<compile_context>
chip_gen: v7x
topology: tpu7x:2x2x1
jax: 0.10.0
libtpu: 0.0.40
codegen_flags: <defaults>
</compile_context>

<pallas_src>
import functools

import jax
import jax.numpy as jnp
from jax.experimental import pallas as pl
from jax.experimental.pallas import tpu as pltpu


_VMEM_LIMIT = 48 * 1024 * 1024  # <= usable VMEM on v7x (64 MiB physical)


# ----------------------------------------------------------------------------
# Pallas kernels
# ----------------------------------------------------------------------------
def _conv_lrelu_kernel(p_ref, w_ref, o_ref, *, slope):
    """One M-tile of (patches @ weight) with fused LeakyReLU (no bias)."""
    acc = jnp.dot(p_ref[...], w_ref[...], preferred_element_type=jnp.float32)
    acc = jnp.where(acc >= 0, acc, slope * acc)
    o_ref[...] = acc.astype(o_ref.dtype)


def _conv_stats_kernel(p_ref, w_ref, o_ref, sum_ref, sq_ref):
    """(patches @ weight) tile + fused per-channel sum / sum-of-squares.

    The (1, N) stats outputs map to the same block for every grid step, so
    they stay resident in VMEM and accumulate across the M (arbitrary) axis.
    """
    @pl.when(pl.program_id(0) == 0)
    def _():
        sum_ref[...] = jnp.zeros_like(sum_ref)
        sq_ref[...] = jnp.zeros_like(sq_ref)

    acc = jnp.dot(p_ref[...], w_ref[...], preferred_element_type=jnp.float32)
    o_ref[...] = acc
    sum_ref[...] += jnp.sum(acc, axis=0, keepdims=True)
    sq_ref[...] += jnp.sum(acc * acc, axis=0, keepdims=True)


def _bn_lrelu_kernel(x_ref, scale_ref, shift_ref, o_ref, *, slope):
    """y = x * scale + shift ; leaky_relu(y, slope).  f32 elementwise math."""
    y = x_ref[...] * scale_ref[...] + shift_ref[...]
    o_ref[...] = jnp.where(y >= 0, y, slope * y).astype(o_ref.dtype)


# ----------------------------------------------------------------------------
# Tiling helper (always returns a divisor of m, or m itself -> full block)
# ----------------------------------------------------------------------------
def _pick_tile(m, cap):
    for t in (1024, 512, 256, 128, 64, 32, 16, 8):
        if t <= cap and t <= m and m % t == 0:
            return t
    return m


# ----------------------------------------------------------------------------
# Pallas wrappers
# ----------------------------------------------------------------------------
def conv_lrelu(patches, w_mat, slope, out_dtype):
    """patches: (M, K) bf16, w_mat: (K, N) bf16 -> (M, N) out_dtype."""
    M, K = patches.shape
    N = w_mat.shape[1]
    tm = _pick_tile(M, cap=256)
    return pl.pallas_call(
        functools.partial(_conv_lrelu_kernel, slope=slope),
        out_shape=jax.ShapeDtypeStruct((M, N), out_dtype),
        grid_spec=pltpu.PrefetchScalarGridSpec(
            num_scalar_prefetch=0,
            grid=(M // tm,),
            in_specs=[
                pl.BlockSpec((tm, K), lambda i: (i, 0)),
                pl.BlockSpec((K, N), lambda i: (0, 0)),
            ],
            out_specs=pl.BlockSpec((tm, N), lambda i: (i, 0)),
        ),
        compiler_params=pltpu.CompilerParams(
            dimension_semantics=("parallel",),
            vmem_limit_bytes=_VMEM_LIMIT,
        ),
    )(patches, w_mat)


def conv_with_stats(patches, w_mat):
    """Conv matmul with fused per-channel sum/sumsq epilogue.

    Returns (conv f32 (M, N), sum f32 (1, N), sumsq f32 (1, N)).
    """
    M, K = patches.shape
    N = w_mat.shape[1]
    tm = _pick_tile(M, cap=256)
    return pl.pallas_call(
        _conv_stats_kernel,
        out_shape=(
            jax.ShapeDtypeStruct((M, N), jnp.float32),
            jax.ShapeDtypeStruct((1, N), jnp.float32),
            jax.ShapeDtypeStruct((1, N), jnp.float32),
        ),
        grid_spec=pltpu.PrefetchScalarGridSpec(
            num_scalar_prefetch=0,
            grid=(M // tm,),
            in_specs=[
                pl.BlockSpec((tm, K), lambda i: (i, 0)),
                pl.BlockSpec((K, N), lambda i: (0, 0)),
            ],
            out_specs=(
                pl.BlockSpec((tm, N), lambda i: (i, 0)),
                pl.BlockSpec((1, N), lambda i: (0, 0)),
                pl.BlockSpec((1, N), lambda i: (0, 0)),
            ),
        ),
        compiler_params=pltpu.CompilerParams(
            dimension_semantics=("arbitrary",),  # stats accumulate across M
            vmem_limit_bytes=_VMEM_LIMIT,
        ),
    )(patches, w_mat)


def bn_lrelu(x, scale, shift, slope, out_dtype):
    """x: (M, N) f32, scale/shift: (1, N) f32 -> (M, N) out_dtype."""
    M, N = x.shape
    tm = _pick_tile(M, cap=1024)  # mem-bound: largest tile that fits
    return pl.pallas_call(
        functools.partial(_bn_lrelu_kernel, slope=slope),
        out_shape=jax.ShapeDtypeStruct((M, N), out_dtype),
        grid_spec=pltpu.PrefetchScalarGridSpec(
            num_scalar_prefetch=0,
            grid=(M // tm,),
            in_specs=[
                pl.BlockSpec((tm, N), lambda i: (i, 0)),
                pl.BlockSpec((1, N), lambda i: (0, 0)),
                pl.BlockSpec((1, N), lambda i: (0, 0)),
            ],
            out_specs=pl.BlockSpec((tm, N), lambda i: (i, 0)),
        ),
        compiler_params=pltpu.CompilerParams(
            dimension_semantics=("parallel",),
            vmem_limit_bytes=_VMEM_LIMIT,
        ),
    )(x, scale, shift)


# ----------------------------------------------------------------------------
# Glue: im2col, parameter setup, layer composition
# ----------------------------------------------------------------------------
def im2col_nhwc(x, k, stride, pad, cin=None):
    """x: (N, H, W, C) -> (N*Ho*Wo, k*k*Cin) with patch order (kh, kw, cin)."""
    if cin is not None:
        x = x[..., :cin]  # drop lane-padding channels, free in the gather
    xp = jnp.pad(x, ((0, 0), (pad, pad), (pad, pad), (0, 0)))
    n, hp, wp, c = xp.shape
    ho = (hp - k) // stride + 1
    wo = (wp - k) // stride + 1
    cols = []
    for di in range(k):
        for dj in range(k):
            cols.append(
                xp[:, di:di + stride * ho:stride, dj:dj + stride * wo:stride, :]
            )
    p = jnp.stack(cols, axis=3)                      # (N, Ho, Wo, k*k, C)
    return p.reshape(n * ho * wo, k * k * c), (n, ho, wo)


def _w_to_mat(w_oikk, pad_out_to=None):
    """(Cout, Cin, kh, kw) -> bf16 (kh*kw*Cin, Cout[padded]) matmul weight."""
    cout, cin, kh, kw = w_oikk.shape
    m = jnp.transpose(w_oikk, (2, 3, 1, 0)).reshape(kh * kw * cin, cout)
    if pad_out_to is not None and pad_out_to > cout:
        m = jnp.pad(m, ((0, 0), (0, pad_out_to - cout)))  # lane-dense output
    return m.astype(jnp.bfloat16)


def conv_bn_lrelu_layer(x_nhwc, w_mat, gamma, beta, cin=None,
                        slope=0.2, eps=1e-5, out_dtype=jnp.bfloat16):
    """Conv2d(k=4,s=2,p=1, bias dropped) + training-mode BN + LeakyReLU."""
    patches, (n, ho, wo) = im2col_nhwc(x_nhwc, 4, 2, 1, cin=cin)
    conv, s, sq = conv_with_stats(patches, w_mat)     # f32
    m = conv.shape[0]
    mean = s / m
    var = jnp.maximum(sq / m - mean * mean, 0.0)      # biased var, clamp cancellation
    inv_std = jax.lax.rsqrt(var + eps)
    scale = gamma.reshape(1, -1) * inv_std
    shift = beta.reshape(1, -1) - mean * scale
    h = bn_lrelu(conv, scale, shift, slope, out_dtype)
    return h.reshape(n, ho, wo, w_mat.shape[1])


def init_params(key):
    ks = jax.random.split(key, 4)
    w1 = 0.05 * jax.random.normal(ks[0], (64, 3, 4, 4), jnp.float32)
    w2 = 0.05 * jax.random.normal(ks[1], (128, 64, 4, 4), jnp.float32)
    w3 = 0.05 * jax.random.normal(ks[2], (256, 128, 4, 4), jnp.float32)
    w4 = 0.05 * jax.random.normal(ks[3], (512, 256, 4, 4), jnp.float32)
    p = {
        # Weight transforms hoisted out of the forward path (bf16 MXU operands).
        "w1_mat": _w_to_mat(w1, pad_out_to=128),   # 64 -> 128 lane-dense pad
        "w2_mat": _w_to_mat(w2),
        "w3_mat": _w_to_mat(w3),
        "w4_mat": _w_to_mat(w4),
        # BatchNorm2d default init: weight = 1, bias = 0
        "g2": jnp.ones((128,), jnp.float32), "be2": jnp.zeros((128,), jnp.float32),
        "g3": jnp.ones((256,), jnp.float32), "be3": jnp.zeros((256,), jnp.float32),
        "g4": jnp.ones((512,), jnp.float32), "be4": jnp.zeros((512,), jnp.float32),
    }
    # conv2/3/4 biases omitted: the following training-mode BatchNorm subtracts
    # the batch mean, so any constant per-channel bias cancels exactly.
    # conv5 exists in __init__ but is unused by forward(); not instantiated.
    return p


def discriminator_forward(x_nchw, p):
    x = jnp.transpose(x_nchw, (0, 2, 3, 1)).astype(jnp.bfloat16)  # NCHW -> NHWC

    # conv1 (bias=False) + leaky_relu(default slope 0.01); Cout padded to 128
    patches, (n, ho, wo) = im2col_nhwc(x, 4, 2, 1)
    h = conv_lrelu(patches, p["w1_mat"], slope=0.01, out_dtype=jnp.bfloat16)
    x = h.reshape(n, ho, wo, 128)

    # conv2 + bn2 + leaky_relu(0.2)   (only first 64 channels of x are real)
    x = conv_bn_lrelu_layer(x, p["w2_mat"], p["g2"], p["be2"], cin=64,
                            out_dtype=jnp.bfloat16)
    # conv3 + bn3 + leaky_relu(0.2)
    x = conv_bn_lrelu_layer(x, p["w3_mat"], p["g3"], p["be3"],
                            out_dtype=jnp.bfloat16)
    # conv4 + bn4 + leaky_relu(0.2)  (final layer -> keep f32)
    x = conv_bn_lrelu_layer(x, p["w4_mat"], p["g4"], p["be4"],
                            out_dtype=jnp.float32)

    # PyTorch x.view(-1, 1) flattens NCHW order: NHWC -> NCHW -> (-1, 1)
    out = jnp.transpose(x, (0, 3, 1, 2)).reshape(-1, 1).astype(jnp.float32)
    return out


if __name__ == "__main__":
    key = jax.random.PRNGKey(0)
    k_in, k_params = jax.random.split(key)

    # Small DCGAN-style input: batch=2, 3 channels, 32x32 spatial
    x = jax.random.normal(k_in, (2, 3, 32, 32), jnp.float32)
    params = init_params(k_params)

    fwd = jax.jit(discriminator_forward)
    out = jax.block_until_ready(fwd(x, params))

    # After 4 stride-2 convs: 32 -> 16 -> 8 -> 4 -> 2, channels 512
    assert out.shape == (2 * 512 * 2 * 2, 1), out.shape
    assert bool(jnp.all(jnp.isfinite(out)))
    print("KERNEL_OK")
</pallas_src>

<mosaic_0001>
module attributes {stable_mosaic.version = 11 : i64} {
  func.func @_conv_lrelu_kernel(%arg0: i32, %arg1: memref<256x48xbf16, #tpu.memory_space<vmem>>, %arg2: memref<48x128xbf16, #tpu.memory_space<vmem>>, %arg3: memref<256x128xbf16, #tpu.memory_space<vmem>>) attributes {dimension_semantics = [#tpu.dimension_semantics<parallel>], iteration_bounds = array<i64: 2>, scalar_prefetch = 0 : i64, scratch_operands = 0 : i64, tpu.core_type = #tpu.core_type<tc>, window_params = [{transform_indices = @transform_0, window_bounds = array<i64: 256, 48>}, {pipeline_mode = #tpu.pipeline_mode<synchronous>, transform_indices = @transform_1, window_bounds = array<i64: 48, 128>}, {transform_indices = @transform_2, window_bounds = array<i64: 256, 128>}]} {
    %c0 = arith.constant 0 : index
    %c0_0 = arith.constant 0 : index
    %0 = vector.load %arg1[%c0, %c0_0] : memref<256x48xbf16, #tpu.memory_space<vmem>>, vector<256x48xbf16>
    %c0_1 = arith.constant 0 : index
    %c0_2 = arith.constant 0 : index
    %1 = vector.load %arg2[%c0_1, %c0_2] : memref<48x128xbf16, #tpu.memory_space<vmem>>, vector<48x128xbf16>
    %cst = arith.constant dense<0.000000e+00> : vector<256x128xf32>
    %2 = tpu.matmul %0, %1, %cst {dimension_numbers = #tpu.dot_dimension_numbers<[1], [0], [0], [1], [0, 0, 1, 1], [], []>} : vector<256x48xbf16>, vector<48x128xbf16>, vector<256x128xf32> -> vector<256x128xf32>
    %cst_3 = arith.constant 0.000000e+00 : f32
    %3 = vector.broadcast %cst_3 : f32 to vector<256x128xf32>
    %4 = arith.cmpf oge, %2, %3 : vector<256x128xf32>
    %cst_4 = arith.constant 0.00999999977 : f32
    %5 = vector.broadcast %cst_4 : f32 to vector<256x128xf32>
    %6 = arith.mulf %5, %2 : vector<256x128xf32>
    %7 = arith.select %4, %2, %6 : vector<256x128xi1>, vector<256x128xf32>
    %8 = arith.truncf %7 : vector<256x128xf32> to vector<256x128xbf16>
    %c0_5 = arith.constant 0 : index
    %c0_6 = arith.constant 0 : index
    %9 = vector.load %arg3[%c0_5, %c0_6] : memref<256x128xbf16, #tpu.memory_space<vmem>>, vector<256x128xbf16>
    tpu.vector_store %arg3[%c0_5, %c0_6], %8 {strides = array<i32>} : memref<256x128xbf16, #tpu.memory_space<vmem>>, vector<256x128xbf16>,
    return
  }
  func.func @transform_0(%arg0: i32) -> (i32, i32) {
    %c0_i32 = arith.constant 0 : i32
    %c0_i32_0 = arith.constant 0 : i32
    return %arg0, %c0_i32 : i32, i32
  }
  func.func @transform_1(%arg0: i32) -> (i32, i32) {
    %c0_i32 = arith.constant 0 : i32
    %c0_i32_0 = arith.constant 0 : i32
    %c0_i32_1 = arith.constant 0 : i32
    return %c0_i32, %c0_i32_0 : i32, i32
  }
  func.func @transform_2(%arg0: i32) -> (i32, i32) {
    %c0_i32 = arith.constant 0 : i32
    %c0_i32_0 = arith.constant 0 : i32
    return %arg0, %c0_i32 : i32, i32
  }
}

module attributes {stable_mosaic.version = 11 : i64} {
  func.func @_conv_stats_kernel(%arg0: i32, %arg1: memref<128x1024xbf16, #tpu.memory_space<vmem>>, %arg2: memref<1024x128xbf16, #tpu.memory_space<vmem>>, %arg3: memref<128x128xf32, #tpu.memory_space<vmem>>, %arg4: memref<1x128xf32, #tpu.memory_space<vmem>>, %arg5: memref<1x128xf32, #tpu.memory_space<vmem>>) attributes {dimension_semantics = [#tpu.dimension_semantics<arbitrary>], iteration_bounds = array<i64: 1>, scalar_prefetch = 0 : i64, scratch_operands = 0 : i64, tpu.core_type = #tpu.core_type<tc>, window_params = [{transform_indices = @transform_0, window_bounds = array<i64: 128, 1024>}, {pipeline_mode = #tpu.pipeline_mode<synchronous>, transform_indices = @transform_1, window_bounds = array<i64: 1024, 128>}, {transform_indices = @transform_2, window_bounds = array<i64: 128, 128>}, {pipeline_mode = #tpu.pipeline_mode<synchronous>, transform_indices = @transform_3, window_bounds = array<i64: 1, 128>}, {pipeline_mode = #tpu.pipeline_mode<synchronous>, transform_indices = @transform_4, window_bounds = array<i64: 1, 128>}]} {
    %c0_i32 = arith.constant 0 : i32
    %0 = arith.cmpi eq, %arg0, %c0_i32 : i32
    %1 = arith.extui %0 : i1 to i32
    %c0_i32_0 = arith.constant 0 : i32
    %2 = arith.cmpi ne, %1, %c0_i32_0 : i32
    scf.if %2 {
      %cst_16 = arith.constant 0.000000e+00 : f32
      %18 = vector.broadcast %cst_16 : f32 to vector<1x128xf32>
      %c0_17 = arith.constant 0 : index
      %c0_18 = arith.constant 0 : index
      %19 = vector.load %arg4[%c0_17, %c0_18] : memref<1x128xf32, #tpu.memory_space<vmem>>, vector<1x128xf32>
      tpu.vector_store %arg4[%c0_17, %c0_18], %18 {strides = array<i32>} : memref<1x128xf32, #tpu.memory_space<vmem>>, vector<1x128xf32>,
      %cst_19 = arith.constant 0.000000e+00 : f32
      %20 = vector.broadcast %cst_19 : f32 to vector<1x128xf32>
      %c0_20 = arith.constant 0 : index
      %c0_21 = arith.constant 0 : index
      %21 = vector.load %arg5[%c0_20, %c0_21] : memref<1x128xf32, #tpu.memory_space<vmem>>, vector<1x128xf32>
      tpu.vector_store %arg5[%c0_20, %c0_21], %20 {strides = array<i32>} : memref<1x128xf32, #tpu.memory_space<vmem>>, vector<1x128xf32>,
    } else {
    }
    %c0 = arith.constant 0 : index
    %c0_1 = arith.constant 0 : index
    %3 = vector.load %arg1[%c0, %c0_1] : memref<128x1024xbf16, #tpu.memory_space<vmem>>, vector<128x1024xbf16>
    %c0_2 = arith.constant 0 : index
    %c0_3 = arith.constant 0 : index
    %4 = vector.load %arg2[%c0_2, %c0_3] : memref<1024x128xbf16, #tpu.memory_space<vmem>>, vector<1024x128xbf16>
    %cst = arith.constant dense<0.000000e+00> : vector<128x128xf32>
    %5 = tpu.matmul %3, %4, %cst {dimension_numbers = #tpu.dot_dimension_numbers<[1], [0], [0], [1], [0, 0, 1, 1], [], []>} : vector<128x1024xbf16>, vector<1024x128xbf16>, vector<128x128xf32> -> vector<128x128xf32>
    %c0_4 = arith.constant 0 : index
    %c0_5 = arith.constant 0 : index
    %6 = vector.load %arg3[%c0_4, %c0_5] : memref<128x128xf32, #tpu.memory_space<vmem>>, vector<128x128xf32>
    tpu.vector_store %arg3[%c0_4, %c0_5], %5 {strides = array<i32>} : memref<128x128xf32, #tpu.memory_space<vmem>>, vector<128x128xf32>,
    %c0_6 = arith.constant 0 : index
    %c0_7 = arith.constant 0 : index
    %7 = vector.load %arg4[%c0_6, %c0_7] : memref<1x128xf32, #tpu.memory_space<vmem>>, vector<1x128xf32>
    %cst_8 = arith.constant dense<0.000000e+00> : vector<128xf32>
    %8 = vector.multi_reduction <add>, %5, %cst_8 [0] : vector<128x128xf32> to vector<128xf32>
    %9 = vector.shape_cast %8 : vector<128xf32> to vector<1x128xf32>
    %10 = arith.addf %7, %9 : vector<1x128xf32>
    %c0_9 = arith.constant 0 : index
    %c0_10 = arith.constant 0 : index
    %11 = vector.load %arg4[%c0_9, %c0_10] : memref<1x128xf32, #tpu.memory_space<vmem>>, vector<1x128xf32>
    tpu.vector_store %arg4[%c0_9, %c0_10], %10 {strides = array<i32>} : memref<1x128xf32, #tpu.memory_space<vmem>>, vector<1x128xf32>,
    %c0_11 = arith.constant 0 : index
    %c0_12 = arith.constant 0 : index
    %12 = vector.load %arg5[%c0_11, %c0_12] : memref<1x128xf32, #tpu.memory_space<vmem>>, vector<1x128xf32>
    %13 = arith.mulf %5, %5 : vector<128x128xf32>
    %cst_13 = arith.constant dense<0.000000e+00> : vector<128xf32>
    %14 = vector.multi_reduction <add>, %13, %cst_13 [0] : vector<128x128xf32> to vector<128xf32>
    %15 = vector.shape_cast %14 : vector<128xf32> to vector<1x128xf32>
    %16 = arith.addf %12, %15 : vector<1x128xf32>
    %c0_14 = arith.constant 0 : index
    %c0_15 = arith.constant 0 : index
    %17 = vector.load %arg5[%c0_14, %c0_15] : memref<1x128xf32, #tpu.memory_space<vmem>>, vector<1x128xf32>
    tpu.vector_store %arg5[%c0_14, %c0_15], %16 {strides = array<i32>} : memref<1x128xf32, #tpu.memory_space<vmem>>, vector<1x128xf32>,
    return
  }
  func.func @transform_0(%arg0: i32) -> (i32, i32) {
    %c0_i32 = arith.constant 0 : i32
    %c0_i32_0 = arith.constant 0 : i32
    return %arg0, %c0_i32 : i32, i32
  }
  func.func @transform_1(%arg0: i32) -> (i32, i32) {
    %c0_i32 = arith.constant 0 : i32
    %c0_i32_0 = arith.constant 0 : i32
    %c0_i32_1 = arith.constant 0 : i32
    return %c0_i32, %c0_i32_0 : i32, i32
  }
  func.func @transform_2(%arg0: i32) -> (i32, i32) {
    %c0_i32 = arith.constant 0 : i32
    %c0_i32_0 = arith.constant 0 : i32
    return %arg0, %c0_i32 : i32, i32
  }
  func.func @transform_3(%arg0: i32) -> (i32, i32) {
    %c0_i32 = arith.constant 0 : i32
    %c0_i32_0 = arith.constant 0 : i32
    %c0_i32_1 = arith.constant 0 : i32
    return %c0_i32, %c0_i32_0 : i32, i32
  }
  func.func @transform_4(%arg0: i32) -> (i32, i32) {
    %c0_i32 = arith.constant 0 : i32
    %c0_i32_0 = arith.constant 0 : i32
    %c0_i32_1 = arith.constant 0 : i32
    return %c0_i32, %c0_i32_0 : i32, i32
  }
}

module attributes {stable_mosaic.version = 11 : i64} {
  func.func @_bn_lrelu_kernel(%arg0: i32, %arg1: memref<128x128xf32, #tpu.memory_space<vmem>>, %arg2: memref<1x128xf32, #tpu.memory_space<vmem>>, %arg3: memref<1x128xf32, #tpu.memory_space<vmem>>, %arg4: memref<128x128xbf16, #tpu.memory_space<vmem>>) attributes {dimension_semantics = [#tpu.dimension_semantics<parallel>], iteration_bounds = array<i64: 1>, scalar_prefetch = 0 : i64, scratch_operands = 0 : i64, tpu.core_type = #tpu.core_type<tc>, window_params = [{transform_indices = @transform_0, window_bounds = array<i64: 128, 128>}, {pipeline_mode = #tpu.pipeline_mode<synchronous>, transform_indices = @transform_1, window_bounds = array<i64: 1, 128>}, {pipeline_mode = #tpu.pipeline_mode<synchronous>, transform_indices = @transform_2, window_bounds = array<i64: 1, 128>}, {transform_indices = @transform_3, window_bounds = array<i64: 128, 128>}]} {
    %c0 = arith.constant 0 : index
    %c0_0 = arith.constant 0 : index
    %0 = vector.load %arg1[%c0, %c0_0] : memref<128x128xf32, #tpu.memory_space<vmem>>, vector<128x128xf32>
    %c0_1 = arith.constant 0 : index
    %c0_2 = arith.constant 0 : index
    %1 = vector.load %arg2[%c0_1, %c0_2] : memref<1x128xf32, #tpu.memory_space<vmem>>, vector<1x128xf32>
    %2 = vector.broadcast %1 : vector<1x128xf32> to vector<128x128xf32>
    %3 = arith.mulf %0, %2 : vector<128x128xf32>
    %c0_3 = arith.constant 0 : index
    %c0_4 = arith.constant 0 : index
    %4 = vector.load %arg3[%c0_3, %c0_4] : memref<1x128xf32, #tpu.memory_space<vmem>>, vector<1x128xf32>
    %5 = vector.broadcast %4 : vector<1x128xf32> to vector<128x128xf32>
    %6 = arith.addf %3, %5 : vector<128x128xf32>
    %cst = arith.constant 0.000000e+00 : f32
    %7 = vector.broadcast %cst : f32 to vector<128x128xf32>
    %8 = arith.cmpf oge, %6, %7 : vector<128x128xf32>
    %cst_5 = arith.constant 2.000000e-01 : f32
    %9 = vector.broadcast %cst_5 : f32 to vector<128x128xf32>
    %10 = arith.mulf %9, %6 : vector<128x128xf32>
    %11 = arith.select %8, %6, %10 : vector<128x128xi1>, vector<128x128xf32>
    %12 = arith.truncf %11 : vector<128x128xf32> to vector<128x128xbf16>
    %c0_6 = arith.constant 0 : index
    %c0_7 = arith.constant 0 : index
    %13 = vector.load %arg4[%c0_6, %c0_7] : memref<128x128xbf16, #tpu.memory_space<vmem>>, vector<128x128xbf16>
    tpu.vector_store %arg4[%c0_6, %c0_7], %12 {strides = array<i32>} : memref<128x128xbf16, #tpu.memory_space<vmem>>, vector<128x128xbf16>,
    return
  }
  func.func @transform_0(%arg0: i32) -> (i32, i32) {
    %c0_i32 = arith.constant 0 : i32
    %c0_i32_0 = arith.constant 0 : i32
    return %arg0, %c0_i32 : i32, i32
  }
  func.func @transform_1(%arg0: i32) -> (i32, i32) {
    %c0_i32 = arith.constant 0 : i32
    %c0_i32_0 = arith.constant 0 : i32
    %c0_i32_1 = arith.constant 0 : i32
    return %c0_i32, %c0_i32_0 : i32, i32
  }
  func.func @transform_2(%arg0: i32) -> (i32, i32) {
    %c0_i32 = arith.constant 0 : i32
    %c0_i32_0 = arith.constant 0 : i32
    %c0_i32_1 = arith.constant 0 : i32
    return %c0_i32, %c0_i32_0 : i32, i32
  }
  func.func @transform_3(%arg0: i32) -> (i32, i32) {
    %c0_i32 = arith.constant 0 : i32
    %c0_i32_0 = arith.constant 0 : i32
    return %arg0, %c0_i32 : i32, i32
  }
}

module attributes {stable_mosaic.version = 11 : i64} {
  func.func @_conv_stats_kernel(%arg0: i32, %arg1: memref<32x2048xbf16, #tpu.memory_space<vmem>>, %arg2: memref<2048x256xbf16, #tpu.memory_space<vmem>>, %arg3: memref<32x256xf32, #tpu.memory_space<vmem>>, %arg4: memref<1x256xf32, #tpu.memory_space<vmem>>, %arg5: memref<1x256xf32, #tpu.memory_space<vmem>>) attributes {dimension_semantics = [#tpu.dimension_semantics<arbitrary>], iteration_bounds = array<i64: 1>, scalar_prefetch = 0 : i64, scratch_operands = 0 : i64, tpu.core_type = #tpu.core_type<tc>, window_params = [{transform_indices = @transform_0, window_bounds = array<i64: 32, 2048>}, {pipeline_mode = #tpu.pipeline_mode<synchronous>, transform_indices = @transform_1, window_bounds = array<i64: 2048, 256>}, {transform_indices = @transform_2, window_bounds = array<i64: 32, 256>}, {pipeline_mode = #tpu.pipeline_mode<synchronous>, transform_indices = @transform_3, window_bounds = array<i64: 1, 256>}, {pipeline_mode = #tpu.pipeline_mode<synchronous>, transform_indices = @transform_4, window_bounds = array<i64: 1, 256>}]} {
    %c0_i32 = arith.constant 0 : i32
    %0 = arith.cmpi eq, %arg0, %c0_i32 : i32
    %1 = arith.extui %0 : i1 to i32
    %c0_i32_0 = arith.constant 0 : i32
    %2 = arith.cmpi ne, %1, %c0_i32_0 : i32
    scf.if %2 {
      %cst_16 = arith.constant 0.000000e+00 : f32
      %18 = vector.broadcast %cst_16 : f32 to vector<1x256xf32>
      %c0_17 = arith.constant 0 : index
      %c0_18 = arith.constant 0 : index
      %19 = vector.load %arg4[%c0_17, %c0_18] : memref<1x256xf32, #tpu.memory_space<vmem>>, vector<1x256xf32>
      tpu.vector_store %arg4[%c0_17, %c0_18], %18 {strides = array<i32>} : memref<1x256xf32, #tpu.memory_space<vmem>>, vector<1x256xf32>,
      %cst_19 = arith.constant 0.000000e+00 : f32
      %20 = vector.broadcast %cst_19 : f32 to vector<1x256xf32>
      %c0_20 = arith.constant 0 : index
      %c0_21 = arith.constant 0 : index
      %21 = vector.load %arg5[%c0_20, %c0_21] : memref<1x256xf32, #tpu.memory_space<vmem>>, vector<1x256xf32>
      tpu.vector_store %arg5[%c0_20, %c0_21], %20 {strides = array<i32>} : memref<1x256xf32, #tpu.memory_space<vmem>>, vector<1x256xf32>,
    } else {
    }
    %c0 = arith.constant 0 : index
    %c0_1 = arith.constant 0 : index
    %3 = vector.load %arg1[%c0, %c0_1] : memref<32x2048xbf16, #tpu.memory_space<vmem>>, vector<32x2048xbf16>
    %c0_2 = arith.constant 0 : index
    %c0_3 = arith.constant 0 : index
    %4 = vector.load %arg2[%c0_2, %c0_3] : memref<2048x256xbf16, #tpu.memory_space<vmem>>, vector<2048x256xbf16>
    %cst = arith.constant dense<0.000000e+00> : vector<32x256xf32>
    %5 = tpu.matmul %3, %4, %cst {dimension_numbers = #tpu.dot_dimension_numbers<[1], [0], [0], [1], [0, 0, 1, 1], [], []>} : vector<32x2048xbf16>, vector<2048x256xbf16>, vector<32x256xf32> -> vector<32x256xf32>
    %c0_4 = arith.constant 0 : index
    %c0_5 = arith.constant 0 : index
    %6 = vector.load %arg3[%c0_4, %c0_5] : memref<32x256xf32, #tpu.memory_space<vmem>>, vector<32x256xf32>
    tpu.vector_store %arg3[%c0_4, %c0_5], %5 {strides = array<i32>} : memref<32x256xf32, #tpu.memory_space<vmem>>, vector<32x256xf32>,
    %c0_6 = arith.constant 0 : index
    %c0_7 = arith.constant 0 : index
    %7 = vector.load %arg4[%c0_6, %c0_7] : memref<1x256xf32, #tpu.memory_space<vmem>>, vector<1x256xf32>
    %cst_8 = arith.constant dense<0.000000e+00> : vector<256xf32>
    %8 = vector.multi_reduction <add>, %5, %cst_8 [0] : vector<32x256xf32> to vector<256xf32>
    %9 = vector.shape_cast %8 : vector<256xf32> to vector<1x256xf32>
    %10 = arith.addf %7, %9 : vector<1x256xf32>
    %c0_9 = arith.constant 0 : index
    %c0_10 = arith.constant 0 : index
    %11 = vector.load %arg4[%c0_9, %c0_10] : memref<1x256xf32, #tpu.memory_space<vmem>>, vector<1x256xf32>
    tpu.vector_store %arg4[%c0_9, %c0_10], %10 {strides = array<i32>} : memref<1x256xf32, #tpu.memory_space<vmem>>, vector<1x256xf32>,
    %c0_11 = arith.constant 0 : index
    %c0_12 = arith.constant 0 : index
    %12 = vector.load %arg5[%c0_11, %c0_12] : memref<1x256xf32, #tpu.memory_space<vmem>>, vector<1x256xf32>
    %13 = arith.mulf %5, %5 : vector<32x256xf32>
    %cst_13 = arith.constant dense<0.000000e+00> : vector<256xf32>
    %14 = vector.multi_reduction <add>, %13, %cst_13 [0] : vector<32x256xf32> to vector<256xf32>
    %15 = vector.shape_cast %14 : vector<256xf32> to vector<1x256xf32>
    %16 = arith.addf %12, %15 : vector<1x256xf32>
    %c0_14 = arith.constant 0 : index
    %c0_15 = arith.constant 0 : index
    %17 = vector.load %arg5[%c0_14, %c0_15] : memref<1x256xf32, #tpu.memory_space<vmem>>, vector<1x256xf32>
    tpu.vector_store %arg5[%c0_14, %c0_15], %16 {strides = array<i32>} : memref<1x256xf32, #tpu.memory_space<vmem>>, vector<1x256xf32>,
    return
  }
  func.func @transform_0(%arg0: i32) -> (i32, i32) {
    %c0_i32 = arith.constant 0 : i32
    %c0_i32_0 = arith.constant 0 : i32
    return %arg0, %c0_i32 : i32, i32
  }
  func.func @transform_1(%arg0: i32) -> (i32, i32) {
    %c0_i32 = arith.constant 0 : i32
    %c0_i32_0 = arith.constant 0 : i32
    %c0_i32_1 = arith.constant 0 : i32
    return %c0_i32, %c0_i32_0 : i32, i32
  }
  func.func @transform_2(%arg0: i32) -> (i32, i32) {
    %c0_i32 = arith.constant 0 : i32
    %c0_i32_0 = arith.constant 0 : i32
    return %arg0, %c0_i32 : i32, i32
  }
  func.func @transform_3(%arg0: i32) -> (i32, i32) {
    %c0_i32 = arith.constant 0 : i32
    %c0_i32_0 = arith.constant 0 : i32
    %c0_i32_1 = arith.constant 0 : i32
    return %c0_i32, %c0_i32_0 : i32, i32
  }
  func.func @transform_4(%arg0: i32) -> (i32, i32) {
    %c0_i32 = arith.constant 0 : i32
    %c0_i32_0 = arith.constant 0 : i32
    %c0_i32_1 = arith.constant 0 : i32
    return %c0_i32, %c0_i32_0 : i32, i32
  }
}

module attributes {stable_mosaic.version = 11 : i64} {
  func.func @_bn_lrelu_kernel(%arg0: i32, %arg1: memref<32x256xf32, #tpu.memory_space<vmem>>, %arg2: memref<1x256xf32, #tpu.memory_space<vmem>>, %arg3: memref<1x256xf32, #tpu.memory_space<vmem>>, %arg4: memref<32x256xbf16, #tpu.memory_space<vmem>>) attributes {dimension_semantics = [#tpu.dimension_semantics<parallel>], iteration_bounds = array<i64: 1>, scalar_prefetch = 0 : i64, scratch_operands = 0 : i64, tpu.core_type = #tpu.core_type<tc>, window_params = [{transform_indices = @transform_0, window_bounds = array<i64: 32, 256>}, {pipeline_mode = #tpu.pipeline_mode<synchronous>, transform_indices = @transform_1, window_bounds = array<i64: 1, 256>}, {pipeline_mode = #tpu.pipeline_mode<synchronous>, transform_indices = @transform_2, window_bounds = array<i64: 1, 256>}, {transform_indices = @transform_3, window_bounds = array<i64: 32, 256>}]} {
    %c0 = arith.constant 0 : index
    %c0_0 = arith.constant 0 : index
    %0 = vector.load %arg1[%c0, %c0_0] : memref<32x256xf32, #tpu.memory_space<vmem>>, vector<32x256xf32>
    %c0_1 = arith.constant 0 : index
    %c0_2 = arith.constant 0 : index
    %1 = vector.load %arg2[%c0_1, %c0_2] : memref<1x256xf32, #tpu.memory_space<vmem>>, vector<1x256xf32>
    %2 = vector.broadcast %1 : vector<1x256xf32> to vector<32x256xf32>
    %3 = arith.mulf %0, %2 : vector<32x256xf32>
    %c0_3 = arith.constant 0 : index
    %c0_4 = arith.constant 0 : index
    %4 = vector.load %arg3[%c0_3, %c0_4] : memref<1x256xf32, #tpu.memory_space<vmem>>, vector<1x256xf32>
    %5 = vector.broadcast %4 : vector<1x256xf32> to vector<32x256xf32>
    %6 = arith.addf %3, %5 : vector<32x256xf32>
    %cst = arith.constant 0.000000e+00 : f32
    %7 = vector.broadcast %cst : f32 to vector<32x256xf32>
    %8 = arith.cmpf oge, %6, %7 : vector<32x256xf32>
    %cst_5 = arith.constant 2.000000e-01 : f32
    %9 = vector.broadcast %cst_5 : f32 to vector<32x256xf32>
    %10 = arith.mulf %9, %6 : vector<32x256xf32>
    %11 = arith.select %8, %6, %10 : vector<32x256xi1>, vector<32x256xf32>
    %12 = arith.truncf %11 : vector<32x256xf32> to vector<32x256xbf16>
    %c0_6 = arith.constant 0 : index
    %c0_7 = arith.constant 0 : index
    %13 = vector.load %arg4[%c0_6, %c0_7] : memref<32x256xbf16, #tpu.memory_space<vmem>>, vector<32x256xbf16>
    tpu.vector_store %arg4[%c0_6, %c0_7], %12 {strides = array<i32>} : memref<32x256xbf16, #tpu.memory_space<vmem>>, vector<32x256xbf16>,
    return
  }
  func.func @transform_0(%arg0: i32) -> (i32, i32) {
    %c0_i32 = arith.constant 0 : i32
    %c0_i32_0 = arith.constant 0 : i32
    return %arg0, %c0_i32 : i32, i32
  }
  func.func @transform_1(%arg0: i32) -> (i32, i32) {
    %c0_i32 = arith.constant 0 : i32
    %c0_i32_0 = arith.constant 0 : i32
    %c0_i32_1 = arith.constant 0 : i32
    return %c0_i32, %c0_i32_0 : i32, i32
  }
  func.func @transform_2(%arg0: i32) -> (i32, i32) {
    %c0_i32 = arith.constant 0 : i32
    %c0_i32_0 = arith.constant 0 : i32
    %c0_i32_1 = arith.constant 0 : i32
    return %c0_i32, %c0_i32_0 : i32, i32
  }
  func.func @transform_3(%arg0: i32) -> (i32, i32) {
    %c0_i32 = arith.constant 0 : i32
    %c0_i32_0 = arith.constant 0 : i32
    return %arg0, %c0_i32 : i32, i32
  }
}

module attributes {stable_mosaic.version = 11 : i64} {
  func.func @_bn_lrelu_kernel(%arg0: i32, %arg1: memref<8x512xf32, #tpu.memory_space<vmem>>, %arg2: memref<1x512xf32, #tpu.memory_space<vmem>>, %arg3: memref<1x512xf32, #tpu.memory_space<vmem>>, %arg4: memref<8x512xf32, #tpu.memory_space<vmem>>) attributes {dimension_semantics = [#tpu.dimension_semantics<parallel>], iteration_bounds = array<i64: 1>, scalar_prefetch = 0 : i64, scratch_operands = 0 : i64, tpu.core_type = #tpu.core_type<tc>, window_params = [{transform_indices = @transform_0, window_bounds = array<i64: 8, 512>}, {pipeline_mode = #tpu.pipeline_mode<synchronous>, transform_indices = @transform_1, window_bounds = array<i64: 1, 512>}, {pipeline_mode = #tpu.pipeline_mode<synchronous>, transform_indices = @transform_2, window_bounds = array<i64: 1, 512>}, {transform_indices = @transform_3, window_bounds = array<i64: 8, 512>}]} {
    %c0 = arith.constant 0 : index
    %c0_0 = arith.constant 0 : index
    %0 = vector.load %arg1[%c0, %c0_0] : memref<8x512xf32, #tpu.memory_space<vmem>>, vector<8x512xf32>
    %c0_1 = arith.constant 0 : index
    %c0_2 = arith.constant 0 : index
    %1 = vector.load %arg2[%c0_1, %c0_2] : memref<1x512xf32, #tpu.memory_space<vmem>>, vector<1x512xf32>
    %2 = vector.broadcast %1 : vector<1x512xf32> to vector<8x512xf32>
    %3 = arith.mulf %0, %2 : vector<8x512xf32>
    %c0_3 = arith.constant 0 : index
    %c0_4 = arith.constant 0 : index
    %4 = vector.load %arg3[%c0_3, %c0_4] : memref<1x512xf32, #tpu.memory_space<vmem>>, vector<1x512xf32>
    %5 = vector.broadcast %4 : vector<1x512xf32> to vector<8x512xf32>
    %6 = arith.addf %3, %5 : vector<8x512xf32>
    %cst = arith.constant 0.000000e+00 : f32
    %7 = vector.broadcast %cst : f32 to vector<8x512xf32>
    %8 = arith.cmpf oge, %6, %7 : vector<8x512xf32>
    %cst_5 = arith.constant 2.000000e-01 : f32
    %9 = vector.broadcast %cst_5 : f32 to vector<8x512xf32>
    %10 = arith.mulf %9, %6 : vector<8x512xf32>
    %11 = arith.select %8, %6, %10 : vector<8x512xi1>, vector<8x512xf32>
    %c0_6 = arith.constant 0 : index
    %c0_7 = arith.constant 0 : index
    %12 = vector.load %arg4[%c0_6, %c0_7] : memref<8x512xf32, #tpu.memory_space<vmem>>, vector<8x512xf32>
    tpu.vector_store %arg4[%c0_6, %c0_7], %11 {strides = array<i32>} : memref<8x512xf32, #tpu.memory_space<vmem>>, vector<8x512xf32>,
    return
  }
  func.func @transform_0(%arg0: i32) -> (i32, i32) {
    %c0_i32 = arith.constant 0 : i32
    %c0_i32_0 = arith.constant 0 : i32
    return %arg0, %c0_i32 : i32, i32
  }
  func.func @transform_1(%arg0: i32) -> (i32, i32) {
    %c0_i32 = arith.constant 0 : i32
    %c0_i32_0 = arith.constant 0 : i32
    %c0_i32_1 = arith.constant 0 : i32
    return %c0_i32, %c0_i32_0 : i32, i32
  }
  func.func @transform_2(%arg0: i32) -> (i32, i32) {
    %c0_i32 = arith.constant 0 : i32
    %c0_i32_0 = arith.constant 0 : i32
    %c0_i32_1 = arith.constant 0 : i32
    return %c0_i32, %c0_i32_0 : i32, i32
  }
  func.func @transform_3(%arg0: i32) -> (i32, i32) {
    %c0_i32 = arith.constant 0 : i32
    %c0_i32_0 = arith.constant 0 : i32
    return %arg0, %c0_i32 : i32, i32
  }
}

module attributes {stable_mosaic.version = 11 : i64} {
  func.func @_conv_stats_kernel(%arg0: i32, %arg1: memref<8x4096xbf16, #tpu.memory_space<vmem>>, %arg2: memref<4096x512xbf16, #tpu.memory_space<vmem>>, %arg3: memref<8x512xf32, #tpu.memory_space<vmem>>, %arg4: memref<1x512xf32, #tpu.memory_space<vmem>>, %arg5: memref<1x512xf32, #tpu.memory_space<vmem>>) attributes {dimension_semantics = [#tpu.dimension_semantics<arbitrary>], iteration_bounds = array<i64: 1>, scalar_prefetch = 0 : i64, scratch_operands = 0 : i64, tpu.core_type = #tpu.core_type<tc>, window_params = [{transform_indices = @transform_0, window_bounds = array<i64: 8, 4096>}, {pipeline_mode = #tpu.pipeline_mode<synchronous>, transform_indices = @transform_1, window_bounds = array<i64: 4096, 512>}, {transform_indices = @transform_2, window_bounds = array<i64: 8, 512>}, {pipeline_mode = #tpu.pipeline_mode<synchronous>, transform_indices = @transform_3, window_bounds = array<i64: 1, 512>}, {pipeline_mode = #tpu.pipeline_mode<synchronous>, transform_indices = @transform_4, window_bounds = array<i64: 1, 512>}]} {
    %c0_i32 = arith.constant 0 : i32
    %0 = arith.cmpi eq, %arg0, %c0_i32 : i32
    %1 = arith.extui %0 : i1 to i32
    %c0_i32_0 = arith.constant 0 : i32
    %2 = arith.cmpi ne, %1, %c0_i32_0 : i32
    scf.if %2 {
      %cst_16 = arith.constant 0.000000e+00 : f32
      %18 = vector.broadcast %cst_16 : f32 to vector<1x512xf32>
      %c0_17 = arith.constant 0 : index
      %c0_18 = arith.constant 0 : index
      %19 = vector.load %arg4[%c0_17, %c0_18] : memref<1x512xf32, #tpu.memory_space<vmem>>, vector<1x512xf32>
      tpu.vector_store %arg4[%c0_17, %c0_18], %18 {strides = array<i32>} : memref<1x512xf32, #tpu.memory_space<vmem>>, vector<1x512xf32>,
      %cst_19 = arith.constant 0.000000e+00 : f32
      %20 = vector.broadcast %cst_19 : f32 to vector<1x512xf32>
      %c0_20 = arith.constant 0 : index
      %c0_21 = arith.constant 0 : index
      %21 = vector.load %arg5[%c0_20, %c0_21] : memref<1x512xf32, #tpu.memory_space<vmem>>, vector<1x512xf32>
      tpu.vector_store %arg5[%c0_20, %c0_21], %20 {strides = array<i32>} : memref<1x512xf32, #tpu.memory_space<vmem>>, vector<1x512xf32>,
    } else {
    }
    %c0 = arith.constant 0 : index
    %c0_1 = arith.constant 0 : index
    %3 = vector.load %arg1[%c0, %c0_1] : memref<8x4096xbf16, #tpu.memory_space<vmem>>, vector<8x4096xbf16>
    %c0_2 = arith.constant 0 : index
    %c0_3 = arith.constant 0 : index
    %4 = vector.load %arg2[%c0_2, %c0_3] : memref<4096x512xbf16, #tpu.memory_space<vmem>>, vector<4096x512xbf16>
    %cst = arith.constant dense<0.000000e+00> : vector<8x512xf32>
    %5 = tpu.matmul %3, %4, %cst {dimension_numbers = #tpu.dot_dimension_numbers<[1], [0], [0], [1], [0, 0, 1, 1], [], []>} : vector<8x4096xbf16>, vector<4096x512xbf16>, vector<8x512xf32> -> vector<8x512xf32>
    %c0_4 = arith.constant 0 : index
    %c0_5 = arith.constant 0 : index
    %6 = vector.load %arg3[%c0_4, %c0_5] : memref<8x512xf32, #tpu.memory_space<vmem>>, vector<8x512xf32>
    tpu.vector_store %arg3[%c0_4, %c0_5], %5 {strides = array<i32>} : memref<8x512xf32, #tpu.memory_space<vmem>>, vector<8x512xf32>,
    %c0_6 = arith.constant 0 : index
    %c0_7 = arith.constant 0 : index
    %7 = vector.load %arg4[%c0_6, %c0_7] : memref<1x512xf32, #tpu.memory_space<vmem>>, vector<1x512xf32>
    %cst_8 = arith.constant dense<0.000000e+00> : vector<512xf32>
    %8 = vector.multi_reduction <add>, %5, %cst_8 [0] : vector<8x512xf32> to vector<512xf32>
    %9 = vector.shape_cast %8 : vector<512xf32> to vector<1x512xf32>
    %10 = arith.addf %7, %9 : vector<1x512xf32>
    %c0_9 = arith.constant 0 : index
    %c0_10 = arith.constant 0 : index
    %11 = vector.load %arg4[%c0_9, %c0_10] : memref<1x512xf32, #tpu.memory_space<vmem>>, vector<1x512xf32>
    tpu.vector_store %arg4[%c0_9, %c0_10], %10 {strides = array<i32>} : memref<1x512xf32, #tpu.memory_space<vmem>>, vector<1x512xf32>,
    %c0_11 = arith.constant 0 : index
    %c0_12 = arith.constant 0 : index
    %12 = vector.load %arg5[%c0_11, %c0_12] : memref<1x512xf32, #tpu.memory_space<vmem>>, vector<1x512xf32>
    %13 = arith.mulf %5, %5 : vector<8x512xf32>
    %cst_13 = arith.constant dense<0.000000e+00> : vector<512xf32>
    %14 = vector.multi_reduction <add>, %13, %cst_13 [0] : vector<8x512xf32> to vector<512xf32>
    %15 = vector.shape_cast %14 : vector<512xf32> to vector<1x512xf32>
    %16 = arith.addf %12, %15 : vector<1x512xf32>
    %c0_14 = arith.constant 0 : index
    %c0_15 = arith.constant 0 : index
    %17 = vector.load %arg5[%c0_14, %c0_15] : memref<1x512xf32, #tpu.memory_space<vmem>>, vector<1x512xf32>
    tpu.vector_store %arg5[%c0_14, %c0_15], %16 {strides = array<i32>} : memref<1x512xf32, #tpu.memory_space<vmem>>, vector<1x512xf32>,
    return
  }
  func.func @transform_0(%arg0: i32) -> (i32, i32) {
    %c0_i32 = arith.constant 0 : i32
    %c0_i32_0 = arith.constant 0 : i32
    return %arg0, %c0_i32 : i32, i32
  }
  func.func @transform_1(%arg0: i32) -> (i32, i32) {
    %c0_i32 = arith.constant 0 : i32
    %c0_i32_0 = arith.constant 0 : i32
    %c0_i32_1 = arith.constant 0 : i32
    return %c0_i32, %c0_i32_0 : i32, i32
  }
  func.func @transform_2(%arg0: i32) -> (i32, i32) {
    %c0_i32 = arith.constant 0 : i32
    %c0_i32_0 = arith.constant 0 : i32
    return %arg0, %c0_i32 : i32, i32
  }
  func.func @transform_3(%arg0: i32) -> (i32, i32) {
    %c0_i32 = arith.constant 0 : i32
    %c0_i32_0 = arith.constant 0 : i32
    %c0_i32_1 = arith.constant 0 : i32
    return %c0_i32, %c0_i32_0 : i32, i32
  }
  func.func @transform_4(%arg0: i32) -> (i32, i32) {
    %c0_i32 = arith.constant 0 : i32
    %c0_i32_0 = arith.constant 0 : i32
    %c0_i32_1 = arith.constant 0 : i32
    return %c0_i32, %c0_i32_0 : i32, i32
  }
}

</mosaic_0001>

<bundles_post_ra>
// kernel: discriminator_forward.7
= control target key start
LH: loop header
LB: loop body
LE: loop exit
PB: predicated region body
PF: predicated region fallthrough
CT: control target
= control target key end

     0   :  { %7 = vsyncpa [#allocation3], 0  ;;  %s1201_s9 = smov 0   ;;  %s1322_s0 = inlined_call_operand.vmem [shape: bf16[512,48], index: 0, kind: input, shape index: {}]   ;;  %s1323_s1 = inlined_call_operand.hbm [shape: bf16[48,128], index: 1, kind: input, shape index: {}]   ;;  %s1324_s2 = inlined_call_operand.vmem [shape: bf16[512,128], index: 2, kind: output, shape index: {}]  }
   0x1 LB: > { %s833_s10 = sadd.s32 4294967295, %s1181_s9   ;;  %p835_p0 = scmp.ge.s32.totalorder %s1181_s9, 1  ;;  %s1181_s9 = sphi %s1201_s9, %s13_s9  }
   0x2   : > { %p91_p1 = scmp.lt.s32.totalorder %s1181_s9, 3  ;;  %s1183_s11 = smov [#allocation2]  }
   0x3   : > { %s103_s12 = sshll.u32 %s1183_s11, 4  ;;  %p1215_p3 = scmp.eq.s32.totalorder %s833_s10, 0  ;;  %s104_s12 = int_to_ptr.vmem [resolvable:$true] %s103_s12 }
   0x4   : > { %p1209_p2 = pnand %p835_p0, %p91_p1  ;;  %s1143_s18 = scalar_lea.hbm %s1323_s1, 384 }
   0x5   : > { %s1329_s14 = scalar_select %p1215_p3, 1, 0 }
   0x6   : > { %s1328_s13 = scalar_select %p1209_p2, 1, 0 }
   0x7   : > { %p1107_p4 = pneg %p1209_p2  ;;  %p1144_p6 = scmp.ne.s32.totalorder %s1323_s1, %s1143_s18 }
   0x8   : > { %p1150_p10 = scmp.lt.u32.totalorder %s1143_s18, %s1323_s1 }
   0x9   : > { %p1223_p5 = pnand %p1215_p3, %p1107_p4 }
   0xb   : > { %p1145_p7 = pneg %p1223_p5 }
   0xd   : > { %p1146_p8 = pnand %p1145_p7, %p1144_p6 }
   0xf   : > { %p1147_p9 = pneg %p1146_p8 }
  0x11   : > { %p1152_p11 = pnand %p1150_p10, %p1147_p9 }
  0x13   : > { %1155 = shalt.err (!%p1152_p11)
}
  0x14   : > { %s1156_s23 = scalar_lea.vmem %s104_s12, 384  ;;  %p1164_p1 = scmp.lt.s32.totalorder %s104_s12, %s104_s12 }
  0x15   : > { %p1157_p12 = scmp.ne.s32.totalorder %s104_s12, %s1156_s23  ;;  %p1165_p4 = scmp.lt.s32.totalorder %s1156_s23, %s1156_s23 }
  0x17   : > { %p1159_p13 = pnand %p1157_p12, %p1145_p7  ;;  %p1166_p3 = por %p1165_p4, %p1164_p1 }
  0x19   : > { %p1160_p0 = pneg %p1159_p13 }
  0x1b   : > { %p1167_p2 = pnand %p1166_p3, %p1160_p0 }
  0x1d   : > { %1170 = shalt.err (!%p1167_p2)
}
  0x1e   : > { %s1184_s24 = smov 64   ;;  %s1185_s25 = smov 4  }
  0x1f   : > { %1110 = dma.hbm_to_vmem [thread:$0]  (!%p1223_p5), %s1323_s1, 384, %s104_s12, [#allocation3], %s1184_s24, %s1184_s24, %s1185_s25  }
  0x20   : > { %p1331_p6 = scmp.ne.s32.totalorder %s1328_s13, 0 }
  0x21   : > { %p1332_p8 = scmp.ne.s32.totalorder (!%p1331_p6), %s1329_s14, 0 }
  0x22   : > { %128 = sbr.rel (%p1331_p6) target bundleno = 302 (0x12e), region = 28 }
  0x29   : > { %1176 = dma.done.wait (%p1332_p8), [#allocation3], 384  }
  0x2a   : > { %1178 = vsyncadd (%p1332_p8), [#allocation3], 4294966912  ;;  %s840_s28 = sshll.u32 %s833_s10, 5  ;;  %v1124_v0 = vld [vmem:[#allocation2] sm:$0xff]   ;;  %v1125_v1 = vld [vmem:[#allocation2 + $0x8] sm:$0xff]   ;;  %vm299_vm0 = vcmask 392192  }
  0x2b   : > { %p151_p2 = scmp.lt.s32.totalorder %s840_s28, 63  ;;  %1059 = vmatprep.subr.bf16.mxu0 %v1124_v0  ;;  %1097 = vmatprep.subr.bf16.mxu1 %v1124_v0  ;;  %v1126_v2 = vld [vmem:[#allocation2 + $0x10] sm:$0xff]  }
  0x2c   : > { %1060 = vmatpush3.bf16.msra.mxu0 %v1124_v0  ;;  %1100 = vmatpush3.bf16.msra.mxu1 %v1124_v0 }
  0x2d   : > { %s1334_s28 = smov (!%p151_p2, %s840_s28), 63  ;;  %1061 = vmatprep.subr.bf16.mxu0 %v1125_v1  ;;  %1098 = vmatprep.subr.bf16.mxu1 %v1125_v1 }
  0x2e   : > { %s841_s29 = sshll.u32 %s1334_s28, 2 }
  0x2f   : > { %s1259_s4 = scalar_lea.vmem %s1322_s0, %s841_s29  ;;  %s1298_s7 = scalar_lea.vmem %s1324_s2, %s841_s29 }
  0x30   : > { %v1127_v3 = vld [vmem:[%s1259_s4] sm:$0xff]   ;;  %1062 = vmatpush3.bf16.msra.mxu0 %v1125_v1  ;;  %1101 = vmatpush3.bf16.msra.mxu1 %v1125_v1  ;;  %v1129_v5 = vld [vmem:[%s1259_s4 + $0x8] sm:$0xff]   ;;  %v1131_v7 = vld [vmem:[%s1259_s4 + $0x10] sm:$0xff]  }
  0x31   : > { %v1128_v4 = vld [vmem:[%s1259_s4 + $0x40] sm:$0xff]   ;;  %1065 = vmatprep.mubr.msk.bf16.mxu0 %vm299_vm0, %v1127_v3  ;;  %1063 = vmatprep.subr.bf16.mxu0 %v1126_v2  ;;  %v1130_v6 = vld [vmem:[%s1259_s4 + $0x48] sm:$0xff]   ;;  %v1132_v8 = vld [vmem:[%s1259_s4 + $0x50] sm:$0xff]  }
  0x32   : > { %1081 = vmatprep.mubr.msk.bf16.mxu1 %vm299_vm0, %v1128_v4  ;;  %1099 = vmatprep.subr.bf16.mxu1 %v1126_v2  ;;  %v1133_v9 = vld [vmem:[%s1259_s4 + $0x18] sm:$0xff]   ;;  %v1135_v11 = vld [vmem:[%s1259_s4 + $0x20] sm:$0xff]   ;;  %v1137_v13 = vld [vmem:[%s1259_s4 + $0x28] sm:$0xff]  }
  0x33   : > { %v1134_v10 = vld [vmem:[%s1259_s4 + $0x58] sm:$0xff]   ;;  %v1136_v12 = vld [vmem:[%s1259_s4 + $0x60] sm:$0xff]   ;;  %v1138_v14 = vld [vmem:[%s1259_s4 + $0x68] sm:$0xff]  }
  0x34   : > { %1064 = vmatpush3.bf16.msra.mxu0 %v1126_v2  ;;  %1102 = vmatpush3.bf16.msra.mxu1 %v1126_v2  ;;  %v1139_v15 = vld [vmem:[%s1259_s4 + $0x30] sm:$0xff]   ;;  %v1141_v17 = vld [vmem:[%s1259_s4 + $0x38] sm:$0xff]  }
  0x35   : > { %v1140_v16 = vld [vmem:[%s1259_s4 + $0x70] sm:$0xff]   ;;  %v1142_v18 = vld [vmem:[%s1259_s4 + $0x78] sm:$0xff]  }
  0x37   : > { %1066 = vmatmul.mubr.msk.bf16.vlgmr.msra.gmra.mrb[0].mxu0 %vm299_vm0, %v1129_v5  ;;  %1082 = vmatmul.mubr.msk.bf16.vlgmr.msra.gmra.mrb[0].mxu1 %vm299_vm0, %v1130_v6 }
  0x38   : > { %1069 = vmatprep.mubr.msk.bf16.mxu0 %vm299_vm0, %v1131_v7  ;;  %1085 = vmatprep.mubr.msk.bf16.mxu1 %vm299_vm0, %v1132_v8 }
  0x3f   : > { %1070 = vmatmul.mubr.msk.bf16.gmra.mrb[4].mxu0 %vm299_vm0, %v1133_v9  ;;  %1086 = vmatmul.mubr.msk.bf16.gmra.mrb[4].mxu1 %vm299_vm0, %v1134_v10 }
  0x40   : > { %1073 = vmatprep.mubr.msk.bf16.mxu0 %vm299_vm0, %v1135_v11  ;;  %1089 = vmatprep.mubr.msk.bf16.mxu1 %vm299_vm0, %v1136_v12 }
  0x47   : > { %1074 = vmatmul.mubr.msk.bf16.gmra.mrb[8].mxu0 %vm299_vm0, %v1137_v13  ;;  %1090 = vmatmul.mubr.msk.bf16.gmra.mrb[8].mxu1 %vm299_vm0, %v1138_v14 }
  0x48   : > { %1077 = vmatprep.mubr.msk.bf16.mxu0 %vm299_vm0, %v1139_v15  ;;  %1093 = vmatprep.mubr.msk.bf16.mxu1 %vm299_vm0, %v1140_v16 }
  0x4f   : > { %1078 = vmatmul.mubr.msk.bf16.gmra.mrb[12].mxu0 %vm299_vm0, %v1141_v17  ;;  %1094 = vmatmul.mubr.msk.bf16.gmra.mrb[12].mxu1 %vm299_vm0, %v1142_v18 }
 0x10a   : > { %v1067_v19 = vpop.f32.mrb[0].mxu0  ;;  %v1083_v20 = vpop.f32.mrb[0].mxu1 }
 0x10b   : > { %vm511_vm1 = vcmp.ge.f32.partialorder %v1067_v19, 0.0  ;;  %v543_v21 = vmul.f32 0.01, %v1067_v19  ;;  %v559_v22 = vmul.f32 0.01, %v1083_v20  ;;  %vm527_vm2 = vcmp.ge.f32.partialorder %v1083_v20, 0.0 }
 0x10c   : > { %v382_v23 = vpop.f32.mrb[1].mxu0  ;;  %v446_v24 = vpop.f32.mrb[1].mxu1 }
 0x10d   : > { %v541_v25 = vmul.f32 0.01, %v382_v23  ;;  %v1068_v26 = vpop.f32.mrb[2].mxu0  ;;  %v1084_v27 = vpop.f32.mrb[2].mxu1  ;;  %v575_v28 = vsel %vm511_vm1, %v1067_v19, %v543_v21  ;;  %v557_v29 = vmul.f32 0.01, %v446_v24  ;;  %v591_v31 = vsel %vm527_vm2, %v1083_v20, %v559_v22 }
 0x10e   : > { %vm512_vm3 = vcmp.ge.f32.partialorder %v1068_v26, 0.0  ;;  %v544_v30 = vmul.f32 0.01, %v1068_v26  ;;  %vm509_vm4 = vcmp.ge.f32.partialorder %v382_v23, 0.0  ;;  %vm528_vm5 = vcmp.ge.f32.partialorder %v1084_v27, 0.0  ;;  %v385_v33 = vpop.f32.mrb[3].mxu0 }
 0x10f   : > { %v560_v32 = vmul.f32 0.01, %v1084_v27  ;;  %v449_v34 = vpop.f32.mrb[3].mxu1  ;;  %vm525_vm6 = vcmp.ge.f32.partialorder %v446_v24, 0.0  ;;  %vm510_vm7 = vcmp.ge.f32.partialorder %v385_v33, 0.0  ;;  %v573_v40 = vsel %vm509_vm4, %v382_v23, %v541_v25 }
 0x110   : > { %v576_v35 = vsel %vm512_vm3, %v1068_v26, %v544_v30  ;;  %v542_v36 = vmul.f32 0.01, %v385_v33  ;;  %vm526_vm8 = vcmp.ge.f32.partialorder %v449_v34, 0.0  ;;  %v558_v39 = vmul.f32 0.01, %v449_v34 }
 0x111   : > { %v953_v37 = vpack.c.bf16 %v576_v35, %v575_v28  ;;  %v592_v38 = vsel %vm528_vm5, %v1084_v27, %v560_v32  ;;  %v589_v45 = vsel %vm525_vm6, %v446_v24, %v557_v29 }
 0x112   : > { %v993_v41 = vpack.c.bf16 %v592_v38, %v591_v31  ;;  %v574_v42 = vsel %vm510_vm7, %v385_v33, %v542_v36  ;;  %v1071_v43 = vpop.f32.mrb[4].mxu0  ;;  %v1087_v44 = vpop.f32.mrb[4].mxu1  ;;  %v590_v47 = vsel %vm526_vm8, %v449_v34, %v558_v39 }
 0x113   : > { %1025 = vst [vmem:[%s1298_s7 + $0x8] sm:$0xff] %v953_v37   ;;  %v948_v46 = vpack.c.bf16 %v574_v42, %v573_v40  ;;  %v547_v48 = vmul.f32 0.01, %v1071_v43  ;;  %v398_v49 = vpop.f32.mrb[5].mxu0  ;;  %v462_v50 = vpop.f32.mrb[5].mxu1  ;;  %v988_v51 = vpack.c.bf16 %v590_v47, %v589_v45  ;;  %vm515_vm9 = vcmp.ge.f32.partialorder %v1071_v43, 0.0 }
 0x114   : > { %1033 = vst [vmem:[%s1298_s7 + $0x48] sm:$0xff] %v993_v41   ;;  %v563_v52 = vmul.f32 0.01, %v1087_v44  ;;  %v1072_v53 = vpop.f32.mrb[6].mxu0  ;;  %v1088_v54 = vpop.f32.mrb[6].mxu1  ;;  %vm531_vm10 = vcmp.ge.f32.partialorder %v1087_v44, 0.0 }
 0x115   : > { %949 = vst [vmem:[%s1298_s7] sm:$0xff] %v948_v46   ;;  %v545_v55 = vmul.f32 0.01, %v398_v49  ;;  %v561_v56 = vmul.f32 0.01, %v462_v50  ;;  %v401_v57 = vpop.f32.mrb[7].mxu0  ;;  %1032 = vst [vmem:[%s1298_s7 + $0x40] sm:$0xff] %v988_v51   ;;  %v579_v60 = vsel %vm515_vm9, %v1071_v43, %v547_v48 }
 0x116   : > { %vm513_vm11 = vcmp.ge.f32.partialorder %v398_v49, 0.0  ;;  %vm516_vm12 = vcmp.ge.f32.partialorder %v1072_v53, 0.0  ;;  %v548_v58 = vmul.f32 0.01, %v1072_v53  ;;  %vm532_vm13 = vcmp.ge.f32.partialorder %v1088_v54, 0.0  ;;  %v465_v59 = vpop.f32.mrb[7].mxu1 }
 0x117   : > { %vm529_vm14 = vcmp.ge.f32.partialorder %v462_v50, 0.0  ;;  %v564_v61 = vmul.f32 0.01, %v1088_v54  ;;  %vm514_vm15 = vcmp.ge.f32.partialorder %v401_v57, 0.0  ;;  %v546_v63 = vmul.f32 0.01, %v401_v57 }
 0x118   : > { %v580_v62 = vsel %vm516_vm12, %v1072_v53, %v548_v58  ;;  %vm530_vm0 = vcmp.ge.f32.partialorder %v465_v59, 0.0  ;;  %v562_v0 = vmul.f32 0.01, %v465_v59  ;;  %v595_v1 = vsel %vm531_vm10, %v1087_v44, %v563_v52 }
 0x119   : > { %v577_v2 = vsel %vm513_vm11, %v398_v49, %v545_v55  ;;  %v963_v3 = vpack.c.bf16 %v580_v62, %v579_v60  ;;  %v596_v4 = vsel %vm532_vm13, %v1088_v54, %v564_v61  ;;  %v593_v5 = vsel %vm529_vm14, %v462_v50, %v561_v56 }
 0x11a   : > { %v1003_v6 = vpack.c.bf16 %v596_v4, %v595_v1  ;;  %v578_v7 = vsel %vm514_vm15, %v401_v57, %v546_v63  ;;  %v594_v8 = vsel %vm530_vm0, %v465_v59, %v562_v0  ;;  %v1075_v9 = vpop.f32.mrb[8].mxu0  ;;  %v1091_v10 = vpop.f32.mrb[8].mxu1 }
 0x11b   : > { %1027 = vst [vmem:[%s1298_s7 + $0x18] sm:$0xff] %v963_v3   ;;  %v958_v11 = vpack.c.bf16 %v578_v7, %v577_v2  ;;  %v998_v12 = vpack.c.bf16 %v594_v8, %v593_v5  ;;  %vm519_vm1 = vcmp.ge.f32.partialorder %v1075_v9, 0.0  ;;  %v551_v13 = vmul.f32 0.01, %v1075_v9  ;;  %v414_v14 = vpop.f32.mrb[9].mxu0  ;;  %v478_v15 = vpop.f32.mrb[9].mxu1 }
 0x11c   : > { %1035 = vst [vmem:[%s1298_s7 + $0x58] sm:$0xff] %v1003_v6   ;;  %vm535_vm2 = vcmp.ge.f32.partialorder %v1091_v10, 0.0  ;;  %v567_v16 = vmul.f32 0.01, %v1091_v10  ;;  %v549_v17 = vmul.f32 0.01, %v414_v14 }
 0x11d   : > { %1026 = vst [vmem:[%s1298_s7 + $0x10] sm:$0xff] %v958_v11   ;;  %1034 = vst [vmem:[%s1298_s7 + $0x50] sm:$0xff] %v998_v12   ;;  %v565_v18 = vmul.f32 0.01, %v478_v15  ;;  %v1076_v19 = vpop.f32.mrb[10].mxu0  ;;  %v1092_v20 = vpop.f32.mrb[10].mxu1  ;;  %v583_v21 = vsel %vm519_vm1, %v1075_v9, %v551_v13 }
 0x11e   : > { %vm517_vm3 = vcmp.ge.f32.partialorder %v414_v14, 0.0  ;;  %vm520_vm4 = vcmp.ge.f32.partialorder %v1076_v19, 0.0  ;;  %v552_v22 = vmul.f32 0.01, %v1076_v19  ;;  %v417_v23 = vpop.f32.mrb[11].mxu0  ;;  %v481_v24 = vpop.f32.mrb[11].mxu1  ;;  %v599_v29 = vsel %vm535_vm2, %v1091_v10, %v567_v16 }
 0x11f   : > { %vm533_vm5 = vcmp.ge.f32.partialorder %v478_v15, 0.0  ;;  %vm536_vm6 = vcmp.ge.f32.partialorder %v1092_v20, 0.0  ;;  %v568_v25 = vmul.f32 0.01, %v1092_v20  ;;  %vm518_vm7 = vcmp.ge.f32.partialorder %v417_v23, 0.0 }
 0x120   : > { %v584_v26 = vsel %vm520_vm4, %v1076_v19, %v552_v22  ;;  %v550_v27 = vmul.f32 0.01, %v417_v23  ;;  %vm534_vm8 = vcmp.ge.f32.partialorder %v481_v24, 0.0  ;;  %v566_v28 = vmul.f32 0.01, %v481_v24 }
 0x121   : > { %v581_v30 = vsel %vm517_vm3, %v414_v14, %v549_v17  ;;  %v973_v31 = vpack.c.bf16 %v584_v26, %v583_v21  ;;  %v600_v32 = vsel %vm536_vm6, %v1092_v20, %v568_v25  ;;  %v597_v33 = vsel %vm533_vm5, %v478_v15, %v565_v18 }
 0x122   : > { %v1013_v34 = vpack.c.bf16 %v600_v32, %v599_v29  ;;  %v582_v35 = vsel %vm518_vm7, %v417_v23, %v550_v27  ;;  %v598_v36 = vsel %vm534_vm8, %v481_v24, %v566_v28  ;;  %v1079_v37 = vpop.f32.mrb[12].mxu0  ;;  %v1095_v38 = vpop.f32.mrb[12].mxu1 }
 0x123   : > { %1029 = vst [vmem:[%s1298_s7 + $0x28] sm:$0xff] %v973_v31   ;;  %v968_v39 = vpack.c.bf16 %v582_v35, %v581_v30  ;;  %v1008_v40 = vpack.c.bf16 %v598_v36, %v597_v33  ;;  %vm523_vm9 = vcmp.ge.f32.partialorder %v1079_v37, 0.0  ;;  %v555_v41 = vmul.f32 0.01, %v1079_v37  ;;  %v430_v42 = vpop.f32.mrb[13].mxu0  ;;  %v494_v43 = vpop.f32.mrb[13].mxu1 }
 0x124   : > { %1037 = vst [vmem:[%s1298_s7 + $0x68] sm:$0xff] %v1013_v34   ;;  %vm539_vm10 = vcmp.ge.f32.partialorder %v1095_v38, 0.0  ;;  %v571_v44 = vmul.f32 0.01, %v1095_v38  ;;  %v553_v45 = vmul.f32 0.01, %v430_v42 }
 0x125   : > { %1028 = vst [vmem:[%s1298_s7 + $0x20] sm:$0xff] %v968_v39   ;;  %1036 = vst [vmem:[%s1298_s7 + $0x60] sm:$0xff] %v1008_v40   ;;  %v569_v46 = vmul.f32 0.01, %v494_v43  ;;  %v1080_v47 = vpop.f32.mrb[14].mxu0  ;;  %v1096_v48 = vpop.f32.mrb[14].mxu1  ;;  %v587_v49 = vsel %vm523_vm9, %v1079_v37, %v555_v41 }
 0x126   : > { %vm521_vm11 = vcmp.ge.f32.partialorder %v430_v42, 0.0  ;;  %vm524_vm12 = vcmp.ge.f32.partialorder %v1080_v47, 0.0  ;;  %v556_v50 = vmul.f32 0.01, %v1080_v47  ;;  %v433_v51 = vpop.f32.mrb[15].mxu0  ;;  %v497_v52 = vpop.f32.mrb[15].mxu1  ;;  %v603_v57 = vsel %vm539_vm10, %v1095_v38, %v571_v44 }
 0x127   : > { %vm537_vm13 = vcmp.ge.f32.partialorder %v494_v43, 0.0  ;;  %vm540_vm14 = vcmp.ge.f32.partialorder %v1096_v48, 0.0  ;;  %v572_v53 = vmul.f32 0.01, %v1096_v48  ;;  %vm522_vm15 = vcmp.ge.f32.partialorder %v433_v51, 0.0 }
 0x128   : > { %v588_v54 = vsel %vm524_vm12, %v1080_v47, %v556_v50  ;;  %v554_v55 = vmul.f32 0.01, %v433_v51  ;;  %vm538_vm0 = vcmp.ge.f32.partialorder %v497_v52, 0.0  ;;  %v570_v56 = vmul.f32 0.01, %v497_v52 }
 0x129   : > { %v585_v58 = vsel %vm521_vm11, %v430_v42, %v553_v45  ;;  %v983_v59 = vpack.c.bf16 %v588_v54, %v587_v49  ;;  %v604_v60 = vsel %vm540_vm14, %v1096_v48, %v572_v53  ;;  %v601_v61 = vsel %vm537_vm13, %v494_v43, %v569_v46 }
 0x12a   : > { %v1023_v62 = vpack.c.bf16 %v604_v60, %v603_v57  ;;  %v586_v63 = vsel %vm522_vm15, %v433_v51, %v554_v55  ;;  %v602_v0 = vsel %vm538_vm0, %v497_v52, %v570_v56 }
 0x12b   : > { %1031 = vst [vmem:[%s1298_s7 + $0x38] sm:$0xff] %v983_v59   ;;  %v978_v1 = vpack.c.bf16 %v586_v63, %v585_v58  ;;  %v1018_v2 = vpack.c.bf16 %v602_v0, %v601_v61 }
 0x12c   : > { %1039 = vst [vmem:[%s1298_s7 + $0x78] sm:$0xff] %v1023_v62  }
 0x12d   : > { %1030 = vst [vmem:[%s1298_s7 + $0x30] sm:$0xff] %v978_v1   ;;  %1038 = vst [vmem:[%s1298_s7 + $0x70] sm:$0xff] %v1018_v2  }
 0x12e PF: > { %s13_s9 = sadd.s32 1, %s1181_s9  }
 0x12f   : > { %p10_p3 = scmp.ge.s32.totalorder %s13_s9, 4  }
 0x131   :  { %12 = sbr.rel (!%p10_p3) target bundleno = 1 (0x1), region = 63 }
 0x138   :  { %787 = vsyncpa [#allocation3], 1 }
 0x139   :  { %789 = vsyncpa [#allocation3 + $0x1], 1 }

// kernel: discriminator_forward.8
= control target key start
LH: loop header
LB: loop body
LE: loop exit
PB: predicated region body
PF: predicated region fallthrough
CT: control target
= control target key end

     0   :  { %s2370_s1 = inlined_call_operand.vmem [shape: bf16[1024,128], index: 1, kind: input, shape index: {}]   ;;  %s2371_s0 = inlined_call_operand.vmem [shape: bf16[128,1024], index: 0, kind: input, shape index: {}]   ;;  %s2372_s3 = inlined_call_operand.vmem [shape: f32[1,128], index: 3, kind: output, shape index: {1}]   ;;  %s2373_s4 = inlined_call_operand.vmem [shape: f32[1,128], index: 4, kind: output, shape index: {2}]   ;;  %s2374_s2 = inlined_call_operand.vmem [shape: f32[128,128], index: 2, kind: output, shape index: {0}]  }
   0x1   :  { %v1782_v0 = vld [vmem:[%s2370_s1 + $0x40] sm:$0xff]   ;;  %v1786_v4 = vld [vmem:[%s2370_s1 + $0x48] sm:$0xff]   ;;  %v1790_v8 = vld [vmem:[%s2370_s1 + $0x50] sm:$0xff]  }
   0x2   :  { %v1783_v1 = vld [vmem:[%s2370_s1 + $0xc0] sm:$0xff]   ;;  %1525 = vmatprep.subr.bf16.mxu0 %v1782_v0  ;;  %v1787_v5 = vld [vmem:[%s2370_s1 + $0xc8] sm:$0xff]   ;;  %v1791_v9 = vld [vmem:[%s2370_s1 + $0xd0] sm:$0xff]  }
   0x3   :  { %v1784_v2 = vld [vmem:[%s2370_s1] sm:$0xff]   ;;  %1589 = vmatprep.subr.bf16.mxu1 %v1783_v1  ;;  %v1788_v6 = vld [vmem:[%s2370_s1 + $0x8] sm:$0xff]   ;;  %v1792_v10 = vld [vmem:[%s2370_s1 + $0x10] sm:$0xff]  }
   0x4   :  { %v1785_v3 = vld [vmem:[%s2370_s1 + $0x80] sm:$0xff]   ;;  %1526 = vmatpush3.bf16.msra.mxu0 %v1784_v2  ;;  %v1789_v7 = vld [vmem:[%s2370_s1 + $0x88] sm:$0xff]   ;;  %v1793_v11 = vld [vmem:[%s2370_s1 + $0x90] sm:$0xff]  }
   0x5   :  { %1590 = vmatpush3.bf16.msra.mxu1 %v1785_v3  ;;  %1527 = vmatprep.subr.bf16.mxu0 %v1786_v4  ;;  %v1794_v12 = vld [vmem:[%s2370_s1 + $0x58] sm:$0xff]   ;;  %v1798_v16 = vld [vmem:[%s2370_s1 + $0x60] sm:$0xff]   ;;  %v1802_v20 = vld [vmem:[%s2370_s1 + $0x68] sm:$0xff]  }
   0x6   :  { %1591 = vmatprep.subr.bf16.mxu1 %v1787_v5  ;;  %v1795_v13 = vld [vmem:[%s2370_s1 + $0xd8] sm:$0xff]   ;;  %v1799_v17 = vld [vmem:[%s2370_s1 + $0xe0] sm:$0xff]   ;;  %v1803_v21 = vld [vmem:[%s2370_s1 + $0xe8] sm:$0xff]  }
   0x7   :  { %v1796_v14 = vld [vmem:[%s2370_s1 + $0x18] sm:$0xff]   ;;  %v1800_v18 = vld [vmem:[%s2370_s1 + $0x20] sm:$0xff]   ;;  %v1804_v22 = vld [vmem:[%s2370_s1 + $0x28] sm:$0xff]  }
   0x8   :  { %1528 = vmatpush3.bf16.msra.mxu0 %v1788_v6  ;;  %v1797_v15 = vld [vmem:[%s2370_s1 + $0x98] sm:$0xff]   ;;  %v1801_v19 = vld [vmem:[%s2370_s1 + $0xa0] sm:$0xff]   ;;  %v1805_v23 = vld [vmem:[%s2370_s1 + $0xa8] sm:$0xff]  }
   0x9   :  { %1592 = vmatpush3.bf16.msra.mxu1 %v1789_v7  ;;  %1529 = vmatprep.subr.bf16.mxu0 %v1790_v8  ;;  %v1806_v24 = vld [vmem:[%s2370_s1 + $0x70] sm:$0xff]   ;;  %v1810_v28 = vld [vmem:[%s2370_s1 + $0x78] sm:$0xff]   ;;  %v21_v32 = vld [vmem:[%s2371_s0] sm:$0xff] }
   0xa   :  { %1593 = vmatprep.subr.bf16.mxu1 %v1791_v9  ;;  %v1807_v25 = vld [vmem:[%s2370_s1 + $0xf0] sm:$0xff]   ;;  %v1811_v29 = vld [vmem:[%s2370_s1 + $0xf8] sm:$0xff]   ;;  %v25_v33 = vld [vmem:[%s2371_s0 + $0x20] sm:$0xff] }
   0xb   :  { %v1808_v26 = vld [vmem:[%s2370_s1 + $0x30] sm:$0xff]   ;;  %v1812_v30 = vld [vmem:[%s2370_s1 + $0x38] sm:$0xff]   ;;  %v22_v34 = vld [vmem:[%s2371_s0 + $0x8] sm:$0xff]  ;;  %v1397_v35 = vcombine.low %v21_v32, %v25_v33  ;;  %v1398_v36 = vcombine.high %v21_v32, %v25_v33 }
   0xc   :  { %1530 = vmatpush3.bf16.msra.mxu0 %v1792_v10  ;;  %v1809_v27 = vld [vmem:[%s2370_s1 + $0xb0] sm:$0xff]   ;;  %v1813_v31 = vld [vmem:[%s2370_s1 + $0xb8] sm:$0xff]   ;;  %v26_v37 = vld [vmem:[%s2371_s0 + $0x28] sm:$0xff] }
   0xd   :  { %1594 = vmatpush3.bf16.msra.mxu1 %v1793_v11  ;;  %1531 = vmatprep.subr.bf16.mxu0 %v1794_v12  ;;  %v1399_v38 = vcombine.low %v22_v34, %v26_v37  ;;  %v1400_v39 = vcombine.high %v22_v34, %v26_v37  ;;  %v1814_v40 = vld [vmem:[%s2370_s1 + $0x140] sm:$0xff]   ;;  %v30_v47 = vld [vmem:[%s2371_s0 + $0x48] sm:$0xff]  ;;  %v1822_v62 = vld [vmem:[%s2370_s1 + $0x150] sm:$0xff]  }
   0xe   :  { %1595 = vmatprep.subr.bf16.mxu1 %v1795_v13  ;;  %949 = vmatprep.mubr.bf16.mxu0 %v1398_v36  ;;  %v1815_v41 = vld [vmem:[%s2370_s1 + $0x100] sm:$0xff]   ;;  %v34_v48 = vld [vmem:[%s2371_s0 + $0x68] sm:$0xff]  ;;  %v1823_v63 = vld [vmem:[%s2370_s1 + $0x110] sm:$0xff]  }
   0xf   :  { %1046 = vmatprep.mubr.bf16.mxu1 %v1400_v39  ;;  %v1816_v42 = vld [vmem:[%s2370_s1 + $0x1c0] sm:$0xff]   ;;  %v1408_v49 = vcombine.high %v30_v47, %v34_v48  ;;  %v1818_v50 = vld [vmem:[%s2370_s1 + $0x148] sm:$0xff]   ;;  %v1407_v53 = vcombine.low %v30_v47, %v34_v48  ;;  %v1824_v0 = vld [vmem:[%s2370_s1 + $0x1d0] sm:$0xff]  }
  0x10   :  { %1532 = vmatpush3.bf16.msra.mxu0 %v1796_v14  ;;  %v1817_v43 = vld [vmem:[%s2370_s1 + $0x180] sm:$0xff]   ;;  %v1819_v52 = vld [vmem:[%s2370_s1 + $0x108] sm:$0xff]   ;;  %v1825_v1 = vld [vmem:[%s2370_s1 + $0x190] sm:$0xff]  }
  0x11   :  { %1596 = vmatpush3.bf16.msra.mxu1 %v1797_v15  ;;  %1533 = vmatprep.subr.bf16.mxu0 %v1798_v16  ;;  %v29_v44 = vld [vmem:[%s2371_s0 + $0x40] sm:$0xff]  ;;  %v1820_v54 = vld [vmem:[%s2370_s1 + $0x1c8] sm:$0xff]   ;;  %v1826_v10 = vld [vmem:[%s2370_s1 + $0x158] sm:$0xff]  }
  0x12   :  { %1597 = vmatprep.subr.bf16.mxu1 %v1799_v17  ;;  %v33_v45 = vld [vmem:[%s2371_s0 + $0x60] sm:$0xff]  ;;  %v1821_v55 = vld [vmem:[%s2370_s1 + $0x188] sm:$0xff]   ;;  %v1827_v11 = vld [vmem:[%s2370_s1 + $0x118] sm:$0xff]  }
  0x13   :  { %v1406_v46 = vcombine.high %v29_v44, %v33_v45  ;;  %v1405_v51 = vcombine.low %v29_v44, %v33_v45  ;;  %v37_v56 = vld [vmem:[%s2371_s0 + $0x80] sm:$0xff]  ;;  %v38_v58 = vld [vmem:[%s2371_s0 + $0x88] sm:$0xff]  ;;  %v1828_v12 = vld [vmem:[%s2370_s1 + $0x1d8] sm:$0xff]  }
  0x14   :  { %1534 = vmatpush3.bf16.msra.mxu0 %v1800_v18  ;;  %v41_v57 = vld [vmem:[%s2371_s0 + $0xa0] sm:$0xff]  ;;  %v42_v59 = vld [vmem:[%s2371_s0 + $0xa8] sm:$0xff]  ;;  %v1829_v13 = vld [vmem:[%s2370_s1 + $0x198] sm:$0xff]  }
  0x15   :  { %1598 = vmatpush3.bf16.msra.mxu1 %v1801_v19  ;;  %1535 = vmatprep.subr.bf16.mxu0 %v1802_v20  ;;  %v1414_v60 = vcombine.high %v37_v56, %v41_v57  ;;  %v1416_v61 = vcombine.high %v38_v58, %v42_v59  ;;  %v1413_v2 = vcombine.low %v37_v56, %v41_v57  ;;  %v45_v3 = vld [vmem:[%s2371_s0 + $0xc0] sm:$0xff]  ;;  %v46_v5 = vld [vmem:[%s2371_s0 + $0xc8] sm:$0xff]  ;;  %v1839_v39 = vld [vmem:[%s2370_s1 + $0x130] sm:$0xff]  }
  0x16   :  { %1599 = vmatprep.subr.bf16.mxu1 %v1803_v21  ;;  %v49_v4 = vld [vmem:[%s2371_s0 + $0xe0] sm:$0xff]  ;;  %v1415_v6 = vcombine.low %v38_v58, %v42_v59  ;;  %v50_v8 = vld [vmem:[%s2371_s0 + $0xe8] sm:$0xff]  ;;  %v1843_v48 = vld [vmem:[%s2370_s1 + $0x138] sm:$0xff]  }
  0x17   :  { %v1422_v7 = vcombine.high %v45_v3, %v49_v4  ;;  %v1424_v9 = vcombine.high %v46_v5, %v50_v8  ;;  %v53_v14 = vld [vmem:[%s2371_s0 + $0x100] sm:$0xff]  ;;  %v54_v16 = vld [vmem:[%s2371_s0 + $0x108] sm:$0xff]  ;;  %v1421_v19 = vcombine.low %v45_v3, %v49_v4  ;;  %v1423_v21 = vcombine.low %v46_v5, %v50_v8  ;;  %v32_v8 = vld [vmem:[%s2371_s0 + $0x58] sm:$0xff] }
  0x18   :  { %1536 = vmatpush3.bf16.msra.mxu0 %v1804_v22  ;;  %v57_v15 = vld [vmem:[%s2371_s0 + $0x120] sm:$0xff]  ;;  %v58_v17 = vld [vmem:[%s2371_s0 + $0x128] sm:$0xff] }
  0x19   :  { %1600 = vmatpush3.bf16.msra.mxu1 %v1805_v23  ;;  %1537 = vmatprep.subr.bf16.mxu0 %v1806_v24  ;;  %v1830_v18 = vld [vmem:[%s2370_s1 + $0x160] sm:$0xff]   ;;  %v1430_v22 = vcombine.high %v53_v14, %v57_v15  ;;  %v1432_v24 = vcombine.high %v54_v16, %v58_v17  ;;  %v1836_v32 = vld [vmem:[%s2370_s1 + $0x1e8] sm:$0xff]   ;;  %v1429_v34 = vcombine.low %v53_v14, %v57_v15  ;;  %v39_v14 = vld [vmem:[%s2371_s0 + $0x90] sm:$0xff] }
  0x1a   :  { %1601 = vmatprep.subr.bf16.mxu1 %v1807_v25  ;;  %v1831_v20 = vld [vmem:[%s2370_s1 + $0x120] sm:$0xff]   ;;  %v1837_v33 = vld [vmem:[%s2370_s1 + $0x1a8] sm:$0xff]   ;;  %v43_v15 = vld [vmem:[%s2371_s0 + $0xb0] sm:$0xff] }
  0x1b   :  { %v1832_v23 = vld [vmem:[%s2370_s1 + $0x1e0] sm:$0xff]   ;;  %v70_v44 = vld [vmem:[%s2371_s0 + $0x188] sm:$0xff] }
  0x1c   :  { %1538 = vmatpush3.bf16.msra.mxu0 %v1808_v26  ;;  %v1833_v25 = vld [vmem:[%s2370_s1 + $0x1a0] sm:$0xff]   ;;  %v74_v45 = vld [vmem:[%s2371_s0 + $0x1a8] sm:$0xff] }
  0x1d   :  { %1602 = vmatpush3.bf16.msra.mxu1 %v1809_v27  ;;  %1539 = vmatprep.subr.bf16.mxu0 %v1810_v28  ;;  %v61_v26 = vld [vmem:[%s2371_s0 + $0x140] sm:$0xff]  ;;  %v1834_v28 = vld [vmem:[%s2370_s1 + $0x168] sm:$0xff]   ;;  %v1447_v59 = vcombine.low %v70_v44, %v74_v45 }
  0x1e   :  { %1603 = vmatprep.subr.bf16.mxu1 %v1811_v29  ;;  %v65_v27 = vld [vmem:[%s2371_s0 + $0x160] sm:$0xff]  ;;  %v62_v29 = vld [vmem:[%s2371_s0 + $0x148] sm:$0xff] }
  0x1f   :  { %v1438_v36 = vcombine.high %v61_v26, %v65_v27  ;;  %v1437_v47 = vcombine.low %v61_v26, %v65_v27  ;;  %v78_v56 = vld [vmem:[%s2371_s0 + $0x1c8] sm:$0xff]  ;;  %v1417_v26 = vcombine.low %v39_v14, %v43_v15 }
  0x20   :  { %1540 = vmatpush3.bf16.msra.mxu0 %v1812_v30  ;;  %v66_v30 = vld [vmem:[%s2371_s0 + $0x168] sm:$0xff] }
  0x21   :  { %1604 = vmatpush3.bf16.msra.mxu1 %v1813_v31  ;;  %1653 = vmatprep.subr.bf16.mxu0 %v1814_v40  ;;  %v1835_v31 = vld [vmem:[%s2370_s1 + $0x128] sm:$0xff]   ;;  %v1440_v37 = vcombine.high %v62_v29, %v66_v30  ;;  %v1840_v40 = vld [vmem:[%s2370_s1 + $0x1f0] sm:$0xff]  }
  0x22   :  { %1717 = vmatprep.subr.bf16.mxu1 %v1816_v42  ;;  %v73_v42 = vld [vmem:[%s2371_s0 + $0x1a0] sm:$0xff]  ;;  %v82_v57 = vld [vmem:[%s2371_s0 + $0x1e8] sm:$0xff] }
  0x23   :  { %950 = vmatmul.mubr.bf16.vlgmr.msra.gmra.mrb[0].mxu0 %v1397_v35  ;;  %v1431_v35 = vcombine.low %v54_v16, %v58_v17  ;;  %v1455_v3 = vcombine.low %v78_v56, %v82_v57  ;;  %v40_v16 = vld [vmem:[%s2371_s0 + $0x98] sm:$0xff] }
  0x24   :  { %1047 = vmatmul.mubr.bf16.vlgmr.msra.gmra.mrb[0].mxu1 %v1399_v38  ;;  %1654 = vmatpush3.bf16.msra.mxu0 %v1815_v41  ;;  %v1838_v38 = vld [vmem:[%s2370_s1 + $0x170] sm:$0xff]   ;;  %v69_v41 = vld [vmem:[%s2371_s0 + $0x180] sm:$0xff]  ;;  %v44_v17 = vld [vmem:[%s2371_s0 + $0xb8] sm:$0xff] }
  0x25   :  { %1718 = vmatpush3.bf16.msra.mxu1 %v1817_v43  ;;  %957 = vmatprep.mubr.bf16.mxu0 %v1406_v46  ;;  %v1841_v43 = vld [vmem:[%s2370_s1 + $0x1b0] sm:$0xff]   ;;  %v1842_v46 = vld [vmem:[%s2370_s1 + $0x178] sm:$0xff]   ;;  %v1445_v58 = vcombine.low %v69_v41, %v73_v42  ;;  %v1419_v27 = vcombine.low %v40_v16, %v44_v17 }
  0x26   :  { %1054 = vmatprep.mubr.bf16.mxu1 %v1408_v49  ;;  %1655 = vmatprep.subr.bf16.mxu0 %v1818_v50  ;;  %v1439_v49 = vcombine.low %v62_v29, %v66_v30  ;;  %v1446_v50 = vcombine.high %v69_v41, %v73_v42  ;;  %v55_v30 = vld [vmem:[%s2371_s0 + $0x110] sm:$0xff]  ;;  %v68_v41 = vld [vmem:[%s2371_s0 + $0x178] sm:$0xff] }
  0x27   :  { %1719 = vmatprep.subr.bf16.mxu1 %v1820_v54  ;;  %v77_v54 = vld [vmem:[%s2371_s0 + $0x1c0] sm:$0xff] }
  0x28   :  { %1656 = vmatpush3.bf16.msra.mxu0 %v1819_v52  ;;  %v1448_v52 = vcombine.high %v70_v44, %v74_v45 }
  0x29   :  { %1720 = vmatpush3.bf16.msra.mxu1 %v1821_v55  ;;  %1657 = vmatprep.subr.bf16.mxu0 %v1822_v62  ;;  %v81_v55 = vld [vmem:[%s2371_s0 + $0x1e0] sm:$0xff]  ;;  %v23_v62 = vld [vmem:[%s2371_s0 + $0x10] sm:$0xff] }
  0x2a   :  { %1721 = vmatprep.subr.bf16.mxu1 %v1824_v0  ;;  %v24_v0 = vld [vmem:[%s2371_s0 + $0x18] sm:$0xff] }
  0x2b   :  { %958 = vmatmul.mubr.bf16.gmra.mrb[4].mxu0 %v1405_v51  ;;  %v1844_v51 = vld [vmem:[%s2370_s1 + $0x1f8] sm:$0xff]  }
  0x2c   :  { %1055 = vmatmul.mubr.bf16.gmra.mrb[4].mxu1 %v1407_v53  ;;  %965 = vmatprep.mubr.bf16.mxu0 %v1414_v60  ;;  %v1845_v53 = vld [vmem:[%s2370_s1 + $0x1b8] sm:$0xff]   ;;  %v1454_v60 = vcombine.high %v77_v54, %v81_v55 }
  0x2d   :  { %1062 = vmatprep.mubr.bf16.mxu1 %v1416_v61  ;;  %1658 = vmatpush3.bf16.msra.mxu0 %v1823_v63  ;;  %v1456_v61 = vcombine.high %v78_v56, %v82_v57  ;;  %v27_v63 = vld [vmem:[%s2371_s0 + $0x30] sm:$0xff]  ;;  %v80_v56 = vld [vmem:[%s2371_s0 + $0x1d8] sm:$0xff] }
  0x2e   :  { %1722 = vmatpush3.bf16.msra.mxu1 %v1825_v1  ;;  %1659 = vmatprep.subr.bf16.mxu0 %v1826_v10  ;;  %v28_v1 = vld [vmem:[%s2371_s0 + $0x38] sm:$0xff]  ;;  %v1402_v4 = vcombine.high %v23_v62, %v27_v63  ;;  %v1401_v10 = vcombine.low %v23_v62, %v27_v63 }
  0x2f   :  { %1723 = vmatprep.subr.bf16.mxu1 %v1828_v12  ;;  %v1404_v5 = vcombine.high %v24_v0, %v28_v1  ;;  %v84_v57 = vld [vmem:[%s2371_s0 + $0x1f8] sm:$0xff] }
  0x30   :  { %v1459_v63 = vcombine.low %v80_v56, %v84_v57 }
  0x31   :  { %1660 = vmatpush3.bf16.msra.mxu0 %v1827_v11  ;;  %v1403_v11 = vcombine.low %v24_v0, %v28_v1 }
  0x32   :  { %1724 = vmatpush3.bf16.msra.mxu1 %v1829_v13  ;;  %1661 = vmatprep.subr.bf16.mxu0 %v1830_v18 }
  0x33   :  { %966 = vmatmul.mubr.bf16.gmra.mrb[8].mxu0 %v1413_v2  ;;  %1725 = vmatprep.subr.bf16.mxu1 %v1832_v23  ;;  %v1453_v2 = vcombine.low %v77_v54, %v81_v55  ;;  %v51_v23 = vld [vmem:[%s2371_s0 + $0xf0] sm:$0xff] }
  0x34   :  { %1063 = vmatmul.mubr.bf16.gmra.mrb[8].mxu1 %v1415_v6  ;;  %973 = vmatprep.mubr.bf16.mxu0 %v1422_v7  ;;  %v31_v6 = vld [vmem:[%s2371_s0 + $0x50] sm:$0xff] }
  0x35   :  { %1070 = vmatprep.mubr.bf16.mxu1 %v1424_v9  ;;  %1662 = vmatpush3.bf16.msra.mxu0 %v1831_v20  ;;  %v35_v7 = vld [vmem:[%s2371_s0 + $0x70] sm:$0xff]  ;;  %v36_v9 = vld [vmem:[%s2371_s0 + $0x78] sm:$0xff]  ;;  %v1418_v20 = vcombine.high %v39_v14, %v43_v15 }
  0x36   :  { %1726 = vmatpush3.bf16.msra.mxu1 %v1833_v25  ;;  %1663 = vmatprep.subr.bf16.mxu0 %v1834_v28  ;;  %v1410_v12 = vcombine.high %v31_v6, %v35_v7  ;;  %v1412_v13 = vcombine.high %v32_v8, %v36_v9  ;;  %v1409_v18 = vcombine.low %v31_v6, %v35_v7  ;;  %v52_v25 = vld [vmem:[%s2371_s0 + $0xf8] sm:$0xff]  ;;  %v79_v54 = vld [vmem:[%s2371_s0 + $0x1d0] sm:$0xff] }
  0x37   :  { %1727 = vmatprep.subr.bf16.mxu1 %v1836_v32  ;;  %v56_v32 = vld [vmem:[%s2371_s0 + $0x118] sm:$0xff]  ;;  %v83_v55 = vld [vmem:[%s2371_s0 + $0x1f0] sm:$0xff] }
  0x38   :  { %v1457_v62 = vcombine.low %v79_v54, %v83_v55 }
  0x39   :  { %1664 = vmatpush3.bf16.msra.mxu0 %v1835_v31  ;;  %v59_v31 = vld [vmem:[%s2371_s0 + $0x130] sm:$0xff] }
  0x3a   :  { %1728 = vmatpush3.bf16.msra.mxu1 %v1837_v33  ;;  %1665 = vmatprep.subr.bf16.mxu0 %v1838_v38  ;;  %v60_v33 = vld [vmem:[%s2371_s0 + $0x138] sm:$0xff]  ;;  %v63_v38 = vld [vmem:[%s2371_s0 + $0x150] sm:$0xff]  ;;  %v1433_v42 = vcombine.low %v55_v30, %v59_v31 }
  0x3b   :  { %974 = vmatmul.mubr.bf16.gmra.mrb[12].mxu0 %v1421_v19  ;;  %1729 = vmatprep.subr.bf16.mxu1 %v1840_v40  ;;  %v1411_v19 = vcombine.low %v32_v8, %v36_v9  ;;  %v64_v40 = vld [vmem:[%s2371_s0 + $0x158] sm:$0xff]  ;;  %v1846_v9 = vmov 0.0  }
  0x3c   :  { %1071 = vmatmul.mubr.bf16.gmra.mrb[12].mxu1 %v1423_v21  ;;  %981 = vmatprep.mubr.bf16.mxu0 %v1430_v22  ;;  %v1420_v21 = vcombine.high %v40_v16, %v44_v17  ;;  %v47_v22 = vld [vmem:[%s2371_s0 + $0xd0] sm:$0xff]  ;;  %v1444_v45 = vcombine.high %v64_v40, %v68_v41  ;;  %19 = vst [vmem:[%s2372_s3] sm:$0x1] %v1846_v9  ;;  %20 = vst [vmem:[%s2373_s4] sm:$0x1] %v1846_v9 }
  0x3d   :  { %1078 = vmatprep.mubr.bf16.mxu1 %v1432_v24  ;;  %1666 = vmatpush3.bf16.msra.mxu0 %v1839_v39  ;;  %v48_v24 = vld [vmem:[%s2371_s0 + $0xd8] sm:$0xff]  ;;  %v1426_v28 = vcombine.high %v47_v22, %v51_v23  ;;  %v67_v39 = vld [vmem:[%s2371_s0 + $0x170] sm:$0xff] }
  0x3e   :  { %1730 = vmatpush3.bf16.msra.mxu1 %v1841_v43  ;;  %1667 = vmatprep.subr.bf16.mxu0 %v1842_v46  ;;  %v1428_v29 = vcombine.high %v48_v24, %v52_v25  ;;  %v1435_v43 = vcombine.low %v56_v32, %v60_v33  ;;  %v1442_v44 = vcombine.high %v63_v38, %v67_v39  ;;  %v71_v46 = vld [vmem:[%s2371_s0 + $0x190] sm:$0xff] }
  0x3f   :  { %1731 = vmatprep.subr.bf16.mxu1 %v1844_v51  ;;  %v1443_v51 = vcombine.low %v64_v40, %v68_v41 }
  0x41   :  { %1668 = vmatpush3.bf16.msra.mxu0 %v1843_v48  ;;  %v72_v48 = vld [vmem:[%s2371_s0 + $0x198] sm:$0xff] }
  0x42   :  { %1732 = vmatpush3.bf16.msra.mxu1 %v1845_v53 }
  0x43   :  { %982 = vmatmul.mubr.bf16.gmra.mrb[16].mxu0 %v1429_v34  ;;  %v1425_v34 = vcombine.low %v47_v22, %v51_v23 }
  0x44   :  { %1079 = vmatmul.mubr.bf16.gmra.mrb[16].mxu1 %v1431_v35  ;;  %989 = vmatprep.mubr.bf16.mxu0 %v1438_v36  ;;  %v1427_v35 = vcombine.low %v48_v24, %v52_v25  ;;  %v1434_v36 = vcombine.high %v55_v30, %v59_v31 }
  0x45   :  { %1086 = vmatprep.mubr.bf16.mxu1 %v1440_v37  ;;  %v1436_v37 = vcombine.high %v56_v32, %v60_v33 }
  0x4b   :  { %990 = vmatmul.mubr.bf16.gmra.mrb[20].mxu0 %v1437_v47  ;;  %v75_v47 = vld [vmem:[%s2371_s0 + $0x1b0] sm:$0xff] }
  0x4c   :  { %1087 = vmatmul.mubr.bf16.gmra.mrb[20].mxu1 %v1439_v49  ;;  %997 = vmatprep.mubr.bf16.mxu0 %v1446_v50  ;;  %v76_v49 = vld [vmem:[%s2371_s0 + $0x1b8] sm:$0xff]  ;;  %v1441_v50 = vcombine.low %v63_v38, %v67_v39 }
  0x4d   :  { %1094 = vmatprep.mubr.bf16.mxu1 %v1448_v52  ;;  %v1450_v52 = vcombine.high %v71_v46, %v75_v47  ;;  %v1452_v53 = vcombine.high %v72_v48, %v76_v49 }
  0x53   :  { %998 = vmatmul.mubr.bf16.gmra.mrb[24].mxu0 %v1445_v58  ;;  %v1449_v58 = vcombine.low %v71_v46, %v75_v47 }
  0x54   :  { %1095 = vmatmul.mubr.bf16.gmra.mrb[24].mxu1 %v1447_v59  ;;  %1005 = vmatprep.mubr.bf16.mxu0 %v1454_v60  ;;  %v1451_v59 = vcombine.low %v72_v48, %v76_v49  ;;  %v1458_v60 = vcombine.high %v79_v54, %v83_v55 }
  0x55   :  { %1102 = vmatprep.mubr.bf16.mxu1 %v1456_v61  ;;  %v1460_v61 = vcombine.high %v80_v56, %v84_v57 }
  0x5b   :  { %1006 = vmatmul.mubr.bf16.gmra.mrb[28].mxu0 %v1453_v2 }
  0x5c   :  { %1103 = vmatmul.mubr.bf16.gmra.mrb[28].mxu1 %v1455_v3  ;;  %1143 = vmatprep.mubr.bf16.mxu0 %v1402_v4 }
  0x5d   :  { %1240 = vmatprep.mubr.bf16.mxu1 %v1404_v5 }
  0x63   :  { %1144 = vmatmul.mubr.bf16.vlgmr.msra.gmra.mrb[32].mxu0 %v1401_v10 }
  0x64   :  { %1241 = vmatmul.mubr.bf16.vlgmr.msra.gmra.mrb[32].mxu1 %v1403_v11  ;;  %1151 = vmatprep.mubr.bf16.mxu0 %v1410_v12 }
  0x65   :  { %1248 = vmatprep.mubr.bf16.mxu1 %v1412_v13 }
  0x6b   :  { %1152 = vmatmul.mubr.bf16.gmra.mrb[36].mxu0 %v1409_v18 }
  0x6c   :  { %1249 = vmatmul.mubr.bf16.gmra.mrb[36].mxu1 %v1411_v19  ;;  %1159 = vmatprep.mubr.bf16.mxu0 %v1418_v20 }
  0x6d   :  { %1256 = vmatprep.mubr.bf16.mxu1 %v1420_v21 }
  0x73   :  { %1160 = vmatmul.mubr.bf16.gmra.mrb[40].mxu0 %v1417_v26 }
  0x74   :  { %1257 = vmatmul.mubr.bf16.gmra.mrb[40].mxu1 %v1419_v27  ;;  %1167 = vmatprep.mubr.bf16.mxu0 %v1426_v28 }
  0x75   :  { %1264 = vmatprep.mubr.bf16.mxu1 %v1428_v29 }
  0x7b   :  { %1168 = vmatmul.mubr.bf16.gmra.mrb[44].mxu0 %v1425_v34 }
  0x7c   :  { %1265 = vmatmul.mubr.bf16.gmra.mrb[44].mxu1 %v1427_v35  ;;  %1175 = vmatprep.mubr.bf16.mxu0 %v1434_v36 }
  0x7d   :  { %1272 = vmatprep.mubr.bf16.mxu1 %v1436_v37 }
  0x83   :  { %1176 = vmatmul.mubr.bf16.gmra.mrb[48].mxu0 %v1433_v42 }
  0x84   :  { %1273 = vmatmul.mubr.bf16.gmra.mrb[48].mxu1 %v1435_v43  ;;  %1183 = vmatprep.mubr.bf16.mxu0 %v1442_v44 }
  0x85   :  { %1280 = vmatprep.mubr.bf16.mxu1 %v1444_v45 }
  0x8b   :  { %1184 = vmatmul.mubr.bf16.gmra.mrb[52].mxu0 %v1441_v50 }
  0x8c   :  { %1281 = vmatmul.mubr.bf16.gmra.mrb[52].mxu1 %v1443_v51  ;;  %1191 = vmatprep.mubr.bf16.mxu0 %v1450_v52 }
  0x8d   :  { %1288 = vmatprep.mubr.bf16.mxu1 %v1452_v53 }
  0x93   :  { %1192 = vmatmul.mubr.bf16.gmra.mrb[56].mxu0 %v1449_v58 }
  0x94   :  { %1289 = vmatmul.mubr.bf16.gmra.mrb[56].mxu1 %v1451_v59  ;;  %1199 = vmatprep.mubr.bf16.mxu0 %v1458_v60 }
  0x95   :  { %1296 = vmatprep.mubr.bf16.mxu1 %v1460_v61 }
  0x9b   :  { %1200 = vmatmul.mubr.bf16.gmra.mrb[60].mxu0 %v1457_v62 }
  0x9c   :  { %1297 = vmatmul.mubr.bf16.gmra.mrb[60].mxu1 %v1459_v63 }
  0xf6   :  { %v1541_v0 = vpop.f32.mrb[0].mxu0 }
  0xf7   :  { %v1605_v1 = vpop.f32.mrb[0].mxu1  ;;  %v1542_v2 = vpop.f32.mrb[1].mxu0 }
  0xf8   :  { %v1543_v3 = vadd.f32 %v1542_v2, %v1541_v0  ;;  %v1606_v4 = vpop.f32.mrb[1].mxu1  ;;  %v1544_v5 = vpop.f32.mrb[2].mxu0 }
  0xf9   :  { %v1607_v6 = vadd.f32 %v1606_v4, %v1605_v1  ;;  %v1608_v7 = vpop.f32.mrb[2].mxu1  ;;  %v1545_v8 = vpop.f32.mrb[3].mxu0 }
  0xfa   :  { %v1546_v10 = vadd.f32 %v1545_v8, %v1544_v5  ;;  %v1609_v11 = vpop.f32.mrb[3].mxu1 }
  0xfb   :  { %v2262_v12 = vadd.f32 %v1607_v6, %v1543_v3  ;;  %v1610_v13 = vadd.f32 %v1609_v11, %v1608_v7 }
  0xfd   :  { %v2264_v14 = vadd.f32 %v1610_v13, %v1546_v10 }
  0xfe   :  { %v1547_v15 = vpop.f32.mrb[4].mxu0 }
  0xff   :  { %v1611_v16 = vpop.f32.mrb[4].mxu1  ;;  %v1548_v17 = vpop.f32.mrb[5].mxu0 }
 0x100   :  { %v1549_v18 = vadd.f32 %v1548_v17, %v1547_v15  ;;  %v1612_v19 = vpop.f32.mrb[5].mxu1  ;;  %v1550_v20 = vpop.f32.mrb[6].mxu0 }
 0x101   :  { %v1613_v21 = vadd.f32 %v1612_v19, %v1611_v16  ;;  %v1614_v22 = vpop.f32.mrb[6].mxu1  ;;  %v1551_v23 = vpop.f32.mrb[7].mxu0 }
 0x102   :  { %v1552_v24 = vadd.f32 %v1551_v23, %v1550_v20  ;;  %v1615_v25 = vpop.f32.mrb[7].mxu1 }
 0x103   :  { %v2266_v26 = vadd.f32 %v1613_v21, %v1549_v18  ;;  %v1616_v27 = vadd.f32 %v1615_v25, %v1614_v22 }
 0x105   :  { %v2268_v28 = vadd.f32 %v1616_v27, %v1552_v24 }
 0x106   :  { %v1553_v29 = vpop.f32.mrb[8].mxu0 }
 0x107   :  { %v1617_v30 = vpop.f32.mrb[8].mxu1  ;;  %v1554_v31 = vpop.f32.mrb[9].mxu0 }
 0x108   :  { %v1555_v32 = vadd.f32 %v1554_v31, %v1553_v29  ;;  %v1618_v33 = vpop.f32.mrb[9].mxu1  ;;  %v1556_v34 = vpop.f32.mrb[10].mxu0 }
 0x109   :  { %v1619_v35 = vadd.f32 %v1618_v33, %v1617_v30  ;;  %v1620_v36 = vpop.f32.mrb[10].mxu1  ;;  %v1557_v37 = vpop.f32.mrb[11].mxu0 }
 0x10a   :  { %v1558_v38 = vadd.f32 %v1557_v37, %v1556_v34  ;;  %v1621_v39 = vpop.f32.mrb[11].mxu1 }
 0x10b   :  { %v2270_v40 = vadd.f32 %v1619_v35, %v1555_v32  ;;  %v1622_v41 = vadd.f32 %v1621_v39, %v1620_v36 }
 0x10d   :  { %v2272_v42 = vadd.f32 %v1622_v41, %v1558_v38 }
 0x10e   :  { %v1559_v43 = vpop.f32.mrb[12].mxu0 }
 0x10f   :  { %v1623_v44 = vpop.f32.mrb[12].mxu1  ;;  %v1560_v45 = vpop.f32.mrb[13].mxu0 }
 0x110   :  { %v1561_v46 = vadd.f32 %v1560_v45, %v1559_v43  ;;  %v1624_v47 = vpop.f32.mrb[13].mxu1  ;;  %v1562_v48 = vpop.f32.mrb[14].mxu0 }
 0x111   :  { %v1625_v49 = vadd.f32 %v1624_v47, %v1623_v44  ;;  %v1626_v50 = vpop.f32.mrb[14].mxu1  ;;  %v1563_v51 = vpop.f32.mrb[15].mxu0 }
 0x112   :  { %v1564_v52 = vadd.f32 %v1563_v51, %v1562_v48  ;;  %v1627_v53 = vpop.f32.mrb[15].mxu1 }
 0x113   :  { %v2274_v54 = vadd.f32 %v1625_v49, %v1561_v46  ;;  %v1628_v55 = vadd.f32 %v1627_v53, %v1626_v50 }
 0x115   :  { %v2276_v56 = vadd.f32 %v1628_v55, %v1564_v52 }
 0x116   :  { %v1565_v57 = vpop.f32.mrb[16].mxu0 }
 0x117   :  { %v1629_v58 = vpop.f32.mrb[16].mxu1  ;;  %v1566_v59 = vpop.f32.mrb[17].mxu0 }
 0x118   :  { %v1567_v60 = vadd.f32 %v1566_v59, %v1565_v57  ;;  %v1630_v61 = vpop.f32.mrb[17].mxu1  ;;  %v1568_v62 = vpop.f32.mrb[18].mxu0 }
 0x119   :  { %v1631_v63 = vadd.f32 %v1630_v61, %v1629_v58  ;;  %v1632_v0 = vpop.f32.mrb[18].mxu1  ;;  %v1569_v1 = vpop.f32.mrb[19].mxu0 }
 0x11a   :  { %v1570_v2 = vadd.f32 %v1569_v1, %v1568_v62  ;;  %v1633_v3 = vpop.f32.mrb[19].mxu1 }
 0x11b   :  { %v2278_v4 = vadd.f32 %v1631_v63, %v1567_v60  ;;  %v1634_v5 = vadd.f32 %v1633_v3, %v1632_v0 }
 0x11d   :  { %v2280_v6 = vadd.f32 %v1634_v5, %v1570_v2 }
 0x11e   :  { %v1571_v7 = vpop.f32.mrb[20].mxu0 }
 0x11f   :  { %v1635_v8 = vpop.f32.mrb[20].mxu1  ;;  %v1572_v9 = vpop.f32.mrb[21].mxu0 }
 0x120   :  { %v1573_v10 = vadd.f32 %v1572_v9, %v1571_v7  ;;  %v1636_v11 = vpop.f32.mrb[21].mxu1  ;;  %v1574_v13 = vpop.f32.mrb[22].mxu0 }
 0x121   :  { %v1637_v15 = vadd.f32 %v1636_v11, %v1635_v8  ;;  %v1638_v16 = vpop.f32.mrb[22].mxu1  ;;  %v1575_v17 = vpop.f32.mrb[23].mxu0 }
 0x122   :  { %v1576_v18 = vadd.f32 %v1575_v17, %v1574_v13  ;;  %v1639_v19 = vpop.f32.mrb[23].mxu1 }
 0x123   :  { %v2282_v20 = vadd.f32 %v1637_v15, %v1573_v10  ;;  %v1640_v21 = vadd.f32 %v1639_v19, %v1638_v16 }
 0x125   :  { %v2284_v22 = vadd.f32 %v1640_v21, %v1576_v18 }
 0x126   :  { %v1577_v23 = vpop.f32.mrb[24].mxu0 }
 0x127   :  { %v1641_v24 = vpop.f32.mrb[24].mxu1  ;;  %v1578_v25 = vpop.f32.mrb[25].mxu0 }
 0x128   :  { %v1579_v27 = vadd.f32 %v1578_v25, %v1577_v23  ;;  %v1642_v29 = vpop.f32.mrb[25].mxu1  ;;  %v1580_v30 = vpop.f32.mrb[26].mxu0 }
 0x129   :  { %v1643_v31 = vadd.f32 %v1642_v29, %v1641_v24  ;;  %v1644_v32 = vpop.f32.mrb[26].mxu1  ;;  %v1581_v33 = vpop.f32.mrb[27].mxu0 }
 0x12a   :  { %v1582_v34 = vadd.f32 %v1581_v33, %v1580_v30  ;;  %v1645_v35 = vpop.f32.mrb[27].mxu1 }
 0x12b   :  { %v2286_v36 = vadd.f32 %v1643_v31, %v1579_v27  ;;  %v1646_v37 = vadd.f32 %v1645_v35, %v1644_v32 }
 0x12d   :  { %v2288_v38 = vadd.f32 %v1646_v37, %v1582_v34 }
 0x12e   :  { %v1583_v39 = vpop.f32.mrb[28].mxu0 }
 0x12f   :  { %v1647_v41 = vpop.f32.mrb[28].mxu1  ;;  %v1584_v43 = vpop.f32.mrb[29].mxu0 }
 0x130   :  { %v1585_v44 = vadd.f32 %v1584_v43, %v1583_v39  ;;  %v1648_v45 = vpop.f32.mrb[29].mxu1  ;;  %v1586_v46 = vpop.f32.mrb[30].mxu0 }
 0x131   :  { %v1649_v47 = vadd.f32 %v1648_v45, %v1647_v41  ;;  %v1650_v48 = vpop.f32.mrb[30].mxu1  ;;  %v1587_v49 = vpop.f32.mrb[31].mxu0 }
 0x132   :  { %v1588_v50 = vadd.f32 %v1587_v49, %v1586_v46  ;;  %v1651_v51 = vpop.f32.mrb[31].mxu1 }
 0x133   :  { %v2290_v52 = vadd.f32 %v1649_v47, %v1585_v44  ;;  %v1652_v53 = vadd.f32 %v1651_v51, %v1650_v48 }
 0x135   :  { %v2292_v55 = vadd.f32 %v1652_v53, %v1588_v50 }
 0x136   :  { %v1669_v57 = vpop.f32.mrb[32].mxu0 }
 0x137   :  { %v1733_v58 = vpop.f32.mrb[32].mxu1  ;;  %v1670_v59 = vpop.f32.mrb[33].mxu0 }
 0x138   :  { %v1671_v60 = vadd.f32 %v1670_v59, %v1669_v57  ;;  %v1734_v61 = vpop.f32.mrb[33].mxu1  ;;  %v1672_v62 = vpop.f32.mrb[34].mxu0 }
 0x139   :  { %v1735_v63 = vadd.f32 %v1734_v61, %v1733_v58  ;;  %v1736_v0 = vpop.f32.mrb[34].mxu1  ;;  %v1673_v1 = vpop.f32.mrb[35].mxu0 }
 0x13a   :  { %v1146_v2 = vadd.f32 %v1671_v60, %v2262_v12  ;;  %v1674_v3 = vadd.f32 %v1673_v1, %v1672_v62  ;;  %v1737_v5 = vpop.f32.mrb[35].mxu1 }
 0x13b   :  { %v1738_v7 = vadd.f32 %v1737_v5, %v1736_v0 }
 0x13c   :  { %v1243_v8 = vadd.f32 %v1735_v63, %v1146_v2  ;;  %v1149_v9 = vadd.f32 %v1674_v3, %v2264_v14 }
 0x13e   :  { %1305 = vst [vmem:[%s2374_s2] sm:$0xff] %v1243_v8  ;;  %v1246_v10 = vadd.f32 %v1738_v7, %v1149_v9  ;;  %v1675_v11 = vpop.f32.mrb[36].mxu0  ;;  %v1346_v16 = vmul.f32 %v1243_v8, %v1243_v8 }
 0x13f   :  { %v1739_v13 = vpop.f32.mrb[36].mxu1  ;;  %v1676_v15 = vpop.f32.mrb[37].mxu0 }
 0x140   :  { %1306 = vst [vmem:[%s2374_s2 + $0x8] sm:$0xff] %v1246_v10  ;;  %v1322_v12 = vadd.f32 %v1246_v10, %v1243_v8  ;;  %v1347_v17 = vmul.f32 %v1246_v10, %v1246_v10  ;;  %v1677_v18 = vadd.f32 %v1676_v15, %v1675_v11  ;;  %v1740_v19 = vpop.f32.mrb[37].mxu1  ;;  %v1678_v21 = vpop.f32.mrb[38].mxu0 }
 0x141   :  { %v1741_v23 = vadd.f32 %v1740_v19, %v1739_v13  ;;  %v1742_v14 = vpop.f32.mrb[38].mxu1  ;;  %v1679_v24 = vpop.f32.mrb[39].mxu0 }
 0x142   :  { %v1362_v25 = vadd.f32 %v1347_v17, %v1346_v16  ;;  %v1154_v27 = vadd.f32 %v1677_v18, %v2266_v26  ;;  %v1680_v29 = vadd.f32 %v1679_v24, %v1678_v21  ;;  %v1743_v30 = vpop.f32.mrb[39].mxu1 }
 0x143   :  { %v1744_v31 = vadd.f32 %v1743_v30, %v1742_v14 }
 0x144   :  { %v1251_v32 = vadd.f32 %v1741_v23, %v1154_v27  ;;  %v1157_v33 = vadd.f32 %v1680_v29, %v2268_v28 }
 0x146   :  { %1307 = vst [vmem:[%s2374_s2 + $0x10] sm:$0xff] %v1251_v32  ;;  %v1323_v34 = vadd.f32 %v1322_v12, %v1251_v32  ;;  %v1348_v35 = vmul.f32 %v1251_v32, %v1251_v32  ;;  %v1254_v37 = vadd.f32 %v1744_v31, %v1157_v33  ;;  %v1681_v39 = vpop.f32.mrb[40].mxu0 }
 0x147   :  { %v1745_v41 = vpop.f32.mrb[40].mxu1  ;;  %v1682_v43 = vpop.f32.mrb[41].mxu0 }
 0x148   :  { %v1363_v44 = vadd.f32 %v1362_v25, %v1348_v35  ;;  %1308 = vst [vmem:[%s2374_s2 + $0x18] sm:$0xff] %v1254_v37  ;;  %v1324_v26 = vadd.f32 %v1323_v34, %v1254_v37  ;;  %v1349_v45 = vmul.f32 %v1254_v37, %v1254_v37  ;;  %v1683_v46 = vadd.f32 %v1682_v43, %v1681_v39  ;;  %v1746_v47 = vpop.f32.mrb[41].mxu1  ;;  %v1684_v28 = vpop.f32.mrb[42].mxu0 }
 0x149   :  { %v1747_v48 = vadd.f32 %v1746_v47, %v1745_v41  ;;  %v1748_v49 = vpop.f32.mrb[42].mxu1  ;;  %v1685_v50 = vpop.f32.mrb[43].mxu0 }
 0x14a   :  { %v1364_v51 = vadd.f32 %v1363_v44, %v1349_v45  ;;  %v1162_v53 = vadd.f32 %v1683_v46, %v2270_v40  ;;  %v1686_v57 = vadd.f32 %v1685_v50, %v1684_v28  ;;  %v1749_v58 = vpop.f32.mrb[43].mxu1 }
 0x14b   :  { %v1750_v59 = vadd.f32 %v1749_v58, %v1748_v49 }
 0x14c   :  { %v1259_v60 = vadd.f32 %v1747_v48, %v1162_v53  ;;  %v1165_v61 = vadd.f32 %v1686_v57, %v2272_v42 }
 0x14e   :  { %1309 = vst [vmem:[%s2374_s2 + $0x20] sm:$0xff] %v1259_v60  ;;  %v1325_v62 = vadd.f32 %v1324_v26, %v1259_v60  ;;  %v1350_v63 = vmul.f32 %v1259_v60, %v1259_v60  ;;  %v1262_v0 = vadd.f32 %v1750_v59, %v1165_v61  ;;  %v1687_v1 = vpop.f32.mrb[44].mxu0 }
 0x14f   :  { %v1751_v2 = vpop.f32.mrb[44].mxu1  ;;  %v1688_v3 = vpop.f32.mrb[45].mxu0 }
 0x150   :  { %v1365_v5 = vadd.f32 %v1364_v51, %v1350_v63  ;;  %1310 = vst [vmem:[%s2374_s2 + $0x28] sm:$0xff] %v1262_v0  ;;  %v1326_v40 = vadd.f32 %v1325_v62, %v1262_v0  ;;  %v1351_v7 = vmul.f32 %v1262_v0, %v1262_v0  ;;  %v1689_v8 = vadd.f32 %v1688_v3, %v1687_v1  ;;  %v1752_v9 = vpop.f32.mrb[45].mxu1  ;;  %v1690_v42 = vpop.f32.mrb[46].mxu0 }
 0x151   :  { %v1753_v10 = vadd.f32 %v1752_v9, %v1751_v2  ;;  %v1754_v11 = vpop.f32.mrb[46].mxu1  ;;  %v1691_v13 = vpop.f32.mrb[47].mxu0 }
 0x152   :  { %v1366_v15 = vadd.f32 %v1365_v5, %v1351_v7  ;;  %v1170_v16 = vadd.f32 %v1689_v8, %v2274_v54  ;;  %v1692_v12 = vadd.f32 %v1691_v13, %v1690_v42  ;;  %v1755_v17 = vpop.f32.mrb[47].mxu1 }
 0x153   :  { %v1756_v18 = vadd.f32 %v1755_v17, %v1754_v11 }
 0x154   :  { %v1267_v19 = vadd.f32 %v1753_v10, %v1170_v16  ;;  %v1173_v21 = vadd.f32 %v1692_v12, %v2276_v56 }
 0x156   :  { %1311 = vst [vmem:[%s2374_s2 + $0x30] sm:$0xff] %v1267_v19  ;;  %v1327_v23 = vadd.f32 %v1326_v40, %v1267_v19  ;;  %v1352_v14 = vmul.f32 %v1267_v19, %v1267_v19  ;;  %v1270_v24 = vadd.f32 %v1756_v18, %v1173_v21  ;;  %v1693_v25 = vpop.f32.mrb[48].mxu0 }
 0x157   :  { %v1757_v27 = vpop.f32.mrb[48].mxu1  ;;  %v1694_v29 = vpop.f32.mrb[49].mxu0 }
 0x158   :  { %v1367_v30 = vadd.f32 %v1366_v15, %v1352_v14  ;;  %1312 = vst [vmem:[%s2374_s2 + $0x38] sm:$0xff] %v1270_v24  ;;  %v1328_v54 = vadd.f32 %v1327_v23, %v1270_v24  ;;  %v1353_v31 = vmul.f32 %v1270_v24, %v1270_v24  ;;  %v1695_v32 = vadd.f32 %v1694_v29, %v1693_v25  ;;  %v1758_v33 = vpop.f32.mrb[49].mxu1  ;;  %v1696_v56 = vpop.f32.mrb[50].mxu0 }
 0x159   :  { %v1759_v34 = vadd.f32 %v1758_v33, %v1757_v27  ;;  %v1760_v35 = vpop.f32.mrb[50].mxu1  ;;  %v1697_v37 = vpop.f32.mrb[51].mxu0 }
 0x15a   :  { %v1368_v39 = vadd.f32 %v1367_v30, %v1353_v31  ;;  %v1178_v41 = vadd.f32 %v1695_v32, %v2278_v4  ;;  %v1698_v43 = vadd.f32 %v1697_v37, %v1696_v56  ;;  %v1761_v44 = vpop.f32.mrb[51].mxu1 }
 0x15b   :  { %v1762_v26 = vadd.f32 %v1761_v44, %v1760_v35 }
 0x15c   :  { %v1275_v45 = vadd.f32 %v1759_v34, %v1178_v41  ;;  %v1181_v46 = vadd.f32 %v1698_v43, %v2280_v6 }
 0x15e   :  { %1313 = vst [vmem:[%s2374_s2 + $0x40] sm:$0xff] %v1275_v45  ;;  %v1329_v47 = vadd.f32 %v1328_v54, %v1275_v45  ;;  %v1354_v28 = vmul.f32 %v1275_v45, %v1275_v45  ;;  %v1278_v48 = vadd.f32 %v1762_v26, %v1181_v46  ;;  %v1699_v49 = vpop.f32.mrb[52].mxu0 }
 0x15f   :  { %v1763_v50 = vpop.f32.mrb[52].mxu1  ;;  %v1700_v51 = vpop.f32.mrb[53].mxu0 }
 0x160   :  { %v1369_v53 = vadd.f32 %v1368_v39, %v1354_v28  ;;  %1314 = vst [vmem:[%s2374_s2 + $0x48] sm:$0xff] %v1278_v48  ;;  %v1330_v4 = vadd.f32 %v1329_v47, %v1278_v48  ;;  %v1355_v57 = vmul.f32 %v1278_v48, %v1278_v48  ;;  %v1701_v58 = vadd.f32 %v1700_v51, %v1699_v49  ;;  %v1764_v59 = vpop.f32.mrb[53].mxu1  ;;  %v1702_v6 = vpop.f32.mrb[54].mxu0 }
 0x161   :  { %v1765_v60 = vadd.f32 %v1764_v59, %v1763_v50  ;;  %v1766_v61 = vpop.f32.mrb[54].mxu1  ;;  %v1703_v62 = vpop.f32.mrb[55].mxu0 }
 0x162   :  { %v1370_v63 = vadd.f32 %v1369_v53, %v1355_v57  ;;  %v1186_v0 = vadd.f32 %v1701_v58, %v2282_v20  ;;  %v1704_v1 = vadd.f32 %v1703_v62, %v1702_v6  ;;  %v1767_v2 = vpop.f32.mrb[55].mxu1 }
 0x163   :  { %v1768_v3 = vadd.f32 %v1767_v2, %v1766_v61  ;;  %v1321_v2 = vld [vmem:[%s2372_s3] sm:$0x1] }
 0x164   :  { %v1283_v5 = vadd.f32 %v1765_v60, %v1186_v0  ;;  %v1189_v40 = vadd.f32 %v1704_v1, %v2284_v22 }
 0x166   :  { %1315 = vst [vmem:[%s2374_s2 + $0x50] sm:$0xff] %v1283_v5  ;;  %v1331_v7 = vadd.f32 %v1330_v4, %v1283_v5  ;;  %v1356_v8 = vmul.f32 %v1283_v5, %v1283_v5  ;;  %v1286_v9 = vadd.f32 %v1768_v3, %v1189_v40  ;;  %v1705_v42 = vpop.f32.mrb[56].mxu0  ;;  %v1345_v40 = vld [vmem:[%s2373_s4] sm:$0x1] }
 0x167   :  { %v1769_v10 = vpop.f32.mrb[56].mxu1  ;;  %v1706_v11 = vpop.f32.mrb[57].mxu0 }
 0x168   :  { %v1371_v13 = vadd.f32 %v1370_v63, %v1356_v8  ;;  %1316 = vst [vmem:[%s2374_s2 + $0x58] sm:$0xff] %v1286_v9  ;;  %v1332_v20 = vadd.f32 %v1331_v7, %v1286_v9  ;;  %v1357_v15 = vmul.f32 %v1286_v9, %v1286_v9  ;;  %v1707_v16 = vadd.f32 %v1706_v11, %v1705_v42  ;;  %v1770_v12 = vpop.f32.mrb[57].mxu1  ;;  %v1708_v22 = vpop.f32.mrb[58].mxu0 }
 0x169   :  { %v1771_v17 = vadd.f32 %v1770_v12, %v1769_v10  ;;  %v1772_v18 = vpop.f32.mrb[58].mxu1  ;;  %v1709_v19 = vpop.f32.mrb[59].mxu0 }
 0x16a   :  { %v1372_v21 = vadd.f32 %v1371_v13, %v1357_v15  ;;  %v1194_v23 = vadd.f32 %v1707_v16, %v2286_v36  ;;  %v1710_v14 = vadd.f32 %v1709_v19, %v1708_v22  ;;  %v1773_v24 = vpop.f32.mrb[59].mxu1 }
 0x16b   :  { %v1774_v25 = vadd.f32 %v1773_v24, %v1772_v18 }
 0x16c   :  { %v1291_v27 = vadd.f32 %v1771_v17, %v1194_v23  ;;  %v1197_v29 = vadd.f32 %v1710_v14, %v2288_v38 }
 0x16e   :  { %1317 = vst [vmem:[%s2374_s2 + $0x60] sm:$0xff] %v1291_v27  ;;  %v1333_v30 = vadd.f32 %v1332_v20, %v1291_v27  ;;  %v1358_v54 = vmul.f32 %v1291_v27, %v1291_v27  ;;  %v1294_v31 = vadd.f32 %v1774_v25, %v1197_v29  ;;  %v1711_v32 = vpop.f32.mrb[60].mxu0 }
 0x16f   :  { %v1775_v33 = vpop.f32.mrb[60].mxu1  ;;  %v1712_v56 = vpop.f32.mrb[61].mxu0 }
 0x170   :  { %v1373_v34 = vadd.f32 %v1372_v21, %v1358_v54  ;;  %1318 = vst [vmem:[%s2374_s2 + $0x68] sm:$0xff] %v1294_v31  ;;  %v1334_v36 = vadd.f32 %v1333_v30, %v1294_v31  ;;  %v1359_v35 = vmul.f32 %v1294_v31, %v1294_v31  ;;  %v1713_v37 = vadd.f32 %v1712_v56, %v1711_v32  ;;  %v1776_v39 = vpop.f32.mrb[61].mxu1  ;;  %v1714_v38 = vpop.f32.mrb[62].mxu0 }
 0x171   :  { %v1777_v41 = vadd.f32 %v1776_v39, %v1775_v33  ;;  %v1778_v43 = vpop.f32.mrb[62].mxu1  ;;  %v1715_v44 = vpop.f32.mrb[63].mxu0 }
 0x172   :  { %v1374_v26 = vadd.f32 %v1373_v34, %v1359_v35  ;;  %v1202_v45 = vadd.f32 %v1713_v37, %v2290_v52  ;;  %v1716_v46 = vadd.f32 %v1715_v44, %v1714_v38  ;;  %v1779_v47 = vpop.f32.mrb[63].mxu1 }
 0x173   :  { %v1780_v28 = vadd.f32 %v1779_v47, %v1778_v43 }
 0x174   :  { %v1299_v48 = vadd.f32 %v1777_v41, %v1202_v45  ;;  %v1205_v49 = vadd.f32 %v1716_v46, %v2292_v55 }
 0x176   :  { %1319 = vst [vmem:[%s2374_s2 + $0x70] sm:$0xff] %v1299_v48  ;;  %v1335_v50 = vadd.f32 %v1334_v36, %v1299_v48  ;;  %v1360_v51 = vmul.f32 %v1299_v48, %v1299_v48  ;;  %v1302_v53 = vadd.f32 %v1780_v28, %v1205_v49 }
 0x178   :  { %v1375_v4 = vadd.f32 %v1374_v26, %v1360_v51  ;;  %1320 = vst [vmem:[%s2374_s2 + $0x78] sm:$0xff] %v1302_v53  ;;  %v1336_v57 = vadd.f32 %v1335_v50, %v1302_v53  ;;  %v1361_v52 = vmul.f32 %v1302_v53, %v1302_v53 }
 0x17a   :  { %v1337_v58 = vrot.slane %v1336_v57, 4  ;;  %v1376_v59 = vadd.f32 %v1375_v4, %v1361_v52 }
 0x17c   :  { %v1338_v6 = vadd.f32 %v1337_v58, %v1336_v57  ;;  %v1377_v60 = vrot.slane %v1376_v59, 4 }
 0x17e   :  { %v1339_v61 = vrot.slane %v1338_v6, 2  ;;  %v1378_v55 = vadd.f32 %v1377_v60, %v1376_v59 }
 0x180   :  { %v1340_v62 = vadd.f32 %v1339_v61, %v1338_v6  ;;  %v1379_v63 = vrot.slane %v1378_v55, 2 }
 0x182   :  { %v1341_v0 = vrot.slane %v1340_v62, 1  ;;  %v1380_v1 = vadd.f32 %v1379_v63, %v1378_v55 }
 0x184   :  { %v1342_v3 = vadd.f32 %v1341_v0, %v1340_v62  ;;  %v1381_v5 = vrot.slane %v1380_v1, 1 }
 0x186   :  { %v1343_v7 = vadd.f32 %v1342_v3, %v1321_v2  ;;  %v1382_v8 = vadd.f32 %v1381_v5, %v1380_v1 }
 0x188   :  { %1344 = vst [vmem:[%s2372_s3] sm:$0x1] %v1343_v7  ;;  %v1383_v9 = vadd.f32 %v1382_v8, %v1345_v40 }
 0x18a   :  { %1384 = vst [vmem:[%s2373_s4] sm:$0x1] %v1383_v9 }

// kernel: discriminator_forward.9
= control target key start
LH: loop header
LB: loop body
LE: loop exit
PB: predicated region body
PF: predicated region fallthrough
CT: control target
= control target key end

     0   :  { %s423_s0 = inlined_call_operand.vmem [shape: f32[128,128], index: 0, kind: input, shape index: {}]   ;;  %s424_s1 = inlined_call_operand.vmem [shape: f32[1,128], index: 1, kind: input, shape index: {}]   ;;  %s425_s2 = inlined_call_operand.vmem [shape: f32[1,128], index: 2, kind: input, shape index: {}]   ;;  %s426_s3 = inlined_call_operand.vmem [shape: bf16[128,128], index: 3, kind: output, shape index: {}]  }
   0x1   :  { %v14_v0 = vld [vmem:[%s423_s0] sm:$0xff]  ;;  %v15_v1 = vld [vmem:[%s423_s0 + $0x8] sm:$0xff]  ;;  %v16_v6 = vld [vmem:[%s423_s0 + $0x10] sm:$0xff] }
   0x2   :  { %v318_v2 = vld [vmem:[%s424_s1] ss:$0 sm:$0xff]  ;;  %v17_v7 = vld [vmem:[%s423_s0 + $0x18] sm:$0xff]  ;;  %v19_v11 = vld [vmem:[%s423_s0 + $0x28] sm:$0xff] }
   0x3   :  { %v37_v3 = vmul.f32 %v318_v2, %v14_v0  ;;  %v38_v4 = vmul.f32 %v318_v2, %v15_v1  ;;  %v325_v5 = vld [vmem:[%s425_s2] ss:$0 sm:$0xff]  ;;  %v39_v8 = vmul.f32 %v318_v2, %v16_v6  ;;  %v40_v9 = vmul.f32 %v318_v2, %v17_v7  ;;  %v20_v12 = vld [vmem:[%s423_s0 + $0x30] sm:$0xff]  ;;  %v21_v17 = vld [vmem:[%s423_s0 + $0x38] sm:$0xff] }
   0x4   :  { %v18_v10 = vld [vmem:[%s423_s0 + $0x20] sm:$0xff]  ;;  %v42_v16 = vmul.f32 %v318_v2, %v19_v11  ;;  %v43_v20 = vmul.f32 %v318_v2, %v20_v12  ;;  %v44_v21 = vmul.f32 %v318_v2, %v21_v17  ;;  %v23_v35 = vld [vmem:[%s423_s0 + $0x48] sm:$0xff]  ;;  %v24_v36 = vld [vmem:[%s423_s0 + $0x50] sm:$0xff] }
   0x5   :  { %v60_v13 = vadd.f32 %v325_v5, %v37_v3  ;;  %v61_v14 = vadd.f32 %v325_v5, %v38_v4  ;;  %v41_v15 = vmul.f32 %v318_v2, %v18_v10  ;;  %v62_v18 = vadd.f32 %v325_v5, %v39_v8  ;;  %v22_v34 = vld [vmem:[%s423_s0 + $0x40] sm:$0xff]  ;;  %v25_v42 = vld [vmem:[%s423_s0 + $0x58] sm:$0xff]  ;;  %v27_v48 = vld [vmem:[%s423_s0 + $0x68] sm:$0xff] }
   0x6   :  { %v63_v19 = vadd.f32 %v325_v5, %v40_v9  ;;  %v65_v29 = vadd.f32 %v325_v5, %v42_v16  ;;  %v66_v33 = vadd.f32 %v325_v5, %v43_v20  ;;  %v67_v40 = vadd.f32 %v325_v5, %v44_v21  ;;  %v26_v47 = vld [vmem:[%s423_s0 + $0x60] sm:$0xff]  ;;  %v28_v60 = vld [vmem:[%s423_s0 + $0x70] sm:$0xff]  ;;  %v29_v7 = vld [vmem:[%s423_s0 + $0x78] sm:$0xff] }
   0x7   :  { %vm76_vm0 = vcmp.ge.f32.partialorder %v60_v13, 0.0  ;;  %vm77_vm1 = vcmp.ge.f32.partialorder %v61_v14, 0.0  ;;  %v92_v22 = vmul.f32 0.2, %v60_v13  ;;  %v93_v23 = vmul.f32 0.2, %v61_v14 }
   0x8   :  { %vm78_vm2 = vcmp.ge.f32.partialorder %v62_v18, 0.0  ;;  %vm79_vm3 = vcmp.ge.f32.partialorder %v63_v19, 0.0  ;;  %v94_v24 = vmul.f32 0.2, %v62_v18  ;;  %v95_v25 = vmul.f32 0.2, %v63_v19 }
   0x9   :  { %v108_v26 = vsel %vm76_vm0, %v60_v13, %v92_v22  ;;  %v109_v27 = vsel %vm77_vm1, %v61_v14, %v93_v23  ;;  %v64_v28 = vadd.f32 %v325_v5, %v41_v15  ;;  %vm81_vm5 = vcmp.ge.f32.partialorder %v65_v29, 0.0 }
   0xa   :  { %v245_v30 = vpack.c.bf16 %v109_v27, %v108_v26  ;;  %v110_v31 = vsel %vm78_vm2, %v62_v18, %v94_v24  ;;  %v111_v32 = vsel %vm79_vm3, %v63_v19, %v95_v25  ;;  %v97_v39 = vmul.f32 0.2, %v65_v29 }
   0xb   :  { %v250_v37 = vpack.c.bf16 %v111_v32, %v110_v31  ;;  %vm80_vm4 = vcmp.ge.f32.partialorder %v64_v28, 0.0  ;;  %v96_v38 = vmul.f32 0.2, %v64_v28  ;;  %vm82_vm6 = vcmp.ge.f32.partialorder %v66_v33, 0.0 }
   0xc   :  { %246 = vst [vmem:[%s426_s3] sm:$0xff] %v245_v30   ;;  %v98_v41 = vmul.f32 0.2, %v66_v33  ;;  %v45_v44 = vmul.f32 %v318_v2, %v22_v34  ;;  %v46_v45 = vmul.f32 %v318_v2, %v23_v35  ;;  %v47_v46 = vmul.f32 %v318_v2, %v24_v36 }
   0xd   :  { %282 = vst [vmem:[%s426_s3 + $0x8] sm:$0xff] %v250_v37   ;;  %v112_v43 = vsel %vm80_vm4, %v64_v28, %v96_v38  ;;  %v113_v49 = vsel %vm81_vm5, %v65_v29, %v97_v39  ;;  %vm83_vm7 = vcmp.ge.f32.partialorder %v67_v40, 0.0  ;;  %v99_v50 = vmul.f32 0.2, %v67_v40 }
   0xe   :  { %v114_v51 = vsel %vm82_vm6, %v66_v33, %v98_v41  ;;  %v255_v52 = vpack.c.bf16 %v113_v49, %v112_v43  ;;  %v68_v53 = vadd.f32 %v325_v5, %v45_v44  ;;  %v69_v54 = vadd.f32 %v325_v5, %v46_v45 }
   0xf   :  { %v48_v55 = vmul.f32 %v318_v2, %v25_v42  ;;  %v115_v56 = vsel %vm83_vm7, %v67_v40, %v99_v50  ;;  %v70_v57 = vadd.f32 %v325_v5, %v47_v46  ;;  %v49_v58 = vmul.f32 %v318_v2, %v26_v47 }
  0x10   :  { %v50_v59 = vmul.f32 %v318_v2, %v27_v48  ;;  %283 = vst [vmem:[%s426_s3 + $0x10] sm:$0xff] %v255_v52   ;;  %v260_v61 = vpack.c.bf16 %v115_v56, %v114_v51  ;;  %vm84_vm8 = vcmp.ge.f32.partialorder %v68_v53, 0.0  ;;  %vm85_vm9 = vcmp.ge.f32.partialorder %v69_v54, 0.0 }
  0x11   :  { %v100_v62 = vmul.f32 0.2, %v68_v53  ;;  %v101_v63 = vmul.f32 0.2, %v69_v54  ;;  %v71_v0 = vadd.f32 %v325_v5, %v48_v55  ;;  %vm86_vm10 = vcmp.ge.f32.partialorder %v70_v57, 0.0 }
  0x12   :  { %v102_v1 = vmul.f32 0.2, %v70_v57  ;;  %284 = vst [vmem:[%s426_s3 + $0x18] sm:$0xff] %v260_v61   ;;  %v72_v4 = vadd.f32 %v325_v5, %v49_v58  ;;  %v73_v6 = vadd.f32 %v325_v5, %v50_v59  ;;  %v51_v8 = vmul.f32 %v318_v2, %v28_v60 }
  0x13   :  { %v116_v3 = vsel %vm84_vm8, %v68_v53, %v100_v62  ;;  %v117_v9 = vsel %vm85_vm9, %v69_v54, %v101_v63  ;;  %vm87_vm11 = vcmp.ge.f32.partialorder %v71_v0, 0.0  ;;  %v103_v10 = vmul.f32 0.2, %v71_v0 }
  0x14   :  { %v118_v11 = vsel %vm86_vm10, %v70_v57, %v102_v1  ;;  %v265_v12 = vpack.c.bf16 %v117_v9, %v116_v3  ;;  %vm88_vm12 = vcmp.ge.f32.partialorder %v72_v4, 0.0  ;;  %vm89_vm13 = vcmp.ge.f32.partialorder %v73_v6, 0.0 }
  0x15   :  { %v104_v13 = vmul.f32 0.2, %v72_v4  ;;  %v119_v14 = vsel %vm87_vm11, %v71_v0, %v103_v10  ;;  %v105_v15 = vmul.f32 0.2, %v73_v6  ;;  %v52_v16 = vmul.f32 %v318_v2, %v29_v7 }
  0x16   :  { %v74_v17 = vadd.f32 %v325_v5, %v51_v8  ;;  %285 = vst [vmem:[%s426_s3 + $0x20] sm:$0xff] %v265_v12   ;;  %v270_v18 = vpack.c.bf16 %v119_v14, %v118_v11 }
  0x17   :  { %v120_v19 = vsel %vm88_vm12, %v72_v4, %v104_v13  ;;  %v121_v20 = vsel %vm89_vm13, %v73_v6, %v105_v15  ;;  %v75_v21 = vadd.f32 %v325_v5, %v52_v16 }
  0x18   :  { %vm90_vm14 = vcmp.ge.f32.partialorder %v74_v17, 0.0  ;;  %v106_v22 = vmul.f32 0.2, %v74_v17  ;;  %286 = vst [vmem:[%s426_s3 + $0x28] sm:$0xff] %v270_v18   ;;  %v275_v23 = vpack.c.bf16 %v121_v20, %v120_v19 }
  0x19   :  { %vm91_vm15 = vcmp.ge.f32.partialorder %v75_v21, 0.0  ;;  %v107_v2 = vmul.f32 0.2, %v75_v21 }
  0x1a   :  { %v122_v24 = vsel %vm90_vm14, %v74_v17, %v106_v22  ;;  %287 = vst [vmem:[%s426_s3 + $0x30] sm:$0xff] %v275_v23  }
  0x1b   :  { %v123_v25 = vsel %vm91_vm15, %v75_v21, %v107_v2 }
  0x1c   :  { %v280_v26 = vpack.c.bf16 %v123_v25, %v122_v24 }
  0x1e   :  { %288 = vst [vmem:[%s426_s3 + $0x38] sm:$0xff] %v280_v26  }

// kernel: discriminator_forward.11
= control target key start
LH: loop header
LB: loop body
LE: loop exit
PB: predicated region body
PF: predicated region fallthrough
CT: control target
= control target key end

     0   :  { %v24_v0 = vlaneseq  ;;  %s188_s1 = inlined_call_operand.vmem [shape: f32[1,256], index: 1, kind: input, shape index: {}]   ;;  %s189_s2 = inlined_call_operand.vmem [shape: f32[1,256], index: 2, kind: input, shape index: {}]   ;;  %s190_s0 = inlined_call_operand.vmem [shape: f32[32,256], index: 0, kind: input, shape index: {}]   ;;  %s191_s3 = inlined_call_operand.vmem [shape: bf16[32,256], index: 3, kind: output, shape index: {}]  }
   0x1   :  { %v22_v2 = vld [vmem:[%s188_s1] sm:$0x3]  ;;  %v15_v5 = vld [vmem:[%s190_s0 + $0x8] sm:$0xff]  ;;  %v16_v8 = vld [vmem:[%s190_s0 + $0x10] sm:$0xff] }
   0x2   :  { %v25_v1 = vshrl.u32 %v24_v0, 7  ;;  %v42_v3 = vld [vmem:[%s189_s2] sm:$0x3]  ;;  %v17_v9 = vld [vmem:[%s190_s0 + $0x18] sm:$0xff]  ;;  %v19_v15 = vld [vmem:[%s190_s0 + $0x28] sm:$0xff] }
   0x3   :  { %v14_v4 = vld [vmem:[%s190_s0] sm:$0xff]  ;;  %v20_v16 = vld [vmem:[%s190_s0 + $0x30] sm:$0xff]  ;;  %v21_v17 = vld [vmem:[%s190_s0 + $0x38] sm:$0xff] }
   0x4   :  { %v26_v6 = vsub.s32 0, %v25_v1  ;;  %v30_v7 = vsub.s32 1, %v25_v1  ;;  %v18_v10 = vld [vmem:[%s190_s0 + $0x20] sm:$0xff] }
   0x6   :  { %v27_v11 = vrot.slane %v22_v2, %v26_v6  ;;  %v31_v12 = vrot.slane %v22_v2, %v30_v7  ;;  %v47_v13 = vrot.slane %v42_v3, %v26_v6  ;;  %v51_v14 = vrot.slane %v42_v3, %v30_v7 }
   0x8   :  { %v34_v18 = vmul.f32 %v27_v11, %v14_v4  ;;  %v35_v19 = vmul.f32 %v31_v12, %v15_v5  ;;  %v36_v20 = vmul.f32 %v27_v11, %v16_v8  ;;  %v37_v21 = vmul.f32 %v31_v12, %v17_v9 }
   0x9   :  { %v38_v22 = vmul.f32 %v27_v11, %v18_v10  ;;  %v39_v23 = vmul.f32 %v31_v12, %v19_v15  ;;  %v40_v24 = vmul.f32 %v27_v11, %v20_v16  ;;  %v41_v25 = vmul.f32 %v31_v12, %v21_v17 }
   0xa   :  { %v54_v26 = vadd.f32 %v47_v13, %v34_v18  ;;  %v55_v27 = vadd.f32 %v51_v14, %v35_v19  ;;  %v56_v28 = vadd.f32 %v47_v13, %v36_v20  ;;  %v57_v29 = vadd.f32 %v51_v14, %v37_v21 }
   0xb   :  { %v58_v30 = vadd.f32 %v47_v13, %v38_v22  ;;  %v59_v31 = vadd.f32 %v51_v14, %v39_v23  ;;  %v60_v32 = vadd.f32 %v47_v13, %v40_v24  ;;  %v61_v33 = vadd.f32 %v51_v14, %v41_v25 }
   0xc   :  { %vm62_vm0 = vcmp.ge.f32.partialorder %v54_v26, 0.0  ;;  %vm63_vm1 = vcmp.ge.f32.partialorder %v55_v27, 0.0  ;;  %v70_v34 = vmul.f32 0.2, %v54_v26  ;;  %v71_v35 = vmul.f32 0.2, %v55_v27 }
   0xd   :  { %vm64_vm2 = vcmp.ge.f32.partialorder %v56_v28, 0.0  ;;  %vm65_vm3 = vcmp.ge.f32.partialorder %v57_v29, 0.0  ;;  %v72_v36 = vmul.f32 0.2, %v56_v28  ;;  %v73_v37 = vmul.f32 0.2, %v57_v29 }
   0xe   :  { %v78_v38 = vsel %vm62_vm0, %v54_v26, %v70_v34  ;;  %v79_v39 = vsel %vm63_vm1, %v55_v27, %v71_v35  ;;  %vm66_vm4 = vcmp.ge.f32.partialorder %v58_v30, 0.0  ;;  %vm67_vm5 = vcmp.ge.f32.partialorder %v59_v31, 0.0 }
   0xf   :  { %v122_v40 = vpack.c.bf16 %v79_v39, %v78_v38  ;;  %v80_v41 = vsel %vm64_vm2, %v56_v28, %v72_v36  ;;  %v81_v42 = vsel %vm65_vm3, %v57_v29, %v73_v37  ;;  %v74_v43 = vmul.f32 0.2, %v58_v30 }
  0x10   :  { %v123_v44 = vpack.c.bf16 %v81_v42, %v80_v41  ;;  %v75_v45 = vmul.f32 0.2, %v59_v31  ;;  %vm68_vm6 = vcmp.ge.f32.partialorder %v60_v32, 0.0  ;;  %vm69_vm7 = vcmp.ge.f32.partialorder %v61_v33, 0.0 }
  0x11   :  { %110 = vst [vmem:[%s191_s3] sm:$0xff] %v122_v40  ;;  %v82_v46 = vsel %vm66_vm4, %v58_v30, %v74_v43  ;;  %v76_v47 = vmul.f32 0.2, %v60_v32  ;;  %v77_v48 = vmul.f32 0.2, %v61_v33 }
  0x12   :  { %111 = vst [vmem:[%s191_s3 + $0x8] sm:$0xff] %v123_v44  ;;  %v83_v49 = vsel %vm67_vm5, %v59_v31, %v75_v45 }
  0x13   :  { %v124_v50 = vpack.c.bf16 %v83_v49, %v82_v46  ;;  %v84_v51 = vsel %vm68_vm6, %v60_v32, %v76_v47  ;;  %v85_v52 = vsel %vm69_vm7, %v61_v33, %v77_v48 }
  0x14   :  { %v125_v53 = vpack.c.bf16 %v85_v52, %v84_v51 }
  0x15   :  { %112 = vst [vmem:[%s191_s3 + $0x10] sm:$0xff] %v124_v50 }
  0x16   :  { %113 = vst [vmem:[%s191_s3 + $0x18] sm:$0xff] %v125_v53 }

// kernel: discriminator_forward.10
= control target key start
LH: loop header
LB: loop body
LE: loop exit
PB: predicated region body
PF: predicated region fallthrough
CT: control target
= control target key end

     0   :  { %s4011_s1 = inlined_call_operand.vmem [shape: bf16[2048,256], index: 1, kind: input, shape index: {}]   ;;  %s4012_s0 = inlined_call_operand.vmem [shape: bf16[32,2048], index: 0, kind: input, shape index: {}]   ;;  %s4013_s3 = inlined_call_operand.vmem [shape: f32[1,256], index: 3, kind: output, shape index: {1}]   ;;  %s4014_s4 = inlined_call_operand.vmem [shape: f32[1,256], index: 4, kind: output, shape index: {2}]   ;;  %s4015_s2 = inlined_call_operand.vmem [shape: f32[32,256], index: 2, kind: output, shape index: {0}]  }
   0x1   :  { %v2632_v0 = vld [vmem:[%s4011_s1 + $0x4] ss:$8 sps:$4 sm:$0xff]   ;;  %v2636_v2 = vld [vmem:[%s4011_s1] ss:$8 sps:$4 sm:$0xff]   ;;  %v2638_v4 = vld [vmem:[%s4011_s1 + $0x14] ss:$8 sps:$4 sm:$0xff]  }
   0x2   :  { %v2634_v1 = vld [vmem:[%s4011_s1 + $0x404] ss:$8 sps:$4 sm:$0xff]   ;;  %1752 = vmatprep.subr.bf16.mxu1 %v2632_v0  ;;  %v2637_v3 = vld [vmem:[%s4011_s1 + $0x400] ss:$8 sps:$4 sm:$0xff]   ;;  %v2640_v5 = vld [vmem:[%s4011_s1 + $0x414] ss:$8 sps:$4 sm:$0xff]  }
   0x3   :  { %1964 = vmatprep.subr.bf16.mxu0 %v2634_v1  ;;  %1753 = vmatpush1.bf16.msra.mxu1 %v2636_v2  ;;  %v2642_v6 = vld [vmem:[%s4011_s1 + $0x10] ss:$8 sps:$4 sm:$0xff]   ;;  %v2644_v8 = vld [vmem:[%s4011_s1 + $0x24] ss:$8 sps:$4 sm:$0xff]   ;;  %v2648_v10 = vld [vmem:[%s4011_s1 + $0x20] ss:$8 sps:$4 sm:$0xff]  }
   0x4   :  { %1965 = vmatpush1.bf16.msra.mxu0 %v2637_v3  ;;  %1754 = vmatprep.subr.bf16.mxu1 %v2638_v4  ;;  %v2643_v7 = vld [vmem:[%s4011_s1 + $0x410] ss:$8 sps:$4 sm:$0xff]   ;;  %v2646_v9 = vld [vmem:[%s4011_s1 + $0x424] ss:$8 sps:$4 sm:$0xff]   ;;  %v2649_v11 = vld [vmem:[%s4011_s1 + $0x420] ss:$8 sps:$4 sm:$0xff]  }
   0x5   :  { %1966 = vmatprep.subr.bf16.mxu0 %v2640_v5  ;;  %v2650_v12 = vld [vmem:[%s4011_s1 + $0x34] ss:$8 sps:$4 sm:$0xff]   ;;  %v2654_v14 = vld [vmem:[%s4011_s1 + $0x30] ss:$8 sps:$4 sm:$0xff]   ;;  %v2656_v16 = vld [vmem:[%s4011_s1 + $0x44] ss:$8 sps:$4 sm:$0xff]  }
   0x6   :  { %v2652_v13 = vld [vmem:[%s4011_s1 + $0x434] ss:$8 sps:$4 sm:$0xff]   ;;  %v2655_v15 = vld [vmem:[%s4011_s1 + $0x430] ss:$8 sps:$4 sm:$0xff]   ;;  %v2658_v17 = vld [vmem:[%s4011_s1 + $0x444] ss:$8 sps:$4 sm:$0xff]  }
   0x7   :  { %1755 = vmatpush1.bf16.msra.mxu1 %v2642_v6  ;;  %v2660_v18 = vld [vmem:[%s4011_s1 + $0x40] ss:$8 sps:$4 sm:$0xff]   ;;  %v2662_v20 = vld [vmem:[%s4011_s1 + $0x54] ss:$8 sps:$4 sm:$0xff]   ;;  %v2666_v22 = vld [vmem:[%s4011_s1 + $0x50] ss:$8 sps:$4 sm:$0xff]  }
   0x8   :  { %1967 = vmatpush1.bf16.msra.mxu0 %v2643_v7  ;;  %1756 = vmatprep.subr.bf16.mxu1 %v2644_v8  ;;  %v2661_v19 = vld [vmem:[%s4011_s1 + $0x440] ss:$8 sps:$4 sm:$0xff]   ;;  %v2664_v21 = vld [vmem:[%s4011_s1 + $0x454] ss:$8 sps:$4 sm:$0xff]   ;;  %v2667_v23 = vld [vmem:[%s4011_s1 + $0x450] ss:$8 sps:$4 sm:$0xff]  }
   0x9   :  { %1968 = vmatprep.subr.bf16.mxu0 %v2646_v9  ;;  %v2668_v24 = vld [vmem:[%s4011_s1 + $0x64] ss:$8 sps:$4 sm:$0xff]   ;;  %v2672_v26 = vld [vmem:[%s4011_s1 + $0x60] ss:$8 sps:$4 sm:$0xff]   ;;  %v2674_v28 = vld [vmem:[%s4011_s1 + $0x74] ss:$8 sps:$4 sm:$0xff]  }
   0xa   :  { %v2670_v25 = vld [vmem:[%s4011_s1 + $0x464] ss:$8 sps:$4 sm:$0xff]   ;;  %v2673_v27 = vld [vmem:[%s4011_s1 + $0x460] ss:$8 sps:$4 sm:$0xff]   ;;  %v2676_v29 = vld [vmem:[%s4011_s1 + $0x474] ss:$8 sps:$4 sm:$0xff]  }
   0xb   :  { %1757 = vmatpush1.bf16.msra.mxu1 %v2648_v10  ;;  %v2678_v30 = vld [vmem:[%s4011_s1 + $0x70] ss:$8 sps:$4 sm:$0xff]   ;;  %v2680_v32 = vld [vmem:[%s4011_s1 + $0x84] ss:$8 sps:$4 sm:$0xff]   ;;  %v2684_v34 = vld [vmem:[%s4011_s1 + $0x80] ss:$8 sps:$4 sm:$0xff]  }
   0xc   :  { %1969 = vmatpush1.bf16.msra.mxu0 %v2649_v11  ;;  %1758 = vmatprep.subr.bf16.mxu1 %v2650_v12  ;;  %v2679_v31 = vld [vmem:[%s4011_s1 + $0x470] ss:$8 sps:$4 sm:$0xff]   ;;  %v2682_v33 = vld [vmem:[%s4011_s1 + $0x484] ss:$8 sps:$4 sm:$0xff]   ;;  %v2685_v35 = vld [vmem:[%s4011_s1 + $0x480] ss:$8 sps:$4 sm:$0xff]  }
   0xd   :  { %1970 = vmatprep.subr.bf16.mxu0 %v2652_v13  ;;  %v2686_v36 = vld [vmem:[%s4011_s1 + $0x94] ss:$8 sps:$4 sm:$0xff]   ;;  %v2690_v38 = vld [vmem:[%s4011_s1 + $0x90] ss:$8 sps:$4 sm:$0xff]   ;;  %v2692_v40 = vld [vmem:[%s4011_s1 + $0xa4] ss:$8 sps:$4 sm:$0xff]  }
   0xe   :  { %v2688_v37 = vld [vmem:[%s4011_s1 + $0x494] ss:$8 sps:$4 sm:$0xff]   ;;  %v2691_v39 = vld [vmem:[%s4011_s1 + $0x490] ss:$8 sps:$4 sm:$0xff]   ;;  %v2694_v41 = vld [vmem:[%s4011_s1 + $0x4a4] ss:$8 sps:$4 sm:$0xff]  }
   0xf   :  { %1759 = vmatpush1.bf16.msra.mxu1 %v2654_v14  ;;  %v2696_v42 = vld [vmem:[%s4011_s1 + $0xa0] ss:$8 sps:$4 sm:$0xff]   ;;  %v2698_v44 = vld [vmem:[%s4011_s1 + $0xb4] ss:$8 sps:$4 sm:$0xff]   ;;  %v2702_v46 = vld [vmem:[%s4011_s1 + $0xb0] ss:$8 sps:$4 sm:$0xff]  }
  0x10   :  { %1971 = vmatpush1.bf16.msra.mxu0 %v2655_v15  ;;  %1760 = vmatprep.subr.bf16.mxu1 %v2656_v16  ;;  %v2697_v43 = vld [vmem:[%s4011_s1 + $0x4a0] ss:$8 sps:$4 sm:$0xff]   ;;  %v2700_v45 = vld [vmem:[%s4011_s1 + $0x4b4] ss:$8 sps:$4 sm:$0xff]   ;;  %v2703_v47 = vld [vmem:[%s4011_s1 + $0x4b0] ss:$8 sps:$4 sm:$0xff]  }
  0x11   :  { %1972 = vmatprep.subr.bf16.mxu0 %v2658_v17  ;;  %v24_v48 = vld [vmem:[%s4012_s0] sm:$0xff]  ;;  %v2710_v58 = vld [vmem:[%s4011_s1 + $0xd4] ss:$8 sps:$4 sm:$0xff]   ;;  %v2714_v60 = vld [vmem:[%s4011_s1 + $0xd0] ss:$8 sps:$4 sm:$0xff]  }
  0x12   :  { %v32_v49 = vld [vmem:[%s4012_s0 + $0x40] sm:$0xff]  ;;  %v2712_v59 = vld [vmem:[%s4011_s1 + $0x4d4] ss:$8 sps:$4 sm:$0xff]   ;;  %v2715_v61 = vld [vmem:[%s4011_s1 + $0x4d0] ss:$8 sps:$4 sm:$0xff]  }
  0x13   :  { %1761 = vmatpush1.bf16.msra.mxu1 %v2660_v18  ;;  %v2704_v50 = vld [vmem:[%s4011_s1 + $0xc4] ss:$8 sps:$4 sm:$0xff]   ;;  %v2287_v52 = vcombine.high %v24_v48, %v32_v49  ;;  %v2708_v56 = vld [vmem:[%s4011_s1 + $0xc0] ss:$8 sps:$4 sm:$0xff]   ;;  %v2722_v2 = vld [vmem:[%s4011_s1 + $0xf4] ss:$8 sps:$4 sm:$0xff]   ;;  %v2286_v8 = vcombine.low %v24_v48, %v32_v49 }
  0x14   :  { %1973 = vmatpush1.bf16.msra.mxu0 %v2661_v19  ;;  %1762 = vmatprep.subr.bf16.mxu1 %v2662_v20  ;;  %v2706_v51 = vld [vmem:[%s4011_s1 + $0x4c4] ss:$8 sps:$4 sm:$0xff]   ;;  %v2709_v57 = vld [vmem:[%s4011_s1 + $0x4c0] ss:$8 sps:$4 sm:$0xff]   ;;  %v2724_v3 = vld [vmem:[%s4011_s1 + $0x4f4] ss:$8 sps:$4 sm:$0xff]  }
  0x15   :  { %1974 = vmatprep.subr.bf16.mxu0 %v2664_v21  ;;  %v28_v53 = vld [vmem:[%s4012_s0 + $0x20] sm:$0xff]  ;;  %1784 = vmatprep.mubr.bf16.mxu1 %v2287_v52  ;;  %v2726_v4 = vld [vmem:[%s4011_s1 + $0xf0] ss:$8 sps:$4 sm:$0xff]   ;;  %v2736_v12 = vld [vmem:[%s4011_s1 + $0x114] ss:$8 sps:$4 sm:$0xff]  }
  0x16   :  { %v36_v54 = vld [vmem:[%s4012_s0 + $0x60] sm:$0xff]  ;;  %v2727_v5 = vld [vmem:[%s4011_s1 + $0x4f0] ss:$8 sps:$4 sm:$0xff]   ;;  %v2739_v13 = vld [vmem:[%s4011_s1 + $0x514] ss:$8 sps:$4 sm:$0xff]  }
  0x17   :  { %1763 = vmatpush1.bf16.msra.mxu1 %v2666_v22  ;;  %v2295_v55 = vcombine.high %v28_v53, %v36_v54  ;;  %v2716_v62 = vld [vmem:[%s4011_s1 + $0xe4] ss:$8 sps:$4 sm:$0xff]   ;;  %v2720_v0 = vld [vmem:[%s4011_s1 + $0xe0] ss:$8 sps:$4 sm:$0xff]   ;;  %v2294_v10 = vcombine.low %v28_v53, %v36_v54  ;;  %v2734_v14 = vld [vmem:[%s4011_s1 + $0x110] ss:$8 sps:$4 sm:$0xff]  }
  0x18   :  { %1975 = vmatpush1.bf16.msra.mxu0 %v2667_v23  ;;  %1764 = vmatprep.subr.bf16.mxu1 %v2668_v24  ;;  %v2718_v63 = vld [vmem:[%s4011_s1 + $0x4e4] ss:$8 sps:$4 sm:$0xff]   ;;  %v2721_v1 = vld [vmem:[%s4011_s1 + $0x4e0] ss:$8 sps:$4 sm:$0xff]   ;;  %v2737_v15 = vld [vmem:[%s4011_s1 + $0x510] ss:$8 sps:$4 sm:$0xff]  }
  0x19   :  { %1976 = vmatprep.subr.bf16.mxu0 %v2670_v25  ;;  %1996 = vmatprep.mubr.bf16.mxu0 %v2295_v55  ;;  %v2730_v6 = vld [vmem:[%s4011_s1 + $0x104] ss:$8 sps:$4 sm:$0xff]   ;;  %v2728_v9 = vld [vmem:[%s4011_s1 + $0x100] ss:$8 sps:$4 sm:$0xff]   ;;  %v2748_v20 = vld [vmem:[%s4011_s1 + $0x134] ss:$8 sps:$4 sm:$0xff]  }
  0x1a   :  { %v2733_v7 = vld [vmem:[%s4011_s1 + $0x504] ss:$8 sps:$4 sm:$0xff]   ;;  %v2731_v11 = vld [vmem:[%s4011_s1 + $0x500] ss:$8 sps:$4 sm:$0xff]   ;;  %v2751_v21 = vld [vmem:[%s4011_s1 + $0x534] ss:$8 sps:$4 sm:$0xff]  }
  0x1b   :  { %1765 = vmatpush1.bf16.msra.mxu1 %v2672_v26  ;;  %v2742_v16 = vld [vmem:[%s4011_s1 + $0x124] ss:$8 sps:$4 sm:$0xff]   ;;  %v2740_v18 = vld [vmem:[%s4011_s1 + $0x120] ss:$8 sps:$4 sm:$0xff]   ;;  %v2746_v22 = vld [vmem:[%s4011_s1 + $0x130] ss:$8 sps:$4 sm:$0xff]  }
  0x1c   :  { %1977 = vmatpush1.bf16.msra.mxu0 %v2673_v27  ;;  %1766 = vmatprep.subr.bf16.mxu1 %v2674_v28  ;;  %v2745_v17 = vld [vmem:[%s4011_s1 + $0x524] ss:$8 sps:$4 sm:$0xff]   ;;  %v2743_v19 = vld [vmem:[%s4011_s1 + $0x520] ss:$8 sps:$4 sm:$0xff]   ;;  %v2749_v23 = vld [vmem:[%s4011_s1 + $0x530] ss:$8 sps:$4 sm:$0xff]  }
  0x1d   :  { %1978 = vmatprep.subr.bf16.mxu0 %v2676_v29  ;;  %v2754_v24 = vld [vmem:[%s4011_s1 + $0x144] ss:$8 sps:$4 sm:$0xff]   ;;  %v2752_v26 = vld [vmem:[%s4011_s1 + $0x140] ss:$8 sps:$4 sm:$0xff]   ;;  %v2760_v28 = vld [vmem:[%s4011_s1 + $0x154] ss:$8 sps:$4 sm:$0xff]  }
  0x1e   :  { %v2757_v25 = vld [vmem:[%s4011_s1 + $0x544] ss:$8 sps:$4 sm:$0xff]   ;;  %v2755_v27 = vld [vmem:[%s4011_s1 + $0x540] ss:$8 sps:$4 sm:$0xff]   ;;  %v2763_v29 = vld [vmem:[%s4011_s1 + $0x554] ss:$8 sps:$4 sm:$0xff]  }
  0x1f   :  { %1767 = vmatpush1.bf16.msra.mxu1 %v2678_v30  ;;  %v40_v30 = vld [vmem:[%s4012_s0 + $0x80] sm:$0xff]  ;;  %v3364_v49 = vld [vmem:[%s4012_s0 + $0x28] sm:$0xff]  ;;  %v2773_v52 = vld [vmem:[%s4011_s1 + $0x570] ss:$8 sps:$4 sm:$0xff]  }
  0x20   :  { %1979 = vmatpush1.bf16.msra.mxu0 %v2679_v31  ;;  %1768 = vmatprep.subr.bf16.mxu1 %v2680_v32  ;;  %v48_v31 = vld [vmem:[%s4012_s0 + $0xc0] sm:$0xff]  ;;  %v2758_v32 = vld [vmem:[%s4011_s1 + $0x150] ss:$8 sps:$4 sm:$0xff]  }
  0x21   :  { %1980 = vmatprep.subr.bf16.mxu0 %v2682_v33  ;;  %v2303_v33 = vcombine.high %v40_v30, %v48_v31  ;;  %v2778_v54 = vld [vmem:[%s4011_s1 + $0x184] ss:$8 sps:$4 sm:$0xff]  }
  0x22   :  { %v2781_v55 = vld [vmem:[%s4011_s1 + $0x584] ss:$8 sps:$4 sm:$0xff]  }
  0x23   :  { %1769 = vmatpush1.bf16.msra.mxu1 %v2684_v34  ;;  %v2761_v34 = vld [vmem:[%s4011_s1 + $0x550] ss:$8 sps:$4 sm:$0xff]  }
  0x24   :  { %1981 = vmatpush1.bf16.msra.mxu0 %v2685_v35  ;;  %1770 = vmatprep.subr.bf16.mxu1 %v2686_v36  ;;  %v44_v35 = vld [vmem:[%s4012_s0 + $0xa0] sm:$0xff] }
  0x25   :  { %1982 = vmatprep.subr.bf16.mxu0 %v2688_v37  ;;  %v52_v36 = vld [vmem:[%s4012_s0 + $0xe0] sm:$0xff]  ;;  %v2302_v37 = vcombine.low %v40_v30, %v48_v31  ;;  %v2832_v30 = vld [vmem:[%s4011_s1 + $0x214] ss:$8 sps:$4 sm:$0xff]  }
  0x26   :  { %v2835_v31 = vld [vmem:[%s4011_s1 + $0x614] ss:$8 sps:$4 sm:$0xff]  }
  0x27   :  { %1771 = vmatpush1.bf16.msra.mxu1 %v2690_v38  ;;  %v2766_v38 = vld [vmem:[%s4011_s1 + $0x164] ss:$8 sps:$4 sm:$0xff]  }
  0x28   :  { %1983 = vmatpush1.bf16.msra.mxu0 %v2691_v39  ;;  %1772 = vmatprep.subr.bf16.mxu1 %v2692_v40  ;;  %v2311_v39 = vcombine.high %v44_v35, %v52_v36  ;;  %v2310_v40 = vcombine.low %v44_v35, %v52_v36  ;;  %v2830_v36 = vld [vmem:[%s4011_s1 + $0x210] ss:$8 sps:$4 sm:$0xff]  }
  0x29   :  { %1984 = vmatprep.subr.bf16.mxu0 %v2694_v41  ;;  %v2769_v41 = vld [vmem:[%s4011_s1 + $0x564] ss:$8 sps:$4 sm:$0xff]  }
  0x2b   :  { %1773 = vmatpush1.bf16.msra.mxu1 %v2696_v42  ;;  %v2764_v42 = vld [vmem:[%s4011_s1 + $0x160] ss:$8 sps:$4 sm:$0xff]  }
  0x2c   :  { %1985 = vmatpush1.bf16.msra.mxu0 %v2697_v43  ;;  %1774 = vmatprep.subr.bf16.mxu1 %v2698_v44  ;;  %v2767_v43 = vld [vmem:[%s4011_s1 + $0x560] ss:$8 sps:$4 sm:$0xff]  }
  0x2d   :  { %1986 = vmatprep.subr.bf16.mxu0 %v2700_v45  ;;  %v3346_v44 = vld [vmem:[%s4012_s0 + $0x8] sm:$0xff] }
  0x2e   :  { %v3351_v45 = vld [vmem:[%s4012_s0 + $0x48] sm:$0xff] }
  0x2f   :  { %1775 = vmatpush1.bf16.msra.mxu1 %v2702_v46  ;;  %v2772_v46 = vld [vmem:[%s4011_s1 + $0x174] ss:$8 sps:$4 sm:$0xff]   ;;  %v2289_v48 = vcombine.high %v3346_v44, %v3351_v45 }
  0x30   :  { %1987 = vmatpush1.bf16.msra.mxu0 %v2703_v47  ;;  %1776 = vmatprep.subr.bf16.mxu1 %v2704_v50  ;;  %v2775_v47 = vld [vmem:[%s4011_s1 + $0x574] ss:$8 sps:$4 sm:$0xff]   ;;  %v3369_v50 = vld [vmem:[%s4012_s0 + $0x68] sm:$0xff] }
  0x31   :  { %1988 = vmatprep.subr.bf16.mxu0 %v2706_v51  ;;  %v2770_v51 = vld [vmem:[%s4011_s1 + $0x170] ss:$8 sps:$4 sm:$0xff]   ;;  %v2297_v53 = vcombine.high %v3364_v49, %v3369_v50 }
  0x33   :  { %1777 = vmatpush1.bf16.msra.mxu1 %v2708_v56  ;;  %v2776_v56 = vld [vmem:[%s4011_s1 + $0x180] ss:$8 sps:$4 sm:$0xff]  }
  0x34   :  { %1989 = vmatpush1.bf16.msra.mxu0 %v2709_v57  ;;  %1778 = vmatprep.subr.bf16.mxu1 %v2710_v58  ;;  %v2779_v57 = vld [vmem:[%s4011_s1 + $0x580] ss:$8 sps:$4 sm:$0xff]   ;;  %v2784_v58 = vld [vmem:[%s4011_s1 + $0x194] ss:$8 sps:$4 sm:$0xff]  }
  0x35   :  { %1990 = vmatprep.subr.bf16.mxu0 %v2712_v59  ;;  %v2787_v59 = vld [vmem:[%s4011_s1 + $0x594] ss:$8 sps:$4 sm:$0xff]  }
  0x37   :  { %1779 = vmatpush1.bf16.msra.mxu1 %v2714_v60  ;;  %v2782_v60 = vld [vmem:[%s4011_s1 + $0x190] ss:$8 sps:$4 sm:$0xff]  }
  0x38   :  { %1991 = vmatpush1.bf16.msra.mxu0 %v2715_v61  ;;  %1780 = vmatprep.subr.bf16.mxu1 %v2716_v62  ;;  %v2785_v61 = vld [vmem:[%s4011_s1 + $0x590] ss:$8 sps:$4 sm:$0xff]   ;;  %v2790_v62 = vld [vmem:[%s4011_s1 + $0x1a4] ss:$8 sps:$4 sm:$0xff]  }
  0x39   :  { %1992 = vmatprep.subr.bf16.mxu0 %v2718_v63  ;;  %v2793_v63 = vld [vmem:[%s4011_s1 + $0x5a4] ss:$8 sps:$4 sm:$0xff]  }
  0x3b   :  { %1781 = vmatpush1.bf16.msra.mxu1 %v2720_v0  ;;  %v2788_v0 = vld [vmem:[%s4011_s1 + $0x1a0] ss:$8 sps:$4 sm:$0xff]  }
  0x3c   :  { %1993 = vmatpush1.bf16.msra.mxu0 %v2721_v1  ;;  %1782 = vmatprep.subr.bf16.mxu1 %v2722_v2  ;;  %v2791_v1 = vld [vmem:[%s4011_s1 + $0x5a0] ss:$8 sps:$4 sm:$0xff]   ;;  %v2796_v2 = vld [vmem:[%s4011_s1 + $0x1b4] ss:$8 sps:$4 sm:$0xff]  }
  0x3d   :  { %1994 = vmatprep.subr.bf16.mxu0 %v2724_v3  ;;  %v2799_v3 = vld [vmem:[%s4011_s1 + $0x5b4] ss:$8 sps:$4 sm:$0xff]  }
  0x3f   :  { %1783 = vmatpush1.bf16.msra.mxu1 %v2726_v4  ;;  %v2794_v4 = vld [vmem:[%s4011_s1 + $0x1b0] ss:$8 sps:$4 sm:$0xff]  }
  0x40   :  { %1995 = vmatpush1.bf16.msra.mxu0 %v2727_v5  ;;  %1805 = vmatprep.subr.bf16.mxu1 %v2730_v6  ;;  %v2797_v5 = vld [vmem:[%s4011_s1 + $0x5b0] ss:$8 sps:$4 sm:$0xff]   ;;  %v2802_v6 = vld [vmem:[%s4011_s1 + $0x1c4] ss:$8 sps:$4 sm:$0xff]  }
  0x41   :  { %2017 = vmatprep.subr.bf16.mxu0 %v2733_v7  ;;  %v2805_v7 = vld [vmem:[%s4011_s1 + $0x5c4] ss:$8 sps:$4 sm:$0xff]  }
  0x42   :  { %1785 = vmatmul.mubr.bf16.vlgmr.msra.gmra.mrb[0].mxu1 %v2286_v8  ;;  %v2800_v8 = vld [vmem:[%s4011_s1 + $0x1c0] ss:$8 sps:$4 sm:$0xff]  }
  0x43   :  { %1997 = vmatmul.mubr.bf16.vlgmr.msra.gmra.mrb[0].mxu0 %v2294_v10  ;;  %1806 = vmatpush1.bf16.msra.mxu1 %v2728_v9  ;;  %v2803_v9 = vld [vmem:[%s4011_s1 + $0x5c0] ss:$8 sps:$4 sm:$0xff]   ;;  %v2808_v10 = vld [vmem:[%s4011_s1 + $0x1d4] ss:$8 sps:$4 sm:$0xff]  }
  0x44   :  { %2018 = vmatpush1.bf16.msra.mxu0 %v2731_v11  ;;  %1807 = vmatprep.subr.bf16.mxu1 %v2736_v12  ;;  %v2811_v11 = vld [vmem:[%s4011_s1 + $0x5d4] ss:$8 sps:$4 sm:$0xff]   ;;  %v2806_v12 = vld [vmem:[%s4011_s1 + $0x1d0] ss:$8 sps:$4 sm:$0xff]  }
  0x45   :  { %2019 = vmatprep.subr.bf16.mxu0 %v2739_v13  ;;  %1794 = vmatprep.mubr.bf16.mxu1 %v2303_v33  ;;  %v2809_v13 = vld [vmem:[%s4011_s1 + $0x5d0] ss:$8 sps:$4 sm:$0xff]   ;;  %v53_v33 = vld [vmem:[%s4012_s0 + $0xe8] sm:$0xff] }
  0x46   :  { %2006 = vmatprep.mubr.bf16.mxu0 %v2311_v39  ;;  %v2841_v39 = vld [vmem:[%s4011_s1 + $0x624] ss:$8 sps:$4 sm:$0xff]  }
  0x47   :  { %1808 = vmatpush1.bf16.msra.mxu1 %v2734_v14  ;;  %v2814_v14 = vld [vmem:[%s4011_s1 + $0x1e4] ss:$8 sps:$4 sm:$0xff]  }
  0x48   :  { %2020 = vmatpush1.bf16.msra.mxu0 %v2737_v15  ;;  %1809 = vmatprep.subr.bf16.mxu1 %v2742_v16  ;;  %v2817_v15 = vld [vmem:[%s4011_s1 + $0x5e4] ss:$8 sps:$4 sm:$0xff]   ;;  %v2812_v16 = vld [vmem:[%s4011_s1 + $0x1e0] ss:$8 sps:$4 sm:$0xff]  }
  0x49   :  { %2021 = vmatprep.subr.bf16.mxu0 %v2745_v17  ;;  %v2815_v17 = vld [vmem:[%s4011_s1 + $0x5e0] ss:$8 sps:$4 sm:$0xff]  }
  0x4a   :  { %1795 = vmatmul.mubr.bf16.gmra.mrb[4].mxu1 %v2302_v37  ;;  %v2833_v37 = vld [vmem:[%s4011_s1 + $0x610] ss:$8 sps:$4 sm:$0xff]  }
  0x4b   :  { %1810 = vmatpush1.bf16.msra.mxu1 %v2740_v18  ;;  %2007 = vmatmul.mubr.bf16.gmra.mrb[4].mxu0 %v2310_v40  ;;  %v2820_v18 = vld [vmem:[%s4011_s1 + $0x1f4] ss:$8 sps:$4 sm:$0xff]   ;;  %v2836_v40 = vld [vmem:[%s4011_s1 + $0x220] ss:$8 sps:$4 sm:$0xff]  }
  0x4c   :  { %2022 = vmatpush1.bf16.msra.mxu0 %v2743_v19  ;;  %1811 = vmatprep.subr.bf16.mxu1 %v2748_v20  ;;  %v2823_v19 = vld [vmem:[%s4011_s1 + $0x5f4] ss:$8 sps:$4 sm:$0xff]   ;;  %v2818_v20 = vld [vmem:[%s4011_s1 + $0x1f0] ss:$8 sps:$4 sm:$0xff]  }
  0x4d   :  { %2023 = vmatprep.subr.bf16.mxu0 %v2751_v21  ;;  %1837 = vmatprep.mubr.bf16.mxu1 %v2289_v48  ;;  %v2821_v21 = vld [vmem:[%s4011_s1 + $0x5f0] ss:$8 sps:$4 sm:$0xff]   ;;  %v2844_v48 = vld [vmem:[%s4011_s1 + $0x234] ss:$8 sps:$4 sm:$0xff]  }
  0x4e   :  { %2049 = vmatprep.mubr.bf16.mxu0 %v2297_v53  ;;  %v2845_v53 = vld [vmem:[%s4011_s1 + $0x630] ss:$8 sps:$4 sm:$0xff]  }
  0x4f   :  { %1812 = vmatpush1.bf16.msra.mxu1 %v2746_v22  ;;  %v2826_v22 = vld [vmem:[%s4011_s1 + $0x204] ss:$8 sps:$4 sm:$0xff]  }
  0x50   :  { %2024 = vmatpush1.bf16.msra.mxu0 %v2749_v23  ;;  %1813 = vmatprep.subr.bf16.mxu1 %v2754_v24  ;;  %v2829_v23 = vld [vmem:[%s4011_s1 + $0x604] ss:$8 sps:$4 sm:$0xff]   ;;  %v2824_v24 = vld [vmem:[%s4011_s1 + $0x200] ss:$8 sps:$4 sm:$0xff]  }
  0x51   :  { %2025 = vmatprep.subr.bf16.mxu0 %v2757_v25  ;;  %v2827_v25 = vld [vmem:[%s4011_s1 + $0x600] ss:$8 sps:$4 sm:$0xff]  }
  0x53   :  { %1814 = vmatpush1.bf16.msra.mxu1 %v2752_v26  ;;  %v41_v26 = vld [vmem:[%s4012_s0 + $0x88] sm:$0xff] }
  0x54   :  { %2026 = vmatpush1.bf16.msra.mxu0 %v2755_v27  ;;  %1815 = vmatprep.subr.bf16.mxu1 %v2760_v28  ;;  %v2288_v27 = vcombine.low %v3346_v44, %v3351_v45  ;;  %v2296_v28 = vcombine.low %v3364_v49, %v3369_v50  ;;  %v3535_v45 = vld [vmem:[%s4012_s0 + $0x50] sm:$0xff] }
  0x55   :  { %2027 = vmatprep.subr.bf16.mxu0 %v2763_v29  ;;  %v49_v29 = vld [vmem:[%s4012_s0 + $0xc8] sm:$0xff]  ;;  %v2847_v49 = vld [vmem:[%s4011_s1 + $0x634] ss:$8 sps:$4 sm:$0xff]  }
  0x57   :  { %1816 = vmatpush1.bf16.msra.mxu1 %v2758_v32  ;;  %v45_v32 = vld [vmem:[%s4012_s0 + $0xa8] sm:$0xff] }
  0x58   :  { %2028 = vmatpush1.bf16.msra.mxu0 %v2761_v34  ;;  %1817 = vmatprep.subr.bf16.mxu1 %v2766_v38  ;;  %v2305_v34 = vcombine.high %v41_v26, %v49_v29  ;;  %v2313_v35 = vcombine.high %v45_v32, %v53_v33  ;;  %v2838_v38 = vld [vmem:[%s4011_s1 + $0x224] ss:$8 sps:$4 sm:$0xff]   ;;  %v2312_v44 = vcombine.low %v45_v32, %v53_v33  ;;  %v2908_v32 = vld [vmem:[%s4011_s1 + $0x2e0] ss:$8 sps:$4 sm:$0xff]  }
  0x59   :  { %2029 = vmatprep.subr.bf16.mxu0 %v2769_v41  ;;  %v2839_v41 = vld [vmem:[%s4011_s1 + $0x620] ss:$8 sps:$4 sm:$0xff]  }
  0x5a   :  { %v2911_v33 = vld [vmem:[%s4011_s1 + $0x6e0] ss:$8 sps:$4 sm:$0xff]  }
  0x5b   :  { %1818 = vmatpush1.bf16.msra.mxu1 %v2764_v42  ;;  %v3530_v42 = vld [vmem:[%s4012_s0 + $0x10] sm:$0xff] }
  0x5c   :  { %2030 = vmatpush1.bf16.msra.mxu0 %v2767_v43  ;;  %1819 = vmatprep.subr.bf16.mxu1 %v2772_v46  ;;  %v2304_v43 = vcombine.low %v41_v26, %v49_v29  ;;  %v3540_v46 = vld [vmem:[%s4012_s0 + $0x30] sm:$0xff]  ;;  %v2291_v50 = vcombine.high %v3530_v42, %v3535_v45 }
  0x5d   :  { %2031 = vmatprep.subr.bf16.mxu0 %v2775_v47  ;;  %v3545_v47 = vld [vmem:[%s4012_s0 + $0x70] sm:$0xff] }
  0x5e   :  { %v2904_v26 = vld [vmem:[%s4011_s1 + $0x2d4] ss:$8 sps:$4 sm:$0xff]   ;;  %v2905_v29 = vld [vmem:[%s4011_s1 + $0x6d0] ss:$8 sps:$4 sm:$0xff]  }
  0x5f   :  { %1820 = vmatpush1.bf16.msra.mxu1 %v2770_v51  ;;  %v2299_v51 = vcombine.high %v3540_v46, %v3545_v47 }
  0x60   :  { %2032 = vmatpush1.bf16.msra.mxu0 %v2773_v52  ;;  %1821 = vmatprep.subr.bf16.mxu1 %v2778_v54  ;;  %v2842_v52 = vld [vmem:[%s4011_s1 + $0x230] ss:$8 sps:$4 sm:$0xff]   ;;  %v2850_v54 = vld [vmem:[%s4011_s1 + $0x244] ss:$8 sps:$4 sm:$0xff]  }
  0x61   :  { %2033 = vmatprep.subr.bf16.mxu0 %v2781_v55  ;;  %v2853_v55 = vld [vmem:[%s4011_s1 + $0x644] ss:$8 sps:$4 sm:$0xff]  }
  0x63   :  { %1822 = vmatpush1.bf16.msra.mxu1 %v2776_v56  ;;  %v2848_v56 = vld [vmem:[%s4011_s1 + $0x240] ss:$8 sps:$4 sm:$0xff]  }
  0x64   :  { %2034 = vmatpush1.bf16.msra.mxu0 %v2779_v57  ;;  %1823 = vmatprep.subr.bf16.mxu1 %v2784_v58  ;;  %v2851_v57 = vld [vmem:[%s4011_s1 + $0x640] ss:$8 sps:$4 sm:$0xff]   ;;  %v2856_v58 = vld [vmem:[%s4011_s1 + $0x254] ss:$8 sps:$4 sm:$0xff]  }
  0x65   :  { %2035 = vmatprep.subr.bf16.mxu0 %v2787_v59  ;;  %v2859_v59 = vld [vmem:[%s4011_s1 + $0x654] ss:$8 sps:$4 sm:$0xff]  }
  0x67   :  { %1824 = vmatpush1.bf16.msra.mxu1 %v2782_v60  ;;  %v2854_v60 = vld [vmem:[%s4011_s1 + $0x250] ss:$8 sps:$4 sm:$0xff]  }
  0x68   :  { %2036 = vmatpush1.bf16.msra.mxu0 %v2785_v61  ;;  %1825 = vmatprep.subr.bf16.mxu1 %v2790_v62  ;;  %v2857_v61 = vld [vmem:[%s4011_s1 + $0x650] ss:$8 sps:$4 sm:$0xff]   ;;  %v2862_v62 = vld [vmem:[%s4011_s1 + $0x264] ss:$8 sps:$4 sm:$0xff]  }
  0x69   :  { %2037 = vmatprep.subr.bf16.mxu0 %v2793_v63  ;;  %v2865_v63 = vld [vmem:[%s4011_s1 + $0x664] ss:$8 sps:$4 sm:$0xff]  }
  0x6b   :  { %1826 = vmatpush1.bf16.msra.mxu1 %v2788_v0  ;;  %v2860_v0 = vld [vmem:[%s4011_s1 + $0x260] ss:$8 sps:$4 sm:$0xff]  }
  0x6c   :  { %2038 = vmatpush1.bf16.msra.mxu0 %v2791_v1  ;;  %1827 = vmatprep.subr.bf16.mxu1 %v2796_v2  ;;  %v2863_v1 = vld [vmem:[%s4011_s1 + $0x660] ss:$8 sps:$4 sm:$0xff]   ;;  %v2868_v2 = vld [vmem:[%s4011_s1 + $0x274] ss:$8 sps:$4 sm:$0xff]  }
  0x6d   :  { %2039 = vmatprep.subr.bf16.mxu0 %v2799_v3  ;;  %v2871_v3 = vld [vmem:[%s4011_s1 + $0x674] ss:$8 sps:$4 sm:$0xff]  }
  0x6f   :  { %1828 = vmatpush1.bf16.msra.mxu1 %v2794_v4  ;;  %v2866_v4 = vld [vmem:[%s4011_s1 + $0x270] ss:$8 sps:$4 sm:$0xff]  }
  0x70   :  { %2040 = vmatpush1.bf16.msra.mxu0 %v2797_v5  ;;  %1829 = vmatprep.subr.bf16.mxu1 %v2802_v6  ;;  %v2869_v5 = vld [vmem:[%s4011_s1 + $0x670] ss:$8 sps:$4 sm:$0xff]   ;;  %v2874_v6 = vld [vmem:[%s4011_s1 + $0x284] ss:$8 sps:$4 sm:$0xff]  }
  0x71   :  { %2041 = vmatprep.subr.bf16.mxu0 %v2805_v7  ;;  %v2877_v7 = vld [vmem:[%s4011_s1 + $0x684] ss:$8 sps:$4 sm:$0xff]  }
  0x73   :  { %1830 = vmatpush1.bf16.msra.mxu1 %v2800_v8  ;;  %v2872_v8 = vld [vmem:[%s4011_s1 + $0x280] ss:$8 sps:$4 sm:$0xff]  }
  0x74   :  { %2042 = vmatpush1.bf16.msra.mxu0 %v2803_v9  ;;  %1831 = vmatprep.subr.bf16.mxu1 %v2808_v10  ;;  %v2875_v9 = vld [vmem:[%s4011_s1 + $0x680] ss:$8 sps:$4 sm:$0xff]   ;;  %v2880_v10 = vld [vmem:[%s4011_s1 + $0x294] ss:$8 sps:$4 sm:$0xff]  }
  0x75   :  { %2043 = vmatprep.subr.bf16.mxu0 %v2811_v11  ;;  %v2883_v11 = vld [vmem:[%s4011_s1 + $0x694] ss:$8 sps:$4 sm:$0xff]  }
  0x77   :  { %1832 = vmatpush1.bf16.msra.mxu1 %v2806_v12  ;;  %v2878_v12 = vld [vmem:[%s4011_s1 + $0x290] ss:$8 sps:$4 sm:$0xff]  }
  0x78   :  { %2044 = vmatpush1.bf16.msra.mxu0 %v2809_v13  ;;  %1833 = vmatprep.subr.bf16.mxu1 %v2814_v14  ;;  %v2881_v13 = vld [vmem:[%s4011_s1 + $0x690] ss:$8 sps:$4 sm:$0xff]   ;;  %v2886_v14 = vld [vmem:[%s4011_s1 + $0x2a4] ss:$8 sps:$4 sm:$0xff]  }
  0x79   :  { %2045 = vmatprep.subr.bf16.mxu0 %v2817_v15  ;;  %v2889_v15 = vld [vmem:[%s4011_s1 + $0x6a4] ss:$8 sps:$4 sm:$0xff]  }
  0x7b   :  { %1834 = vmatpush1.bf16.msra.mxu1 %v2812_v16  ;;  %v2884_v16 = vld [vmem:[%s4011_s1 + $0x2a0] ss:$8 sps:$4 sm:$0xff]  }
  0x7c   :  { %2046 = vmatpush1.bf16.msra.mxu0 %v2815_v17  ;;  %1835 = vmatprep.subr.bf16.mxu1 %v2820_v18  ;;  %v2887_v17 = vld [vmem:[%s4011_s1 + $0x6a0] ss:$8 sps:$4 sm:$0xff]   ;;  %v2892_v18 = vld [vmem:[%s4011_s1 + $0x2b4] ss:$8 sps:$4 sm:$0xff]  }
  0x7d   :  { %2047 = vmatprep.subr.bf16.mxu0 %v2823_v19  ;;  %v2895_v19 = vld [vmem:[%s4011_s1 + $0x6b4] ss:$8 sps:$4 sm:$0xff]  }
  0x7f   :  { %1836 = vmatpush1.bf16.msra.mxu1 %v2818_v20  ;;  %v2890_v20 = vld [vmem:[%s4011_s1 + $0x2b0] ss:$8 sps:$4 sm:$0xff]  }
  0x80   :  { %2048 = vmatpush1.bf16.msra.mxu0 %v2821_v21  ;;  %1858 = vmatprep.subr.bf16.mxu1 %v2826_v22  ;;  %v2893_v21 = vld [vmem:[%s4011_s1 + $0x6b0] ss:$8 sps:$4 sm:$0xff]   ;;  %v2898_v22 = vld [vmem:[%s4011_s1 + $0x2c4] ss:$8 sps:$4 sm:$0xff]  }
  0x81   :  { %2070 = vmatprep.subr.bf16.mxu0 %v2829_v23  ;;  %v2901_v23 = vld [vmem:[%s4011_s1 + $0x6c4] ss:$8 sps:$4 sm:$0xff]  }
  0x82   :  { %1838 = vmatmul.mubr.bf16.vlgmr.msra.gmra.mrb[0].mxu1 %v2288_v27  ;;  %v2907_v27 = vld [vmem:[%s4011_s1 + $0x6d4] ss:$8 sps:$4 sm:$0xff]  }
  0x83   :  { %2050 = vmatmul.mubr.bf16.vlgmr.msra.gmra.mrb[0].mxu0 %v2296_v28  ;;  %1859 = vmatpush1.bf16.msra.mxu1 %v2824_v24  ;;  %v2896_v24 = vld [vmem:[%s4011_s1 + $0x2c0] ss:$8 sps:$4 sm:$0xff]   ;;  %v2902_v28 = vld [vmem:[%s4011_s1 + $0x2d0] ss:$8 sps:$4 sm:$0xff]  }
  0x84   :  { %2071 = vmatpush1.bf16.msra.mxu0 %v2827_v25  ;;  %1860 = vmatprep.subr.bf16.mxu1 %v2832_v30  ;;  %v2899_v25 = vld [vmem:[%s4011_s1 + $0x6c0] ss:$8 sps:$4 sm:$0xff]   ;;  %v2910_v30 = vld [vmem:[%s4011_s1 + $0x2e4] ss:$8 sps:$4 sm:$0xff]  }
  0x85   :  { %2072 = vmatprep.subr.bf16.mxu0 %v2835_v31  ;;  %1847 = vmatprep.mubr.bf16.mxu1 %v2305_v34  ;;  %v2913_v31 = vld [vmem:[%s4011_s1 + $0x6e4] ss:$8 sps:$4 sm:$0xff]   ;;  %v2916_v34 = vld [vmem:[%s4011_s1 + $0x2f4] ss:$8 sps:$4 sm:$0xff]  }
  0x86   :  { %2059 = vmatprep.mubr.bf16.mxu0 %v2313_v35  ;;  %v2919_v35 = vld [vmem:[%s4011_s1 + $0x6f4] ss:$8 sps:$4 sm:$0xff]  }
  0x87   :  { %1861 = vmatpush1.bf16.msra.mxu1 %v2830_v36  ;;  %v2914_v36 = vld [vmem:[%s4011_s1 + $0x2f0] ss:$8 sps:$4 sm:$0xff]  }
  0x88   :  { %2073 = vmatpush1.bf16.msra.mxu0 %v2833_v37  ;;  %1862 = vmatprep.subr.bf16.mxu1 %v2838_v38  ;;  %v2917_v37 = vld [vmem:[%s4011_s1 + $0x6f0] ss:$8 sps:$4 sm:$0xff]   ;;  %v2922_v38 = vld [vmem:[%s4011_s1 + $0x304] ss:$8 sps:$4 sm:$0xff]  }
  0x89   :  { %2074 = vmatprep.subr.bf16.mxu0 %v2841_v39  ;;  %v2925_v39 = vld [vmem:[%s4011_s1 + $0x704] ss:$8 sps:$4 sm:$0xff]  }
  0x8a   :  { %1848 = vmatmul.mubr.bf16.gmra.mrb[4].mxu1 %v2304_v43  ;;  %v2298_v43 = vcombine.low %v3540_v46, %v3545_v47  ;;  %v2928_v46 = vld [vmem:[%s4011_s1 + $0x314] ss:$8 sps:$4 sm:$0xff]  }
  0x8b   :  { %2060 = vmatmul.mubr.bf16.gmra.mrb[4].mxu0 %v2312_v44  ;;  %1863 = vmatpush1.bf16.msra.mxu1 %v2836_v40  ;;  %v42_v40 = vld [vmem:[%s4012_s0 + $0x90] sm:$0xff] }
  0x8c   :  { %2075 = vmatpush1.bf16.msra.mxu0 %v2839_v41  ;;  %1864 = vmatprep.subr.bf16.mxu1 %v2844_v48  ;;  %v2290_v41 = vcombine.low %v3530_v42, %v3535_v45  ;;  %v50_v44 = vld [vmem:[%s4012_s0 + $0xd0] sm:$0xff]  ;;  %v2920_v42 = vld [vmem:[%s4011_s1 + $0x300] ss:$8 sps:$4 sm:$0xff]  }
  0x8d   :  { %2076 = vmatprep.subr.bf16.mxu0 %v2847_v49  ;;  %1890 = vmatprep.mubr.bf16.mxu1 %v2291_v50  ;;  %v46_v48 = vld [vmem:[%s4012_s0 + $0xb0] sm:$0xff]  ;;  %v2923_v45 = vld [vmem:[%s4011_s1 + $0x700] ss:$8 sps:$4 sm:$0xff]   ;;  %v2307_v50 = vcombine.high %v42_v40, %v50_v44 }
  0x8e   :  { %2102 = vmatprep.mubr.bf16.mxu0 %v2299_v51  ;;  %v54_v49 = vld [vmem:[%s4012_s0 + $0xf0] sm:$0xff] }
  0x8f   :  { %1865 = vmatpush1.bf16.msra.mxu1 %v2842_v52  ;;  %v2931_v47 = vld [vmem:[%s4011_s1 + $0x714] ss:$8 sps:$4 sm:$0xff]   ;;  %v2315_v51 = vcombine.high %v46_v48, %v54_v49  ;;  %v2926_v52 = vld [vmem:[%s4011_s1 + $0x310] ss:$8 sps:$4 sm:$0xff]  }
  0x90   :  { %2077 = vmatpush1.bf16.msra.mxu0 %v2845_v53  ;;  %1866 = vmatprep.subr.bf16.mxu1 %v2850_v54  ;;  %v2929_v53 = vld [vmem:[%s4011_s1 + $0x710] ss:$8 sps:$4 sm:$0xff]   ;;  %v2934_v54 = vld [vmem:[%s4011_s1 + $0x324] ss:$8 sps:$4 sm:$0xff]  }
  0x91   :  { %2078 = vmatprep.subr.bf16.mxu0 %v2853_v55  ;;  %v2937_v55 = vld [vmem:[%s4011_s1 + $0x724] ss:$8 sps:$4 sm:$0xff]  }
  0x93   :  { %1867 = vmatpush1.bf16.msra.mxu1 %v2848_v56  ;;  %v3756_v56 = vld [vmem:[%s4012_s0 + $0x18] sm:$0xff] }
  0x94   :  { %2079 = vmatpush1.bf16.msra.mxu0 %v2851_v57  ;;  %1868 = vmatprep.subr.bf16.mxu1 %v2856_v58  ;;  %v2306_v57 = vcombine.low %v42_v40, %v50_v44  ;;  %v2314_v58 = vcombine.low %v46_v48, %v54_v49  ;;  %v2992_v40 = vld [vmem:[%s4011_s1 + $0x3c0] ss:$8 sps:$4 sm:$0xff]   ;;  %v3003_v44 = vld [vmem:[%s4011_s1 + $0x7d4] ss:$8 sps:$4 sm:$0xff]   ;;  %v2998_v48 = vld [vmem:[%s4011_s1 + $0x3d0] ss:$8 sps:$4 sm:$0xff]  }
  0x95   :  { %2080 = vmatprep.subr.bf16.mxu0 %v2859_v59  ;;  %v3761_v59 = vld [vmem:[%s4012_s0 + $0x58] sm:$0xff] }
  0x96   :  { %v3001_v49 = vld [vmem:[%s4011_s1 + $0x7d0] ss:$8 sps:$4 sm:$0xff]  }
  0x97   :  { %1869 = vmatpush1.bf16.msra.mxu1 %v2854_v60  ;;  %v3766_v60 = vld [vmem:[%s4012_s0 + $0x38] sm:$0xff] }
  0x98   :  { %2081 = vmatpush1.bf16.msra.mxu0 %v2857_v61  ;;  %1870 = vmatprep.subr.bf16.mxu1 %v2862_v62  ;;  %v3771_v61 = vld [vmem:[%s4012_s0 + $0x78] sm:$0xff]  ;;  %v2932_v62 = vld [vmem:[%s4011_s1 + $0x320] ss:$8 sps:$4 sm:$0xff]  }
  0x99   :  { %2082 = vmatprep.subr.bf16.mxu0 %v2865_v63  ;;  %v2935_v63 = vld [vmem:[%s4011_s1 + $0x720] ss:$8 sps:$4 sm:$0xff]  }
  0x9b   :  { %1871 = vmatpush1.bf16.msra.mxu1 %v2860_v0  ;;  %v2940_v0 = vld [vmem:[%s4011_s1 + $0x334] ss:$8 sps:$4 sm:$0xff]  }
  0x9c   :  { %2083 = vmatpush1.bf16.msra.mxu0 %v2863_v1  ;;  %1872 = vmatprep.subr.bf16.mxu1 %v2868_v2  ;;  %v2943_v1 = vld [vmem:[%s4011_s1 + $0x734] ss:$8 sps:$4 sm:$0xff]   ;;  %v2293_v2 = vcombine.high %v3756_v56, %v3761_v59 }
  0x9d   :  { %2084 = vmatprep.subr.bf16.mxu0 %v2871_v3  ;;  %v2301_v3 = vcombine.high %v3766_v60, %v3771_v61 }
  0x9f   :  { %1873 = vmatpush1.bf16.msra.mxu1 %v2866_v4  ;;  %v2938_v4 = vld [vmem:[%s4011_s1 + $0x330] ss:$8 sps:$4 sm:$0xff]  }
  0xa0   :  { %2085 = vmatpush1.bf16.msra.mxu0 %v2869_v5  ;;  %1874 = vmatprep.subr.bf16.mxu1 %v2874_v6  ;;  %v2941_v5 = vld [vmem:[%s4011_s1 + $0x730] ss:$8 sps:$4 sm:$0xff]   ;;  %v2946_v6 = vld [vmem:[%s4011_s1 + $0x344] ss:$8 sps:$4 sm:$0xff]  }
  0xa1   :  { %2086 = vmatprep.subr.bf16.mxu0 %v2877_v7  ;;  %v2949_v7 = vld [vmem:[%s4011_s1 + $0x744] ss:$8 sps:$4 sm:$0xff]  }
  0xa3   :  { %1875 = vmatpush1.bf16.msra.mxu1 %v2872_v8  ;;  %v2944_v8 = vld [vmem:[%s4011_s1 + $0x340] ss:$8 sps:$4 sm:$0xff]  }
  0xa4   :  { %2087 = vmatpush1.bf16.msra.mxu0 %v2875_v9  ;;  %1876 = vmatprep.subr.bf16.mxu1 %v2880_v10  ;;  %v2947_v9 = vld [vmem:[%s4011_s1 + $0x740] ss:$8 sps:$4 sm:$0xff]   ;;  %v2952_v10 = vld [vmem:[%s4011_s1 + $0x354] ss:$8 sps:$4 sm:$0xff]  }
  0xa5   :  { %2088 = vmatprep.subr.bf16.mxu0 %v2883_v11  ;;  %v2955_v11 = vld [vmem:[%s4011_s1 + $0x754] ss:$8 sps:$4 sm:$0xff]  }
  0xa7   :  { %1877 = vmatpush1.bf16.msra.mxu1 %v2878_v12  ;;  %v2950_v12 = vld [vmem:[%s4011_s1 + $0x350] ss:$8 sps:$4 sm:$0xff]  }
  0xa8   :  { %2089 = vmatpush1.bf16.msra.mxu0 %v2881_v13  ;;  %1878 = vmatprep.subr.bf16.mxu1 %v2886_v14  ;;  %v2953_v13 = vld [vmem:[%s4011_s1 + $0x750] ss:$8 sps:$4 sm:$0xff]   ;;  %v2958_v14 = vld [vmem:[%s4011_s1 + $0x364] ss:$8 sps:$4 sm:$0xff]  }
  0xa9   :  { %2090 = vmatprep.subr.bf16.mxu0 %v2889_v15  ;;  %v2961_v15 = vld [vmem:[%s4011_s1 + $0x764] ss:$8 sps:$4 sm:$0xff]  }
  0xab   :  { %1879 = vmatpush1.bf16.msra.mxu1 %v2884_v16  ;;  %v2956_v16 = vld [vmem:[%s4011_s1 + $0x360] ss:$8 sps:$4 sm:$0xff]  }
  0xac   :  { %2091 = vmatpush1.bf16.msra.mxu0 %v2887_v17  ;;  %1880 = vmatprep.subr.bf16.mxu1 %v2892_v18  ;;  %v2959_v17 = vld [vmem:[%s4011_s1 + $0x760] ss:$8 sps:$4 sm:$0xff]   ;;  %v2964_v18 = vld [vmem:[%s4011_s1 + $0x374] ss:$8 sps:$4 sm:$0xff]  }
  0xad   :  { %2092 = vmatprep.subr.bf16.mxu0 %v2895_v19  ;;  %v2967_v19 = vld [vmem:[%s4011_s1 + $0x774] ss:$8 sps:$4 sm:$0xff]  }
  0xaf   :  { %1881 = vmatpush1.bf16.msra.mxu1 %v2890_v20  ;;  %v2962_v20 = vld [vmem:[%s4011_s1 + $0x370] ss:$8 sps:$4 sm:$0xff]  }
  0xb0   :  { %2093 = vmatpush1.bf16.msra.mxu0 %v2893_v21  ;;  %1882 = vmatprep.subr.bf16.mxu1 %v2898_v22  ;;  %v2965_v21 = vld [vmem:[%s4011_s1 + $0x770] ss:$8 sps:$4 sm:$0xff]   ;;  %v2970_v22 = vld [vmem:[%s4011_s1 + $0x384] ss:$8 sps:$4 sm:$0xff]  }
  0xb1   :  { %2094 = vmatprep.subr.bf16.mxu0 %v2901_v23  ;;  %v2973_v23 = vld [vmem:[%s4011_s1 + $0x784] ss:$8 sps:$4 sm:$0xff]  }
  0xb3   :  { %1883 = vmatpush1.bf16.msra.mxu1 %v2896_v24  ;;  %v2968_v24 = vld [vmem:[%s4011_s1 + $0x380] ss:$8 sps:$4 sm:$0xff]  }
  0xb4   :  { %2095 = vmatpush1.bf16.msra.mxu0 %v2899_v25  ;;  %1884 = vmatprep.subr.bf16.mxu1 %v2904_v26  ;;  %v2971_v25 = vld [vmem:[%s4011_s1 + $0x780] ss:$8 sps:$4 sm:$0xff]   ;;  %v2976_v26 = vld [vmem:[%s4011_s1 + $0x394] ss:$8 sps:$4 sm:$0xff]  }
  0xb5   :  { %2096 = vmatprep.subr.bf16.mxu0 %v2907_v27  ;;  %v2979_v27 = vld [vmem:[%s4011_s1 + $0x794] ss:$8 sps:$4 sm:$0xff]  }
  0xb7   :  { %1885 = vmatpush1.bf16.msra.mxu1 %v2902_v28  ;;  %v2974_v28 = vld [vmem:[%s4011_s1 + $0x390] ss:$8 sps:$4 sm:$0xff]  }
  0xb8   :  { %2097 = vmatpush1.bf16.msra.mxu0 %v2905_v29  ;;  %1886 = vmatprep.subr.bf16.mxu1 %v2910_v30  ;;  %v2977_v29 = vld [vmem:[%s4011_s1 + $0x790] ss:$8 sps:$4 sm:$0xff]   ;;  %v2982_v30 = vld [vmem:[%s4011_s1 + $0x3a4] ss:$8 sps:$4 sm:$0xff]  }
  0xb9   :  { %2098 = vmatprep.subr.bf16.mxu0 %v2913_v31  ;;  %v2985_v31 = vld [vmem:[%s4011_s1 + $0x7a4] ss:$8 sps:$4 sm:$0xff]  }
  0xbb   :  { %1887 = vmatpush1.bf16.msra.mxu1 %v2908_v32  ;;  %v2980_v32 = vld [vmem:[%s4011_s1 + $0x3a0] ss:$8 sps:$4 sm:$0xff]  }
  0xbc   :  { %2099 = vmatpush1.bf16.msra.mxu0 %v2911_v33  ;;  %1888 = vmatprep.subr.bf16.mxu1 %v2916_v34  ;;  %v2983_v33 = vld [vmem:[%s4011_s1 + $0x7a0] ss:$8 sps:$4 sm:$0xff]   ;;  %v2988_v34 = vld [vmem:[%s4011_s1 + $0x3b4] ss:$8 sps:$4 sm:$0xff]  }
  0xbd   :  { %2100 = vmatprep.subr.bf16.mxu0 %v2919_v35  ;;  %v2991_v35 = vld [vmem:[%s4011_s1 + $0x7b4] ss:$8 sps:$4 sm:$0xff]  }
  0xbf   :  { %1889 = vmatpush1.bf16.msra.mxu1 %v2914_v36  ;;  %v2986_v36 = vld [vmem:[%s4011_s1 + $0x3b0] ss:$8 sps:$4 sm:$0xff]  }
  0xc0   :  { %2101 = vmatpush1.bf16.msra.mxu0 %v2917_v37  ;;  %1911 = vmatprep.subr.bf16.mxu1 %v2922_v38  ;;  %v2989_v37 = vld [vmem:[%s4011_s1 + $0x7b0] ss:$8 sps:$4 sm:$0xff]   ;;  %v2994_v38 = vld [vmem:[%s4011_s1 + $0x3c4] ss:$8 sps:$4 sm:$0xff]  }
  0xc1   :  { %2123 = vmatprep.subr.bf16.mxu0 %v2925_v39  ;;  %v2997_v39 = vld [vmem:[%s4011_s1 + $0x7c4] ss:$8 sps:$4 sm:$0xff]  }
  0xc2   :  { %1891 = vmatmul.mubr.bf16.vlgmr.msra.gmra.mrb[0].mxu1 %v2290_v41  ;;  %v2995_v41 = vld [vmem:[%s4011_s1 + $0x7c0] ss:$8 sps:$4 sm:$0xff]  }
  0xc3   :  { %2103 = vmatmul.mubr.bf16.vlgmr.msra.gmra.mrb[0].mxu0 %v2298_v43  ;;  %1912 = vmatpush1.bf16.msra.mxu1 %v2920_v42  ;;  %v3000_v43 = vld [vmem:[%s4011_s1 + $0x3d4] ss:$8 sps:$4 sm:$0xff]   ;;  %v3006_v42 = vld [vmem:[%s4011_s1 + $0x3e4] ss:$8 sps:$4 sm:$0xff]  }
  0xc4   :  { %2124 = vmatpush1.bf16.msra.mxu0 %v2923_v45  ;;  %1913 = vmatprep.subr.bf16.mxu1 %v2928_v46  ;;  %v3009_v45 = vld [vmem:[%s4011_s1 + $0x7e4] ss:$8 sps:$4 sm:$0xff]   ;;  %v3004_v46 = vld [vmem:[%s4011_s1 + $0x3e0] ss:$8 sps:$4 sm:$0xff]  }
  0xc5   :  { %2125 = vmatprep.subr.bf16.mxu0 %v2931_v47  ;;  %1900 = vmatprep.mubr.bf16.mxu1 %v2307_v50  ;;  %v3007_v47 = vld [vmem:[%s4011_s1 + $0x7e0] ss:$8 sps:$4 sm:$0xff]   ;;  %v3012_v50 = vld [vmem:[%s4011_s1 + $0x3f4] ss:$8 sps:$4 sm:$0xff]  }
  0xc6   :  { %2112 = vmatprep.mubr.bf16.mxu0 %v2315_v51  ;;  %v3015_v51 = vld [vmem:[%s4011_s1 + $0x7f4] ss:$8 sps:$4 sm:$0xff]  }
  0xc7   :  { %1914 = vmatpush1.bf16.msra.mxu1 %v2926_v52  ;;  %v3010_v52 = vld [vmem:[%s4011_s1 + $0x3f0] ss:$8 sps:$4 sm:$0xff]  }
  0xc8   :  { %2126 = vmatpush1.bf16.msra.mxu0 %v2929_v53  ;;  %1915 = vmatprep.subr.bf16.mxu1 %v2934_v54  ;;  %v3013_v53 = vld [vmem:[%s4011_s1 + $0x7f0] ss:$8 sps:$4 sm:$0xff]  }
  0xc9   :  { %2127 = vmatprep.subr.bf16.mxu0 %v2937_v55  ;;  %v43_v54 = vld [vmem:[%s4012_s0 + $0x98] sm:$0xff] }
  0xca   :  { %1901 = vmatmul.mubr.bf16.gmra.mrb[4].mxu1 %v2306_v57  ;;  %v51_v55 = vld [vmem:[%s4012_s0 + $0xd8] sm:$0xff] }
  0xcb   :  { %2113 = vmatmul.mubr.bf16.gmra.mrb[4].mxu0 %v2314_v58  ;;  %1916 = vmatpush1.bf16.msra.mxu1 %v2932_v62  ;;  %v47_v57 = vld [vmem:[%s4012_s0 + $0xb8] sm:$0xff]  ;;  %v2292_v62 = vcombine.low %v3756_v56, %v3761_v59  ;;  %v3016_v56 = vmov 0.0  }
  0xcc   :  { %2128 = vmatpush1.bf16.msra.mxu0 %v2935_v63  ;;  %1917 = vmatprep.subr.bf16.mxu1 %v2940_v0  ;;  %v55_v58 = vld [vmem:[%s4012_s0 + $0xf8] sm:$0xff]  ;;  %v2300_v63 = vcombine.low %v3766_v60, %v3771_v61  ;;  %v2309_v0 = vcombine.high %v43_v54, %v51_v55 }
  0xcd   :  { %2129 = vmatprep.subr.bf16.mxu0 %v2943_v1  ;;  %1943 = vmatprep.mubr.bf16.mxu1 %v2293_v2  ;;  %v2317_v1 = vcombine.high %v47_v57, %v55_v58  ;;  %v2308_v2 = vcombine.low %v43_v54, %v51_v55 }
  0xce   :  { %2155 = vmatprep.mubr.bf16.mxu0 %v2301_v3  ;;  %v2316_v3 = vcombine.low %v47_v57, %v55_v58 }
  0xcf   :  { %1918 = vmatpush1.bf16.msra.mxu1 %v2938_v4  ;;  %v18_v4 = vlaneseq }
  0xd0   :  { %2130 = vmatpush1.bf16.msra.mxu0 %v2941_v5  ;;  %1919 = vmatprep.subr.bf16.mxu1 %v2946_v6 }
  0xd1   :  { %2131 = vmatprep.subr.bf16.mxu0 %v2949_v7  ;;  %vm3956_vm0 = vcmp.lt.s32.totalorder %v18_v4, 256 }
  0xd2   :  { %22 = vst.msk [vmem:[%s4013_s3] sm:$0x3] %vm3956_vm0, %v3016_v56  ;;  %23 = vst.msk [vmem:[%s4014_s4] sm:$0x3] %vm3956_vm0, %v3016_v56 }
  0xd3   :  { %1920 = vmatpush1.bf16.msra.mxu1 %v2944_v8 }
  0xd4   :  { %2132 = vmatpush1.bf16.msra.mxu0 %v2947_v9  ;;  %1921 = vmatprep.subr.bf16.mxu1 %v2952_v10 }
  0xd5   :  { %2133 = vmatprep.subr.bf16.mxu0 %v2955_v11 }
  0xd7   :  { %1922 = vmatpush1.bf16.msra.mxu1 %v2950_v12 }
  0xd8   :  { %2134 = vmatpush1.bf16.msra.mxu0 %v2953_v13  ;;  %1923 = vmatprep.subr.bf16.mxu1 %v2958_v14 }
  0xd9   :  { %2135 = vmatprep.subr.bf16.mxu0 %v2961_v15 }
  0xdb   :  { %1924 = vmatpush1.bf16.msra.mxu1 %v2956_v16 }
  0xdc   :  { %2136 = vmatpush1.bf16.msra.mxu0 %v2959_v17  ;;  %1925 = vmatprep.subr.bf16.mxu1 %v2964_v18 }
  0xdd   :  { %2137 = vmatprep.subr.bf16.mxu0 %v2967_v19 }
  0xdf   :  { %1926 = vmatpush1.bf16.msra.mxu1 %v2962_v20 }
  0xe0   :  { %2138 = vmatpush1.bf16.msra.mxu0 %v2965_v21  ;;  %1927 = vmatprep.subr.bf16.mxu1 %v2970_v22 }
  0xe1   :  { %2139 = vmatprep.subr.bf16.mxu0 %v2973_v23 }
  0xe3   :  { %1928 = vmatpush1.bf16.msra.mxu1 %v2968_v24 }
  0xe4   :  { %2140 = vmatpush1.bf16.msra.mxu0 %v2971_v25  ;;  %1929 = vmatprep.subr.bf16.mxu1 %v2976_v26 }
  0xe5   :  { %2141 = vmatprep.subr.bf16.mxu0 %v2979_v27 }
  0xe7   :  { %1930 = vmatpush1.bf16.msra.mxu1 %v2974_v28 }
  0xe8   :  { %2142 = vmatpush1.bf16.msra.mxu0 %v2977_v29  ;;  %1931 = vmatprep.subr.bf16.mxu1 %v2982_v30 }
  0xe9   :  { %2143 = vmatprep.subr.bf16.mxu0 %v2985_v31 }
  0xeb   :  { %1932 = vmatpush1.bf16.msra.mxu1 %v2980_v32 }
  0xec   :  { %2144 = vmatpush1.bf16.msra.mxu0 %v2983_v33  ;;  %1933 = vmatprep.subr.bf16.mxu1 %v2988_v34 }
  0xed   :  { %2145 = vmatprep.subr.bf16.mxu0 %v2991_v35 }
  0xef   :  { %1934 = vmatpush1.bf16.msra.mxu1 %v2986_v36 }
  0xf0   :  { %2146 = vmatpush1.bf16.msra.mxu0 %v2989_v37  ;;  %1935 = vmatprep.subr.bf16.mxu1 %v2994_v38 }
  0xf1   :  { %2147 = vmatprep.subr.bf16.mxu0 %v2997_v39 }
  0xf3   :  { %1936 = vmatpush1.bf16.msra.mxu1 %v2992_v40 }
  0xf4   :  { %2148 = vmatpush1.bf16.msra.mxu0 %v2995_v41  ;;  %1937 = vmatprep.subr.bf16.mxu1 %v3000_v43 }
  0xf5   :  { %2149 = vmatprep.subr.bf16.mxu0 %v3003_v44 }
  0xf7   :  { %1938 = vmatpush1.bf16.msra.mxu1 %v2998_v48 }
  0xf8   :  { %2150 = vmatpush1.bf16.msra.mxu0 %v3001_v49  ;;  %1939 = vmatprep.subr.bf16.mxu1 %v3006_v42 }
  0xf9   :  { %2151 = vmatprep.subr.bf16.mxu0 %v3009_v45 }
  0xfb   :  { %1940 = vmatpush1.bf16.msra.mxu1 %v3004_v46 }
  0xfc   :  { %2152 = vmatpush1.bf16.msra.mxu0 %v3007_v47  ;;  %1941 = vmatprep.subr.bf16.mxu1 %v3012_v50 }
  0xfd   :  { %2153 = vmatprep.subr.bf16.mxu0 %v3015_v51 }
  0xff   :  { %1942 = vmatpush1.bf16.msra.mxu1 %v3010_v52  ;;  %v3017_v52 = vmov 1966171168  }
 0x100   :  { %2154 = vmatpush1.bf16.msra.mxu0 %v3013_v53  ;;  %v2207_v53 = vunpack.c.l.s4 %v3017_v52 }
 0x102   :  { %1944 = vmatmul.mubr.bf16.vlgmr.msra.gmra.mrb[0].mxu1 %v2292_v62 }
 0x103   :  { %2156 = vmatmul.mubr.bf16.vlgmr.msra.gmra.mrb[0].mxu0 %v2300_v63  ;;  %1953 = vmatprep.mubr.bf16.mxu1 %v2309_v0 }
 0x104   :  { %2165 = vmatprep.mubr.bf16.mxu0 %v2317_v1 }
 0x10a   :  { %1954 = vmatmul.mubr.bf16.gmra.mrb[4].mxu1 %v2308_v2  ;;  %v2208_v2 = vunpack.c.0.s8 %v2207_v53 }
 0x10b   :  { %2166 = vmatmul.mubr.bf16.gmra.mrb[4].mxu0 %v2316_v3  ;;  %v2210_v3 = vshrl.u32 %v18_v4, 7 }
 0x1d5   :  { %v1945_v59 = vpop.f32.mrb[0].mxu1 }
 0x1d6   :  { %v2157_v60 = vpop.f32.mrb[0].mxu0  ;;  %v1947_v6 = vpop.f32.mrb[1].mxu1 }
 0x1d7   :  { %v2574_v61 = vadd.f32 %v2157_v60, %v1945_v59  ;;  %v2159_v7 = vpop.f32.mrb[1].mxu0  ;;  %v1949_v9 = vpop.f32.mrb[2].mxu1 }
 0x1d8   :  { %v2575_v8 = vadd.f32 %v2159_v7, %v1947_v6  ;;  %v2161_v10 = vpop.f32.mrb[2].mxu0  ;;  %v1951_v12 = vpop.f32.mrb[3].mxu1 }
 0x1d9   :  { %2176 = vst [vmem:[%s4015_s2] sm:$0xff] %v2574_v61  ;;  %v2576_v11 = vadd.f32 %v2161_v10, %v1949_v9  ;;  %v2163_v13 = vpop.f32.mrb[3].mxu0  ;;  %v2228_v15 = vmul.f32 %v2574_v61, %v2574_v61  ;;  %v2211_v10 = vsub.s32 %v2208_v2, %v2210_v3 }
 0x1da   :  { %2177 = vst [vmem:[%s4015_s2 + $0x8] sm:$0xff] %v2575_v8  ;;  %v2577_v14 = vadd.f32 %v2163_v13, %v1951_v12  ;;  %v2229_v18 = vmul.f32 %v2575_v8, %v2575_v8 }
 0x1db   :  { %2178 = vst [vmem:[%s4015_s2 + $0x10] sm:$0xff] %v2576_v11  ;;  %v2185_v16 = vadd.f32 %v2576_v11, %v2574_v61  ;;  %v2230_v17 = vmul.f32 %v2576_v11, %v2576_v11 }
 0x1dc   :  { %2179 = vst [vmem:[%s4015_s2 + $0x18] sm:$0xff] %v2577_v14  ;;  %v2194_v19 = vadd.f32 %v2577_v14, %v2575_v8  ;;  %v2231_v20 = vmul.f32 %v2577_v14, %v2577_v14 }
 0x1dd   :  { %v2236_v21 = vadd.f32 %v2230_v17, %v2228_v15  ;;  %v1955_v23 = vpop.f32.mrb[4].mxu1  ;;  %v2184_v17 = vld [vmem:[%s4013_s3] sm:$0x3] }
 0x1de   :  { %v2245_v22 = vadd.f32 %v2231_v20, %v2229_v18  ;;  %v2167_v24 = vpop.f32.mrb[4].mxu0  ;;  %v1957_v26 = vpop.f32.mrb[5].mxu1 }
 0x1df   :  { %v2578_v25 = vadd.f32 %v2167_v24, %v1955_v23  ;;  %v2169_v27 = vpop.f32.mrb[5].mxu0  ;;  %v1959_v29 = vpop.f32.mrb[6].mxu1 }
 0x1e0   :  { %v2579_v28 = vadd.f32 %v2169_v27, %v1957_v26  ;;  %v2171_v30 = vpop.f32.mrb[6].mxu0  ;;  %v1961_v34 = vpop.f32.mrb[7].mxu1 }
 0x1e1   :  { %2180 = vst [vmem:[%s4015_s2 + $0x20] sm:$0xff] %v2578_v25  ;;  %v2186_v31 = vadd.f32 %v2578_v25, %v2185_v16  ;;  %v2232_v32 = vmul.f32 %v2578_v25, %v2578_v25  ;;  %v2580_v33 = vadd.f32 %v2171_v30, %v1959_v29  ;;  %v2173_v35 = vpop.f32.mrb[7].mxu0 }
 0x1e2   :  { %2181 = vst [vmem:[%s4015_s2 + $0x28] sm:$0xff] %v2579_v28  ;;  %v2195_v36 = vadd.f32 %v2579_v28, %v2194_v19  ;;  %v2233_v37 = vmul.f32 %v2579_v28, %v2579_v28  ;;  %v2581_v38 = vadd.f32 %v2173_v35, %v1961_v34  ;;  %v2227_v19 = vld [vmem:[%s4014_s4] sm:$0x3] }
 0x1e3   :  { %v2237_v39 = vadd.f32 %v2236_v21, %v2232_v32  ;;  %2182 = vst [vmem:[%s4015_s2 + $0x30] sm:$0xff] %v2580_v33  ;;  %v2187_v40 = vadd.f32 %v2580_v33, %v2186_v31  ;;  %v2234_v41 = vmul.f32 %v2580_v33, %v2580_v33 }
 0x1e4   :  { %v2246_v43 = vadd.f32 %v2245_v22, %v2233_v37  ;;  %2183 = vst [vmem:[%s4015_s2 + $0x38] sm:$0xff] %v2581_v38  ;;  %v2196_v44 = vadd.f32 %v2581_v38, %v2195_v36  ;;  %v2235_v48 = vmul.f32 %v2581_v38, %v2581_v38 }
 0x1e5   :  { %v2188_v49 = vrot.slane %v2187_v40, 4  ;;  %v2238_v42 = vadd.f32 %v2237_v39, %v2234_v41 }
 0x1e6   :  { %v2197_v45 = vrot.slane %v2196_v44, 4  ;;  %v2247_v46 = vadd.f32 %v2246_v43, %v2235_v48 }
 0x1e7   :  { %v2189_v47 = vadd.f32 %v2188_v49, %v2187_v40  ;;  %v2239_v50 = vrot.slane %v2238_v42, 4 }
 0x1e8   :  { %v2198_v51 = vadd.f32 %v2197_v45, %v2196_v44  ;;  %v2248_v54 = vrot.slane %v2247_v46, 4 }
 0x1e9   :  { %v2190_v55 = vrot.slane %v2189_v47, 2  ;;  %v2240_v57 = vadd.f32 %v2239_v50, %v2238_v42 }
 0x1ea   :  { %v2199_v58 = vrot.slane %v2198_v51, 2  ;;  %v2249_v62 = vadd.f32 %v2248_v54, %v2247_v46 }
 0x1eb   :  { %v2191_v63 = vadd.f32 %v2190_v55, %v2189_v47  ;;  %v2241_v0 = vrot.slane %v2240_v57, 2 }
 0x1ec   :  { %v2200_v1 = vadd.f32 %v2199_v58, %v2198_v51  ;;  %v2250_v56 = vrot.slane %v2249_v62, 2 }
 0x1ed   :  { %v2192_v59 = vrot.slane %v2191_v63, 1  ;;  %v2242_v60 = vadd.f32 %v2241_v0, %v2240_v57 }
 0x1ee   :  { %v2201_v61 = vrot.slane %v2200_v1, 1  ;;  %v2251_v6 = vadd.f32 %v2250_v56, %v2249_v62 }
 0x1ef   :  { %v2193_v7 = vadd.f32 %v2192_v59, %v2191_v63  ;;  %v2243_v8 = vrot.slane %v2242_v60, 1 }
 0x1f0   :  { %v2202_v9 = vadd.f32 %v2201_v61, %v2200_v1  ;;  %v2252_v11 = vrot.slane %v2251_v6, 1 }
 0x1f1   :  { %v2244_v12 = vadd.f32 %v2243_v8, %v2242_v60 }
 0x1f2   :  { %v2205_v13 = vcombine.low %v2193_v7, %v2202_v9  ;;  %v2253_v14 = vadd.f32 %v2252_v11, %v2251_v6 }
 0x1f4   :  { %v2212_v15 = vrot.slane %v2205_v13, %v2211_v10  ;;  %v2256_v16 = vcombine.low %v2244_v12, %v2253_v14 }
 0x1f6   :  { %v2219_v4 = vrot.slane %v2212_v15, %v2211_v10  ;;  %v2263_v18 = vrot.slane %v2256_v16, %v2211_v10 }
 0x1f8   :  { %v2221_v20 = vadd.f32 %v2219_v4, %v2184_v17  ;;  %v2270_v21 = vrot.slane %v2263_v18, %v2211_v10 }
 0x1fa   :  { %2226 = vst.msk [vmem:[%s4013_s3] sm:$0x3] %vm3956_vm0, %v2221_v20  ;;  %v2272_v22 = vadd.f32 %v2270_v21, %v2227_v19 }
 0x1fc   :  { %2273 = vst.msk [vmem:[%s4014_s4] sm:$0x3] %vm3956_vm0, %v2272_v22 }

// kernel: discriminator_forward.13
= control target key start
LH: loop header
LB: loop body
LE: loop exit
PB: predicated region body
PF: predicated region fallthrough
CT: control target
= control target key end

     0   :  { %v20_v0 = vlaneseq  ;;  %s140_s1 = inlined_call_operand.vmem [shape: f32[1,512], index: 1, kind: input, shape index: {}]   ;;  %s141_s2 = inlined_call_operand.vmem [shape: f32[1,512], index: 2, kind: input, shape index: {}]   ;;  %s142_s0 = inlined_call_operand.vmem [shape: f32[8,512], index: 0, kind: input, shape index: {}]   ;;  %s143_s3 = inlined_call_operand.vmem [shape: f32[8,512], index: 3, kind: output, shape index: {}]  }
   0x1   :  { %v18_v2 = vld [vmem:[%s140_s1] sm:$0xf]  ;;  %v15_v9 = vld [vmem:[%s142_s0 + $0x8] sm:$0xff]  ;;  %v16_v14 = vld [vmem:[%s142_s0 + $0x10] sm:$0xff] }
   0x2   :  { %v21_v1 = vshrl.u32 %v20_v0, 7  ;;  %v44_v3 = vld [vmem:[%s141_s2] sm:$0xf]  ;;  %v17_v15 = vld [vmem:[%s142_s0 + $0x18] sm:$0xff] }
   0x3   :  { %v14_v8 = vld [vmem:[%s142_s0] sm:$0xff] }
   0x4   :  { %v22_v4 = vsub.s32 0, %v21_v1  ;;  %v26_v5 = vsub.s32 1, %v21_v1  ;;  %v30_v6 = vsub.s32 2, %v21_v1  ;;  %v34_v7 = vsub.s32 3, %v21_v1 }
   0x6   :  { %v23_v10 = vrot.slane %v18_v2, %v22_v4  ;;  %v49_v11 = vrot.slane %v44_v3, %v22_v4  ;;  %v27_v12 = vrot.slane %v18_v2, %v26_v5  ;;  %v53_v13 = vrot.slane %v44_v3, %v26_v5 }
   0x7   :  { %v31_v16 = vrot.slane %v18_v2, %v30_v6  ;;  %v57_v17 = vrot.slane %v44_v3, %v30_v6  ;;  %v35_v18 = vrot.slane %v18_v2, %v34_v7  ;;  %v61_v19 = vrot.slane %v44_v3, %v34_v7 }
   0x8   :  { %v40_v20 = vmul.f32 %v23_v10, %v14_v8  ;;  %v41_v21 = vmul.f32 %v27_v12, %v15_v9 }
   0x9   :  { %v42_v22 = vmul.f32 %v31_v16, %v16_v14  ;;  %v43_v23 = vmul.f32 %v35_v18, %v17_v15 }
   0xa   :  { %v66_v24 = vadd.f32 %v49_v11, %v40_v20  ;;  %v67_v25 = vadd.f32 %v53_v13, %v41_v21 }
   0xb   :  { %v68_v26 = vadd.f32 %v57_v17, %v42_v22  ;;  %v69_v27 = vadd.f32 %v61_v19, %v43_v23 }
   0xc   :  { %vm70_vm0 = vcmp.ge.f32.partialorder %v66_v24, 0.0  ;;  %v74_v28 = vmul.f32 0.2, %v66_v24  ;;  %vm71_vm1 = vcmp.ge.f32.partialorder %v67_v25, 0.0  ;;  %v75_v29 = vmul.f32 0.2, %v67_v25 }
   0xd   :  { %vm72_vm2 = vcmp.ge.f32.partialorder %v68_v26, 0.0  ;;  %v76_v30 = vmul.f32 0.2, %v68_v26  ;;  %vm73_vm3 = vcmp.ge.f32.partialorder %v69_v27, 0.0  ;;  %v77_v31 = vmul.f32 0.2, %v69_v27 }
   0xe   :  { %v78_v32 = vsel %vm70_vm0, %v66_v24, %v74_v28  ;;  %v79_v33 = vsel %vm71_vm1, %v67_v25, %v75_v29 }
   0xf   :  { %82 = vst [vmem:[%s143_s3] sm:$0xff] %v78_v32  ;;  %83 = vst [vmem:[%s143_s3 + $0x8] sm:$0xff] %v79_v33  ;;  %v80_v34 = vsel %vm72_vm2, %v68_v26, %v76_v30  ;;  %v81_v35 = vsel %vm73_vm3, %v69_v27, %v77_v31 }
  0x10   :  { %84 = vst [vmem:[%s143_s3 + $0x10] sm:$0xff] %v80_v34  ;;  %85 = vst [vmem:[%s143_s3 + $0x18] sm:$0xff] %v81_v35 }

// kernel: discriminator_forward.12
= control target key start
LH: loop header
LB: loop body
LE: loop exit
PB: predicated region body
PF: predicated region fallthrough
CT: control target
= control target key end

     0   :  { %s13777_s1 = inlined_call_operand.vmem [shape: bf16[4096,512], index: 1, kind: input, shape index: {}]   ;;  %s13778_s0 = inlined_call_operand.vmem [shape: bf16[8,4096], index: 0, kind: input, shape index: {}]   ;;  %s13779_s3 = inlined_call_operand.vmem [shape: f32[1,512], index: 3, kind: output, shape index: {1}]   ;;  %s13780_s4 = inlined_call_operand.vmem [shape: f32[1,512], index: 4, kind: output, shape index: {2}]   ;;  %s13781_s2 = inlined_call_operand.vmem [shape: f32[8,512], index: 2, kind: output, shape index: {0}]  }
   0x1   :  { %v8922_v0 = vld [vmem:[%s13777_s1 + $0x4] ss:$16 sps:$4 sm:$0xff]   ;;  %v8924_v1 = vld [vmem:[%s13777_s1 + $0xc] ss:$16 sps:$4 sm:$0xff]   ;;  %v8926_v2 = vld [vmem:[%s13777_s1] ss:$16 sps:$4 sm:$0xff]  }
   0x2   :  { %6296 = vmatprep.subr.bf16.mxu0 %v8922_v0  ;;  %v8927_v3 = vld [vmem:[%s13777_s1 + $0x8] ss:$16 sps:$4 sm:$0xff]   ;;  %6952 = vmatprep.subr.bf16.mxu1 %v8924_v1  ;;  %v8928_v4 = vld [vmem:[%s13777_s1 + $0x24] ss:$16 sps:$4 sm:$0xff]   ;;  %v8930_v5 = vld [vmem:[%s13777_s1 + $0x2c] ss:$16 sps:$4 sm:$0xff]  }
   0x3   :  { %6297 = vmatpush1.bf16.msra.mxu0 %v8926_v2  ;;  %6953 = vmatpush1.bf16.msra.mxu1 %v8927_v3  ;;  %v8932_v6 = vld [vmem:[%s13777_s1 + $0x20] ss:$16 sps:$4 sm:$0xff]   ;;  %v8933_v7 = vld [vmem:[%s13777_s1 + $0x28] ss:$16 sps:$4 sm:$0xff]   ;;  %v8934_v8 = vld [vmem:[%s13777_s1 + $0x44] ss:$16 sps:$4 sm:$0xff]  }
   0x4   :  { %6298 = vmatprep.subr.bf16.mxu0 %v8928_v4  ;;  %6954 = vmatprep.subr.bf16.mxu1 %v8930_v5  ;;  %v8936_v9 = vld [vmem:[%s13777_s1 + $0x4c] ss:$16 sps:$4 sm:$0xff]   ;;  %v8938_v10 = vld [vmem:[%s13777_s1 + $0x40] ss:$16 sps:$4 sm:$0xff]   ;;  %v8939_v11 = vld [vmem:[%s13777_s1 + $0x48] ss:$16 sps:$4 sm:$0xff]  }
   0x5   :  { %v8940_v12 = vld [vmem:[%s13777_s1 + $0x64] ss:$16 sps:$4 sm:$0xff]   ;;  %v8942_v13 = vld [vmem:[%s13777_s1 + $0x6c] ss:$16 sps:$4 sm:$0xff]   ;;  %v8944_v14 = vld [vmem:[%s13777_s1 + $0x60] ss:$16 sps:$4 sm:$0xff]  }
   0x6   :  { %v8945_v15 = vld [vmem:[%s13777_s1 + $0x68] ss:$16 sps:$4 sm:$0xff]   ;;  %v8946_v16 = vld [vmem:[%s13777_s1 + $0x84] ss:$16 sps:$4 sm:$0xff]   ;;  %v8948_v17 = vld [vmem:[%s13777_s1 + $0x8c] ss:$16 sps:$4 sm:$0xff]  }
   0x7   :  { %6299 = vmatpush1.bf16.msra.mxu0 %v8932_v6  ;;  %6955 = vmatpush1.bf16.msra.mxu1 %v8933_v7  ;;  %v8950_v18 = vld [vmem:[%s13777_s1 + $0x80] ss:$16 sps:$4 sm:$0xff]   ;;  %v8951_v19 = vld [vmem:[%s13777_s1 + $0x88] ss:$16 sps:$4 sm:$0xff]   ;;  %v8952_v20 = vld [vmem:[%s13777_s1 + $0xa4] ss:$16 sps:$4 sm:$0xff]  }
   0x8   :  { %6300 = vmatprep.subr.bf16.mxu0 %v8934_v8  ;;  %6956 = vmatprep.subr.bf16.mxu1 %v8936_v9  ;;  %v8954_v21 = vld [vmem:[%s13777_s1 + $0xac] ss:$16 sps:$4 sm:$0xff]   ;;  %v8956_v22 = vld [vmem:[%s13777_s1 + $0xa0] ss:$16 sps:$4 sm:$0xff]   ;;  %v8957_v23 = vld [vmem:[%s13777_s1 + $0xa8] ss:$16 sps:$4 sm:$0xff]  }
   0x9   :  { %v8958_v24 = vld [vmem:[%s13777_s1 + $0xc4] ss:$16 sps:$4 sm:$0xff]   ;;  %v8960_v25 = vld [vmem:[%s13777_s1 + $0xcc] ss:$16 sps:$4 sm:$0xff]   ;;  %v8962_v26 = vld [vmem:[%s13777_s1 + $0xc0] ss:$16 sps:$4 sm:$0xff]  }
   0xa   :  { %v8963_v27 = vld [vmem:[%s13777_s1 + $0xc8] ss:$16 sps:$4 sm:$0xff]   ;;  %v8964_v28 = vld [vmem:[%s13777_s1 + $0xe4] ss:$16 sps:$4 sm:$0xff]   ;;  %v8966_v29 = vld [vmem:[%s13777_s1 + $0xec] ss:$16 sps:$4 sm:$0xff]  }
   0xb   :  { %6301 = vmatpush1.bf16.msra.mxu0 %v8938_v10  ;;  %6957 = vmatpush1.bf16.msra.mxu1 %v8939_v11  ;;  %v8968_v30 = vld [vmem:[%s13777_s1 + $0xe0] ss:$16 sps:$4 sm:$0xff]   ;;  %v8969_v31 = vld [vmem:[%s13777_s1 + $0xe8] ss:$16 sps:$4 sm:$0xff]   ;;  %v8970_v32 = vld [vmem:[%s13777_s1 + $0x104] ss:$16 sps:$4 sm:$0xff]  }
   0xc   :  { %6302 = vmatprep.subr.bf16.mxu0 %v8940_v12  ;;  %6958 = vmatprep.subr.bf16.mxu1 %v8942_v13  ;;  %v8972_v33 = vld [vmem:[%s13777_s1 + $0x10c] ss:$16 sps:$4 sm:$0xff]   ;;  %v8974_v34 = vld [vmem:[%s13777_s1 + $0x100] ss:$16 sps:$4 sm:$0xff]   ;;  %v8975_v35 = vld [vmem:[%s13777_s1 + $0x108] ss:$16 sps:$4 sm:$0xff]  }
   0xd   :  { %v8976_v36 = vld [vmem:[%s13777_s1 + $0x124] ss:$16 sps:$4 sm:$0xff]   ;;  %v8978_v37 = vld [vmem:[%s13777_s1 + $0x12c] ss:$16 sps:$4 sm:$0xff]   ;;  %v8980_v38 = vld [vmem:[%s13777_s1 + $0x120] ss:$16 sps:$4 sm:$0xff]  }
   0xe   :  { %v8981_v39 = vld [vmem:[%s13777_s1 + $0x128] ss:$16 sps:$4 sm:$0xff]   ;;  %v8982_v40 = vld [vmem:[%s13777_s1 + $0x144] ss:$16 sps:$4 sm:$0xff]   ;;  %v8984_v41 = vld [vmem:[%s13777_s1 + $0x14c] ss:$16 sps:$4 sm:$0xff]  }
   0xf   :  { %6303 = vmatpush1.bf16.msra.mxu0 %v8944_v14  ;;  %6959 = vmatpush1.bf16.msra.mxu1 %v8945_v15  ;;  %v8986_v42 = vld [vmem:[%s13777_s1 + $0x140] ss:$16 sps:$4 sm:$0xff]   ;;  %v8987_v43 = vld [vmem:[%s13777_s1 + $0x148] ss:$16 sps:$4 sm:$0xff]   ;;  %v8988_v44 = vld [vmem:[%s13777_s1 + $0x164] ss:$16 sps:$4 sm:$0xff]  }
  0x10   :  { %6304 = vmatprep.subr.bf16.mxu0 %v8946_v16  ;;  %6960 = vmatprep.subr.bf16.mxu1 %v8948_v17  ;;  %v8990_v45 = vld [vmem:[%s13777_s1 + $0x16c] ss:$16 sps:$4 sm:$0xff]   ;;  %v24_v46 = vld [vmem:[%s13778_s0] sm:$0xff]  ;;  %v8993_v49 = vld [vmem:[%s13777_s1 + $0x168] ss:$16 sps:$4 sm:$0xff]  }
  0x11   :  { %v8992_v47 = vld [vmem:[%s13777_s1 + $0x160] ss:$16 sps:$4 sm:$0xff]   ;;  %v7745_v48 = vcombine.high %v24_v46, %v24_v46  ;;  %v8994_v50 = vld [vmem:[%s13777_s1 + $0x184] ss:$16 sps:$4 sm:$0xff]   ;;  %v8996_v51 = vld [vmem:[%s13777_s1 + $0x18c] ss:$16 sps:$4 sm:$0xff]   ;;  %v7744_v4 = vcombine.low %v24_v46, %v24_v46 }
  0x12   :  { %v8998_v52 = vld [vmem:[%s13777_s1 + $0x180] ss:$16 sps:$4 sm:$0xff]   ;;  %v8999_v53 = vld [vmem:[%s13777_s1 + $0x188] ss:$16 sps:$4 sm:$0xff]   ;;  %v9000_v54 = vld [vmem:[%s13777_s1 + $0x1a4] ss:$16 sps:$4 sm:$0xff]  }
  0x13   :  { %6305 = vmatpush1.bf16.msra.mxu0 %v8950_v18  ;;  %6961 = vmatpush1.bf16.msra.mxu1 %v8951_v19  ;;  %v9002_v55 = vld [vmem:[%s13777_s1 + $0x1ac] ss:$16 sps:$4 sm:$0xff]   ;;  %v9004_v56 = vld [vmem:[%s13777_s1 + $0x1a0] ss:$16 sps:$4 sm:$0xff]   ;;  %v9005_v57 = vld [vmem:[%s13777_s1 + $0x1a8] ss:$16 sps:$4 sm:$0xff]  }
  0x14   :  { %6306 = vmatprep.subr.bf16.mxu0 %v8952_v20  ;;  %6962 = vmatprep.subr.bf16.mxu1 %v8954_v21  ;;  %v9006_v58 = vld [vmem:[%s13777_s1 + $0x1c4] ss:$16 sps:$4 sm:$0xff]   ;;  %v9008_v59 = vld [vmem:[%s13777_s1 + $0x1cc] ss:$16 sps:$4 sm:$0xff]   ;;  %v9010_v60 = vld [vmem:[%s13777_s1 + $0x1c0] ss:$16 sps:$4 sm:$0xff]  }
  0x15   :  { %6328 = vmatprep.mubr.bf16.mxu0 %v7745_v48  ;;  %6984 = vmatprep.mubr.bf16.mxu1 %v7745_v48  ;;  %v9011_v61 = vld [vmem:[%s13777_s1 + $0x1c8] ss:$16 sps:$4 sm:$0xff]   ;;  %v9012_v62 = vld [vmem:[%s13777_s1 + $0x1e4] ss:$16 sps:$4 sm:$0xff]   ;;  %v9014_v63 = vld [vmem:[%s13777_s1 + $0x1ec] ss:$16 sps:$4 sm:$0xff]  }
  0x16   :  { %v9016_v0 = vld [vmem:[%s13777_s1 + $0x1e0] ss:$16 sps:$4 sm:$0xff]   ;;  %v9017_v1 = vld [vmem:[%s13777_s1 + $0x1e8] ss:$16 sps:$4 sm:$0xff]   ;;  %v9022_v2 = vld [vmem:[%s13777_s1 + $0x204] ss:$16 sps:$4 sm:$0xff]  }
  0x17   :  { %6307 = vmatpush1.bf16.msra.mxu0 %v8956_v22  ;;  %6963 = vmatpush1.bf16.msra.mxu1 %v8957_v23  ;;  %v9025_v3 = vld [vmem:[%s13777_s1 + $0x20c] ss:$16 sps:$4 sm:$0xff]   ;;  %v9020_v5 = vld [vmem:[%s13777_s1 + $0x200] ss:$16 sps:$4 sm:$0xff]   ;;  %v9023_v6 = vld [vmem:[%s13777_s1 + $0x208] ss:$16 sps:$4 sm:$0xff]  }
  0x18   :  { %6308 = vmatprep.subr.bf16.mxu0 %v8958_v24  ;;  %6964 = vmatprep.subr.bf16.mxu1 %v8960_v25  ;;  %v9028_v7 = vld [vmem:[%s13777_s1 + $0x224] ss:$16 sps:$4 sm:$0xff]   ;;  %v9031_v8 = vld [vmem:[%s13777_s1 + $0x22c] ss:$16 sps:$4 sm:$0xff]   ;;  %v9026_v9 = vld [vmem:[%s13777_s1 + $0x220] ss:$16 sps:$4 sm:$0xff]  }
  0x19   :  { %v9029_v10 = vld [vmem:[%s13777_s1 + $0x228] ss:$16 sps:$4 sm:$0xff]   ;;  %v9034_v11 = vld [vmem:[%s13777_s1 + $0x244] ss:$16 sps:$4 sm:$0xff]   ;;  %v9037_v12 = vld [vmem:[%s13777_s1 + $0x24c] ss:$16 sps:$4 sm:$0xff]  }
  0x1a   :  { %v9032_v13 = vld [vmem:[%s13777_s1 + $0x240] ss:$16 sps:$4 sm:$0xff]   ;;  %v9035_v14 = vld [vmem:[%s13777_s1 + $0x248] ss:$16 sps:$4 sm:$0xff]   ;;  %v9040_v15 = vld [vmem:[%s13777_s1 + $0x264] ss:$16 sps:$4 sm:$0xff]  }
  0x1b   :  { %6309 = vmatpush1.bf16.msra.mxu0 %v8962_v26  ;;  %6965 = vmatpush1.bf16.msra.mxu1 %v8963_v27  ;;  %v9043_v16 = vld [vmem:[%s13777_s1 + $0x26c] ss:$16 sps:$4 sm:$0xff]   ;;  %v9038_v17 = vld [vmem:[%s13777_s1 + $0x260] ss:$16 sps:$4 sm:$0xff]   ;;  %v9041_v18 = vld [vmem:[%s13777_s1 + $0x268] ss:$16 sps:$4 sm:$0xff]  }
  0x1c   :  { %6310 = vmatprep.subr.bf16.mxu0 %v8964_v28  ;;  %6966 = vmatprep.subr.bf16.mxu1 %v8966_v29  ;;  %v9046_v19 = vld [vmem:[%s13777_s1 + $0x284] ss:$16 sps:$4 sm:$0xff]   ;;  %v9049_v20 = vld [vmem:[%s13777_s1 + $0x28c] ss:$16 sps:$4 sm:$0xff]   ;;  %v9044_v21 = vld [vmem:[%s13777_s1 + $0x280] ss:$16 sps:$4 sm:$0xff]  }
  0x1d   :  { %v9047_v22 = vld [vmem:[%s13777_s1 + $0x288] ss:$16 sps:$4 sm:$0xff]   ;;  %v9052_v23 = vld [vmem:[%s13777_s1 + $0x2a4] ss:$16 sps:$4 sm:$0xff]   ;;  %v9055_v24 = vld [vmem:[%s13777_s1 + $0x2ac] ss:$16 sps:$4 sm:$0xff]  }
  0x1e   :  { %v9050_v25 = vld [vmem:[%s13777_s1 + $0x2a0] ss:$16 sps:$4 sm:$0xff]   ;;  %v9053_v26 = vld [vmem:[%s13777_s1 + $0x2a8] ss:$16 sps:$4 sm:$0xff]   ;;  %v9058_v27 = vld [vmem:[%s13777_s1 + $0x2c4] ss:$16 sps:$4 sm:$0xff]  }
  0x1f   :  { %6311 = vmatpush1.bf16.msra.mxu0 %v8968_v30  ;;  %6967 = vmatpush1.bf16.msra.mxu1 %v8969_v31  ;;  %v9061_v28 = vld [vmem:[%s13777_s1 + $0x2cc] ss:$16 sps:$4 sm:$0xff]   ;;  %v9056_v31 = vld [vmem:[%s13777_s1 + $0x2c0] ss:$16 sps:$4 sm:$0xff]   ;;  %v9083_v48 = vld [vmem:[%s13777_s1 + $0x348] ss:$16 sps:$4 sm:$0xff]  }
  0x20   :  { %6312 = vmatprep.subr.bf16.mxu0 %v8970_v32  ;;  %6968 = vmatprep.subr.bf16.mxu1 %v8972_v33  ;;  %v10793_v29 = vld [vmem:[%s13778_s0 + $0x8] sm:$0xff]  ;;  %v9064_v33 = vld [vmem:[%s13777_s1 + $0x2e4] ss:$16 sps:$4 sm:$0xff]  }
  0x21   :  { %v7747_v30 = vcombine.high %v10793_v29, %v10793_v29  ;;  %v9059_v32 = vld [vmem:[%s13777_s1 + $0x2c8] ss:$16 sps:$4 sm:$0xff]   ;;  %v9085_v46 = vld [vmem:[%s13777_s1 + $0x34c] ss:$16 sps:$4 sm:$0xff]  }
  0x23   :  { %6313 = vmatpush1.bf16.msra.mxu0 %v8974_v34  ;;  %6969 = vmatpush1.bf16.msra.mxu1 %v8975_v35  ;;  %v9067_v34 = vld [vmem:[%s13777_s1 + $0x2ec] ss:$16 sps:$4 sm:$0xff]   ;;  %v9062_v35 = vld [vmem:[%s13777_s1 + $0x2e0] ss:$16 sps:$4 sm:$0xff]  }
  0x24   :  { %6314 = vmatprep.subr.bf16.mxu0 %v8976_v36  ;;  %6970 = vmatprep.subr.bf16.mxu1 %v8978_v37  ;;  %v9065_v36 = vld [vmem:[%s13777_s1 + $0x2e8] ss:$16 sps:$4 sm:$0xff]   ;;  %v9070_v37 = vld [vmem:[%s13777_s1 + $0x304] ss:$16 sps:$4 sm:$0xff]  }
  0x27   :  { %6315 = vmatpush1.bf16.msra.mxu0 %v8980_v38  ;;  %6971 = vmatpush1.bf16.msra.mxu1 %v8981_v39  ;;  %v9073_v38 = vld [vmem:[%s13777_s1 + $0x30c] ss:$16 sps:$4 sm:$0xff]   ;;  %v9068_v39 = vld [vmem:[%s13777_s1 + $0x300] ss:$16 sps:$4 sm:$0xff]  }
  0x28   :  { %6316 = vmatprep.subr.bf16.mxu0 %v8982_v40  ;;  %6972 = vmatprep.subr.bf16.mxu1 %v8984_v41  ;;  %v9071_v40 = vld [vmem:[%s13777_s1 + $0x308] ss:$16 sps:$4 sm:$0xff]   ;;  %v9076_v41 = vld [vmem:[%s13777_s1 + $0x324] ss:$16 sps:$4 sm:$0xff]  }
  0x2b   :  { %6317 = vmatpush1.bf16.msra.mxu0 %v8986_v42  ;;  %6973 = vmatpush1.bf16.msra.mxu1 %v8987_v43  ;;  %v9079_v42 = vld [vmem:[%s13777_s1 + $0x32c] ss:$16 sps:$4 sm:$0xff]   ;;  %v9074_v43 = vld [vmem:[%s13777_s1 + $0x320] ss:$16 sps:$4 sm:$0xff]  }
  0x2c   :  { %6318 = vmatprep.subr.bf16.mxu0 %v8988_v44  ;;  %6974 = vmatprep.subr.bf16.mxu1 %v8990_v45  ;;  %v9077_v44 = vld [vmem:[%s13777_s1 + $0x328] ss:$16 sps:$4 sm:$0xff]   ;;  %v9082_v45 = vld [vmem:[%s13777_s1 + $0x344] ss:$16 sps:$4 sm:$0xff]  }
  0x2f   :  { %6319 = vmatpush1.bf16.msra.mxu0 %v8992_v47  ;;  %6975 = vmatpush1.bf16.msra.mxu1 %v8993_v49  ;;  %v9080_v47 = vld [vmem:[%s13777_s1 + $0x340] ss:$16 sps:$4 sm:$0xff]   ;;  %v9088_v49 = vld [vmem:[%s13777_s1 + $0x364] ss:$16 sps:$4 sm:$0xff]  }
  0x30   :  { %6320 = vmatprep.subr.bf16.mxu0 %v8994_v50  ;;  %6976 = vmatprep.subr.bf16.mxu1 %v8996_v51  ;;  %v9091_v50 = vld [vmem:[%s13777_s1 + $0x36c] ss:$16 sps:$4 sm:$0xff]   ;;  %v9086_v51 = vld [vmem:[%s13777_s1 + $0x360] ss:$16 sps:$4 sm:$0xff]  }
  0x33   :  { %6321 = vmatpush1.bf16.msra.mxu0 %v8998_v52  ;;  %6977 = vmatpush1.bf16.msra.mxu1 %v8999_v53  ;;  %v9089_v52 = vld [vmem:[%s13777_s1 + $0x368] ss:$16 sps:$4 sm:$0xff]   ;;  %v9094_v53 = vld [vmem:[%s13777_s1 + $0x384] ss:$16 sps:$4 sm:$0xff]  }
  0x34   :  { %6322 = vmatprep.subr.bf16.mxu0 %v9000_v54  ;;  %6978 = vmatprep.subr.bf16.mxu1 %v9002_v55  ;;  %v9097_v54 = vld [vmem:[%s13777_s1 + $0x38c] ss:$16 sps:$4 sm:$0xff]   ;;  %v9092_v55 = vld [vmem:[%s13777_s1 + $0x380] ss:$16 sps:$4 sm:$0xff]  }
  0x37   :  { %6323 = vmatpush1.bf16.msra.mxu0 %v9004_v56  ;;  %6979 = vmatpush1.bf16.msra.mxu1 %v9005_v57  ;;  %v9095_v56 = vld [vmem:[%s13777_s1 + $0x388] ss:$16 sps:$4 sm:$0xff]   ;;  %v9100_v57 = vld [vmem:[%s13777_s1 + $0x3a4] ss:$16 sps:$4 sm:$0xff]  }
  0x38   :  { %6324 = vmatprep.subr.bf16.mxu0 %v9006_v58  ;;  %6980 = vmatprep.subr.bf16.mxu1 %v9008_v59  ;;  %v9103_v58 = vld [vmem:[%s13777_s1 + $0x3ac] ss:$16 sps:$4 sm:$0xff]   ;;  %v9098_v59 = vld [vmem:[%s13777_s1 + $0x3a0] ss:$16 sps:$4 sm:$0xff]  }
  0x3b   :  { %6325 = vmatpush1.bf16.msra.mxu0 %v9010_v60  ;;  %6981 = vmatpush1.bf16.msra.mxu1 %v9011_v61  ;;  %v9101_v60 = vld [vmem:[%s13777_s1 + $0x3a8] ss:$16 sps:$4 sm:$0xff]   ;;  %v9106_v61 = vld [vmem:[%s13777_s1 + $0x3c4] ss:$16 sps:$4 sm:$0xff]  }
  0x3c   :  { %6326 = vmatprep.subr.bf16.mxu0 %v9012_v62  ;;  %6982 = vmatprep.subr.bf16.mxu1 %v9014_v63  ;;  %v9109_v62 = vld [vmem:[%s13777_s1 + $0x3cc] ss:$16 sps:$4 sm:$0xff]   ;;  %v9104_v63 = vld [vmem:[%s13777_s1 + $0x3c0] ss:$16 sps:$4 sm:$0xff]  }
  0x3f   :  { %6327 = vmatpush1.bf16.msra.mxu0 %v9016_v0  ;;  %6983 = vmatpush1.bf16.msra.mxu1 %v9017_v1  ;;  %v9107_v0 = vld [vmem:[%s13777_s1 + $0x3c8] ss:$16 sps:$4 sm:$0xff]   ;;  %v9112_v1 = vld [vmem:[%s13777_s1 + $0x3e4] ss:$16 sps:$4 sm:$0xff]  }
  0x40   :  { %6337 = vmatprep.subr.bf16.mxu0 %v9022_v2  ;;  %6993 = vmatprep.subr.bf16.mxu1 %v9025_v3  ;;  %v9115_v2 = vld [vmem:[%s13777_s1 + $0x3ec] ss:$16 sps:$4 sm:$0xff]   ;;  %v9110_v3 = vld [vmem:[%s13777_s1 + $0x3e0] ss:$16 sps:$4 sm:$0xff]  }
  0x42   :  { %6329 = vmatmul.mubr.bf16.vlgmr.msra.gmra.mrb[0].mxu0 %v7744_v4  ;;  %6985 = vmatmul.mubr.bf16.vlgmr.msra.gmra.mrb[0].mxu1 %v7744_v4  ;;  %v9113_v4 = vld [vmem:[%s13777_s1 + $0x3e8] ss:$16 sps:$4 sm:$0xff]  }
  0x43   :  { %6338 = vmatpush1.bf16.msra.mxu0 %v9020_v5  ;;  %6994 = vmatpush1.bf16.msra.mxu1 %v9023_v6  ;;  %v9120_v5 = vld [vmem:[%s13777_s1 + $0x404] ss:$16 sps:$4 sm:$0xff]   ;;  %v9123_v6 = vld [vmem:[%s13777_s1 + $0x40c] ss:$16 sps:$4 sm:$0xff]  }
  0x44   :  { %6339 = vmatprep.subr.bf16.mxu0 %v9028_v7  ;;  %6995 = vmatprep.subr.bf16.mxu1 %v9031_v8  ;;  %v7746_v7 = vcombine.low %v10793_v29, %v10793_v29  ;;  %v9118_v8 = vld [vmem:[%s13777_s1 + $0x400] ss:$16 sps:$4 sm:$0xff]   ;;  %v9153_v29 = vld [vmem:[%s13777_s1 + $0x4ac] ss:$16 sps:$4 sm:$0xff]  }
  0x45   :  { %6369 = vmatprep.mubr.bf16.mxu0 %v7747_v30  ;;  %7025 = vmatprep.mubr.bf16.mxu1 %v7747_v30  ;;  %v9148_v30 = vld [vmem:[%s13777_s1 + $0x4a0] ss:$16 sps:$4 sm:$0xff]  }
  0x47   :  { %6340 = vmatpush1.bf16.msra.mxu0 %v9026_v9  ;;  %6996 = vmatpush1.bf16.msra.mxu1 %v9029_v10  ;;  %v9121_v9 = vld [vmem:[%s13777_s1 + $0x408] ss:$16 sps:$4 sm:$0xff]   ;;  %v9126_v10 = vld [vmem:[%s13777_s1 + $0x424] ss:$16 sps:$4 sm:$0xff]  }
  0x48   :  { %6341 = vmatprep.subr.bf16.mxu0 %v9034_v11  ;;  %6997 = vmatprep.subr.bf16.mxu1 %v9037_v12  ;;  %v10931_v11 = vld [vmem:[%s13778_s0 + $0x10] sm:$0xff]  ;;  %v9129_v12 = vld [vmem:[%s13777_s1 + $0x42c] ss:$16 sps:$4 sm:$0xff]  }
  0x4b   :  { %6342 = vmatpush1.bf16.msra.mxu0 %v9032_v13  ;;  %6998 = vmatpush1.bf16.msra.mxu1 %v9035_v14  ;;  %v7749_v13 = vcombine.high %v10931_v11, %v10931_v11  ;;  %v9124_v14 = vld [vmem:[%s13777_s1 + $0x420] ss:$16 sps:$4 sm:$0xff]  }
  0x4c   :  { %6343 = vmatprep.subr.bf16.mxu0 %v9040_v15  ;;  %6999 = vmatprep.subr.bf16.mxu1 %v9043_v16  ;;  %v9127_v15 = vld [vmem:[%s13777_s1 + $0x428] ss:$16 sps:$4 sm:$0xff]   ;;  %v9132_v16 = vld [vmem:[%s13777_s1 + $0x444] ss:$16 sps:$4 sm:$0xff]  }
  0x4f   :  { %6344 = vmatpush1.bf16.msra.mxu0 %v9038_v17  ;;  %7000 = vmatpush1.bf16.msra.mxu1 %v9041_v18  ;;  %v9135_v17 = vld [vmem:[%s13777_s1 + $0x44c] ss:$16 sps:$4 sm:$0xff]   ;;  %v9130_v18 = vld [vmem:[%s13777_s1 + $0x440] ss:$16 sps:$4 sm:$0xff]  }
  0x50   :  { %6345 = vmatprep.subr.bf16.mxu0 %v9046_v19  ;;  %7001 = vmatprep.subr.bf16.mxu1 %v9049_v20  ;;  %v9133_v19 = vld [vmem:[%s13777_s1 + $0x448] ss:$16 sps:$4 sm:$0xff]   ;;  %v9138_v20 = vld [vmem:[%s13777_s1 + $0x464] ss:$16 sps:$4 sm:$0xff]  }
  0x53   :  { %6346 = vmatpush1.bf16.msra.mxu0 %v9044_v21  ;;  %7002 = vmatpush1.bf16.msra.mxu1 %v9047_v22  ;;  %v9141_v21 = vld [vmem:[%s13777_s1 + $0x46c] ss:$16 sps:$4 sm:$0xff]   ;;  %v9136_v22 = vld [vmem:[%s13777_s1 + $0x460] ss:$16 sps:$4 sm:$0xff]  }
  0x54   :  { %6347 = vmatprep.subr.bf16.mxu0 %v9052_v23  ;;  %7003 = vmatprep.subr.bf16.mxu1 %v9055_v24  ;;  %v9139_v23 = vld [vmem:[%s13777_s1 + $0x468] ss:$16 sps:$4 sm:$0xff]   ;;  %v9144_v24 = vld [vmem:[%s13777_s1 + $0x484] ss:$16 sps:$4 sm:$0xff]  }
  0x57   :  { %6348 = vmatpush1.bf16.msra.mxu0 %v9050_v25  ;;  %7004 = vmatpush1.bf16.msra.mxu1 %v9053_v26  ;;  %v9147_v25 = vld [vmem:[%s13777_s1 + $0x48c] ss:$16 sps:$4 sm:$0xff]   ;;  %v9142_v26 = vld [vmem:[%s13777_s1 + $0x480] ss:$16 sps:$4 sm:$0xff]  }
  0x58   :  { %6349 = vmatprep.subr.bf16.mxu0 %v9058_v27  ;;  %7005 = vmatprep.subr.bf16.mxu1 %v9061_v28  ;;  %v9145_v27 = vld [vmem:[%s13777_s1 + $0x488] ss:$16 sps:$4 sm:$0xff]   ;;  %v9150_v28 = vld [vmem:[%s13777_s1 + $0x4a4] ss:$16 sps:$4 sm:$0xff]  }
  0x5b   :  { %6350 = vmatpush1.bf16.msra.mxu0 %v9056_v31  ;;  %7006 = vmatpush1.bf16.msra.mxu1 %v9059_v32  ;;  %v9151_v31 = vld [vmem:[%s13777_s1 + $0x4a8] ss:$16 sps:$4 sm:$0xff]   ;;  %v9156_v32 = vld [vmem:[%s13777_s1 + $0x4c4] ss:$16 sps:$4 sm:$0xff]  }
  0x5c   :  { %6351 = vmatprep.subr.bf16.mxu0 %v9064_v33  ;;  %7007 = vmatprep.subr.bf16.mxu1 %v9067_v34  ;;  %v9159_v33 = vld [vmem:[%s13777_s1 + $0x4cc] ss:$16 sps:$4 sm:$0xff]   ;;  %v9154_v34 = vld [vmem:[%s13777_s1 + $0x4c0] ss:$16 sps:$4 sm:$0xff]  }
  0x5f   :  { %6352 = vmatpush1.bf16.msra.mxu0 %v9062_v35  ;;  %7008 = vmatpush1.bf16.msra.mxu1 %v9065_v36  ;;  %v9157_v35 = vld [vmem:[%s13777_s1 + $0x4c8] ss:$16 sps:$4 sm:$0xff]   ;;  %v9162_v36 = vld [vmem:[%s13777_s1 + $0x4e4] ss:$16 sps:$4 sm:$0xff]  }
  0x60   :  { %6353 = vmatprep.subr.bf16.mxu0 %v9070_v37  ;;  %7009 = vmatprep.subr.bf16.mxu1 %v9073_v38  ;;  %v9165_v37 = vld [vmem:[%s13777_s1 + $0x4ec] ss:$16 sps:$4 sm:$0xff]   ;;  %v9160_v38 = vld [vmem:[%s13777_s1 + $0x4e0] ss:$16 sps:$4 sm:$0xff]  }
  0x63   :  { %6354 = vmatpush1.bf16.msra.mxu0 %v9068_v39  ;;  %7010 = vmatpush1.bf16.msra.mxu1 %v9071_v40  ;;  %v9163_v39 = vld [vmem:[%s13777_s1 + $0x4e8] ss:$16 sps:$4 sm:$0xff]   ;;  %v9168_v40 = vld [vmem:[%s13777_s1 + $0x504] ss:$16 sps:$4 sm:$0xff]  }
  0x64   :  { %6355 = vmatprep.subr.bf16.mxu0 %v9076_v41  ;;  %7011 = vmatprep.subr.bf16.mxu1 %v9079_v42  ;;  %v9171_v41 = vld [vmem:[%s13777_s1 + $0x50c] ss:$16 sps:$4 sm:$0xff]   ;;  %v9166_v42 = vld [vmem:[%s13777_s1 + $0x500] ss:$16 sps:$4 sm:$0xff]  }
  0x67   :  { %6356 = vmatpush1.bf16.msra.mxu0 %v9074_v43  ;;  %7012 = vmatpush1.bf16.msra.mxu1 %v9077_v44  ;;  %v9169_v43 = vld [vmem:[%s13777_s1 + $0x508] ss:$16 sps:$4 sm:$0xff]   ;;  %v9174_v44 = vld [vmem:[%s13777_s1 + $0x524] ss:$16 sps:$4 sm:$0xff]  }
  0x68   :  { %6357 = vmatprep.subr.bf16.mxu0 %v9082_v45  ;;  %7013 = vmatprep.subr.bf16.mxu1 %v9085_v46  ;;  %v9177_v45 = vld [vmem:[%s13777_s1 + $0x52c] ss:$16 sps:$4 sm:$0xff]   ;;  %v9172_v46 = vld [vmem:[%s13777_s1 + $0x520] ss:$16 sps:$4 sm:$0xff]  }
  0x6b   :  { %6358 = vmatpush1.bf16.msra.mxu0 %v9080_v47  ;;  %7014 = vmatpush1.bf16.msra.mxu1 %v9083_v48  ;;  %v9175_v47 = vld [vmem:[%s13777_s1 + $0x528] ss:$16 sps:$4 sm:$0xff]   ;;  %v9180_v48 = vld [vmem:[%s13777_s1 + $0x544] ss:$16 sps:$4 sm:$0xff]  }
  0x6c   :  { %6359 = vmatprep.subr.bf16.mxu0 %v9088_v49  ;;  %7015 = vmatprep.subr.bf16.mxu1 %v9091_v50  ;;  %v9183_v49 = vld [vmem:[%s13777_s1 + $0x54c] ss:$16 sps:$4 sm:$0xff]   ;;  %v9178_v50 = vld [vmem:[%s13777_s1 + $0x540] ss:$16 sps:$4 sm:$0xff]  }
  0x6f   :  { %6360 = vmatpush1.bf16.msra.mxu0 %v9086_v51  ;;  %7016 = vmatpush1.bf16.msra.mxu1 %v9089_v52  ;;  %v9181_v51 = vld [vmem:[%s13777_s1 + $0x548] ss:$16 sps:$4 sm:$0xff]   ;;  %v9186_v52 = vld [vmem:[%s13777_s1 + $0x564] ss:$16 sps:$4 sm:$0xff]  }
  0x70   :  { %6361 = vmatprep.subr.bf16.mxu0 %v9094_v53  ;;  %7017 = vmatprep.subr.bf16.mxu1 %v9097_v54  ;;  %v9189_v53 = vld [vmem:[%s13777_s1 + $0x56c] ss:$16 sps:$4 sm:$0xff]   ;;  %v9184_v54 = vld [vmem:[%s13777_s1 + $0x560] ss:$16 sps:$4 sm:$0xff]  }
  0x73   :  { %6362 = vmatpush1.bf16.msra.mxu0 %v9092_v55  ;;  %7018 = vmatpush1.bf16.msra.mxu1 %v9095_v56  ;;  %v9187_v55 = vld [vmem:[%s13777_s1 + $0x568] ss:$16 sps:$4 sm:$0xff]   ;;  %v9192_v56 = vld [vmem:[%s13777_s1 + $0x584] ss:$16 sps:$4 sm:$0xff]  }
  0x74   :  { %6363 = vmatprep.subr.bf16.mxu0 %v9100_v57  ;;  %7019 = vmatprep.subr.bf16.mxu1 %v9103_v58  ;;  %v9195_v57 = vld [vmem:[%s13777_s1 + $0x58c] ss:$16 sps:$4 sm:$0xff]   ;;  %v9190_v58 = vld [vmem:[%s13777_s1 + $0x580] ss:$16 sps:$4 sm:$0xff]  }
  0x77   :  { %6364 = vmatpush1.bf16.msra.mxu0 %v9098_v59  ;;  %7020 = vmatpush1.bf16.msra.mxu1 %v9101_v60  ;;  %v9193_v59 = vld [vmem:[%s13777_s1 + $0x588] ss:$16 sps:$4 sm:$0xff]   ;;  %v9198_v60 = vld [vmem:[%s13777_s1 + $0x5a4] ss:$16 sps:$4 sm:$0xff]  }
  0x78   :  { %6365 = vmatprep.subr.bf16.mxu0 %v9106_v61  ;;  %7021 = vmatprep.subr.bf16.mxu1 %v9109_v62  ;;  %v9201_v61 = vld [vmem:[%s13777_s1 + $0x5ac] ss:$16 sps:$4 sm:$0xff]   ;;  %v9196_v62 = vld [vmem:[%s13777_s1 + $0x5a0] ss:$16 sps:$4 sm:$0xff]  }
  0x7b   :  { %6366 = vmatpush1.bf16.msra.mxu0 %v9104_v63  ;;  %7022 = vmatpush1.bf16.msra.mxu1 %v9107_v0  ;;  %v9199_v63 = vld [vmem:[%s13777_s1 + $0x5a8] ss:$16 sps:$4 sm:$0xff]   ;;  %v9204_v0 = vld [vmem:[%s13777_s1 + $0x5c4] ss:$16 sps:$4 sm:$0xff]  }
  0x7c   :  { %6367 = vmatprep.subr.bf16.mxu0 %v9112_v1  ;;  %7023 = vmatprep.subr.bf16.mxu1 %v9115_v2  ;;  %v9207_v1 = vld [vmem:[%s13777_s1 + $0x5cc] ss:$16 sps:$4 sm:$0xff]   ;;  %v9202_v2 = vld [vmem:[%s13777_s1 + $0x5c0] ss:$16 sps:$4 sm:$0xff]  }
  0x7f   :  { %6368 = vmatpush1.bf16.msra.mxu0 %v9110_v3  ;;  %7024 = vmatpush1.bf16.msra.mxu1 %v9113_v4  ;;  %v9205_v3 = vld [vmem:[%s13777_s1 + $0x5c8] ss:$16 sps:$4 sm:$0xff]   ;;  %v9210_v4 = vld [vmem:[%s13777_s1 + $0x5e4] ss:$16 sps:$4 sm:$0xff]  }
  0x80   :  { %6378 = vmatprep.subr.bf16.mxu0 %v9120_v5  ;;  %7034 = vmatprep.subr.bf16.mxu1 %v9123_v6  ;;  %v9213_v5 = vld [vmem:[%s13777_s1 + $0x5ec] ss:$16 sps:$4 sm:$0xff]   ;;  %v9208_v6 = vld [vmem:[%s13777_s1 + $0x5e0] ss:$16 sps:$4 sm:$0xff]  }
  0x82   :  { %6370 = vmatmul.mubr.bf16.vlgmr.msra.gmra.mrb[0].mxu0 %v7746_v7  ;;  %7026 = vmatmul.mubr.bf16.vlgmr.msra.gmra.mrb[0].mxu1 %v7746_v7  ;;  %v9211_v7 = vld [vmem:[%s13777_s1 + $0x5e8] ss:$16 sps:$4 sm:$0xff]  }
  0x83   :  { %6379 = vmatpush1.bf16.msra.mxu0 %v9118_v8  ;;  %7035 = vmatpush1.bf16.msra.mxu1 %v9121_v9  ;;  %v9218_v8 = vld [vmem:[%s13777_s1 + $0x604] ss:$16 sps:$4 sm:$0xff]   ;;  %v9221_v9 = vld [vmem:[%s13777_s1 + $0x60c] ss:$16 sps:$4 sm:$0xff]  }
  0x84   :  { %6380 = vmatprep.subr.bf16.mxu0 %v9126_v10  ;;  %7036 = vmatprep.subr.bf16.mxu1 %v9129_v12  ;;  %v9216_v10 = vld [vmem:[%s13777_s1 + $0x600] ss:$16 sps:$4 sm:$0xff]   ;;  %v7748_v12 = vcombine.low %v10931_v11, %v10931_v11  ;;  %v9227_v11 = vld [vmem:[%s13777_s1 + $0x62c] ss:$16 sps:$4 sm:$0xff]  }
  0x85   :  { %6410 = vmatprep.mubr.bf16.mxu0 %v7749_v13  ;;  %7066 = vmatprep.mubr.bf16.mxu1 %v7749_v13  ;;  %v9219_v13 = vld [vmem:[%s13777_s1 + $0x608] ss:$16 sps:$4 sm:$0xff]  }
  0x87   :  { %6381 = vmatpush1.bf16.msra.mxu0 %v9124_v14  ;;  %7037 = vmatpush1.bf16.msra.mxu1 %v9127_v15  ;;  %v11129_v14 = vld [vmem:[%s13778_s0 + $0x18] sm:$0xff]  ;;  %v9224_v15 = vld [vmem:[%s13777_s1 + $0x624] ss:$16 sps:$4 sm:$0xff]  }
  0x88   :  { %6382 = vmatprep.subr.bf16.mxu0 %v9132_v16  ;;  %7038 = vmatprep.subr.bf16.mxu1 %v9135_v17  ;;  %v7751_v16 = vcombine.high %v11129_v14, %v11129_v14  ;;  %v9222_v17 = vld [vmem:[%s13777_s1 + $0x620] ss:$16 sps:$4 sm:$0xff]  }
  0x8b   :  { %6383 = vmatpush1.bf16.msra.mxu0 %v9130_v18  ;;  %7039 = vmatpush1.bf16.msra.mxu1 %v9133_v19  ;;  %v9225_v18 = vld [vmem:[%s13777_s1 + $0x628] ss:$16 sps:$4 sm:$0xff]   ;;  %v9230_v19 = vld [vmem:[%s13777_s1 + $0x644] ss:$16 sps:$4 sm:$0xff]  }
  0x8c   :  { %6384 = vmatprep.subr.bf16.mxu0 %v9138_v20  ;;  %7040 = vmatprep.subr.bf16.mxu1 %v9141_v21  ;;  %v9233_v20 = vld [vmem:[%s13777_s1 + $0x64c] ss:$16 sps:$4 sm:$0xff]   ;;  %v9228_v21 = vld [vmem:[%s13777_s1 + $0x640] ss:$16 sps:$4 sm:$0xff]  }
  0x8f   :  { %6385 = vmatpush1.bf16.msra.mxu0 %v9136_v22  ;;  %7041 = vmatpush1.bf16.msra.mxu1 %v9139_v23  ;;  %v9231_v22 = vld [vmem:[%s13777_s1 + $0x648] ss:$16 sps:$4 sm:$0xff]   ;;  %v9236_v23 = vld [vmem:[%s13777_s1 + $0x664] ss:$16 sps:$4 sm:$0xff]  }
  0x90   :  { %6386 = vmatprep.subr.bf16.mxu0 %v9144_v24  ;;  %7042 = vmatprep.subr.bf16.mxu1 %v9147_v25  ;;  %v9239_v24 = vld [vmem:[%s13777_s1 + $0x66c] ss:$16 sps:$4 sm:$0xff]   ;;  %v9234_v25 = vld [vmem:[%s13777_s1 + $0x660] ss:$16 sps:$4 sm:$0xff]  }
  0x93   :  { %6387 = vmatpush1.bf16.msra.mxu0 %v9142_v26  ;;  %7043 = vmatpush1.bf16.msra.mxu1 %v9145_v27  ;;  %v9237_v26 = vld [vmem:[%s13777_s1 + $0x668] ss:$16 sps:$4 sm:$0xff]   ;;  %v9242_v27 = vld [vmem:[%s13777_s1 + $0x684] ss:$16 sps:$4 sm:$0xff]  }
  0x94   :  { %6388 = vmatprep.subr.bf16.mxu0 %v9150_v28  ;;  %7044 = vmatprep.subr.bf16.mxu1 %v9153_v29  ;;  %v9245_v28 = vld [vmem:[%s13777_s1 + $0x68c] ss:$16 sps:$4 sm:$0xff]   ;;  %v9240_v29 = vld [vmem:[%s13777_s1 + $0x680] ss:$16 sps:$4 sm:$0xff]  }
  0x97   :  { %6389 = vmatpush1.bf16.msra.mxu0 %v9148_v30  ;;  %7045 = vmatpush1.bf16.msra.mxu1 %v9151_v31  ;;  %v9243_v30 = vld [vmem:[%s13777_s1 + $0x688] ss:$16 sps:$4 sm:$0xff]   ;;  %v9248_v31 = vld [vmem:[%s13777_s1 + $0x6a4] ss:$16 sps:$4 sm:$0xff]  }
  0x98   :  { %6390 = vmatprep.subr.bf16.mxu0 %v9156_v32  ;;  %7046 = vmatprep.subr.bf16.mxu1 %v9159_v33  ;;  %v9251_v32 = vld [vmem:[%s13777_s1 + $0x6ac] ss:$16 sps:$4 sm:$0xff]   ;;  %v9246_v33 = vld [vmem:[%s13777_s1 + $0x6a0] ss:$16 sps:$4 sm:$0xff]  }
  0x9b   :  { %6391 = vmatpush1.bf16.msra.mxu0 %v9154_v34  ;;  %7047 = vmatpush1.bf16.msra.mxu1 %v9157_v35  ;;  %v9249_v34 = vld [vmem:[%s13777_s1 + $0x6a8] ss:$16 sps:$4 sm:$0xff]   ;;  %v9254_v35 = vld [vmem:[%s13777_s1 + $0x6c4] ss:$16 sps:$4 sm:$0xff]  }
  0x9c   :  { %6392 = vmatprep.subr.bf16.mxu0 %v9162_v36  ;;  %7048 = vmatprep.subr.bf16.mxu1 %v9165_v37  ;;  %v9257_v36 = vld [vmem:[%s13777_s1 + $0x6cc] ss:$16 sps:$4 sm:$0xff]   ;;  %v9252_v37 = vld [vmem:[%s13777_s1 + $0x6c0] ss:$16 sps:$4 sm:$0xff]  }
  0x9f   :  { %6393 = vmatpush1.bf16.msra.mxu0 %v9160_v38  ;;  %7049 = vmatpush1.bf16.msra.mxu1 %v9163_v39  ;;  %v9255_v38 = vld [vmem:[%s13777_s1 + $0x6c8] ss:$16 sps:$4 sm:$0xff]   ;;  %v9260_v39 = vld [vmem:[%s13777_s1 + $0x6e4] ss:$16 sps:$4 sm:$0xff]  }
  0xa0   :  { %6394 = vmatprep.subr.bf16.mxu0 %v9168_v40  ;;  %7050 = vmatprep.subr.bf16.mxu1 %v9171_v41  ;;  %v9263_v40 = vld [vmem:[%s13777_s1 + $0x6ec] ss:$16 sps:$4 sm:$0xff]   ;;  %v9258_v41 = vld [vmem:[%s13777_s1 + $0x6e0] ss:$16 sps:$4 sm:$0xff]  }
  0xa3   :  { %6395 = vmatpush1.bf16.msra.mxu0 %v9166_v42  ;;  %7051 = vmatpush1.bf16.msra.mxu1 %v9169_v43  ;;  %v9261_v42 = vld [vmem:[%s13777_s1 + $0x6e8] ss:$16 sps:$4 sm:$0xff]   ;;  %v9266_v43 = vld [vmem:[%s13777_s1 + $0x704] ss:$16 sps:$4 sm:$0xff]  }
  0xa4   :  { %6396 = vmatprep.subr.bf16.mxu0 %v9174_v44  ;;  %7052 = vmatprep.subr.bf16.mxu1 %v9177_v45  ;;  %v9269_v44 = vld [vmem:[%s13777_s1 + $0x70c] ss:$16 sps:$4 sm:$0xff]   ;;  %v9264_v45 = vld [vmem:[%s13777_s1 + $0x700] ss:$16 sps:$4 sm:$0xff]  }
  0xa7   :  { %6397 = vmatpush1.bf16.msra.mxu0 %v9172_v46  ;;  %7053 = vmatpush1.bf16.msra.mxu1 %v9175_v47  ;;  %v9267_v46 = vld [vmem:[%s13777_s1 + $0x708] ss:$16 sps:$4 sm:$0xff]   ;;  %v9272_v47 = vld [vmem:[%s13777_s1 + $0x724] ss:$16 sps:$4 sm:$0xff]  }
  0xa8   :  { %6398 = vmatprep.subr.bf16.mxu0 %v9180_v48  ;;  %7054 = vmatprep.subr.bf16.mxu1 %v9183_v49  ;;  %v9275_v48 = vld [vmem:[%s13777_s1 + $0x72c] ss:$16 sps:$4 sm:$0xff]   ;;  %v9270_v49 = vld [vmem:[%s13777_s1 + $0x720] ss:$16 sps:$4 sm:$0xff]  }
  0xab   :  { %6399 = vmatpush1.bf16.msra.mxu0 %v9178_v50  ;;  %7055 = vmatpush1.bf16.msra.mxu1 %v9181_v51  ;;  %v9273_v50 = vld [vmem:[%s13777_s1 + $0x728] ss:$16 sps:$4 sm:$0xff]   ;;  %v9278_v51 = vld [vmem:[%s13777_s1 + $0x744] ss:$16 sps:$4 sm:$0xff]  }
  0xac   :  { %6400 = vmatprep.subr.bf16.mxu0 %v9186_v52  ;;  %7056 = vmatprep.subr.bf16.mxu1 %v9189_v53  ;;  %v9281_v52 = vld [vmem:[%s13777_s1 + $0x74c] ss:$16 sps:$4 sm:$0xff]   ;;  %v9276_v53 = vld [vmem:[%s13777_s1 + $0x740] ss:$16 sps:$4 sm:$0xff]  }
  0xaf   :  { %6401 = vmatpush1.bf16.msra.mxu0 %v9184_v54  ;;  %7057 = vmatpush1.bf16.msra.mxu1 %v9187_v55  ;;  %v9279_v54 = vld [vmem:[%s13777_s1 + $0x748] ss:$16 sps:$4 sm:$0xff]   ;;  %v9284_v55 = vld [vmem:[%s13777_s1 + $0x764] ss:$16 sps:$4 sm:$0xff]  }
  0xb0   :  { %6402 = vmatprep.subr.bf16.mxu0 %v9192_v56  ;;  %7058 = vmatprep.subr.bf16.mxu1 %v9195_v57  ;;  %v9287_v56 = vld [vmem:[%s13777_s1 + $0x76c] ss:$16 sps:$4 sm:$0xff]   ;;  %v9282_v57 = vld [vmem:[%s13777_s1 + $0x760] ss:$16 sps:$4 sm:$0xff]  }
  0xb3   :  { %6403 = vmatpush1.bf16.msra.mxu0 %v9190_v58  ;;  %7059 = vmatpush1.bf16.msra.mxu1 %v9193_v59  ;;  %v9285_v58 = vld [vmem:[%s13777_s1 + $0x768] ss:$16 sps:$4 sm:$0xff]   ;;  %v9290_v59 = vld [vmem:[%s13777_s1 + $0x784] ss:$16 sps:$4 sm:$0xff]  }
  0xb4   :  { %6404 = vmatprep.subr.bf16.mxu0 %v9198_v60  ;;  %7060 = vmatprep.subr.bf16.mxu1 %v9201_v61  ;;  %v9293_v60 = vld [vmem:[%s13777_s1 + $0x78c] ss:$16 sps:$4 sm:$0xff]   ;;  %v9288_v61 = vld [vmem:[%s13777_s1 + $0x780] ss:$16 sps:$4 sm:$0xff]  }
  0xb7   :  { %6405 = vmatpush1.bf16.msra.mxu0 %v9196_v62  ;;  %7061 = vmatpush1.bf16.msra.mxu1 %v9199_v63  ;;  %v9291_v62 = vld [vmem:[%s13777_s1 + $0x788] ss:$16 sps:$4 sm:$0xff]   ;;  %v9296_v63 = vld [vmem:[%s13777_s1 + $0x7a4] ss:$16 sps:$4 sm:$0xff]  }
  0xb8   :  { %6406 = vmatprep.subr.bf16.mxu0 %v9204_v0  ;;  %7062 = vmatprep.subr.bf16.mxu1 %v9207_v1  ;;  %v9299_v0 = vld [vmem:[%s13777_s1 + $0x7ac] ss:$16 sps:$4 sm:$0xff]   ;;  %v9294_v1 = vld [vmem:[%s13777_s1 + $0x7a0] ss:$16 sps:$4 sm:$0xff]  }
  0xbb   :  { %6407 = vmatpush1.bf16.msra.mxu0 %v9202_v2  ;;  %7063 = vmatpush1.bf16.msra.mxu1 %v9205_v3  ;;  %v9297_v2 = vld [vmem:[%s13777_s1 + $0x7a8] ss:$16 sps:$4 sm:$0xff]   ;;  %v9302_v3 = vld [vmem:[%s13777_s1 + $0x7c4] ss:$16 sps:$4 sm:$0xff]  }
  0xbc   :  { %6408 = vmatprep.subr.bf16.mxu0 %v9210_v4  ;;  %7064 = vmatprep.subr.bf16.mxu1 %v9213_v5  ;;  %v9305_v4 = vld [vmem:[%s13777_s1 + $0x7cc] ss:$16 sps:$4 sm:$0xff]   ;;  %v9300_v5 = vld [vmem:[%s13777_s1 + $0x7c0] ss:$16 sps:$4 sm:$0xff]  }
  0xbf   :  { %6409 = vmatpush1.bf16.msra.mxu0 %v9208_v6  ;;  %7065 = vmatpush1.bf16.msra.mxu1 %v9211_v7  ;;  %v9303_v6 = vld [vmem:[%s13777_s1 + $0x7c8] ss:$16 sps:$4 sm:$0xff]   ;;  %v9308_v7 = vld [vmem:[%s13777_s1 + $0x7e4] ss:$16 sps:$4 sm:$0xff]  }
  0xc0   :  { %6419 = vmatprep.subr.bf16.mxu0 %v9218_v8  ;;  %7075 = vmatprep.subr.bf16.mxu1 %v9221_v9  ;;  %v9311_v8 = vld [vmem:[%s13777_s1 + $0x7ec] ss:$16 sps:$4 sm:$0xff]   ;;  %v9306_v9 = vld [vmem:[%s13777_s1 + $0x7e0] ss:$16 sps:$4 sm:$0xff]  }
  0xc2   :  { %6411 = vmatmul.mubr.bf16.vlgmr.msra.gmra.mrb[0].mxu0 %v7748_v12  ;;  %7067 = vmatmul.mubr.bf16.vlgmr.msra.gmra.mrb[0].mxu1 %v7748_v12  ;;  %v9316_v12 = vld [vmem:[%s13777_s1 + $0x804] ss:$16 sps:$4 sm:$0xff]  }
  0xc3   :  { %6420 = vmatpush1.bf16.msra.mxu0 %v9216_v10  ;;  %7076 = vmatpush1.bf16.msra.mxu1 %v9219_v13  ;;  %v9309_v10 = vld [vmem:[%s13777_s1 + $0x7e8] ss:$16 sps:$4 sm:$0xff]   ;;  %v9319_v13 = vld [vmem:[%s13777_s1 + $0x80c] ss:$16 sps:$4 sm:$0xff]  }
  0xc4   :  { %6421 = vmatprep.subr.bf16.mxu0 %v9224_v15  ;;  %7077 = vmatprep.subr.bf16.mxu1 %v9227_v11  ;;  %v9314_v15 = vld [vmem:[%s13777_s1 + $0x800] ss:$16 sps:$4 sm:$0xff]   ;;  %v7750_v11 = vcombine.low %v11129_v14, %v11129_v14  ;;  %v9325_v14 = vld [vmem:[%s13777_s1 + $0x82c] ss:$16 sps:$4 sm:$0xff]  }
  0xc5   :  { %6451 = vmatprep.mubr.bf16.mxu0 %v7751_v16  ;;  %7107 = vmatprep.mubr.bf16.mxu1 %v7751_v16  ;;  %v11327_v16 = vld [vmem:[%s13778_s0 + $0x20] sm:$0xff] }
  0xc7   :  { %6422 = vmatpush1.bf16.msra.mxu0 %v9222_v17  ;;  %7078 = vmatpush1.bf16.msra.mxu1 %v9225_v18  ;;  %v9317_v17 = vld [vmem:[%s13777_s1 + $0x808] ss:$16 sps:$4 sm:$0xff]   ;;  %v9322_v18 = vld [vmem:[%s13777_s1 + $0x824] ss:$16 sps:$4 sm:$0xff]  }
  0xc8   :  { %6423 = vmatprep.subr.bf16.mxu0 %v9230_v19  ;;  %7079 = vmatprep.subr.bf16.mxu1 %v9233_v20  ;;  %v7753_v19 = vcombine.high %v11327_v16, %v11327_v16  ;;  %v9320_v20 = vld [vmem:[%s13777_s1 + $0x820] ss:$16 sps:$4 sm:$0xff]  }
  0xcb   :  { %6424 = vmatpush1.bf16.msra.mxu0 %v9228_v21  ;;  %7080 = vmatpush1.bf16.msra.mxu1 %v9231_v22  ;;  %v9323_v21 = vld [vmem:[%s13777_s1 + $0x828] ss:$16 sps:$4 sm:$0xff]   ;;  %v9328_v22 = vld [vmem:[%s13777_s1 + $0x844] ss:$16 sps:$4 sm:$0xff]  }
  0xcc   :  { %6425 = vmatprep.subr.bf16.mxu0 %v9236_v23  ;;  %7081 = vmatprep.subr.bf16.mxu1 %v9239_v24  ;;  %v9331_v23 = vld [vmem:[%s13777_s1 + $0x84c] ss:$16 sps:$4 sm:$0xff]   ;;  %v9326_v24 = vld [vmem:[%s13777_s1 + $0x840] ss:$16 sps:$4 sm:$0xff]  }
  0xcf   :  { %6426 = vmatpush1.bf16.msra.mxu0 %v9234_v25  ;;  %7082 = vmatpush1.bf16.msra.mxu1 %v9237_v26  ;;  %v9329_v25 = vld [vmem:[%s13777_s1 + $0x848] ss:$16 sps:$4 sm:$0xff]   ;;  %v9334_v26 = vld [vmem:[%s13777_s1 + $0x864] ss:$16 sps:$4 sm:$0xff]  }
  0xd0   :  { %6427 = vmatprep.subr.bf16.mxu0 %v9242_v27  ;;  %7083 = vmatprep.subr.bf16.mxu1 %v9245_v28  ;;  %v9337_v27 = vld [vmem:[%s13777_s1 + $0x86c] ss:$16 sps:$4 sm:$0xff]   ;;  %v9332_v28 = vld [vmem:[%s13777_s1 + $0x860] ss:$16 sps:$4 sm:$0xff]  }
  0xd3   :  { %6428 = vmatpush1.bf16.msra.mxu0 %v9240_v29  ;;  %7084 = vmatpush1.bf16.msra.mxu1 %v9243_v30  ;;  %v9335_v29 = vld [vmem:[%s13777_s1 + $0x868] ss:$16 sps:$4 sm:$0xff]   ;;  %v9340_v30 = vld [vmem:[%s13777_s1 + $0x884] ss:$16 sps:$4 sm:$0xff]  }
  0xd4   :  { %6429 = vmatprep.subr.bf16.mxu0 %v9248_v31  ;;  %7085 = vmatprep.subr.bf16.mxu1 %v9251_v32  ;;  %v9343_v31 = vld [vmem:[%s13777_s1 + $0x88c] ss:$16 sps:$4 sm:$0xff]   ;;  %v9338_v32 = vld [vmem:[%s13777_s1 + $0x880] ss:$16 sps:$4 sm:$0xff]  }
  0xd7   :  { %6430 = vmatpush1.bf16.msra.mxu0 %v9246_v33  ;;  %7086 = vmatpush1.bf16.msra.mxu1 %v9249_v34  ;;  %v9341_v33 = vld [vmem:[%s13777_s1 + $0x888] ss:$16 sps:$4 sm:$0xff]   ;;  %v9346_v34 = vld [vmem:[%s13777_s1 + $0x8a4] ss:$16 sps:$4 sm:$0xff]  }
  0xd8   :  { %6431 = vmatprep.subr.bf16.mxu0 %v9254_v35  ;;  %7087 = vmatprep.subr.bf16.mxu1 %v9257_v36  ;;  %v9349_v35 = vld [vmem:[%s13777_s1 + $0x8ac] ss:$16 sps:$4 sm:$0xff]   ;;  %v9344_v36 = vld [vmem:[%s13777_s1 + $0x8a0] ss:$16 sps:$4 sm:$0xff]  }
  0xdb   :  { %6432 = vmatpush1.bf16.msra.mxu0 %v9252_v37  ;;  %7088 = vmatpush1.bf16.msra.mxu1 %v9255_v38  ;;  %v9347_v37 = vld [vmem:[%s13777_s1 + $0x8a8] ss:$16 sps:$4 sm:$0xff]   ;;  %v9352_v38 = vld [vmem:[%s13777_s1 + $0x8c4] ss:$16 sps:$4 sm:$0xff]  }
  0xdc   :  { %6433 = vmatprep.subr.bf16.mxu0 %v9260_v39  ;;  %7089 = vmatprep.subr.bf16.mxu1 %v9263_v40  ;;  %v9355_v39 = vld [vmem:[%s13777_s1 + $0x8cc] ss:$16 sps:$4 sm:$0xff]   ;;  %v9350_v40 = vld [vmem:[%s13777_s1 + $0x8c0] ss:$16 sps:$4 sm:$0xff]  }
  0xdf   :  { %6434 = vmatpush1.bf16.msra.mxu0 %v9258_v41  ;;  %7090 = vmatpush1.bf16.msra.mxu1 %v9261_v42  ;;  %v9353_v41 = vld [vmem:[%s13777_s1 + $0x8c8] ss:$16 sps:$4 sm:$0xff]   ;;  %v9358_v42 = vld [vmem:[%s13777_s1 + $0x8e4] ss:$16 sps:$4 sm:$0xff]  }
  0xe0   :  { %6435 = vmatprep.subr.bf16.mxu0 %v9266_v43  ;;  %7091 = vmatprep.subr.bf16.mxu1 %v9269_v44  ;;  %v9361_v43 = vld [vmem:[%s13777_s1 + $0x8ec] ss:$16 sps:$4 sm:$0xff]   ;;  %v9356_v44 = vld [vmem:[%s13777_s1 + $0x8e0] ss:$16 sps:$4 sm:$0xff]  }
  0xe3   :  { %6436 = vmatpush1.bf16.msra.mxu0 %v9264_v45  ;;  %7092 = vmatpush1.bf16.msra.mxu1 %v9267_v46  ;;  %v9359_v45 = vld [vmem:[%s13777_s1 + $0x8e8] ss:$16 sps:$4 sm:$0xff]   ;;  %v9364_v46 = vld [vmem:[%s13777_s1 + $0x904] ss:$16 sps:$4 sm:$0xff]  }
  0xe4   :  { %6437 = vmatprep.subr.bf16.mxu0 %v9272_v47  ;;  %7093 = vmatprep.subr.bf16.mxu1 %v9275_v48  ;;  %v9367_v47 = vld [vmem:[%s13777_s1 + $0x90c] ss:$16 sps:$4 sm:$0xff]   ;;  %v9362_v48 = vld [vmem:[%s13777_s1 + $0x900] ss:$16 sps:$4 sm:$0xff]  }
  0xe7   :  { %6438 = vmatpush1.bf16.msra.mxu0 %v9270_v49  ;;  %7094 = vmatpush1.bf16.msra.mxu1 %v9273_v50  ;;  %v9365_v49 = vld [vmem:[%s13777_s1 + $0x908] ss:$16 sps:$4 sm:$0xff]   ;;  %v9370_v50 = vld [vmem:[%s13777_s1 + $0x924] ss:$16 sps:$4 sm:$0xff]  }
  0xe8   :  { %6439 = vmatprep.subr.bf16.mxu0 %v9278_v51  ;;  %7095 = vmatprep.subr.bf16.mxu1 %v9281_v52  ;;  %v9373_v51 = vld [vmem:[%s13777_s1 + $0x92c] ss:$16 sps:$4 sm:$0xff]   ;;  %v9368_v52 = vld [vmem:[%s13777_s1 + $0x920] ss:$16 sps:$4 sm:$0xff]  }
  0xeb   :  { %6440 = vmatpush1.bf16.msra.mxu0 %v9276_v53  ;;  %7096 = vmatpush1.bf16.msra.mxu1 %v9279_v54  ;;  %v9371_v53 = vld [vmem:[%s13777_s1 + $0x928] ss:$16 sps:$4 sm:$0xff]   ;;  %v9376_v54 = vld [vmem:[%s13777_s1 + $0x944] ss:$16 sps:$4 sm:$0xff]  }
  0xec   :  { %6441 = vmatprep.subr.bf16.mxu0 %v9284_v55  ;;  %7097 = vmatprep.subr.bf16.mxu1 %v9287_v56  ;;  %v9379_v55 = vld [vmem:[%s13777_s1 + $0x94c] ss:$16 sps:$4 sm:$0xff]   ;;  %v9374_v56 = vld [vmem:[%s13777_s1 + $0x940] ss:$16 sps:$4 sm:$0xff]  }
  0xef   :  { %6442 = vmatpush1.bf16.msra.mxu0 %v9282_v57  ;;  %7098 = vmatpush1.bf16.msra.mxu1 %v9285_v58  ;;  %v9377_v57 = vld [vmem:[%s13777_s1 + $0x948] ss:$16 sps:$4 sm:$0xff]   ;;  %v9382_v58 = vld [vmem:[%s13777_s1 + $0x964] ss:$16 sps:$4 sm:$0xff]  }
  0xf0   :  { %6443 = vmatprep.subr.bf16.mxu0 %v9290_v59  ;;  %7099 = vmatprep.subr.bf16.mxu1 %v9293_v60  ;;  %v9385_v59 = vld [vmem:[%s13777_s1 + $0x96c] ss:$16 sps:$4 sm:$0xff]   ;;  %v9380_v60 = vld [vmem:[%s13777_s1 + $0x960] ss:$16 sps:$4 sm:$0xff]  }
  0xf3   :  { %6444 = vmatpush1.bf16.msra.mxu0 %v9288_v61  ;;  %7100 = vmatpush1.bf16.msra.mxu1 %v9291_v62  ;;  %v9383_v61 = vld [vmem:[%s13777_s1 + $0x968] ss:$16 sps:$4 sm:$0xff]   ;;  %v9388_v62 = vld [vmem:[%s13777_s1 + $0x984] ss:$16 sps:$4 sm:$0xff]  }
  0xf4   :  { %6445 = vmatprep.subr.bf16.mxu0 %v9296_v63  ;;  %7101 = vmatprep.subr.bf16.mxu1 %v9299_v0  ;;  %v9391_v63 = vld [vmem:[%s13777_s1 + $0x98c] ss:$16 sps:$4 sm:$0xff]   ;;  %v9386_v0 = vld [vmem:[%s13777_s1 + $0x980] ss:$16 sps:$4 sm:$0xff]  }
  0xf7   :  { %6446 = vmatpush1.bf16.msra.mxu0 %v9294_v1  ;;  %7102 = vmatpush1.bf16.msra.mxu1 %v9297_v2  ;;  %v9389_v1 = vld [vmem:[%s13777_s1 + $0x988] ss:$16 sps:$4 sm:$0xff]   ;;  %v9394_v2 = vld [vmem:[%s13777_s1 + $0x9a4] ss:$16 sps:$4 sm:$0xff]  }
  0xf8   :  { %6447 = vmatprep.subr.bf16.mxu0 %v9302_v3  ;;  %7103 = vmatprep.subr.bf16.mxu1 %v9305_v4  ;;  %v9397_v3 = vld [vmem:[%s13777_s1 + $0x9ac] ss:$16 sps:$4 sm:$0xff]   ;;  %v9392_v4 = vld [vmem:[%s13777_s1 + $0x9a0] ss:$16 sps:$4 sm:$0xff]  }
  0xfb   :  { %6448 = vmatpush1.bf16.msra.mxu0 %v9300_v5  ;;  %7104 = vmatpush1.bf16.msra.mxu1 %v9303_v6  ;;  %v9395_v5 = vld [vmem:[%s13777_s1 + $0x9a8] ss:$16 sps:$4 sm:$0xff]   ;;  %v9400_v6 = vld [vmem:[%s13777_s1 + $0x9c4] ss:$16 sps:$4 sm:$0xff]  }
  0xfc   :  { %6449 = vmatprep.subr.bf16.mxu0 %v9308_v7  ;;  %7105 = vmatprep.subr.bf16.mxu1 %v9311_v8  ;;  %v9403_v7 = vld [vmem:[%s13777_s1 + $0x9cc] ss:$16 sps:$4 sm:$0xff]   ;;  %v9398_v8 = vld [vmem:[%s13777_s1 + $0x9c0] ss:$16 sps:$4 sm:$0xff]  }
  0xff   :  { %6450 = vmatpush1.bf16.msra.mxu0 %v9306_v9  ;;  %7106 = vmatpush1.bf16.msra.mxu1 %v9309_v10  ;;  %v9401_v9 = vld [vmem:[%s13777_s1 + $0x9c8] ss:$16 sps:$4 sm:$0xff]   ;;  %v9406_v10 = vld [vmem:[%s13777_s1 + $0x9e4] ss:$16 sps:$4 sm:$0xff]  }
 0x100   :  { %6460 = vmatprep.subr.bf16.mxu0 %v9316_v12  ;;  %7116 = vmatprep.subr.bf16.mxu1 %v9319_v13  ;;  %v9409_v12 = vld [vmem:[%s13777_s1 + $0x9ec] ss:$16 sps:$4 sm:$0xff]   ;;  %v9404_v13 = vld [vmem:[%s13777_s1 + $0x9e0] ss:$16 sps:$4 sm:$0xff]  }
 0x102   :  { %6452 = vmatmul.mubr.bf16.vlgmr.msra.gmra.mrb[0].mxu0 %v7750_v11  ;;  %7108 = vmatmul.mubr.bf16.vlgmr.msra.gmra.mrb[0].mxu1 %v7750_v11  ;;  %v9414_v11 = vld [vmem:[%s13777_s1 + $0xa04] ss:$16 sps:$4 sm:$0xff]  }
 0x103   :  { %6461 = vmatpush1.bf16.msra.mxu0 %v9314_v15  ;;  %7117 = vmatpush1.bf16.msra.mxu1 %v9317_v17  ;;  %v9407_v15 = vld [vmem:[%s13777_s1 + $0x9e8] ss:$16 sps:$4 sm:$0xff]   ;;  %v9417_v17 = vld [vmem:[%s13777_s1 + $0xa0c] ss:$16 sps:$4 sm:$0xff]  }
 0x104   :  { %6462 = vmatprep.subr.bf16.mxu0 %v9322_v18  ;;  %7118 = vmatprep.subr.bf16.mxu1 %v9325_v14  ;;  %v11523_v18 = vld [vmem:[%s13778_s0 + $0x28] sm:$0xff]  ;;  %v7752_v14 = vcombine.low %v11327_v16, %v11327_v16 }
 0x105   :  { %6492 = vmatprep.mubr.bf16.mxu0 %v7753_v19  ;;  %7148 = vmatprep.mubr.bf16.mxu1 %v7753_v19  ;;  %v9412_v19 = vld [vmem:[%s13777_s1 + $0xa00] ss:$16 sps:$4 sm:$0xff]   ;;  %v9423_v16 = vld [vmem:[%s13777_s1 + $0xa2c] ss:$16 sps:$4 sm:$0xff]  }
 0x107   :  { %6463 = vmatpush1.bf16.msra.mxu0 %v9320_v20  ;;  %7119 = vmatpush1.bf16.msra.mxu1 %v9323_v21  ;;  %v9415_v20 = vld [vmem:[%s13777_s1 + $0xa08] ss:$16 sps:$4 sm:$0xff]   ;;  %v9420_v21 = vld [vmem:[%s13777_s1 + $0xa24] ss:$16 sps:$4 sm:$0xff]  }
 0x108   :  { %6464 = vmatprep.subr.bf16.mxu0 %v9328_v22  ;;  %7120 = vmatprep.subr.bf16.mxu1 %v9331_v23  ;;  %v7755_v22 = vcombine.high %v11523_v18, %v11523_v18  ;;  %v9418_v23 = vld [vmem:[%s13777_s1 + $0xa20] ss:$16 sps:$4 sm:$0xff]  }
 0x10b   :  { %6465 = vmatpush1.bf16.msra.mxu0 %v9326_v24  ;;  %7121 = vmatpush1.bf16.msra.mxu1 %v9329_v25  ;;  %v9421_v24 = vld [vmem:[%s13777_s1 + $0xa28] ss:$16 sps:$4 sm:$0xff]   ;;  %v9426_v25 = vld [vmem:[%s13777_s1 + $0xa44] ss:$16 sps:$4 sm:$0xff]  }
 0x10c   :  { %6466 = vmatprep.subr.bf16.mxu0 %v9334_v26  ;;  %7122 = vmatprep.subr.bf16.mxu1 %v9337_v27  ;;  %v9429_v26 = vld [vmem:[%s13777_s1 + $0xa4c] ss:$16 sps:$4 sm:$0xff]   ;;  %v9424_v27 = vld [vmem:[%s13777_s1 + $0xa40] ss:$16 sps:$4 sm:$0xff]  }
 0x10f   :  { %6467 = vmatpush1.bf16.msra.mxu0 %v9332_v28  ;;  %7123 = vmatpush1.bf16.msra.mxu1 %v9335_v29  ;;  %v9427_v28 = vld [vmem:[%s13777_s1 + $0xa48] ss:$16 sps:$4 sm:$0xff]   ;;  %v9432_v29 = vld [vmem:[%s13777_s1 + $0xa64] ss:$16 sps:$4 sm:$0xff]  }
 0x110   :  { %6468 = vmatprep.subr.bf16.mxu0 %v9340_v30  ;;  %7124 = vmatprep.subr.bf16.mxu1 %v9343_v31  ;;  %v9435_v30 = vld [vmem:[%s13777_s1 + $0xa6c] ss:$16 sps:$4 sm:$0xff]   ;;  %v9430_v31 = vld [vmem:[%s13777_s1 + $0xa60] ss:$16 sps:$4 sm:$0xff]  }
 0x113   :  { %6469 = vmatpush1.bf16.msra.mxu0 %v9338_v32  ;;  %7125 = vmatpush1.bf16.msra.mxu1 %v9341_v33  ;;  %v9433_v32 = vld [vmem:[%s13777_s1 + $0xa68] ss:$16 sps:$4 sm:$0xff]   ;;  %v9438_v33 = vld [vmem:[%s13777_s1 + $0xa84] ss:$16 sps:$4 sm:$0xff]  }
 0x114   :  { %6470 = vmatprep.subr.bf16.mxu0 %v9346_v34  ;;  %7126 = vmatprep.subr.bf16.mxu1 %v9349_v35  ;;  %v9441_v34 = vld [vmem:[%s13777_s1 + $0xa8c] ss:$16 sps:$4 sm:$0xff]   ;;  %v9436_v35 = vld [vmem:[%s13777_s1 + $0xa80] ss:$16 sps:$4 sm:$0xff]  }
 0x117   :  { %6471 = vmatpush1.bf16.msra.mxu0 %v9344_v36  ;;  %7127 = vmatpush1.bf16.msra.mxu1 %v9347_v37  ;;  %v9439_v36 = vld [vmem:[%s13777_s1 + $0xa88] ss:$16 sps:$4 sm:$0xff]   ;;  %v9444_v37 = vld [vmem:[%s13777_s1 + $0xaa4] ss:$16 sps:$4 sm:$0xff]  }
 0x118   :  { %6472 = vmatprep.subr.bf16.mxu0 %v9352_v38  ;;  %7128 = vmatprep.subr.bf16.mxu1 %v9355_v39  ;;  %v9447_v38 = vld [vmem:[%s13777_s1 + $0xaac] ss:$16 sps:$4 sm:$0xff]   ;;  %v9442_v39 = vld [vmem:[%s13777_s1 + $0xaa0] ss:$16 sps:$4 sm:$0xff]  }
 0x11b   :  { %6473 = vmatpush1.bf16.msra.mxu0 %v9350_v40  ;;  %7129 = vmatpush1.bf16.msra.mxu1 %v9353_v41  ;;  %v9445_v40 = vld [vmem:[%s13777_s1 + $0xaa8] ss:$16 sps:$4 sm:$0xff]   ;;  %v9450_v41 = vld [vmem:[%s13777_s1 + $0xac4] ss:$16 sps:$4 sm:$0xff]  }
 0x11c   :  { %6474 = vmatprep.subr.bf16.mxu0 %v9358_v42  ;;  %7130 = vmatprep.subr.bf16.mxu1 %v9361_v43  ;;  %v9453_v42 = vld [vmem:[%s13777_s1 + $0xacc] ss:$16 sps:$4 sm:$0xff]   ;;  %v9448_v43 = vld [vmem:[%s13777_s1 + $0xac0] ss:$16 sps:$4 sm:$0xff]  }
 0x11f   :  { %6475 = vmatpush1.bf16.msra.mxu0 %v9356_v44  ;;  %7131 = vmatpush1.bf16.msra.mxu1 %v9359_v45  ;;  %v9451_v44 = vld [vmem:[%s13777_s1 + $0xac8] ss:$16 sps:$4 sm:$0xff]   ;;  %v9456_v45 = vld [vmem:[%s13777_s1 + $0xae4] ss:$16 sps:$4 sm:$0xff]  }
 0x120   :  { %6476 = vmatprep.subr.bf16.mxu0 %v9364_v46  ;;  %7132 = vmatprep.subr.bf16.mxu1 %v9367_v47  ;;  %v9459_v46 = vld [vmem:[%s13777_s1 + $0xaec] ss:$16 sps:$4 sm:$0xff]   ;;  %v9454_v47 = vld [vmem:[%s13777_s1 + $0xae0] ss:$16 sps:$4 sm:$0xff]  }
 0x123   :  { %6477 = vmatpush1.bf16.msra.mxu0 %v9362_v48  ;;  %7133 = vmatpush1.bf16.msra.mxu1 %v9365_v49  ;;  %v9457_v48 = vld [vmem:[%s13777_s1 + $0xae8] ss:$16 sps:$4 sm:$0xff]   ;;  %v9462_v49 = vld [vmem:[%s13777_s1 + $0xb04] ss:$16 sps:$4 sm:$0xff]  }
 0x124   :  { %6478 = vmatprep.subr.bf16.mxu0 %v9370_v50  ;;  %7134 = vmatprep.subr.bf16.mxu1 %v9373_v51  ;;  %v9465_v50 = vld [vmem:[%s13777_s1 + $0xb0c] ss:$16 sps:$4 sm:$0xff]   ;;  %v9460_v51 = vld [vmem:[%s13777_s1 + $0xb00] ss:$16 sps:$4 sm:$0xff]  }
 0x127   :  { %6479 = vmatpush1.bf16.msra.mxu0 %v9368_v52  ;;  %7135 = vmatpush1.bf16.msra.mxu1 %v9371_v53  ;;  %v9463_v52 = vld [vmem:[%s13777_s1 + $0xb08] ss:$16 sps:$4 sm:$0xff]   ;;  %v9468_v53 = vld [vmem:[%s13777_s1 + $0xb24] ss:$16 sps:$4 sm:$0xff]  }
 0x128   :  { %6480 = vmatprep.subr.bf16.mxu0 %v9376_v54  ;;  %7136 = vmatprep.subr.bf16.mxu1 %v9379_v55  ;;  %v9471_v54 = vld [vmem:[%s13777_s1 + $0xb2c] ss:$16 sps:$4 sm:$0xff]   ;;  %v9466_v55 = vld [vmem:[%s13777_s1 + $0xb20] ss:$16 sps:$4 sm:$0xff]  }
 0x12b   :  { %6481 = vmatpush1.bf16.msra.mxu0 %v9374_v56  ;;  %7137 = vmatpush1.bf16.msra.mxu1 %v9377_v57  ;;  %v9469_v56 = vld [vmem:[%s13777_s1 + $0xb28] ss:$16 sps:$4 sm:$0xff]   ;;  %v9474_v57 = vld [vmem:[%s13777_s1 + $0xb44] ss:$16 sps:$4 sm:$0xff]  }
 0x12c   :  { %6482 = vmatprep.subr.bf16.mxu0 %v9382_v58  ;;  %7138 = vmatprep.subr.bf16.mxu1 %v9385_v59  ;;  %v9477_v58 = vld [vmem:[%s13777_s1 + $0xb4c] ss:$16 sps:$4 sm:$0xff]   ;;  %v9472_v59 = vld [vmem:[%s13777_s1 + $0xb40] ss:$16 sps:$4 sm:$0xff]  }
 0x12f   :  { %6483 = vmatpush1.bf16.msra.mxu0 %v9380_v60  ;;  %7139 = vmatpush1.bf16.msra.mxu1 %v9383_v61  ;;  %v9475_v60 = vld [vmem:[%s13777_s1 + $0xb48] ss:$16 sps:$4 sm:$0xff]   ;;  %v9480_v61 = vld [vmem:[%s13777_s1 + $0xb64] ss:$16 sps:$4 sm:$0xff]  }
 0x130   :  { %6484 = vmatprep.subr.bf16.mxu0 %v9388_v62  ;;  %7140 = vmatprep.subr.bf16.mxu1 %v9391_v63  ;;  %v9483_v62 = vld [vmem:[%s13777_s1 + $0xb6c] ss:$16 sps:$4 sm:$0xff]   ;;  %v9478_v63 = vld [vmem:[%s13777_s1 + $0xb60] ss:$16 sps:$4 sm:$0xff]  }
 0x133   :  { %6485 = vmatpush1.bf16.msra.mxu0 %v9386_v0  ;;  %7141 = vmatpush1.bf16.msra.mxu1 %v9389_v1  ;;  %v9481_v0 = vld [vmem:[%s13777_s1 + $0xb68] ss:$16 sps:$4 sm:$0xff]   ;;  %v9486_v1 = vld [vmem:[%s13777_s1 + $0xb84] ss:$16 sps:$4 sm:$0xff]  }
 0x134   :  { %6486 = vmatprep.subr.bf16.mxu0 %v9394_v2  ;;  %7142 = vmatprep.subr.bf16.mxu1 %v9397_v3  ;;  %v9489_v2 = vld [vmem:[%s13777_s1 + $0xb8c] ss:$16 sps:$4 sm:$0xff]   ;;  %v9484_v3 = vld [vmem:[%s13777_s1 + $0xb80] ss:$16 sps:$4 sm:$0xff]  }
 0x137   :  { %6487 = vmatpush1.bf16.msra.mxu0 %v9392_v4  ;;  %7143 = vmatpush1.bf16.msra.mxu1 %v9395_v5  ;;  %v9487_v4 = vld [vmem:[%s13777_s1 + $0xb88] ss:$16 sps:$4 sm:$0xff]   ;;  %v9492_v5 = vld [vmem:[%s13777_s1 + $0xba4] ss:$16 sps:$4 sm:$0xff]  }
 0x138   :  { %6488 = vmatprep.subr.bf16.mxu0 %v9400_v6  ;;  %7144 = vmatprep.subr.bf16.mxu1 %v9403_v7  ;;  %v9495_v6 = vld [vmem:[%s13777_s1 + $0xbac] ss:$16 sps:$4 sm:$0xff]   ;;  %v9490_v7 = vld [vmem:[%s13777_s1 + $0xba0] ss:$16 sps:$4 sm:$0xff]  }
 0x13b   :  { %6489 = vmatpush1.bf16.msra.mxu0 %v9398_v8  ;;  %7145 = vmatpush1.bf16.msra.mxu1 %v9401_v9  ;;  %v9493_v8 = vld [vmem:[%s13777_s1 + $0xba8] ss:$16 sps:$4 sm:$0xff]   ;;  %v9498_v9 = vld [vmem:[%s13777_s1 + $0xbc4] ss:$16 sps:$4 sm:$0xff]  }
 0x13c   :  { %6490 = vmatprep.subr.bf16.mxu0 %v9406_v10  ;;  %7146 = vmatprep.subr.bf16.mxu1 %v9409_v12  ;;  %v9501_v10 = vld [vmem:[%s13777_s1 + $0xbcc] ss:$16 sps:$4 sm:$0xff]   ;;  %v9496_v12 = vld [vmem:[%s13777_s1 + $0xbc0] ss:$16 sps:$4 sm:$0xff]  }
 0x13f   :  { %6491 = vmatpush1.bf16.msra.mxu0 %v9404_v13  ;;  %7147 = vmatpush1.bf16.msra.mxu1 %v9407_v15  ;;  %v9499_v13 = vld [vmem:[%s13777_s1 + $0xbc8] ss:$16 sps:$4 sm:$0xff]   ;;  %v9504_v15 = vld [vmem:[%s13777_s1 + $0xbe4] ss:$16 sps:$4 sm:$0xff]  }
 0x140   :  { %6501 = vmatprep.subr.bf16.mxu0 %v9414_v11  ;;  %7157 = vmatprep.subr.bf16.mxu1 %v9417_v17  ;;  %v9507_v11 = vld [vmem:[%s13777_s1 + $0xbec] ss:$16 sps:$4 sm:$0xff]   ;;  %v9502_v17 = vld [vmem:[%s13777_s1 + $0xbe0] ss:$16 sps:$4 sm:$0xff]  }
 0x142   :  { %6493 = vmatmul.mubr.bf16.vlgmr.msra.gmra.mrb[0].mxu0 %v7752_v14  ;;  %7149 = vmatmul.mubr.bf16.vlgmr.msra.gmra.mrb[0].mxu1 %v7752_v14  ;;  %v9505_v14 = vld [vmem:[%s13777_s1 + $0xbe8] ss:$16 sps:$4 sm:$0xff]  }
 0x143   :  { %6502 = vmatpush1.bf16.msra.mxu0 %v9412_v19  ;;  %7158 = vmatpush1.bf16.msra.mxu1 %v9415_v20  ;;  %v9512_v19 = vld [vmem:[%s13777_s1 + $0xc04] ss:$16 sps:$4 sm:$0xff]   ;;  %v9515_v20 = vld [vmem:[%s13777_s1 + $0xc0c] ss:$16 sps:$4 sm:$0xff]  }
 0x144   :  { %6503 = vmatprep.subr.bf16.mxu0 %v9420_v21  ;;  %7159 = vmatprep.subr.bf16.mxu1 %v9423_v16  ;;  %v11724_v21 = vld [vmem:[%s13778_s0 + $0x30] sm:$0xff]  ;;  %v7754_v16 = vcombine.low %v11523_v18, %v11523_v18  ;;  %v9521_v18 = vld [vmem:[%s13777_s1 + $0xc2c] ss:$16 sps:$4 sm:$0xff]  }
 0x145   :  { %6533 = vmatprep.mubr.bf16.mxu0 %v7755_v22  ;;  %7189 = vmatprep.mubr.bf16.mxu1 %v7755_v22  ;;  %v9510_v22 = vld [vmem:[%s13777_s1 + $0xc00] ss:$16 sps:$4 sm:$0xff]  }
 0x147   :  { %6504 = vmatpush1.bf16.msra.mxu0 %v9418_v23  ;;  %7160 = vmatpush1.bf16.msra.mxu1 %v9421_v24  ;;  %v9513_v23 = vld [vmem:[%s13777_s1 + $0xc08] ss:$16 sps:$4 sm:$0xff]   ;;  %v9518_v24 = vld [vmem:[%s13777_s1 + $0xc24] ss:$16 sps:$4 sm:$0xff]  }
 0x148   :  { %6505 = vmatprep.subr.bf16.mxu0 %v9426_v25  ;;  %7161 = vmatprep.subr.bf16.mxu1 %v9429_v26  ;;  %v7757_v25 = vcombine.high %v11724_v21, %v11724_v21  ;;  %v9516_v26 = vld [vmem:[%s13777_s1 + $0xc20] ss:$16 sps:$4 sm:$0xff]  }
 0x14b   :  { %6506 = vmatpush1.bf16.msra.mxu0 %v9424_v27  ;;  %7162 = vmatpush1.bf16.msra.mxu1 %v9427_v28  ;;  %v9519_v27 = vld [vmem:[%s13777_s1 + $0xc28] ss:$16 sps:$4 sm:$0xff]   ;;  %v9524_v28 = vld [vmem:[%s13777_s1 + $0xc44] ss:$16 sps:$4 sm:$0xff]  }
 0x14c   :  { %6507 = vmatprep.subr.bf16.mxu0 %v9432_v29  ;;  %7163 = vmatprep.subr.bf16.mxu1 %v9435_v30  ;;  %v9527_v29 = vld [vmem:[%s13777_s1 + $0xc4c] ss:$16 sps:$4 sm:$0xff]   ;;  %v9522_v30 = vld [vmem:[%s13777_s1 + $0xc40] ss:$16 sps:$4 sm:$0xff]  }
 0x14f   :  { %6508 = vmatpush1.bf16.msra.mxu0 %v9430_v31  ;;  %7164 = vmatpush1.bf16.msra.mxu1 %v9433_v32  ;;  %v9525_v31 = vld [vmem:[%s13777_s1 + $0xc48] ss:$16 sps:$4 sm:$0xff]   ;;  %v9530_v32 = vld [vmem:[%s13777_s1 + $0xc64] ss:$16 sps:$4 sm:$0xff]  }
 0x150   :  { %6509 = vmatprep.subr.bf16.mxu0 %v9438_v33  ;;  %7165 = vmatprep.subr.bf16.mxu1 %v9441_v34  ;;  %v9533_v33 = vld [vmem:[%s13777_s1 + $0xc6c] ss:$16 sps:$4 sm:$0xff]   ;;  %v9528_v34 = vld [vmem:[%s13777_s1 + $0xc60] ss:$16 sps:$4 sm:$0xff]  }
 0x153   :  { %6510 = vmatpush1.bf16.msra.mxu0 %v9436_v35  ;;  %7166 = vmatpush1.bf16.msra.mxu1 %v9439_v36  ;;  %v9531_v35 = vld [vmem:[%s13777_s1 + $0xc68] ss:$16 sps:$4 sm:$0xff]   ;;  %v9536_v36 = vld [vmem:[%s13777_s1 + $0xc84] ss:$16 sps:$4 sm:$0xff]  }
 0x154   :  { %6511 = vmatprep.subr.bf16.mxu0 %v9444_v37  ;;  %7167 = vmatprep.subr.bf16.mxu1 %v9447_v38  ;;  %v9539_v37 = vld [vmem:[%s13777_s1 + $0xc8c] ss:$16 sps:$4 sm:$0xff]   ;;  %v9534_v38 = vld [vmem:[%s13777_s1 + $0xc80] ss:$16 sps:$4 sm:$0xff]  }
 0x157   :  { %6512 = vmatpush1.bf16.msra.mxu0 %v9442_v39  ;;  %7168 = vmatpush1.bf16.msra.mxu1 %v9445_v40  ;;  %v9537_v39 = vld [vmem:[%s13777_s1 + $0xc88] ss:$16 sps:$4 sm:$0xff]   ;;  %v9542_v40 = vld [vmem:[%s13777_s1 + $0xca4] ss:$16 sps:$4 sm:$0xff]  }
 0x158   :  { %6513 = vmatprep.subr.bf16.mxu0 %v9450_v41  ;;  %7169 = vmatprep.subr.bf16.mxu1 %v9453_v42  ;;  %v9545_v41 = vld [vmem:[%s13777_s1 + $0xcac] ss:$16 sps:$4 sm:$0xff]   ;;  %v9540_v42 = vld [vmem:[%s13777_s1 + $0xca0] ss:$16 sps:$4 sm:$0xff]  }
 0x15b   :  { %6514 = vmatpush1.bf16.msra.mxu0 %v9448_v43  ;;  %7170 = vmatpush1.bf16.msra.mxu1 %v9451_v44  ;;  %v9543_v43 = vld [vmem:[%s13777_s1 + $0xca8] ss:$16 sps:$4 sm:$0xff]   ;;  %v9548_v44 = vld [vmem:[%s13777_s1 + $0xcc4] ss:$16 sps:$4 sm:$0xff]  }
 0x15c   :  { %6515 = vmatprep.subr.bf16.mxu0 %v9456_v45  ;;  %7171 = vmatprep.subr.bf16.mxu1 %v9459_v46  ;;  %v9551_v45 = vld [vmem:[%s13777_s1 + $0xccc] ss:$16 sps:$4 sm:$0xff]   ;;  %v9546_v46 = vld [vmem:[%s13777_s1 + $0xcc0] ss:$16 sps:$4 sm:$0xff]  }
 0x15f   :  { %6516 = vmatpush1.bf16.msra.mxu0 %v9454_v47  ;;  %7172 = vmatpush1.bf16.msra.mxu1 %v9457_v48  ;;  %v9549_v47 = vld [vmem:[%s13777_s1 + $0xcc8] ss:$16 sps:$4 sm:$0xff]   ;;  %v9554_v48 = vld [vmem:[%s13777_s1 + $0xce4] ss:$16 sps:$4 sm:$0xff]  }
 0x160   :  { %6517 = vmatprep.subr.bf16.mxu0 %v9462_v49  ;;  %7173 = vmatprep.subr.bf16.mxu1 %v9465_v50  ;;  %v9557_v49 = vld [vmem:[%s13777_s1 + $0xcec] ss:$16 sps:$4 sm:$0xff]   ;;  %v9552_v50 = vld [vmem:[%s13777_s1 + $0xce0] ss:$16 sps:$4 sm:$0xff]  }
 0x163   :  { %6518 = vmatpush1.bf16.msra.mxu0 %v9460_v51  ;;  %7174 = vmatpush1.bf16.msra.mxu1 %v9463_v52  ;;  %v9555_v51 = vld [vmem:[%s13777_s1 + $0xce8] ss:$16 sps:$4 sm:$0xff]   ;;  %v9560_v52 = vld [vmem:[%s13777_s1 + $0xd04] ss:$16 sps:$4 sm:$0xff]  }
 0x164   :  { %6519 = vmatprep.subr.bf16.mxu0 %v9468_v53  ;;  %7175 = vmatprep.subr.bf16.mxu1 %v9471_v54  ;;  %v9563_v53 = vld [vmem:[%s13777_s1 + $0xd0c] ss:$16 sps:$4 sm:$0xff]   ;;  %v9558_v54 = vld [vmem:[%s13777_s1 + $0xd00] ss:$16 sps:$4 sm:$0xff]  }
 0x167   :  { %6520 = vmatpush1.bf16.msra.mxu0 %v9466_v55  ;;  %7176 = vmatpush1.bf16.msra.mxu1 %v9469_v56  ;;  %v9561_v55 = vld [vmem:[%s13777_s1 + $0xd08] ss:$16 sps:$4 sm:$0xff]   ;;  %v9566_v56 = vld [vmem:[%s13777_s1 + $0xd24] ss:$16 sps:$4 sm:$0xff]  }
 0x168   :  { %6521 = vmatprep.subr.bf16.mxu0 %v9474_v57  ;;  %7177 = vmatprep.subr.bf16.mxu1 %v9477_v58  ;;  %v9569_v57 = vld [vmem:[%s13777_s1 + $0xd2c] ss:$16 sps:$4 sm:$0xff]   ;;  %v9564_v58 = vld [vmem:[%s13777_s1 + $0xd20] ss:$16 sps:$4 sm:$0xff]  }
 0x16b   :  { %6522 = vmatpush1.bf16.msra.mxu0 %v9472_v59  ;;  %7178 = vmatpush1.bf16.msra.mxu1 %v9475_v60  ;;  %v9567_v59 = vld [vmem:[%s13777_s1 + $0xd28] ss:$16 sps:$4 sm:$0xff]   ;;  %v9572_v60 = vld [vmem:[%s13777_s1 + $0xd44] ss:$16 sps:$4 sm:$0xff]  }
 0x16c   :  { %6523 = vmatprep.subr.bf16.mxu0 %v9480_v61  ;;  %7179 = vmatprep.subr.bf16.mxu1 %v9483_v62  ;;  %v9575_v61 = vld [vmem:[%s13777_s1 + $0xd4c] ss:$16 sps:$4 sm:$0xff]   ;;  %v9570_v62 = vld [vmem:[%s13777_s1 + $0xd40] ss:$16 sps:$4 sm:$0xff]  }
 0x16f   :  { %6524 = vmatpush1.bf16.msra.mxu0 %v9478_v63  ;;  %7180 = vmatpush1.bf16.msra.mxu1 %v9481_v0  ;;  %v9573_v63 = vld [vmem:[%s13777_s1 + $0xd48] ss:$16 sps:$4 sm:$0xff]   ;;  %v9578_v0 = vld [vmem:[%s13777_s1 + $0xd64] ss:$16 sps:$4 sm:$0xff]  }
 0x170   :  { %6525 = vmatprep.subr.bf16.mxu0 %v9486_v1  ;;  %7181 = vmatprep.subr.bf16.mxu1 %v9489_v2  ;;  %v9581_v1 = vld [vmem:[%s13777_s1 + $0xd6c] ss:$16 sps:$4 sm:$0xff]   ;;  %v9576_v2 = vld [vmem:[%s13777_s1 + $0xd60] ss:$16 sps:$4 sm:$0xff]  }
 0x173   :  { %6526 = vmatpush1.bf16.msra.mxu0 %v9484_v3  ;;  %7182 = vmatpush1.bf16.msra.mxu1 %v9487_v4  ;;  %v9579_v3 = vld [vmem:[%s13777_s1 + $0xd68] ss:$16 sps:$4 sm:$0xff]   ;;  %v9584_v4 = vld [vmem:[%s13777_s1 + $0xd84] ss:$16 sps:$4 sm:$0xff]  }
 0x174   :  { %6527 = vmatprep.subr.bf16.mxu0 %v9492_v5  ;;  %7183 = vmatprep.subr.bf16.mxu1 %v9495_v6  ;;  %v9587_v5 = vld [vmem:[%s13777_s1 + $0xd8c] ss:$16 sps:$4 sm:$0xff]   ;;  %v9582_v6 = vld [vmem:[%s13777_s1 + $0xd80] ss:$16 sps:$4 sm:$0xff]  }
 0x177   :  { %6528 = vmatpush1.bf16.msra.mxu0 %v9490_v7  ;;  %7184 = vmatpush1.bf16.msra.mxu1 %v9493_v8  ;;  %v9585_v7 = vld [vmem:[%s13777_s1 + $0xd88] ss:$16 sps:$4 sm:$0xff]   ;;  %v9590_v8 = vld [vmem:[%s13777_s1 + $0xda4] ss:$16 sps:$4 sm:$0xff]  }
 0x178   :  { %6529 = vmatprep.subr.bf16.mxu0 %v9498_v9  ;;  %7185 = vmatprep.subr.bf16.mxu1 %v9501_v10  ;;  %v9593_v9 = vld [vmem:[%s13777_s1 + $0xdac] ss:$16 sps:$4 sm:$0xff]   ;;  %v9588_v10 = vld [vmem:[%s13777_s1 + $0xda0] ss:$16 sps:$4 sm:$0xff]  }
 0x17b   :  { %6530 = vmatpush1.bf16.msra.mxu0 %v9496_v12  ;;  %7186 = vmatpush1.bf16.msra.mxu1 %v9499_v13  ;;  %v9591_v12 = vld [vmem:[%s13777_s1 + $0xda8] ss:$16 sps:$4 sm:$0xff]   ;;  %v9596_v13 = vld [vmem:[%s13777_s1 + $0xdc4] ss:$16 sps:$4 sm:$0xff]  }
 0x17c   :  { %6531 = vmatprep.subr.bf16.mxu0 %v9504_v15  ;;  %7187 = vmatprep.subr.bf16.mxu1 %v9507_v11  ;;  %v9599_v15 = vld [vmem:[%s13777_s1 + $0xdcc] ss:$16 sps:$4 sm:$0xff]   ;;  %v9594_v11 = vld [vmem:[%s13777_s1 + $0xdc0] ss:$16 sps:$4 sm:$0xff]  }
 0x17f   :  { %6532 = vmatpush1.bf16.msra.mxu0 %v9502_v17  ;;  %7188 = vmatpush1.bf16.msra.mxu1 %v9505_v14  ;;  %v9597_v17 = vld [vmem:[%s13777_s1 + $0xdc8] ss:$16 sps:$4 sm:$0xff]   ;;  %v9602_v14 = vld [vmem:[%s13777_s1 + $0xde4] ss:$16 sps:$4 sm:$0xff]  }
 0x180   :  { %6542 = vmatprep.subr.bf16.mxu0 %v9512_v19  ;;  %7198 = vmatprep.subr.bf16.mxu1 %v9515_v20  ;;  %v9605_v19 = vld [vmem:[%s13777_s1 + $0xdec] ss:$16 sps:$4 sm:$0xff]   ;;  %v9600_v20 = vld [vmem:[%s13777_s1 + $0xde0] ss:$16 sps:$4 sm:$0xff]  }
 0x182   :  { %6534 = vmatmul.mubr.bf16.vlgmr.msra.gmra.mrb[0].mxu0 %v7754_v16  ;;  %7190 = vmatmul.mubr.bf16.vlgmr.msra.gmra.mrb[0].mxu1 %v7754_v16  ;;  %v9603_v16 = vld [vmem:[%s13777_s1 + $0xde8] ss:$16 sps:$4 sm:$0xff]  }
 0x183   :  { %6543 = vmatpush1.bf16.msra.mxu0 %v9510_v22  ;;  %7199 = vmatpush1.bf16.msra.mxu1 %v9513_v23  ;;  %v9610_v22 = vld [vmem:[%s13777_s1 + $0xe04] ss:$16 sps:$4 sm:$0xff]   ;;  %v9613_v23 = vld [vmem:[%s13777_s1 + $0xe0c] ss:$16 sps:$4 sm:$0xff]  }
 0x184   :  { %6544 = vmatprep.subr.bf16.mxu0 %v9518_v24  ;;  %7200 = vmatprep.subr.bf16.mxu1 %v9521_v18  ;;  %v11925_v24 = vld [vmem:[%s13778_s0 + $0x38] sm:$0xff]  ;;  %v7756_v18 = vcombine.low %v11724_v21, %v11724_v21 }
 0x185   :  { %6574 = vmatprep.mubr.bf16.mxu0 %v7757_v25  ;;  %7230 = vmatprep.mubr.bf16.mxu1 %v7757_v25  ;;  %v9608_v25 = vld [vmem:[%s13777_s1 + $0xe00] ss:$16 sps:$4 sm:$0xff]   ;;  %v9619_v21 = vld [vmem:[%s13777_s1 + $0xe2c] ss:$16 sps:$4 sm:$0xff]  }
 0x187   :  { %6545 = vmatpush1.bf16.msra.mxu0 %v9516_v26  ;;  %7201 = vmatpush1.bf16.msra.mxu1 %v9519_v27  ;;  %v9611_v26 = vld [vmem:[%s13777_s1 + $0xe08] ss:$16 sps:$4 sm:$0xff]   ;;  %v9616_v27 = vld [vmem:[%s13777_s1 + $0xe24] ss:$16 sps:$4 sm:$0xff]  }
 0x188   :  { %6546 = vmatprep.subr.bf16.mxu0 %v9524_v28  ;;  %7202 = vmatprep.subr.bf16.mxu1 %v9527_v29  ;;  %v7759_v28 = vcombine.high %v11925_v24, %v11925_v24  ;;  %v9614_v29 = vld [vmem:[%s13777_s1 + $0xe20] ss:$16 sps:$4 sm:$0xff]  }
 0x18b   :  { %6547 = vmatpush1.bf16.msra.mxu0 %v9522_v30  ;;  %7203 = vmatpush1.bf16.msra.mxu1 %v9525_v31  ;;  %v9617_v30 = vld [vmem:[%s13777_s1 + $0xe28] ss:$16 sps:$4 sm:$0xff]   ;;  %v9622_v31 = vld [vmem:[%s13777_s1 + $0xe44] ss:$16 sps:$4 sm:$0xff]  }
 0x18c   :  { %6548 = vmatprep.subr.bf16.mxu0 %v9530_v32  ;;  %7204 = vmatprep.subr.bf16.mxu1 %v9533_v33  ;;  %v9625_v32 = vld [vmem:[%s13777_s1 + $0xe4c] ss:$16 sps:$4 sm:$0xff]   ;;  %v9620_v33 = vld [vmem:[%s13777_s1 + $0xe40] ss:$16 sps:$4 sm:$0xff]  }
 0x18f   :  { %6549 = vmatpush1.bf16.msra.mxu0 %v9528_v34  ;;  %7205 = vmatpush1.bf16.msra.mxu1 %v9531_v35  ;;  %v9623_v34 = vld [vmem:[%s13777_s1 + $0xe48] ss:$16 sps:$4 sm:$0xff]   ;;  %v9628_v35 = vld [vmem:[%s13777_s1 + $0xe64] ss:$16 sps:$4 sm:$0xff]  }
 0x190   :  { %6550 = vmatprep.subr.bf16.mxu0 %v9536_v36  ;;  %7206 = vmatprep.subr.bf16.mxu1 %v9539_v37  ;;  %v9631_v36 = vld [vmem:[%s13777_s1 + $0xe6c] ss:$16 sps:$4 sm:$0xff]   ;;  %v9626_v37 = vld [vmem:[%s13777_s1 + $0xe60] ss:$16 sps:$4 sm:$0xff]  }
 0x193   :  { %6551 = vmatpush1.bf16.msra.mxu0 %v9534_v38  ;;  %7207 = vmatpush1.bf16.msra.mxu1 %v9537_v39  ;;  %v9629_v38 = vld [vmem:[%s13777_s1 + $0xe68] ss:$16 sps:$4 sm:$0xff]   ;;  %v9634_v39 = vld [vmem:[%s13777_s1 + $0xe84] ss:$16 sps:$4 sm:$0xff]  }
 0x194   :  { %6552 = vmatprep.subr.bf16.mxu0 %v9542_v40  ;;  %7208 = vmatprep.subr.bf16.mxu1 %v9545_v41  ;;  %v9637_v40 = vld [vmem:[%s13777_s1 + $0xe8c] ss:$16 sps:$4 sm:$0xff]   ;;  %v9632_v41 = vld [vmem:[%s13777_s1 + $0xe80] ss:$16 sps:$4 sm:$0xff]  }
 0x197   :  { %6553 = vmatpush1.bf16.msra.mxu0 %v9540_v42  ;;  %7209 = vmatpush1.bf16.msra.mxu1 %v9543_v43  ;;  %v9635_v42 = vld [vmem:[%s13777_s1 + $0xe88] ss:$16 sps:$4 sm:$0xff]   ;;  %v9640_v43 = vld [vmem:[%s13777_s1 + $0xea4] ss:$16 sps:$4 sm:$0xff]  }
 0x198   :  { %6554 = vmatprep.subr.bf16.mxu0 %v9548_v44  ;;  %7210 = vmatprep.subr.bf16.mxu1 %v9551_v45  ;;  %v9643_v44 = vld [vmem:[%s13777_s1 + $0xeac] ss:$16 sps:$4 sm:$0xff]   ;;  %v9638_v45 = vld [vmem:[%s13777_s1 + $0xea0] ss:$16 sps:$4 sm:$0xff]  }
 0x19b   :  { %6555 = vmatpush1.bf16.msra.mxu0 %v9546_v46  ;;  %7211 = vmatpush1.bf16.msra.mxu1 %v9549_v47  ;;  %v9641_v46 = vld [vmem:[%s13777_s1 + $0xea8] ss:$16 sps:$4 sm:$0xff]   ;;  %v9646_v47 = vld [vmem:[%s13777_s1 + $0xec4] ss:$16 sps:$4 sm:$0xff]  }
 0x19c   :  { %6556 = vmatprep.subr.bf16.mxu0 %v9554_v48  ;;  %7212 = vmatprep.subr.bf16.mxu1 %v9557_v49  ;;  %v9649_v48 = vld [vmem:[%s13777_s1 + $0xecc] ss:$16 sps:$4 sm:$0xff]   ;;  %v9644_v49 = vld [vmem:[%s13777_s1 + $0xec0] ss:$16 sps:$4 sm:$0xff]  }
 0x19f   :  { %6557 = vmatpush1.bf16.msra.mxu0 %v9552_v50  ;;  %7213 = vmatpush1.bf16.msra.mxu1 %v9555_v51  ;;  %v9647_v50 = vld [vmem:[%s13777_s1 + $0xec8] ss:$16 sps:$4 sm:$0xff]   ;;  %v9652_v51 = vld [vmem:[%s13777_s1 + $0xee4] ss:$16 sps:$4 sm:$0xff]  }
 0x1a0   :  { %6558 = vmatprep.subr.bf16.mxu0 %v9560_v52  ;;  %7214 = vmatprep.subr.bf16.mxu1 %v9563_v53  ;;  %v9655_v52 = vld [vmem:[%s13777_s1 + $0xeec] ss:$16 sps:$4 sm:$0xff]   ;;  %v9650_v53 = vld [vmem:[%s13777_s1 + $0xee0] ss:$16 sps:$4 sm:$0xff]  }
 0x1a3   :  { %6559 = vmatpush1.bf16.msra.mxu0 %v9558_v54  ;;  %7215 = vmatpush1.bf16.msra.mxu1 %v9561_v55  ;;  %v9653_v54 = vld [vmem:[%s13777_s1 + $0xee8] ss:$16 sps:$4 sm:$0xff]   ;;  %v9658_v55 = vld [vmem:[%s13777_s1 + $0xf04] ss:$16 sps:$4 sm:$0xff]  }
 0x1a4   :  { %6560 = vmatprep.subr.bf16.mxu0 %v9566_v56  ;;  %7216 = vmatprep.subr.bf16.mxu1 %v9569_v57  ;;  %v9661_v56 = vld [vmem:[%s13777_s1 + $0xf0c] ss:$16 sps:$4 sm:$0xff]   ;;  %v9656_v57 = vld [vmem:[%s13777_s1 + $0xf00] ss:$16 sps:$4 sm:$0xff]  }
 0x1a7   :  { %6561 = vmatpush1.bf16.msra.mxu0 %v9564_v58  ;;  %7217 = vmatpush1.bf16.msra.mxu1 %v9567_v59  ;;  %v9659_v58 = vld [vmem:[%s13777_s1 + $0xf08] ss:$16 sps:$4 sm:$0xff]   ;;  %v9664_v59 = vld [vmem:[%s13777_s1 + $0xf24] ss:$16 sps:$4 sm:$0xff]  }
 0x1a8   :  { %6562 = vmatprep.subr.bf16.mxu0 %v9572_v60  ;;  %7218 = vmatprep.subr.bf16.mxu1 %v9575_v61  ;;  %v9667_v60 = vld [vmem:[%s13777_s1 + $0xf2c] ss:$16 sps:$4 sm:$0xff]   ;;  %v9662_v61 = vld [vmem:[%s13777_s1 + $0xf20] ss:$16 sps:$4 sm:$0xff]  }
 0x1ab   :  { %6563 = vmatpush1.bf16.msra.mxu0 %v9570_v62  ;;  %7219 = vmatpush1.bf16.msra.mxu1 %v9573_v63  ;;  %v9665_v62 = vld [vmem:[%s13777_s1 + $0xf28] ss:$16 sps:$4 sm:$0xff]   ;;  %v9670_v63 = vld [vmem:[%s13777_s1 + $0xf44] ss:$16 sps:$4 sm:$0xff]  }
 0x1ac   :  { %6564 = vmatprep.subr.bf16.mxu0 %v9578_v0  ;;  %7220 = vmatprep.subr.bf16.mxu1 %v9581_v1  ;;  %v9673_v0 = vld [vmem:[%s13777_s1 + $0xf4c] ss:$16 sps:$4 sm:$0xff]   ;;  %v9668_v1 = vld [vmem:[%s13777_s1 + $0xf40] ss:$16 sps:$4 sm:$0xff]  }
 0x1af   :  { %6565 = vmatpush1.bf16.msra.mxu0 %v9576_v2  ;;  %7221 = vmatpush1.bf16.msra.mxu1 %v9579_v3  ;;  %v9671_v2 = vld [vmem:[%s13777_s1 + $0xf48] ss:$16 sps:$4 sm:$0xff]   ;;  %v9676_v3 = vld [vmem:[%s13777_s1 + $0xf64] ss:$16 sps:$4 sm:$0xff]  }
 0x1b0   :  { %6566 = vmatprep.subr.bf16.mxu0 %v9584_v4  ;;  %7222 = vmatprep.subr.bf16.mxu1 %v9587_v5  ;;  %v9679_v4 = vld [vmem:[%s13777_s1 + $0xf6c] ss:$16 sps:$4 sm:$0xff]   ;;  %v9674_v5 = vld [vmem:[%s13777_s1 + $0xf60] ss:$16 sps:$4 sm:$0xff]  }
 0x1b3   :  { %6567 = vmatpush1.bf16.msra.mxu0 %v9582_v6  ;;  %7223 = vmatpush1.bf16.msra.mxu1 %v9585_v7  ;;  %v9677_v6 = vld [vmem:[%s13777_s1 + $0xf68] ss:$16 sps:$4 sm:$0xff]   ;;  %v9682_v7 = vld [vmem:[%s13777_s1 + $0xf84] ss:$16 sps:$4 sm:$0xff]  }
 0x1b4   :  { %6568 = vmatprep.subr.bf16.mxu0 %v9590_v8  ;;  %7224 = vmatprep.subr.bf16.mxu1 %v9593_v9  ;;  %v9685_v8 = vld [vmem:[%s13777_s1 + $0xf8c] ss:$16 sps:$4 sm:$0xff]   ;;  %v9680_v9 = vld [vmem:[%s13777_s1 + $0xf80] ss:$16 sps:$4 sm:$0xff]  }
 0x1b7   :  { %6569 = vmatpush1.bf16.msra.mxu0 %v9588_v10  ;;  %7225 = vmatpush1.bf16.msra.mxu1 %v9591_v12  ;;  %v9683_v10 = vld [vmem:[%s13777_s1 + $0xf88] ss:$16 sps:$4 sm:$0xff]   ;;  %v9688_v12 = vld [vmem:[%s13777_s1 + $0xfa4] ss:$16 sps:$4 sm:$0xff]  }
 0x1b8   :  { %6570 = vmatprep.subr.bf16.mxu0 %v9596_v13  ;;  %7226 = vmatprep.subr.bf16.mxu1 %v9599_v15  ;;  %v9691_v13 = vld [vmem:[%s13777_s1 + $0xfac] ss:$16 sps:$4 sm:$0xff]   ;;  %v9686_v15 = vld [vmem:[%s13777_s1 + $0xfa0] ss:$16 sps:$4 sm:$0xff]  }
 0x1bb   :  { %6571 = vmatpush1.bf16.msra.mxu0 %v9594_v11  ;;  %7227 = vmatpush1.bf16.msra.mxu1 %v9597_v17  ;;  %v9689_v11 = vld [vmem:[%s13777_s1 + $0xfa8] ss:$16 sps:$4 sm:$0xff]   ;;  %v9694_v17 = vld [vmem:[%s13777_s1 + $0xfc4] ss:$16 sps:$4 sm:$0xff]  }
 0x1bc   :  { %6572 = vmatprep.subr.bf16.mxu0 %v9602_v14  ;;  %7228 = vmatprep.subr.bf16.mxu1 %v9605_v19  ;;  %v9697_v14 = vld [vmem:[%s13777_s1 + $0xfcc] ss:$16 sps:$4 sm:$0xff]   ;;  %v9692_v19 = vld [vmem:[%s13777_s1 + $0xfc0] ss:$16 sps:$4 sm:$0xff]  }
 0x1bf   :  { %6573 = vmatpush1.bf16.msra.mxu0 %v9600_v20  ;;  %7229 = vmatpush1.bf16.msra.mxu1 %v9603_v16  ;;  %v9695_v20 = vld [vmem:[%s13777_s1 + $0xfc8] ss:$16 sps:$4 sm:$0xff]   ;;  %v9700_v16 = vld [vmem:[%s13777_s1 + $0xfe4] ss:$16 sps:$4 sm:$0xff]  }
 0x1c0   :  { %6583 = vmatprep.subr.bf16.mxu0 %v9610_v22  ;;  %7239 = vmatprep.subr.bf16.mxu1 %v9613_v23  ;;  %v9703_v22 = vld [vmem:[%s13777_s1 + $0xfec] ss:$16 sps:$4 sm:$0xff]   ;;  %v9698_v23 = vld [vmem:[%s13777_s1 + $0xfe0] ss:$16 sps:$4 sm:$0xff]  }
 0x1c2   :  { %6575 = vmatmul.mubr.bf16.vlgmr.msra.gmra.mrb[0].mxu0 %v7756_v18  ;;  %7231 = vmatmul.mubr.bf16.vlgmr.msra.gmra.mrb[0].mxu1 %v7756_v18  ;;  %v9701_v18 = vld [vmem:[%s13777_s1 + $0xfe8] ss:$16 sps:$4 sm:$0xff]  }
 0x1c3   :  { %6584 = vmatpush1.bf16.msra.mxu0 %v9608_v25  ;;  %7240 = vmatpush1.bf16.msra.mxu1 %v9611_v26  ;;  %v9708_v25 = vld [vmem:[%s13777_s1 + $0x1004] ss:$16 sps:$4 sm:$0xff]   ;;  %v9711_v26 = vld [vmem:[%s13777_s1 + $0x100c] ss:$16 sps:$4 sm:$0xff]  }
 0x1c4   :  { %6585 = vmatprep.subr.bf16.mxu0 %v9616_v27  ;;  %7241 = vmatprep.subr.bf16.mxu1 %v9619_v21  ;;  %v12126_v27 = vld [vmem:[%s13778_s0 + $0x40] sm:$0xff]  ;;  %v7758_v21 = vcombine.low %v11925_v24, %v11925_v24  ;;  %v9717_v24 = vld [vmem:[%s13777_s1 + $0x102c] ss:$16 sps:$4 sm:$0xff]  }
 0x1c5   :  { %6615 = vmatprep.mubr.bf16.mxu0 %v7759_v28  ;;  %7271 = vmatprep.mubr.bf16.mxu1 %v7759_v28  ;;  %v9706_v28 = vld [vmem:[%s13777_s1 + $0x1000] ss:$16 sps:$4 sm:$0xff]  }
 0x1c7   :  { %6586 = vmatpush1.bf16.msra.mxu0 %v9614_v29  ;;  %7242 = vmatpush1.bf16.msra.mxu1 %v9617_v30  ;;  %v9709_v29 = vld [vmem:[%s13777_s1 + $0x1008] ss:$16 sps:$4 sm:$0xff]   ;;  %v9714_v30 = vld [vmem:[%s13777_s1 + $0x1024] ss:$16 sps:$4 sm:$0xff]  }
 0x1c8   :  { %6587 = vmatprep.subr.bf16.mxu0 %v9622_v31  ;;  %7243 = vmatprep.subr.bf16.mxu1 %v9625_v32  ;;  %v7761_v31 = vcombine.high %v12126_v27, %v12126_v27  ;;  %v9712_v32 = vld [vmem:[%s13777_s1 + $0x1020] ss:$16 sps:$4 sm:$0xff]  }
 0x1cb   :  { %6588 = vmatpush1.bf16.msra.mxu0 %v9620_v33  ;;  %7244 = vmatpush1.bf16.msra.mxu1 %v9623_v34  ;;  %v9715_v33 = vld [vmem:[%s13777_s1 + $0x1028] ss:$16 sps:$4 sm:$0xff]   ;;  %v9720_v34 = vld [vmem:[%s13777_s1 + $0x1044] ss:$16 sps:$4 sm:$0xff]  }
 0x1cc   :  { %6589 = vmatprep.subr.bf16.mxu0 %v9628_v35  ;;  %7245 = vmatprep.subr.bf16.mxu1 %v9631_v36  ;;  %v9723_v35 = vld [vmem:[%s13777_s1 + $0x104c] ss:$16 sps:$4 sm:$0xff]   ;;  %v9718_v36 = vld [vmem:[%s13777_s1 + $0x1040] ss:$16 sps:$4 sm:$0xff]  }
 0x1cf   :  { %6590 = vmatpush1.bf16.msra.mxu0 %v9626_v37  ;;  %7246 = vmatpush1.bf16.msra.mxu1 %v9629_v38  ;;  %v9721_v37 = vld [vmem:[%s13777_s1 + $0x1048] ss:$16 sps:$4 sm:$0xff]   ;;  %v9726_v38 = vld [vmem:[%s13777_s1 + $0x1064] ss:$16 sps:$4 sm:$0xff]  }
 0x1d0   :  { %6591 = vmatprep.subr.bf16.mxu0 %v9634_v39  ;;  %7247 = vmatprep.subr.bf16.mxu1 %v9637_v40  ;;  %v9729_v39 = vld [vmem:[%s13777_s1 + $0x106c] ss:$16 sps:$4 sm:$0xff]   ;;  %v9724_v40 = vld [vmem:[%s13777_s1 + $0x1060] ss:$16 sps:$4 sm:$0xff]  }
 0x1d3   :  { %6592 = vmatpush1.bf16.msra.mxu0 %v9632_v41  ;;  %7248 = vmatpush1.bf16.msra.mxu1 %v9635_v42  ;;  %v9727_v41 = vld [vmem:[%s13777_s1 + $0x1068] ss:$16 sps:$4 sm:$0xff]   ;;  %v9732_v42 = vld [vmem:[%s13777_s1 + $0x1084] ss:$16 sps:$4 sm:$0xff]  }
 0x1d4   :  { %6593 = vmatprep.subr.bf16.mxu0 %v9640_v43  ;;  %7249 = vmatprep.subr.bf16.mxu1 %v9643_v44  ;;  %v9735_v43 = vld [vmem:[%s13777_s1 + $0x108c] ss:$16 sps:$4 sm:$0xff]   ;;  %v9730_v44 = vld [vmem:[%s13777_s1 + $0x1080] ss:$16 sps:$4 sm:$0xff]  }
 0x1d7   :  { %6594 = vmatpush1.bf16.msra.mxu0 %v9638_v45  ;;  %7250 = vmatpush1.bf16.msra.mxu1 %v9641_v46  ;;  %v9733_v45 = vld [vmem:[%s13777_s1 + $0x1088] ss:$16 sps:$4 sm:$0xff]   ;;  %v9738_v46 = vld [vmem:[%s13777_s1 + $0x10a4] ss:$16 sps:$4 sm:$0xff]  }
 0x1d8   :  { %6595 = vmatprep.subr.bf16.mxu0 %v9646_v47  ;;  %7251 = vmatprep.subr.bf16.mxu1 %v9649_v48  ;;  %v9741_v47 = vld [vmem:[%s13777_s1 + $0x10ac] ss:$16 sps:$4 sm:$0xff]   ;;  %v9736_v48 = vld [vmem:[%s13777_s1 + $0x10a0] ss:$16 sps:$4 sm:$0xff]  }
 0x1db   :  { %6596 = vmatpush1.bf16.msra.mxu0 %v9644_v49  ;;  %7252 = vmatpush1.bf16.msra.mxu1 %v9647_v50  ;;  %v9739_v49 = vld [vmem:[%s13777_s1 + $0x10a8] ss:$16 sps:$4 sm:$0xff]   ;;  %v9744_v50 = vld [vmem:[%s13777_s1 + $0x10c4] ss:$16 sps:$4 sm:$0xff]  }
 0x1dc   :  { %6597 = vmatprep.subr.bf16.mxu0 %v9652_v51  ;;  %7253 = vmatprep.subr.bf16.mxu1 %v9655_v52  ;;  %v9747_v51 = vld [vmem:[%s13777_s1 + $0x10cc] ss:$16 sps:$4 sm:$0xff]   ;;  %v9742_v52 = vld [vmem:[%s13777_s1 + $0x10c0] ss:$16 sps:$4 sm:$0xff]  }
 0x1df   :  { %6598 = vmatpush1.bf16.msra.mxu0 %v9650_v53  ;;  %7254 = vmatpush1.bf16.msra.mxu1 %v9653_v54  ;;  %v9745_v53 = vld [vmem:[%s13777_s1 + $0x10c8] ss:$16 sps:$4 sm:$0xff]   ;;  %v9750_v54 = vld [vmem:[%s13777_s1 + $0x10e4] ss:$16 sps:$4 sm:$0xff]  }
 0x1e0   :  { %6599 = vmatprep.subr.bf16.mxu0 %v9658_v55  ;;  %7255 = vmatprep.subr.bf16.mxu1 %v9661_v56  ;;  %v9753_v55 = vld [vmem:[%s13777_s1 + $0x10ec] ss:$16 sps:$4 sm:$0xff]   ;;  %v9748_v56 = vld [vmem:[%s13777_s1 + $0x10e0] ss:$16 sps:$4 sm:$0xff]  }
 0x1e3   :  { %6600 = vmatpush1.bf16.msra.mxu0 %v9656_v57  ;;  %7256 = vmatpush1.bf16.msra.mxu1 %v9659_v58  ;;  %v9751_v57 = vld [vmem:[%s13777_s1 + $0x10e8] ss:$16 sps:$4 sm:$0xff]   ;;  %v9756_v58 = vld [vmem:[%s13777_s1 + $0x1104] ss:$16 sps:$4 sm:$0xff]  }
 0x1e4   :  { %6601 = vmatprep.subr.bf16.mxu0 %v9664_v59  ;;  %7257 = vmatprep.subr.bf16.mxu1 %v9667_v60  ;;  %v9759_v59 = vld [vmem:[%s13777_s1 + $0x110c] ss:$16 sps:$4 sm:$0xff]   ;;  %v9754_v60 = vld [vmem:[%s13777_s1 + $0x1100] ss:$16 sps:$4 sm:$0xff]  }
 0x1e7   :  { %6602 = vmatpush1.bf16.msra.mxu0 %v9662_v61  ;;  %7258 = vmatpush1.bf16.msra.mxu1 %v9665_v62  ;;  %v9757_v61 = vld [vmem:[%s13777_s1 + $0x1108] ss:$16 sps:$4 sm:$0xff]   ;;  %v9762_v62 = vld [vmem:[%s13777_s1 + $0x1124] ss:$16 sps:$4 sm:$0xff]  }
 0x1e8   :  { %6603 = vmatprep.subr.bf16.mxu0 %v9670_v63  ;;  %7259 = vmatprep.subr.bf16.mxu1 %v9673_v0  ;;  %v9765_v63 = vld [vmem:[%s13777_s1 + $0x112c] ss:$16 sps:$4 sm:$0xff]   ;;  %v9760_v0 = vld [vmem:[%s13777_s1 + $0x1120] ss:$16 sps:$4 sm:$0xff]  }
 0x1eb   :  { %6604 = vmatpush1.bf16.msra.mxu0 %v9668_v1  ;;  %7260 = vmatpush1.bf16.msra.mxu1 %v9671_v2  ;;  %v9763_v1 = vld [vmem:[%s13777_s1 + $0x1128] ss:$16 sps:$4 sm:$0xff]   ;;  %v9768_v2 = vld [vmem:[%s13777_s1 + $0x1144] ss:$16 sps:$4 sm:$0xff]  }
 0x1ec   :  { %6605 = vmatprep.subr.bf16.mxu0 %v9676_v3  ;;  %7261 = vmatprep.subr.bf16.mxu1 %v9679_v4  ;;  %v9771_v3 = vld [vmem:[%s13777_s1 + $0x114c] ss:$16 sps:$4 sm:$0xff]   ;;  %v9766_v4 = vld [vmem:[%s13777_s1 + $0x1140] ss:$16 sps:$4 sm:$0xff]  }
 0x1ef   :  { %6606 = vmatpush1.bf16.msra.mxu0 %v9674_v5  ;;  %7262 = vmatpush1.bf16.msra.mxu1 %v9677_v6  ;;  %v9769_v5 = vld [vmem:[%s13777_s1 + $0x1148] ss:$16 sps:$4 sm:$0xff]   ;;  %v9774_v6 = vld [vmem:[%s13777_s1 + $0x1164] ss:$16 sps:$4 sm:$0xff]  }
 0x1f0   :  { %6607 = vmatprep.subr.bf16.mxu0 %v9682_v7  ;;  %7263 = vmatprep.subr.bf16.mxu1 %v9685_v8  ;;  %v9777_v7 = vld [vmem:[%s13777_s1 + $0x116c] ss:$16 sps:$4 sm:$0xff]   ;;  %v9772_v8 = vld [vmem:[%s13777_s1 + $0x1160] ss:$16 sps:$4 sm:$0xff]  }
 0x1f3   :  { %6608 = vmatpush1.bf16.msra.mxu0 %v9680_v9  ;;  %7264 = vmatpush1.bf16.msra.mxu1 %v9683_v10  ;;  %v9775_v9 = vld [vmem:[%s13777_s1 + $0x1168] ss:$16 sps:$4 sm:$0xff]   ;;  %v9780_v10 = vld [vmem:[%s13777_s1 + $0x1184] ss:$16 sps:$4 sm:$0xff]  }
 0x1f4   :  { %6609 = vmatprep.subr.bf16.mxu0 %v9688_v12  ;;  %7265 = vmatprep.subr.bf16.mxu1 %v9691_v13  ;;  %v9783_v12 = vld [vmem:[%s13777_s1 + $0x118c] ss:$16 sps:$4 sm:$0xff]   ;;  %v9778_v13 = vld [vmem:[%s13777_s1 + $0x1180] ss:$16 sps:$4 sm:$0xff]  }
 0x1f7   :  { %6610 = vmatpush1.bf16.msra.mxu0 %v9686_v15  ;;  %7266 = vmatpush1.bf16.msra.mxu1 %v9689_v11  ;;  %v9781_v15 = vld [vmem:[%s13777_s1 + $0x1188] ss:$16 sps:$4 sm:$0xff]   ;;  %v9786_v11 = vld [vmem:[%s13777_s1 + $0x11a4] ss:$16 sps:$4 sm:$0xff]  }
 0x1f8   :  { %6611 = vmatprep.subr.bf16.mxu0 %v9694_v17  ;;  %7267 = vmatprep.subr.bf16.mxu1 %v9697_v14  ;;  %v9789_v17 = vld [vmem:[%s13777_s1 + $0x11ac] ss:$16 sps:$4 sm:$0xff]   ;;  %v9784_v14 = vld [vmem:[%s13777_s1 + $0x11a0] ss:$16 sps:$4 sm:$0xff]  }
 0x1fb   :  { %6612 = vmatpush1.bf16.msra.mxu0 %v9692_v19  ;;  %7268 = vmatpush1.bf16.msra.mxu1 %v9695_v20  ;;  %v9787_v19 = vld [vmem:[%s13777_s1 + $0x11a8] ss:$16 sps:$4 sm:$0xff]   ;;  %v9792_v20 = vld [vmem:[%s13777_s1 + $0x11c4] ss:$16 sps:$4 sm:$0xff]  }
 0x1fc   :  { %6613 = vmatprep.subr.bf16.mxu0 %v9700_v16  ;;  %7269 = vmatprep.subr.bf16.mxu1 %v9703_v22  ;;  %v9795_v16 = vld [vmem:[%s13777_s1 + $0x11cc] ss:$16 sps:$4 sm:$0xff]   ;;  %v9790_v22 = vld [vmem:[%s13777_s1 + $0x11c0] ss:$16 sps:$4 sm:$0xff]  }
 0x1ff   :  { %6614 = vmatpush1.bf16.msra.mxu0 %v9698_v23  ;;  %7270 = vmatpush1.bf16.msra.mxu1 %v9701_v18  ;;  %v9793_v23 = vld [vmem:[%s13777_s1 + $0x11c8] ss:$16 sps:$4 sm:$0xff]   ;;  %v9798_v18 = vld [vmem:[%s13777_s1 + $0x11e4] ss:$16 sps:$4 sm:$0xff]  }
 0x200   :  { %6624 = vmatprep.subr.bf16.mxu0 %v9708_v25  ;;  %7280 = vmatprep.subr.bf16.mxu1 %v9711_v26  ;;  %v9801_v25 = vld [vmem:[%s13777_s1 + $0x11ec] ss:$16 sps:$4 sm:$0xff]   ;;  %v9796_v26 = vld [vmem:[%s13777_s1 + $0x11e0] ss:$16 sps:$4 sm:$0xff]  }
 0x202   :  { %6616 = vmatmul.mubr.bf16.vlgmr.msra.gmra.mrb[0].mxu0 %v7758_v21  ;;  %7272 = vmatmul.mubr.bf16.vlgmr.msra.gmra.mrb[0].mxu1 %v7758_v21  ;;  %v9799_v21 = vld [vmem:[%s13777_s1 + $0x11e8] ss:$16 sps:$4 sm:$0xff]  }
 0x203   :  { %6625 = vmatpush1.bf16.msra.mxu0 %v9706_v28  ;;  %7281 = vmatpush1.bf16.msra.mxu1 %v9709_v29  ;;  %v9806_v28 = vld [vmem:[%s13777_s1 + $0x1204] ss:$16 sps:$4 sm:$0xff]   ;;  %v9809_v29 = vld [vmem:[%s13777_s1 + $0x120c] ss:$16 sps:$4 sm:$0xff]  }
 0x204   :  { %6626 = vmatprep.subr.bf16.mxu0 %v9714_v30  ;;  %7282 = vmatprep.subr.bf16.mxu1 %v9717_v24  ;;  %v12327_v30 = vld [vmem:[%s13778_s0 + $0x48] sm:$0xff]  ;;  %v7760_v24 = vcombine.low %v12126_v27, %v12126_v27 }
 0x205   :  { %6656 = vmatprep.mubr.bf16.mxu0 %v7761_v31  ;;  %7312 = vmatprep.mubr.bf16.mxu1 %v7761_v31  ;;  %v9804_v31 = vld [vmem:[%s13777_s1 + $0x1200] ss:$16 sps:$4 sm:$0xff]   ;;  %v9815_v27 = vld [vmem:[%s13777_s1 + $0x122c] ss:$16 sps:$4 sm:$0xff]  }
 0x207   :  { %6627 = vmatpush1.bf16.msra.mxu0 %v9712_v32  ;;  %7283 = vmatpush1.bf16.msra.mxu1 %v9715_v33  ;;  %v9807_v32 = vld [vmem:[%s13777_s1 + $0x1208] ss:$16 sps:$4 sm:$0xff]   ;;  %v9812_v33 = vld [vmem:[%s13777_s1 + $0x1224] ss:$16 sps:$4 sm:$0xff]  }
 0x208   :  { %6628 = vmatprep.subr.bf16.mxu0 %v9720_v34  ;;  %7284 = vmatprep.subr.bf16.mxu1 %v9723_v35  ;;  %v7763_v34 = vcombine.high %v12327_v30, %v12327_v30  ;;  %v9810_v35 = vld [vmem:[%s13777_s1 + $0x1220] ss:$16 sps:$4 sm:$0xff]  }
 0x20b   :  { %6629 = vmatpush1.bf16.msra.mxu0 %v9718_v36  ;;  %7285 = vmatpush1.bf16.msra.mxu1 %v9721_v37  ;;  %v9813_v36 = vld [vmem:[%s13777_s1 + $0x1228] ss:$16 sps:$4 sm:$0xff]   ;;  %v9818_v37 = vld [vmem:[%s13777_s1 + $0x1244] ss:$16 sps:$4 sm:$0xff]  }
 0x20c   :  { %6630 = vmatprep.subr.bf16.mxu0 %v9726_v38  ;;  %7286 = vmatprep.subr.bf16.mxu1 %v9729_v39  ;;  %v9821_v38 = vld [vmem:[%s13777_s1 + $0x124c] ss:$16 sps:$4 sm:$0xff]   ;;  %v9816_v39 = vld [vmem:[%s13777_s1 + $0x1240] ss:$16 sps:$4 sm:$0xff]  }
 0x20f   :  { %6631 = vmatpush1.bf16.msra.mxu0 %v9724_v40  ;;  %7287 = vmatpush1.bf16.msra.mxu1 %v9727_v41  ;;  %v9819_v40 = vld [vmem:[%s13777_s1 + $0x1248] ss:$16 sps:$4 sm:$0xff]   ;;  %v9824_v41 = vld [vmem:[%s13777_s1 + $0x1264] ss:$16 sps:$4 sm:$0xff]  }
 0x210   :  { %6632 = vmatprep.subr.bf16.mxu0 %v9732_v42  ;;  %7288 = vmatprep.subr.bf16.mxu1 %v9735_v43  ;;  %v9827_v42 = vld [vmem:[%s13777_s1 + $0x126c] ss:$16 sps:$4 sm:$0xff]   ;;  %v9822_v43 = vld [vmem:[%s13777_s1 + $0x1260] ss:$16 sps:$4 sm:$0xff]  }
 0x213   :  { %6633 = vmatpush1.bf16.msra.mxu0 %v9730_v44  ;;  %7289 = vmatpush1.bf16.msra.mxu1 %v9733_v45  ;;  %v9825_v44 = vld [vmem:[%s13777_s1 + $0x1268] ss:$16 sps:$4 sm:$0xff]   ;;  %v9830_v45 = vld [vmem:[%s13777_s1 + $0x1284] ss:$16 sps:$4 sm:$0xff]  }
 0x214   :  { %6634 = vmatprep.subr.bf16.mxu0 %v9738_v46  ;;  %7290 = vmatprep.subr.bf16.mxu1 %v9741_v47  ;;  %v9833_v46 = vld [vmem:[%s13777_s1 + $0x128c] ss:$16 sps:$4 sm:$0xff]   ;;  %v9828_v47 = vld [vmem:[%s13777_s1 + $0x1280] ss:$16 sps:$4 sm:$0xff]  }
 0x217   :  { %6635 = vmatpush1.bf16.msra.mxu0 %v9736_v48  ;;  %7291 = vmatpush1.bf16.msra.mxu1 %v9739_v49  ;;  %v9831_v48 = vld [vmem:[%s13777_s1 + $0x1288] ss:$16 sps:$4 sm:$0xff]   ;;  %v9836_v49 = vld [vmem:[%s13777_s1 + $0x12a4] ss:$16 sps:$4 sm:$0xff]  }
 0x218   :  { %6636 = vmatprep.subr.bf16.mxu0 %v9744_v50  ;;  %7292 = vmatprep.subr.bf16.mxu1 %v9747_v51  ;;  %v9839_v50 = vld [vmem:[%s13777_s1 + $0x12ac] ss:$16 sps:$4 sm:$0xff]   ;;  %v9834_v51 = vld [vmem:[%s13777_s1 + $0x12a0] ss:$16 sps:$4 sm:$0xff]  }
 0x21b   :  { %6637 = vmatpush1.bf16.msra.mxu0 %v9742_v52  ;;  %7293 = vmatpush1.bf16.msra.mxu1 %v9745_v53  ;;  %v9837_v52 = vld [vmem:[%s13777_s1 + $0x12a8] ss:$16 sps:$4 sm:$0xff]   ;;  %v9842_v53 = vld [vmem:[%s13777_s1 + $0x12c4] ss:$16 sps:$4 sm:$0xff]  }
 0x21c   :  { %6638 = vmatprep.subr.bf16.mxu0 %v9750_v54  ;;  %7294 = vmatprep.subr.bf16.mxu1 %v9753_v55  ;;  %v9845_v54 = vld [vmem:[%s13777_s1 + $0x12cc] ss:$16 sps:$4 sm:$0xff]   ;;  %v9840_v55 = vld [vmem:[%s13777_s1 + $0x12c0] ss:$16 sps:$4 sm:$0xff]  }
 0x21f   :  { %6639 = vmatpush1.bf16.msra.mxu0 %v9748_v56  ;;  %7295 = vmatpush1.bf16.msra.mxu1 %v9751_v57  ;;  %v9843_v56 = vld [vmem:[%s13777_s1 + $0x12c8] ss:$16 sps:$4 sm:$0xff]   ;;  %v9848_v57 = vld [vmem:[%s13777_s1 + $0x12e4] ss:$16 sps:$4 sm:$0xff]  }
 0x220   :  { %6640 = vmatprep.subr.bf16.mxu0 %v9756_v58  ;;  %7296 = vmatprep.subr.bf16.mxu1 %v9759_v59  ;;  %v9851_v58 = vld [vmem:[%s13777_s1 + $0x12ec] ss:$16 sps:$4 sm:$0xff]   ;;  %v9846_v59 = vld [vmem:[%s13777_s1 + $0x12e0] ss:$16 sps:$4 sm:$0xff]  }
 0x223   :  { %6641 = vmatpush1.bf16.msra.mxu0 %v9754_v60  ;;  %7297 = vmatpush1.bf16.msra.mxu1 %v9757_v61  ;;  %v9849_v60 = vld [vmem:[%s13777_s1 + $0x12e8] ss:$16 sps:$4 sm:$0xff]   ;;  %v9854_v61 = vld [vmem:[%s13777_s1 + $0x1304] ss:$16 sps:$4 sm:$0xff]  }
 0x224   :  { %6642 = vmatprep.subr.bf16.mxu0 %v9762_v62  ;;  %7298 = vmatprep.subr.bf16.mxu1 %v9765_v63  ;;  %v9857_v62 = vld [vmem:[%s13777_s1 + $0x130c] ss:$16 sps:$4 sm:$0xff]   ;;  %v9852_v63 = vld [vmem:[%s13777_s1 + $0x1300] ss:$16 sps:$4 sm:$0xff]  }
 0x227   :  { %6643 = vmatpush1.bf16.msra.mxu0 %v9760_v0  ;;  %7299 = vmatpush1.bf16.msra.mxu1 %v9763_v1  ;;  %v9855_v0 = vld [vmem:[%s13777_s1 + $0x1308] ss:$16 sps:$4 sm:$0xff]   ;;  %v9860_v1 = vld [vmem:[%s13777_s1 + $0x1324] ss:$16 sps:$4 sm:$0xff]  }
 0x228   :  { %6644 = vmatprep.subr.bf16.mxu0 %v9768_v2  ;;  %7300 = vmatprep.subr.bf16.mxu1 %v9771_v3  ;;  %v9863_v2 = vld [vmem:[%s13777_s1 + $0x132c] ss:$16 sps:$4 sm:$0xff]   ;;  %v9858_v3 = vld [vmem:[%s13777_s1 + $0x1320] ss:$16 sps:$4 sm:$0xff]  }
 0x22b   :  { %6645 = vmatpush1.bf16.msra.mxu0 %v9766_v4  ;;  %7301 = vmatpush1.bf16.msra.mxu1 %v9769_v5  ;;  %v9861_v4 = vld [vmem:[%s13777_s1 + $0x1328] ss:$16 sps:$4 sm:$0xff]   ;;  %v9866_v5 = vld [vmem:[%s13777_s1 + $0x1344] ss:$16 sps:$4 sm:$0xff]  }
 0x22c   :  { %6646 = vmatprep.subr.bf16.mxu0 %v9774_v6  ;;  %7302 = vmatprep.subr.bf16.mxu1 %v9777_v7  ;;  %v9869_v6 = vld [vmem:[%s13777_s1 + $0x134c] ss:$16 sps:$4 sm:$0xff]   ;;  %v9864_v7 = vld [vmem:[%s13777_s1 + $0x1340] ss:$16 sps:$4 sm:$0xff]  }
 0x22f   :  { %6647 = vmatpush1.bf16.msra.mxu0 %v9772_v8  ;;  %7303 = vmatpush1.bf16.msra.mxu1 %v9775_v9  ;;  %v9867_v8 = vld [vmem:[%s13777_s1 + $0x1348] ss:$16 sps:$4 sm:$0xff]   ;;  %v9872_v9 = vld [vmem:[%s13777_s1 + $0x1364] ss:$16 sps:$4 sm:$0xff]  }
 0x230   :  { %6648 = vmatprep.subr.bf16.mxu0 %v9780_v10  ;;  %7304 = vmatprep.subr.bf16.mxu1 %v9783_v12  ;;  %v9875_v10 = vld [vmem:[%s13777_s1 + $0x136c] ss:$16 sps:$4 sm:$0xff]   ;;  %v9870_v12 = vld [vmem:[%s13777_s1 + $0x1360] ss:$16 sps:$4 sm:$0xff]  }
 0x233   :  { %6649 = vmatpush1.bf16.msra.mxu0 %v9778_v13  ;;  %7305 = vmatpush1.bf16.msra.mxu1 %v9781_v15  ;;  %v9873_v13 = vld [vmem:[%s13777_s1 + $0x1368] ss:$16 sps:$4 sm:$0xff]   ;;  %v9878_v15 = vld [vmem:[%s13777_s1 + $0x1384] ss:$16 sps:$4 sm:$0xff]  }
 0x234   :  { %6650 = vmatprep.subr.bf16.mxu0 %v9786_v11  ;;  %7306 = vmatprep.subr.bf16.mxu1 %v9789_v17  ;;  %v9881_v11 = vld [vmem:[%s13777_s1 + $0x138c] ss:$16 sps:$4 sm:$0xff]   ;;  %v9876_v17 = vld [vmem:[%s13777_s1 + $0x1380] ss:$16 sps:$4 sm:$0xff]  }
 0x237   :  { %6651 = vmatpush1.bf16.msra.mxu0 %v9784_v14  ;;  %7307 = vmatpush1.bf16.msra.mxu1 %v9787_v19  ;;  %v9879_v14 = vld [vmem:[%s13777_s1 + $0x1388] ss:$16 sps:$4 sm:$0xff]   ;;  %v9884_v19 = vld [vmem:[%s13777_s1 + $0x13a4] ss:$16 sps:$4 sm:$0xff]  }
 0x238   :  { %6652 = vmatprep.subr.bf16.mxu0 %v9792_v20  ;;  %7308 = vmatprep.subr.bf16.mxu1 %v9795_v16  ;;  %v9887_v20 = vld [vmem:[%s13777_s1 + $0x13ac] ss:$16 sps:$4 sm:$0xff]   ;;  %v9882_v16 = vld [vmem:[%s13777_s1 + $0x13a0] ss:$16 sps:$4 sm:$0xff]  }
 0x23b   :  { %6653 = vmatpush1.bf16.msra.mxu0 %v9790_v22  ;;  %7309 = vmatpush1.bf16.msra.mxu1 %v9793_v23  ;;  %v9885_v22 = vld [vmem:[%s13777_s1 + $0x13a8] ss:$16 sps:$4 sm:$0xff]   ;;  %v9890_v23 = vld [vmem:[%s13777_s1 + $0x13c4] ss:$16 sps:$4 sm:$0xff]  }
 0x23c   :  { %6654 = vmatprep.subr.bf16.mxu0 %v9798_v18  ;;  %7310 = vmatprep.subr.bf16.mxu1 %v9801_v25  ;;  %v9893_v18 = vld [vmem:[%s13777_s1 + $0x13cc] ss:$16 sps:$4 sm:$0xff]   ;;  %v9888_v25 = vld [vmem:[%s13777_s1 + $0x13c0] ss:$16 sps:$4 sm:$0xff]  }
 0x23f   :  { %6655 = vmatpush1.bf16.msra.mxu0 %v9796_v26  ;;  %7311 = vmatpush1.bf16.msra.mxu1 %v9799_v21  ;;  %v9891_v26 = vld [vmem:[%s13777_s1 + $0x13c8] ss:$16 sps:$4 sm:$0xff]   ;;  %v9896_v21 = vld [vmem:[%s13777_s1 + $0x13e4] ss:$16 sps:$4 sm:$0xff]  }
 0x240   :  { %6665 = vmatprep.subr.bf16.mxu0 %v9806_v28  ;;  %7321 = vmatprep.subr.bf16.mxu1 %v9809_v29  ;;  %v9899_v28 = vld [vmem:[%s13777_s1 + $0x13ec] ss:$16 sps:$4 sm:$0xff]   ;;  %v9894_v29 = vld [vmem:[%s13777_s1 + $0x13e0] ss:$16 sps:$4 sm:$0xff]  }
 0x242   :  { %6657 = vmatmul.mubr.bf16.vlgmr.msra.gmra.mrb[0].mxu0 %v7760_v24  ;;  %7313 = vmatmul.mubr.bf16.vlgmr.msra.gmra.mrb[0].mxu1 %v7760_v24  ;;  %v9897_v24 = vld [vmem:[%s13777_s1 + $0x13e8] ss:$16 sps:$4 sm:$0xff]  }
 0x243   :  { %6666 = vmatpush1.bf16.msra.mxu0 %v9804_v31  ;;  %7322 = vmatpush1.bf16.msra.mxu1 %v9807_v32  ;;  %v9904_v31 = vld [vmem:[%s13777_s1 + $0x1404] ss:$16 sps:$4 sm:$0xff]   ;;  %v9907_v32 = vld [vmem:[%s13777_s1 + $0x140c] ss:$16 sps:$4 sm:$0xff]  }
 0x244   :  { %6667 = vmatprep.subr.bf16.mxu0 %v9812_v33  ;;  %7323 = vmatprep.subr.bf16.mxu1 %v9815_v27  ;;  %v7762_v33 = vcombine.low %v12327_v30, %v12327_v30  ;;  %v12530_v27 = vld [vmem:[%s13778_s0 + $0x50] sm:$0xff] }
 0x245   :  { %6697 = vmatprep.mubr.bf16.mxu0 %v7763_v34  ;;  %7353 = vmatprep.mubr.bf16.mxu1 %v7763_v34  ;;  %v9902_v34 = vld [vmem:[%s13777_s1 + $0x1400] ss:$16 sps:$4 sm:$0xff]   ;;  %v9910_v30 = vld [vmem:[%s13777_s1 + $0x1424] ss:$16 sps:$4 sm:$0xff]  }
 0x247   :  { %6668 = vmatpush1.bf16.msra.mxu0 %v9810_v35  ;;  %7324 = vmatpush1.bf16.msra.mxu1 %v9813_v36  ;;  %v9905_v35 = vld [vmem:[%s13777_s1 + $0x1408] ss:$16 sps:$4 sm:$0xff]   ;;  %v9913_v36 = vld [vmem:[%s13777_s1 + $0x142c] ss:$16 sps:$4 sm:$0xff]  }
 0x248   :  { %6669 = vmatprep.subr.bf16.mxu0 %v9818_v37  ;;  %7325 = vmatprep.subr.bf16.mxu1 %v9821_v38  ;;  %v7765_v37 = vcombine.high %v12530_v27, %v12530_v27  ;;  %v9908_v38 = vld [vmem:[%s13777_s1 + $0x1420] ss:$16 sps:$4 sm:$0xff]  }
 0x24b   :  { %6670 = vmatpush1.bf16.msra.mxu0 %v9816_v39  ;;  %7326 = vmatpush1.bf16.msra.mxu1 %v9819_v40  ;;  %v9911_v39 = vld [vmem:[%s13777_s1 + $0x1428] ss:$16 sps:$4 sm:$0xff]   ;;  %v9916_v40 = vld [vmem:[%s13777_s1 + $0x1444] ss:$16 sps:$4 sm:$0xff]  }
 0x24c   :  { %6671 = vmatprep.subr.bf16.mxu0 %v9824_v41  ;;  %7327 = vmatprep.subr.bf16.mxu1 %v9827_v42  ;;  %v9919_v41 = vld [vmem:[%s13777_s1 + $0x144c] ss:$16 sps:$4 sm:$0xff]   ;;  %v9914_v42 = vld [vmem:[%s13777_s1 + $0x1440] ss:$16 sps:$4 sm:$0xff]  }
 0x24f   :  { %6672 = vmatpush1.bf16.msra.mxu0 %v9822_v43  ;;  %7328 = vmatpush1.bf16.msra.mxu1 %v9825_v44  ;;  %v9917_v43 = vld [vmem:[%s13777_s1 + $0x1448] ss:$16 sps:$4 sm:$0xff]   ;;  %v9922_v44 = vld [vmem:[%s13777_s1 + $0x1464] ss:$16 sps:$4 sm:$0xff]  }
 0x250   :  { %6673 = vmatprep.subr.bf16.mxu0 %v9830_v45  ;;  %7329 = vmatprep.subr.bf16.mxu1 %v9833_v46  ;;  %v9925_v45 = vld [vmem:[%s13777_s1 + $0x146c] ss:$16 sps:$4 sm:$0xff]   ;;  %v9920_v46 = vld [vmem:[%s13777_s1 + $0x1460] ss:$16 sps:$4 sm:$0xff]  }
 0x253   :  { %6674 = vmatpush1.bf16.msra.mxu0 %v9828_v47  ;;  %7330 = vmatpush1.bf16.msra.mxu1 %v9831_v48  ;;  %v9923_v47 = vld [vmem:[%s13777_s1 + $0x1468] ss:$16 sps:$4 sm:$0xff]   ;;  %v9928_v48 = vld [vmem:[%s13777_s1 + $0x1484] ss:$16 sps:$4 sm:$0xff]  }
 0x254   :  { %6675 = vmatprep.subr.bf16.mxu0 %v9836_v49  ;;  %7331 = vmatprep.subr.bf16.mxu1 %v9839_v50  ;;  %v9931_v49 = vld [vmem:[%s13777_s1 + $0x148c] ss:$16 sps:$4 sm:$0xff]   ;;  %v9926_v50 = vld [vmem:[%s13777_s1 + $0x1480] ss:$16 sps:$4 sm:$0xff]  }
 0x257   :  { %6676 = vmatpush1.bf16.msra.mxu0 %v9834_v51  ;;  %7332 = vmatpush1.bf16.msra.mxu1 %v9837_v52  ;;  %v9929_v51 = vld [vmem:[%s13777_s1 + $0x1488] ss:$16 sps:$4 sm:$0xff]   ;;  %v9934_v52 = vld [vmem:[%s13777_s1 + $0x14a4] ss:$16 sps:$4 sm:$0xff]  }
 0x258   :  { %6677 = vmatprep.subr.bf16.mxu0 %v9842_v53  ;;  %7333 = vmatprep.subr.bf16.mxu1 %v9845_v54  ;;  %v9937_v53 = vld [vmem:[%s13777_s1 + $0x14ac] ss:$16 sps:$4 sm:$0xff]   ;;  %v9932_v54 = vld [vmem:[%s13777_s1 + $0x14a0] ss:$16 sps:$4 sm:$0xff]  }
 0x25b   :  { %6678 = vmatpush1.bf16.msra.mxu0 %v9840_v55  ;;  %7334 = vmatpush1.bf16.msra.mxu1 %v9843_v56  ;;  %v9935_v55 = vld [vmem:[%s13777_s1 + $0x14a8] ss:$16 sps:$4 sm:$0xff]   ;;  %v9940_v56 = vld [vmem:[%s13777_s1 + $0x14c4] ss:$16 sps:$4 sm:$0xff]  }
 0x25c   :  { %6679 = vmatprep.subr.bf16.mxu0 %v9848_v57  ;;  %7335 = vmatprep.subr.bf16.mxu1 %v9851_v58  ;;  %v9943_v57 = vld [vmem:[%s13777_s1 + $0x14cc] ss:$16 sps:$4 sm:$0xff]   ;;  %v9938_v58 = vld [vmem:[%s13777_s1 + $0x14c0] ss:$16 sps:$4 sm:$0xff]  }
 0x25f   :  { %6680 = vmatpush1.bf16.msra.mxu0 %v9846_v59  ;;  %7336 = vmatpush1.bf16.msra.mxu1 %v9849_v60  ;;  %v9941_v59 = vld [vmem:[%s13777_s1 + $0x14c8] ss:$16 sps:$4 sm:$0xff]   ;;  %v9946_v60 = vld [vmem:[%s13777_s1 + $0x14e4] ss:$16 sps:$4 sm:$0xff]  }
 0x260   :  { %6681 = vmatprep.subr.bf16.mxu0 %v9854_v61  ;;  %7337 = vmatprep.subr.bf16.mxu1 %v9857_v62  ;;  %v9949_v61 = vld [vmem:[%s13777_s1 + $0x14ec] ss:$16 sps:$4 sm:$0xff]   ;;  %v9944_v62 = vld [vmem:[%s13777_s1 + $0x14e0] ss:$16 sps:$4 sm:$0xff]  }
 0x263   :  { %6682 = vmatpush1.bf16.msra.mxu0 %v9852_v63  ;;  %7338 = vmatpush1.bf16.msra.mxu1 %v9855_v0  ;;  %v9947_v63 = vld [vmem:[%s13777_s1 + $0x14e8] ss:$16 sps:$4 sm:$0xff]   ;;  %v9952_v0 = vld [vmem:[%s13777_s1 + $0x1504] ss:$16 sps:$4 sm:$0xff]  }
 0x264   :  { %6683 = vmatprep.subr.bf16.mxu0 %v9860_v1  ;;  %7339 = vmatprep.subr.bf16.mxu1 %v9863_v2  ;;  %v9955_v1 = vld [vmem:[%s13777_s1 + $0x150c] ss:$16 sps:$4 sm:$0xff]   ;;  %v9950_v2 = vld [vmem:[%s13777_s1 + $0x1500] ss:$16 sps:$4 sm:$0xff]  }
 0x267   :  { %6684 = vmatpush1.bf16.msra.mxu0 %v9858_v3  ;;  %7340 = vmatpush1.bf16.msra.mxu1 %v9861_v4  ;;  %v9953_v3 = vld [vmem:[%s13777_s1 + $0x1508] ss:$16 sps:$4 sm:$0xff]   ;;  %v9958_v4 = vld [vmem:[%s13777_s1 + $0x1524] ss:$16 sps:$4 sm:$0xff]  }
 0x268   :  { %6685 = vmatprep.subr.bf16.mxu0 %v9866_v5  ;;  %7341 = vmatprep.subr.bf16.mxu1 %v9869_v6  ;;  %v9961_v5 = vld [vmem:[%s13777_s1 + $0x152c] ss:$16 sps:$4 sm:$0xff]   ;;  %v9956_v6 = vld [vmem:[%s13777_s1 + $0x1520] ss:$16 sps:$4 sm:$0xff]  }
 0x26b   :  { %6686 = vmatpush1.bf16.msra.mxu0 %v9864_v7  ;;  %7342 = vmatpush1.bf16.msra.mxu1 %v9867_v8  ;;  %v9959_v7 = vld [vmem:[%s13777_s1 + $0x1528] ss:$16 sps:$4 sm:$0xff]   ;;  %v9964_v8 = vld [vmem:[%s13777_s1 + $0x1544] ss:$16 sps:$4 sm:$0xff]  }
 0x26c   :  { %6687 = vmatprep.subr.bf16.mxu0 %v9872_v9  ;;  %7343 = vmatprep.subr.bf16.mxu1 %v9875_v10  ;;  %v9967_v9 = vld [vmem:[%s13777_s1 + $0x154c] ss:$16 sps:$4 sm:$0xff]   ;;  %v9962_v10 = vld [vmem:[%s13777_s1 + $0x1540] ss:$16 sps:$4 sm:$0xff]  }
 0x26f   :  { %6688 = vmatpush1.bf16.msra.mxu0 %v9870_v12  ;;  %7344 = vmatpush1.bf16.msra.mxu1 %v9873_v13  ;;  %v9965_v12 = vld [vmem:[%s13777_s1 + $0x1548] ss:$16 sps:$4 sm:$0xff]   ;;  %v9970_v13 = vld [vmem:[%s13777_s1 + $0x1564] ss:$16 sps:$4 sm:$0xff]  }
 0x270   :  { %6689 = vmatprep.subr.bf16.mxu0 %v9878_v15  ;;  %7345 = vmatprep.subr.bf16.mxu1 %v9881_v11  ;;  %v9973_v15 = vld [vmem:[%s13777_s1 + $0x156c] ss:$16 sps:$4 sm:$0xff]   ;;  %v9968_v11 = vld [vmem:[%s13777_s1 + $0x1560] ss:$16 sps:$4 sm:$0xff]  }
 0x273   :  { %6690 = vmatpush1.bf16.msra.mxu0 %v9876_v17  ;;  %7346 = vmatpush1.bf16.msra.mxu1 %v9879_v14  ;;  %v9971_v17 = vld [vmem:[%s13777_s1 + $0x1568] ss:$16 sps:$4 sm:$0xff]   ;;  %v9976_v14 = vld [vmem:[%s13777_s1 + $0x1584] ss:$16 sps:$4 sm:$0xff]  }
 0x274   :  { %6691 = vmatprep.subr.bf16.mxu0 %v9884_v19  ;;  %7347 = vmatprep.subr.bf16.mxu1 %v9887_v20  ;;  %v9979_v19 = vld [vmem:[%s13777_s1 + $0x158c] ss:$16 sps:$4 sm:$0xff]   ;;  %v9974_v20 = vld [vmem:[%s13777_s1 + $0x1580] ss:$16 sps:$4 sm:$0xff]  }
 0x277   :  { %6692 = vmatpush1.bf16.msra.mxu0 %v9882_v16  ;;  %7348 = vmatpush1.bf16.msra.mxu1 %v9885_v22  ;;  %v9977_v16 = vld [vmem:[%s13777_s1 + $0x1588] ss:$16 sps:$4 sm:$0xff]   ;;  %v9982_v22 = vld [vmem:[%s13777_s1 + $0x15a4] ss:$16 sps:$4 sm:$0xff]  }
 0x278   :  { %6693 = vmatprep.subr.bf16.mxu0 %v9890_v23  ;;  %7349 = vmatprep.subr.bf16.mxu1 %v9893_v18  ;;  %v9985_v23 = vld [vmem:[%s13777_s1 + $0x15ac] ss:$16 sps:$4 sm:$0xff]   ;;  %v9980_v18 = vld [vmem:[%s13777_s1 + $0x15a0] ss:$16 sps:$4 sm:$0xff]  }
 0x27b   :  { %6694 = vmatpush1.bf16.msra.mxu0 %v9888_v25  ;;  %7350 = vmatpush1.bf16.msra.mxu1 %v9891_v26  ;;  %v9983_v25 = vld [vmem:[%s13777_s1 + $0x15a8] ss:$16 sps:$4 sm:$0xff]   ;;  %v9988_v26 = vld [vmem:[%s13777_s1 + $0x15c4] ss:$16 sps:$4 sm:$0xff]  }
 0x27c   :  { %6695 = vmatprep.subr.bf16.mxu0 %v9896_v21  ;;  %7351 = vmatprep.subr.bf16.mxu1 %v9899_v28  ;;  %v9991_v21 = vld [vmem:[%s13777_s1 + $0x15cc] ss:$16 sps:$4 sm:$0xff]   ;;  %v9986_v28 = vld [vmem:[%s13777_s1 + $0x15c0] ss:$16 sps:$4 sm:$0xff]  }
 0x27f   :  { %6696 = vmatpush1.bf16.msra.mxu0 %v9894_v29  ;;  %7352 = vmatpush1.bf16.msra.mxu1 %v9897_v24  ;;  %v9989_v29 = vld [vmem:[%s13777_s1 + $0x15c8] ss:$16 sps:$4 sm:$0xff]   ;;  %v9994_v24 = vld [vmem:[%s13777_s1 + $0x15e4] ss:$16 sps:$4 sm:$0xff]  }
 0x280   :  { %6706 = vmatprep.subr.bf16.mxu0 %v9904_v31  ;;  %7362 = vmatprep.subr.bf16.mxu1 %v9907_v32  ;;  %v9997_v31 = vld [vmem:[%s13777_s1 + $0x15ec] ss:$16 sps:$4 sm:$0xff]   ;;  %v9992_v32 = vld [vmem:[%s13777_s1 + $0x15e0] ss:$16 sps:$4 sm:$0xff]  }
 0x282   :  { %6698 = vmatmul.mubr.bf16.vlgmr.msra.gmra.mrb[0].mxu0 %v7762_v33  ;;  %7354 = vmatmul.mubr.bf16.vlgmr.msra.gmra.mrb[0].mxu1 %v7762_v33  ;;  %v9995_v33 = vld [vmem:[%s13777_s1 + $0x15e8] ss:$16 sps:$4 sm:$0xff]  }
 0x283   :  { %6707 = vmatpush1.bf16.msra.mxu0 %v9902_v34  ;;  %7363 = vmatpush1.bf16.msra.mxu1 %v9905_v35  ;;  %v10002_v34 = vld [vmem:[%s13777_s1 + $0x1604] ss:$16 sps:$4 sm:$0xff]   ;;  %v10005_v35 = vld [vmem:[%s13777_s1 + $0x160c] ss:$16 sps:$4 sm:$0xff]  }
 0x284   :  { %6708 = vmatprep.subr.bf16.mxu0 %v9910_v30  ;;  %7364 = vmatprep.subr.bf16.mxu1 %v9913_v36  ;;  %v7764_v30 = vcombine.low %v12530_v27, %v12530_v27  ;;  %v12731_v36 = vld [vmem:[%s13778_s0 + $0x58] sm:$0xff]  ;;  %v10008_v27 = vld [vmem:[%s13777_s1 + $0x1624] ss:$16 sps:$4 sm:$0xff]  }
 0x285   :  { %6738 = vmatprep.mubr.bf16.mxu0 %v7765_v37  ;;  %7394 = vmatprep.mubr.bf16.mxu1 %v7765_v37  ;;  %v10000_v37 = vld [vmem:[%s13777_s1 + $0x1600] ss:$16 sps:$4 sm:$0xff]  }
 0x287   :  { %6709 = vmatpush1.bf16.msra.mxu0 %v9908_v38  ;;  %7365 = vmatpush1.bf16.msra.mxu1 %v9911_v39  ;;  %v10003_v38 = vld [vmem:[%s13777_s1 + $0x1608] ss:$16 sps:$4 sm:$0xff]   ;;  %v10011_v39 = vld [vmem:[%s13777_s1 + $0x162c] ss:$16 sps:$4 sm:$0xff]  }
 0x288   :  { %6710 = vmatprep.subr.bf16.mxu0 %v9916_v40  ;;  %7366 = vmatprep.subr.bf16.mxu1 %v9919_v41  ;;  %v7767_v40 = vcombine.high %v12731_v36, %v12731_v36  ;;  %v10006_v41 = vld [vmem:[%s13777_s1 + $0x1620] ss:$16 sps:$4 sm:$0xff]  }
 0x28b   :  { %6711 = vmatpush1.bf16.msra.mxu0 %v9914_v42  ;;  %7367 = vmatpush1.bf16.msra.mxu1 %v9917_v43  ;;  %v10009_v42 = vld [vmem:[%s13777_s1 + $0x1628] ss:$16 sps:$4 sm:$0xff]   ;;  %v10014_v43 = vld [vmem:[%s13777_s1 + $0x1644] ss:$16 sps:$4 sm:$0xff]  }
 0x28c   :  { %6712 = vmatprep.subr.bf16.mxu0 %v9922_v44  ;;  %7368 = vmatprep.subr.bf16.mxu1 %v9925_v45  ;;  %v10017_v44 = vld [vmem:[%s13777_s1 + $0x164c] ss:$16 sps:$4 sm:$0xff]   ;;  %v10012_v45 = vld [vmem:[%s13777_s1 + $0x1640] ss:$16 sps:$4 sm:$0xff]  }
 0x28f   :  { %6713 = vmatpush1.bf16.msra.mxu0 %v9920_v46  ;;  %7369 = vmatpush1.bf16.msra.mxu1 %v9923_v47  ;;  %v10015_v46 = vld [vmem:[%s13777_s1 + $0x1648] ss:$16 sps:$4 sm:$0xff]   ;;  %v10020_v47 = vld [vmem:[%s13777_s1 + $0x1664] ss:$16 sps:$4 sm:$0xff]  }
 0x290   :  { %6714 = vmatprep.subr.bf16.mxu0 %v9928_v48  ;;  %7370 = vmatprep.subr.bf16.mxu1 %v9931_v49  ;;  %v10023_v48 = vld [vmem:[%s13777_s1 + $0x166c] ss:$16 sps:$4 sm:$0xff]   ;;  %v10018_v49 = vld [vmem:[%s13777_s1 + $0x1660] ss:$16 sps:$4 sm:$0xff]  }
 0x293   :  { %6715 = vmatpush1.bf16.msra.mxu0 %v9926_v50  ;;  %7371 = vmatpush1.bf16.msra.mxu1 %v9929_v51  ;;  %v10021_v50 = vld [vmem:[%s13777_s1 + $0x1668] ss:$16 sps:$4 sm:$0xff]   ;;  %v10026_v51 = vld [vmem:[%s13777_s1 + $0x1684] ss:$16 sps:$4 sm:$0xff]  }
 0x294   :  { %6716 = vmatprep.subr.bf16.mxu0 %v9934_v52  ;;  %7372 = vmatprep.subr.bf16.mxu1 %v9937_v53  ;;  %v10029_v52 = vld [vmem:[%s13777_s1 + $0x168c] ss:$16 sps:$4 sm:$0xff]   ;;  %v10024_v53 = vld [vmem:[%s13777_s1 + $0x1680] ss:$16 sps:$4 sm:$0xff]  }
 0x297   :  { %6717 = vmatpush1.bf16.msra.mxu0 %v9932_v54  ;;  %7373 = vmatpush1.bf16.msra.mxu1 %v9935_v55  ;;  %v10027_v54 = vld [vmem:[%s13777_s1 + $0x1688] ss:$16 sps:$4 sm:$0xff]   ;;  %v10032_v55 = vld [vmem:[%s13777_s1 + $0x16a4] ss:$16 sps:$4 sm:$0xff]  }
 0x298   :  { %6718 = vmatprep.subr.bf16.mxu0 %v9940_v56  ;;  %7374 = vmatprep.subr.bf16.mxu1 %v9943_v57  ;;  %v10035_v56 = vld [vmem:[%s13777_s1 + $0x16ac] ss:$16 sps:$4 sm:$0xff]   ;;  %v10030_v57 = vld [vmem:[%s13777_s1 + $0x16a0] ss:$16 sps:$4 sm:$0xff]  }
 0x29b   :  { %6719 = vmatpush1.bf16.msra.mxu0 %v9938_v58  ;;  %7375 = vmatpush1.bf16.msra.mxu1 %v9941_v59  ;;  %v10033_v58 = vld [vmem:[%s13777_s1 + $0x16a8] ss:$16 sps:$4 sm:$0xff]   ;;  %v10038_v59 = vld [vmem:[%s13777_s1 + $0x16c4] ss:$16 sps:$4 sm:$0xff]  }
 0x29c   :  { %6720 = vmatprep.subr.bf16.mxu0 %v9946_v60  ;;  %7376 = vmatprep.subr.bf16.mxu1 %v9949_v61  ;;  %v10041_v60 = vld [vmem:[%s13777_s1 + $0x16cc] ss:$16 sps:$4 sm:$0xff]   ;;  %v10036_v61 = vld [vmem:[%s13777_s1 + $0x16c0] ss:$16 sps:$4 sm:$0xff]  }
 0x29f   :  { %6721 = vmatpush1.bf16.msra.mxu0 %v9944_v62  ;;  %7377 = vmatpush1.bf16.msra.mxu1 %v9947_v63  ;;  %v10039_v62 = vld [vmem:[%s13777_s1 + $0x16c8] ss:$16 sps:$4 sm:$0xff]   ;;  %v10044_v63 = vld [vmem:[%s13777_s1 + $0x16e4] ss:$16 sps:$4 sm:$0xff]  }
 0x2a0   :  { %6722 = vmatprep.subr.bf16.mxu0 %v9952_v0  ;;  %7378 = vmatprep.subr.bf16.mxu1 %v9955_v1  ;;  %v10047_v0 = vld [vmem:[%s13777_s1 + $0x16ec] ss:$16 sps:$4 sm:$0xff]   ;;  %v10042_v1 = vld [vmem:[%s13777_s1 + $0x16e0] ss:$16 sps:$4 sm:$0xff]  }
 0x2a3   :  { %6723 = vmatpush1.bf16.msra.mxu0 %v9950_v2  ;;  %7379 = vmatpush1.bf16.msra.mxu1 %v9953_v3  ;;  %v10045_v2 = vld [vmem:[%s13777_s1 + $0x16e8] ss:$16 sps:$4 sm:$0xff]   ;;  %v10050_v3 = vld [vmem:[%s13777_s1 + $0x1704] ss:$16 sps:$4 sm:$0xff]  }
 0x2a4   :  { %6724 = vmatprep.subr.bf16.mxu0 %v9958_v4  ;;  %7380 = vmatprep.subr.bf16.mxu1 %v9961_v5  ;;  %v10053_v4 = vld [vmem:[%s13777_s1 + $0x170c] ss:$16 sps:$4 sm:$0xff]   ;;  %v10048_v5 = vld [vmem:[%s13777_s1 + $0x1700] ss:$16 sps:$4 sm:$0xff]  }
 0x2a7   :  { %6725 = vmatpush1.bf16.msra.mxu0 %v9956_v6  ;;  %7381 = vmatpush1.bf16.msra.mxu1 %v9959_v7  ;;  %v10051_v6 = vld [vmem:[%s13777_s1 + $0x1708] ss:$16 sps:$4 sm:$0xff]   ;;  %v10056_v7 = vld [vmem:[%s13777_s1 + $0x1724] ss:$16 sps:$4 sm:$0xff]  }
 0x2a8   :  { %6726 = vmatprep.subr.bf16.mxu0 %v9964_v8  ;;  %7382 = vmatprep.subr.bf16.mxu1 %v9967_v9  ;;  %v10059_v8 = vld [vmem:[%s13777_s1 + $0x172c] ss:$16 sps:$4 sm:$0xff]   ;;  %v10054_v9 = vld [vmem:[%s13777_s1 + $0x1720] ss:$16 sps:$4 sm:$0xff]  }
 0x2ab   :  { %6727 = vmatpush1.bf16.msra.mxu0 %v9962_v10  ;;  %7383 = vmatpush1.bf16.msra.mxu1 %v9965_v12  ;;  %v10057_v10 = vld [vmem:[%s13777_s1 + $0x1728] ss:$16 sps:$4 sm:$0xff]   ;;  %v10062_v12 = vld [vmem:[%s13777_s1 + $0x1744] ss:$16 sps:$4 sm:$0xff]  }
 0x2ac   :  { %6728 = vmatprep.subr.bf16.mxu0 %v9970_v13  ;;  %7384 = vmatprep.subr.bf16.mxu1 %v9973_v15  ;;  %v10065_v13 = vld [vmem:[%s13777_s1 + $0x174c] ss:$16 sps:$4 sm:$0xff]   ;;  %v10060_v15 = vld [vmem:[%s13777_s1 + $0x1740] ss:$16 sps:$4 sm:$0xff]  }
 0x2af   :  { %6729 = vmatpush1.bf16.msra.mxu0 %v9968_v11  ;;  %7385 = vmatpush1.bf16.msra.mxu1 %v9971_v17  ;;  %v10063_v11 = vld [vmem:[%s13777_s1 + $0x1748] ss:$16 sps:$4 sm:$0xff]   ;;  %v10068_v17 = vld [vmem:[%s13777_s1 + $0x1764] ss:$16 sps:$4 sm:$0xff]  }
 0x2b0   :  { %6730 = vmatprep.subr.bf16.mxu0 %v9976_v14  ;;  %7386 = vmatprep.subr.bf16.mxu1 %v9979_v19  ;;  %v10071_v14 = vld [vmem:[%s13777_s1 + $0x176c] ss:$16 sps:$4 sm:$0xff]   ;;  %v10066_v19 = vld [vmem:[%s13777_s1 + $0x1760] ss:$16 sps:$4 sm:$0xff]  }
 0x2b3   :  { %6731 = vmatpush1.bf16.msra.mxu0 %v9974_v20  ;;  %7387 = vmatpush1.bf16.msra.mxu1 %v9977_v16  ;;  %v10069_v20 = vld [vmem:[%s13777_s1 + $0x1768] ss:$16 sps:$4 sm:$0xff]   ;;  %v10074_v16 = vld [vmem:[%s13777_s1 + $0x1784] ss:$16 sps:$4 sm:$0xff]  }
 0x2b4   :  { %6732 = vmatprep.subr.bf16.mxu0 %v9982_v22  ;;  %7388 = vmatprep.subr.bf16.mxu1 %v9985_v23  ;;  %v10077_v22 = vld [vmem:[%s13777_s1 + $0x178c] ss:$16 sps:$4 sm:$0xff]   ;;  %v10072_v23 = vld [vmem:[%s13777_s1 + $0x1780] ss:$16 sps:$4 sm:$0xff]  }
 0x2b7   :  { %6733 = vmatpush1.bf16.msra.mxu0 %v9980_v18  ;;  %7389 = vmatpush1.bf16.msra.mxu1 %v9983_v25  ;;  %v10075_v18 = vld [vmem:[%s13777_s1 + $0x1788] ss:$16 sps:$4 sm:$0xff]   ;;  %v10080_v25 = vld [vmem:[%s13777_s1 + $0x17a4] ss:$16 sps:$4 sm:$0xff]  }
 0x2b8   :  { %6734 = vmatprep.subr.bf16.mxu0 %v9988_v26  ;;  %7390 = vmatprep.subr.bf16.mxu1 %v9991_v21  ;;  %v10083_v26 = vld [vmem:[%s13777_s1 + $0x17ac] ss:$16 sps:$4 sm:$0xff]   ;;  %v10078_v21 = vld [vmem:[%s13777_s1 + $0x17a0] ss:$16 sps:$4 sm:$0xff]  }
 0x2bb   :  { %6735 = vmatpush1.bf16.msra.mxu0 %v9986_v28  ;;  %7391 = vmatpush1.bf16.msra.mxu1 %v9989_v29  ;;  %v10081_v28 = vld [vmem:[%s13777_s1 + $0x17a8] ss:$16 sps:$4 sm:$0xff]   ;;  %v10086_v29 = vld [vmem:[%s13777_s1 + $0x17c4] ss:$16 sps:$4 sm:$0xff]  }
 0x2bc   :  { %6736 = vmatprep.subr.bf16.mxu0 %v9994_v24  ;;  %7392 = vmatprep.subr.bf16.mxu1 %v9997_v31  ;;  %v10089_v24 = vld [vmem:[%s13777_s1 + $0x17cc] ss:$16 sps:$4 sm:$0xff]   ;;  %v10084_v31 = vld [vmem:[%s13777_s1 + $0x17c0] ss:$16 sps:$4 sm:$0xff]  }
 0x2bf   :  { %6737 = vmatpush1.bf16.msra.mxu0 %v9992_v32  ;;  %7393 = vmatpush1.bf16.msra.mxu1 %v9995_v33  ;;  %v10087_v32 = vld [vmem:[%s13777_s1 + $0x17c8] ss:$16 sps:$4 sm:$0xff]   ;;  %v10092_v33 = vld [vmem:[%s13777_s1 + $0x17e4] ss:$16 sps:$4 sm:$0xff]  }
 0x2c0   :  { %6747 = vmatprep.subr.bf16.mxu0 %v10002_v34  ;;  %7403 = vmatprep.subr.bf16.mxu1 %v10005_v35  ;;  %v10095_v34 = vld [vmem:[%s13777_s1 + $0x17ec] ss:$16 sps:$4 sm:$0xff]   ;;  %v10090_v35 = vld [vmem:[%s13777_s1 + $0x17e0] ss:$16 sps:$4 sm:$0xff]  }
 0x2c2   :  { %6739 = vmatmul.mubr.bf16.vlgmr.msra.gmra.mrb[0].mxu0 %v7764_v30  ;;  %7395 = vmatmul.mubr.bf16.vlgmr.msra.gmra.mrb[0].mxu1 %v7764_v30  ;;  %v10093_v30 = vld [vmem:[%s13777_s1 + $0x17e8] ss:$16 sps:$4 sm:$0xff]  }
 0x2c3   :  { %6748 = vmatpush1.bf16.msra.mxu0 %v10000_v37  ;;  %7404 = vmatpush1.bf16.msra.mxu1 %v10003_v38  ;;  %v10100_v37 = vld [vmem:[%s13777_s1 + $0x1804] ss:$16 sps:$4 sm:$0xff]   ;;  %v10103_v38 = vld [vmem:[%s13777_s1 + $0x180c] ss:$16 sps:$4 sm:$0xff]  }
 0x2c4   :  { %6749 = vmatprep.subr.bf16.mxu0 %v10008_v27  ;;  %7405 = vmatprep.subr.bf16.mxu1 %v10011_v39  ;;  %v7766_v27 = vcombine.low %v12731_v36, %v12731_v36  ;;  %v12932_v39 = vld [vmem:[%s13778_s0 + $0x60] sm:$0xff] }
 0x2c5   :  { %6779 = vmatprep.mubr.bf16.mxu0 %v7767_v40  ;;  %7435 = vmatprep.mubr.bf16.mxu1 %v7767_v40  ;;  %v10098_v40 = vld [vmem:[%s13777_s1 + $0x1800] ss:$16 sps:$4 sm:$0xff]   ;;  %v10106_v36 = vld [vmem:[%s13777_s1 + $0x1824] ss:$16 sps:$4 sm:$0xff]  }
 0x2c7   :  { %6750 = vmatpush1.bf16.msra.mxu0 %v10006_v41  ;;  %7406 = vmatpush1.bf16.msra.mxu1 %v10009_v42  ;;  %v10101_v41 = vld [vmem:[%s13777_s1 + $0x1808] ss:$16 sps:$4 sm:$0xff]   ;;  %v10109_v42 = vld [vmem:[%s13777_s1 + $0x182c] ss:$16 sps:$4 sm:$0xff]  }
 0x2c8   :  { %6751 = vmatprep.subr.bf16.mxu0 %v10014_v43  ;;  %7407 = vmatprep.subr.bf16.mxu1 %v10017_v44  ;;  %v7769_v43 = vcombine.high %v12932_v39, %v12932_v39  ;;  %v10104_v44 = vld [vmem:[%s13777_s1 + $0x1820] ss:$16 sps:$4 sm:$0xff]  }
 0x2cb   :  { %6752 = vmatpush1.bf16.msra.mxu0 %v10012_v45  ;;  %7408 = vmatpush1.bf16.msra.mxu1 %v10015_v46  ;;  %v10107_v45 = vld [vmem:[%s13777_s1 + $0x1828] ss:$16 sps:$4 sm:$0xff]   ;;  %v10112_v46 = vld [vmem:[%s13777_s1 + $0x1844] ss:$16 sps:$4 sm:$0xff]  }
 0x2cc   :  { %6753 = vmatprep.subr.bf16.mxu0 %v10020_v47  ;;  %7409 = vmatprep.subr.bf16.mxu1 %v10023_v48  ;;  %v10115_v47 = vld [vmem:[%s13777_s1 + $0x184c] ss:$16 sps:$4 sm:$0xff]   ;;  %v10110_v48 = vld [vmem:[%s13777_s1 + $0x1840] ss:$16 sps:$4 sm:$0xff]  }
 0x2cf   :  { %6754 = vmatpush1.bf16.msra.mxu0 %v10018_v49  ;;  %7410 = vmatpush1.bf16.msra.mxu1 %v10021_v50  ;;  %v10113_v49 = vld [vmem:[%s13777_s1 + $0x1848] ss:$16 sps:$4 sm:$0xff]   ;;  %v10118_v50 = vld [vmem:[%s13777_s1 + $0x1864] ss:$16 sps:$4 sm:$0xff]  }
 0x2d0   :  { %6755 = vmatprep.subr.bf16.mxu0 %v10026_v51  ;;  %7411 = vmatprep.subr.bf16.mxu1 %v10029_v52  ;;  %v10121_v51 = vld [vmem:[%s13777_s1 + $0x186c] ss:$16 sps:$4 sm:$0xff]   ;;  %v10116_v52 = vld [vmem:[%s13777_s1 + $0x1860] ss:$16 sps:$4 sm:$0xff]  }
 0x2d3   :  { %6756 = vmatpush1.bf16.msra.mxu0 %v10024_v53  ;;  %7412 = vmatpush1.bf16.msra.mxu1 %v10027_v54  ;;  %v10119_v53 = vld [vmem:[%s13777_s1 + $0x1868] ss:$16 sps:$4 sm:$0xff]   ;;  %v10124_v54 = vld [vmem:[%s13777_s1 + $0x1884] ss:$16 sps:$4 sm:$0xff]  }
 0x2d4   :  { %6757 = vmatprep.subr.bf16.mxu0 %v10032_v55  ;;  %7413 = vmatprep.subr.bf16.mxu1 %v10035_v56  ;;  %v10127_v55 = vld [vmem:[%s13777_s1 + $0x188c] ss:$16 sps:$4 sm:$0xff]   ;;  %v10122_v56 = vld [vmem:[%s13777_s1 + $0x1880] ss:$16 sps:$4 sm:$0xff]  }
 0x2d7   :  { %6758 = vmatpush1.bf16.msra.mxu0 %v10030_v57  ;;  %7414 = vmatpush1.bf16.msra.mxu1 %v10033_v58  ;;  %v10125_v57 = vld [vmem:[%s13777_s1 + $0x1888] ss:$16 sps:$4 sm:$0xff]   ;;  %v10130_v58 = vld [vmem:[%s13777_s1 + $0x18a4] ss:$16 sps:$4 sm:$0xff]  }
 0x2d8   :  { %6759 = vmatprep.subr.bf16.mxu0 %v10038_v59  ;;  %7415 = vmatprep.subr.bf16.mxu1 %v10041_v60  ;;  %v10133_v59 = vld [vmem:[%s13777_s1 + $0x18ac] ss:$16 sps:$4 sm:$0xff]   ;;  %v10128_v60 = vld [vmem:[%s13777_s1 + $0x18a0] ss:$16 sps:$4 sm:$0xff]  }
 0x2db   :  { %6760 = vmatpush1.bf16.msra.mxu0 %v10036_v61  ;;  %7416 = vmatpush1.bf16.msra.mxu1 %v10039_v62  ;;  %v10131_v61 = vld [vmem:[%s13777_s1 + $0x18a8] ss:$16 sps:$4 sm:$0xff]   ;;  %v10136_v62 = vld [vmem:[%s13777_s1 + $0x18c4] ss:$16 sps:$4 sm:$0xff]  }
 0x2dc   :  { %6761 = vmatprep.subr.bf16.mxu0 %v10044_v63  ;;  %7417 = vmatprep.subr.bf16.mxu1 %v10047_v0  ;;  %v10139_v63 = vld [vmem:[%s13777_s1 + $0x18cc] ss:$16 sps:$4 sm:$0xff]   ;;  %v10134_v0 = vld [vmem:[%s13777_s1 + $0x18c0] ss:$16 sps:$4 sm:$0xff]  }
 0x2df   :  { %6762 = vmatpush1.bf16.msra.mxu0 %v10042_v1  ;;  %7418 = vmatpush1.bf16.msra.mxu1 %v10045_v2  ;;  %v10137_v1 = vld [vmem:[%s13777_s1 + $0x18c8] ss:$16 sps:$4 sm:$0xff]   ;;  %v10142_v2 = vld [vmem:[%s13777_s1 + $0x18e4] ss:$16 sps:$4 sm:$0xff]  }
 0x2e0   :  { %6763 = vmatprep.subr.bf16.mxu0 %v10050_v3  ;;  %7419 = vmatprep.subr.bf16.mxu1 %v10053_v4  ;;  %v10145_v3 = vld [vmem:[%s13777_s1 + $0x18ec] ss:$16 sps:$4 sm:$0xff]   ;;  %v10140_v4 = vld [vmem:[%s13777_s1 + $0x18e0] ss:$16 sps:$4 sm:$0xff]  }
 0x2e3   :  { %6764 = vmatpush1.bf16.msra.mxu0 %v10048_v5  ;;  %7420 = vmatpush1.bf16.msra.mxu1 %v10051_v6  ;;  %v10143_v5 = vld [vmem:[%s13777_s1 + $0x18e8] ss:$16 sps:$4 sm:$0xff]   ;;  %v10148_v6 = vld [vmem:[%s13777_s1 + $0x1904] ss:$16 sps:$4 sm:$0xff]  }
 0x2e4   :  { %6765 = vmatprep.subr.bf16.mxu0 %v10056_v7  ;;  %7421 = vmatprep.subr.bf16.mxu1 %v10059_v8  ;;  %v10151_v7 = vld [vmem:[%s13777_s1 + $0x190c] ss:$16 sps:$4 sm:$0xff]   ;;  %v10146_v8 = vld [vmem:[%s13777_s1 + $0x1900] ss:$16 sps:$4 sm:$0xff]  }
 0x2e7   :  { %6766 = vmatpush1.bf16.msra.mxu0 %v10054_v9  ;;  %7422 = vmatpush1.bf16.msra.mxu1 %v10057_v10  ;;  %v10149_v9 = vld [vmem:[%s13777_s1 + $0x1908] ss:$16 sps:$4 sm:$0xff]   ;;  %v10154_v10 = vld [vmem:[%s13777_s1 + $0x1924] ss:$16 sps:$4 sm:$0xff]  }
 0x2e8   :  { %6767 = vmatprep.subr.bf16.mxu0 %v10062_v12  ;;  %7423 = vmatprep.subr.bf16.mxu1 %v10065_v13  ;;  %v10157_v12 = vld [vmem:[%s13777_s1 + $0x192c] ss:$16 sps:$4 sm:$0xff]   ;;  %v10152_v13 = vld [vmem:[%s13777_s1 + $0x1920] ss:$16 sps:$4 sm:$0xff]  }
 0x2eb   :  { %6768 = vmatpush1.bf16.msra.mxu0 %v10060_v15  ;;  %7424 = vmatpush1.bf16.msra.mxu1 %v10063_v11  ;;  %v10155_v15 = vld [vmem:[%s13777_s1 + $0x1928] ss:$16 sps:$4 sm:$0xff]   ;;  %v10160_v11 = vld [vmem:[%s13777_s1 + $0x1944] ss:$16 sps:$4 sm:$0xff]  }
 0x2ec   :  { %6769 = vmatprep.subr.bf16.mxu0 %v10068_v17  ;;  %7425 = vmatprep.subr.bf16.mxu1 %v10071_v14  ;;  %v10163_v17 = vld [vmem:[%s13777_s1 + $0x194c] ss:$16 sps:$4 sm:$0xff]   ;;  %v10158_v14 = vld [vmem:[%s13777_s1 + $0x1940] ss:$16 sps:$4 sm:$0xff]  }
 0x2ef   :  { %6770 = vmatpush1.bf16.msra.mxu0 %v10066_v19  ;;  %7426 = vmatpush1.bf16.msra.mxu1 %v10069_v20  ;;  %v10161_v19 = vld [vmem:[%s13777_s1 + $0x1948] ss:$16 sps:$4 sm:$0xff]   ;;  %v10166_v20 = vld [vmem:[%s13777_s1 + $0x1964] ss:$16 sps:$4 sm:$0xff]  }
 0x2f0   :  { %6771 = vmatprep.subr.bf16.mxu0 %v10074_v16  ;;  %7427 = vmatprep.subr.bf16.mxu1 %v10077_v22  ;;  %v10169_v16 = vld [vmem:[%s13777_s1 + $0x196c] ss:$16 sps:$4 sm:$0xff]   ;;  %v10164_v22 = vld [vmem:[%s13777_s1 + $0x1960] ss:$16 sps:$4 sm:$0xff]  }
 0x2f3   :  { %6772 = vmatpush1.bf16.msra.mxu0 %v10072_v23  ;;  %7428 = vmatpush1.bf16.msra.mxu1 %v10075_v18  ;;  %v10167_v23 = vld [vmem:[%s13777_s1 + $0x1968] ss:$16 sps:$4 sm:$0xff]   ;;  %v10172_v18 = vld [vmem:[%s13777_s1 + $0x1984] ss:$16 sps:$4 sm:$0xff]  }
 0x2f4   :  { %6773 = vmatprep.subr.bf16.mxu0 %v10080_v25  ;;  %7429 = vmatprep.subr.bf16.mxu1 %v10083_v26  ;;  %v10175_v25 = vld [vmem:[%s13777_s1 + $0x198c] ss:$16 sps:$4 sm:$0xff]   ;;  %v10170_v26 = vld [vmem:[%s13777_s1 + $0x1980] ss:$16 sps:$4 sm:$0xff]  }
 0x2f7   :  { %6774 = vmatpush1.bf16.msra.mxu0 %v10078_v21  ;;  %7430 = vmatpush1.bf16.msra.mxu1 %v10081_v28  ;;  %v10173_v21 = vld [vmem:[%s13777_s1 + $0x1988] ss:$16 sps:$4 sm:$0xff]   ;;  %v10178_v28 = vld [vmem:[%s13777_s1 + $0x19a4] ss:$16 sps:$4 sm:$0xff]  }
 0x2f8   :  { %6775 = vmatprep.subr.bf16.mxu0 %v10086_v29  ;;  %7431 = vmatprep.subr.bf16.mxu1 %v10089_v24  ;;  %v10181_v29 = vld [vmem:[%s13777_s1 + $0x19ac] ss:$16 sps:$4 sm:$0xff]   ;;  %v10176_v24 = vld [vmem:[%s13777_s1 + $0x19a0] ss:$16 sps:$4 sm:$0xff]  }
 0x2fb   :  { %6776 = vmatpush1.bf16.msra.mxu0 %v10084_v31  ;;  %7432 = vmatpush1.bf16.msra.mxu1 %v10087_v32  ;;  %v10179_v31 = vld [vmem:[%s13777_s1 + $0x19a8] ss:$16 sps:$4 sm:$0xff]   ;;  %v10184_v32 = vld [vmem:[%s13777_s1 + $0x19c4] ss:$16 sps:$4 sm:$0xff]  }
 0x2fc   :  { %6777 = vmatprep.subr.bf16.mxu0 %v10092_v33  ;;  %7433 = vmatprep.subr.bf16.mxu1 %v10095_v34  ;;  %v10187_v33 = vld [vmem:[%s13777_s1 + $0x19cc] ss:$16 sps:$4 sm:$0xff]   ;;  %v10182_v34 = vld [vmem:[%s13777_s1 + $0x19c0] ss:$16 sps:$4 sm:$0xff]  }
 0x2ff   :  { %6778 = vmatpush1.bf16.msra.mxu0 %v10090_v35  ;;  %7434 = vmatpush1.bf16.msra.mxu1 %v10093_v30  ;;  %v10185_v35 = vld [vmem:[%s13777_s1 + $0x19c8] ss:$16 sps:$4 sm:$0xff]   ;;  %v10190_v30 = vld [vmem:[%s13777_s1 + $0x19e4] ss:$16 sps:$4 sm:$0xff]  }
 0x300   :  { %6788 = vmatprep.subr.bf16.mxu0 %v10100_v37  ;;  %7444 = vmatprep.subr.bf16.mxu1 %v10103_v38  ;;  %v10193_v37 = vld [vmem:[%s13777_s1 + $0x19ec] ss:$16 sps:$4 sm:$0xff]   ;;  %v10188_v38 = vld [vmem:[%s13777_s1 + $0x19e0] ss:$16 sps:$4 sm:$0xff]  }
 0x302   :  { %6780 = vmatmul.mubr.bf16.vlgmr.msra.gmra.mrb[0].mxu0 %v7766_v27  ;;  %7436 = vmatmul.mubr.bf16.vlgmr.msra.gmra.mrb[0].mxu1 %v7766_v27  ;;  %v10191_v27 = vld [vmem:[%s13777_s1 + $0x19e8] ss:$16 sps:$4 sm:$0xff]  }
 0x303   :  { %6789 = vmatpush1.bf16.msra.mxu0 %v10098_v40  ;;  %7445 = vmatpush1.bf16.msra.mxu1 %v10101_v41  ;;  %v10198_v40 = vld [vmem:[%s13777_s1 + $0x1a04] ss:$16 sps:$4 sm:$0xff]   ;;  %v10201_v41 = vld [vmem:[%s13777_s1 + $0x1a0c] ss:$16 sps:$4 sm:$0xff]  }
 0x304   :  { %6790 = vmatprep.subr.bf16.mxu0 %v10106_v36  ;;  %7446 = vmatprep.subr.bf16.mxu1 %v10109_v42  ;;  %v7768_v36 = vcombine.low %v12932_v39, %v12932_v39  ;;  %v13133_v42 = vld [vmem:[%s13778_s0 + $0x68] sm:$0xff]  ;;  %v10204_v39 = vld [vmem:[%s13777_s1 + $0x1a24] ss:$16 sps:$4 sm:$0xff]  }
 0x305   :  { %6820 = vmatprep.mubr.bf16.mxu0 %v7769_v43  ;;  %7476 = vmatprep.mubr.bf16.mxu1 %v7769_v43  ;;  %v10196_v43 = vld [vmem:[%s13777_s1 + $0x1a00] ss:$16 sps:$4 sm:$0xff]  }
 0x307   :  { %6791 = vmatpush1.bf16.msra.mxu0 %v10104_v44  ;;  %7447 = vmatpush1.bf16.msra.mxu1 %v10107_v45  ;;  %v10199_v44 = vld [vmem:[%s13777_s1 + $0x1a08] ss:$16 sps:$4 sm:$0xff]   ;;  %v10207_v45 = vld [vmem:[%s13777_s1 + $0x1a2c] ss:$16 sps:$4 sm:$0xff]  }
 0x308   :  { %6792 = vmatprep.subr.bf16.mxu0 %v10112_v46  ;;  %7448 = vmatprep.subr.bf16.mxu1 %v10115_v47  ;;  %v7771_v46 = vcombine.high %v13133_v42, %v13133_v42  ;;  %v10202_v47 = vld [vmem:[%s13777_s1 + $0x1a20] ss:$16 sps:$4 sm:$0xff]  }
 0x30b   :  { %6793 = vmatpush1.bf16.msra.mxu0 %v10110_v48  ;;  %7449 = vmatpush1.bf16.msra.mxu1 %v10113_v49  ;;  %v10205_v48 = vld [vmem:[%s13777_s1 + $0x1a28] ss:$16 sps:$4 sm:$0xff]   ;;  %v10210_v49 = vld [vmem:[%s13777_s1 + $0x1a44] ss:$16 sps:$4 sm:$0xff]  }
 0x30c   :  { %6794 = vmatprep.subr.bf16.mxu0 %v10118_v50  ;;  %7450 = vmatprep.subr.bf16.mxu1 %v10121_v51  ;;  %v10213_v50 = vld [vmem:[%s13777_s1 + $0x1a4c] ss:$16 sps:$4 sm:$0xff]   ;;  %v10208_v51 = vld [vmem:[%s13777_s1 + $0x1a40] ss:$16 sps:$4 sm:$0xff]  }
 0x30f   :  { %6795 = vmatpush1.bf16.msra.mxu0 %v10116_v52  ;;  %7451 = vmatpush1.bf16.msra.mxu1 %v10119_v53  ;;  %v10211_v52 = vld [vmem:[%s13777_s1 + $0x1a48] ss:$16 sps:$4 sm:$0xff]   ;;  %v10216_v53 = vld [vmem:[%s13777_s1 + $0x1a64] ss:$16 sps:$4 sm:$0xff]  }
 0x310   :  { %6796 = vmatprep.subr.bf16.mxu0 %v10124_v54  ;;  %7452 = vmatprep.subr.bf16.mxu1 %v10127_v55  ;;  %v10219_v54 = vld [vmem:[%s13777_s1 + $0x1a6c] ss:$16 sps:$4 sm:$0xff]   ;;  %v10214_v55 = vld [vmem:[%s13777_s1 + $0x1a60] ss:$16 sps:$4 sm:$0xff]  }
 0x313   :  { %6797 = vmatpush1.bf16.msra.mxu0 %v10122_v56  ;;  %7453 = vmatpush1.bf16.msra.mxu1 %v10125_v57  ;;  %v10217_v56 = vld [vmem:[%s13777_s1 + $0x1a68] ss:$16 sps:$4 sm:$0xff]   ;;  %v10222_v57 = vld [vmem:[%s13777_s1 + $0x1a84] ss:$16 sps:$4 sm:$0xff]  }
 0x314   :  { %6798 = vmatprep.subr.bf16.mxu0 %v10130_v58  ;;  %7454 = vmatprep.subr.bf16.mxu1 %v10133_v59  ;;  %v10225_v58 = vld [vmem:[%s13777_s1 + $0x1a8c] ss:$16 sps:$4 sm:$0xff]   ;;  %v10220_v59 = vld [vmem:[%s13777_s1 + $0x1a80] ss:$16 sps:$4 sm:$0xff]  }
 0x317   :  { %6799 = vmatpush1.bf16.msra.mxu0 %v10128_v60  ;;  %7455 = vmatpush1.bf16.msra.mxu1 %v10131_v61  ;;  %v10223_v60 = vld [vmem:[%s13777_s1 + $0x1a88] ss:$16 sps:$4 sm:$0xff]   ;;  %v10228_v61 = vld [vmem:[%s13777_s1 + $0x1aa4] ss:$16 sps:$4 sm:$0xff]  }
 0x318   :  { %6800 = vmatprep.subr.bf16.mxu0 %v10136_v62  ;;  %7456 = vmatprep.subr.bf16.mxu1 %v10139_v63  ;;  %v10231_v62 = vld [vmem:[%s13777_s1 + $0x1aac] ss:$16 sps:$4 sm:$0xff]   ;;  %v10226_v63 = vld [vmem:[%s13777_s1 + $0x1aa0] ss:$16 sps:$4 sm:$0xff]  }
 0x31b   :  { %6801 = vmatpush1.bf16.msra.mxu0 %v10134_v0  ;;  %7457 = vmatpush1.bf16.msra.mxu1 %v10137_v1  ;;  %v10229_v0 = vld [vmem:[%s13777_s1 + $0x1aa8] ss:$16 sps:$4 sm:$0xff]   ;;  %v10234_v1 = vld [vmem:[%s13777_s1 + $0x1ac4] ss:$16 sps:$4 sm:$0xff]  }
 0x31c   :  { %6802 = vmatprep.subr.bf16.mxu0 %v10142_v2  ;;  %7458 = vmatprep.subr.bf16.mxu1 %v10145_v3  ;;  %v10237_v2 = vld [vmem:[%s13777_s1 + $0x1acc] ss:$16 sps:$4 sm:$0xff]   ;;  %v10232_v3 = vld [vmem:[%s13777_s1 + $0x1ac0] ss:$16 sps:$4 sm:$0xff]  }
 0x31f   :  { %6803 = vmatpush1.bf16.msra.mxu0 %v10140_v4  ;;  %7459 = vmatpush1.bf16.msra.mxu1 %v10143_v5  ;;  %v10235_v4 = vld [vmem:[%s13777_s1 + $0x1ac8] ss:$16 sps:$4 sm:$0xff]   ;;  %v10240_v5 = vld [vmem:[%s13777_s1 + $0x1ae4] ss:$16 sps:$4 sm:$0xff]  }
 0x320   :  { %6804 = vmatprep.subr.bf16.mxu0 %v10148_v6  ;;  %7460 = vmatprep.subr.bf16.mxu1 %v10151_v7  ;;  %v10243_v6 = vld [vmem:[%s13777_s1 + $0x1aec] ss:$16 sps:$4 sm:$0xff]   ;;  %v10238_v7 = vld [vmem:[%s13777_s1 + $0x1ae0] ss:$16 sps:$4 sm:$0xff]  }
 0x323   :  { %6805 = vmatpush1.bf16.msra.mxu0 %v10146_v8  ;;  %7461 = vmatpush1.bf16.msra.mxu1 %v10149_v9  ;;  %v10241_v8 = vld [vmem:[%s13777_s1 + $0x1ae8] ss:$16 sps:$4 sm:$0xff]   ;;  %v10246_v9 = vld [vmem:[%s13777_s1 + $0x1b04] ss:$16 sps:$4 sm:$0xff]  }
 0x324   :  { %6806 = vmatprep.subr.bf16.mxu0 %v10154_v10  ;;  %7462 = vmatprep.subr.bf16.mxu1 %v10157_v12  ;;  %v10249_v10 = vld [vmem:[%s13777_s1 + $0x1b0c] ss:$16 sps:$4 sm:$0xff]   ;;  %v10244_v12 = vld [vmem:[%s13777_s1 + $0x1b00] ss:$16 sps:$4 sm:$0xff]  }
 0x327   :  { %6807 = vmatpush1.bf16.msra.mxu0 %v10152_v13  ;;  %7463 = vmatpush1.bf16.msra.mxu1 %v10155_v15  ;;  %v10247_v13 = vld [vmem:[%s13777_s1 + $0x1b08] ss:$16 sps:$4 sm:$0xff]   ;;  %v10252_v15 = vld [vmem:[%s13777_s1 + $0x1b24] ss:$16 sps:$4 sm:$0xff]  }
 0x328   :  { %6808 = vmatprep.subr.bf16.mxu0 %v10160_v11  ;;  %7464 = vmatprep.subr.bf16.mxu1 %v10163_v17  ;;  %v10255_v11 = vld [vmem:[%s13777_s1 + $0x1b2c] ss:$16 sps:$4 sm:$0xff]   ;;  %v10250_v17 = vld [vmem:[%s13777_s1 + $0x1b20] ss:$16 sps:$4 sm:$0xff]  }
 0x32b   :  { %6809 = vmatpush1.bf16.msra.mxu0 %v10158_v14  ;;  %7465 = vmatpush1.bf16.msra.mxu1 %v10161_v19  ;;  %v10253_v14 = vld [vmem:[%s13777_s1 + $0x1b28] ss:$16 sps:$4 sm:$0xff]   ;;  %v10258_v19 = vld [vmem:[%s13777_s1 + $0x1b44] ss:$16 sps:$4 sm:$0xff]  }
 0x32c   :  { %6810 = vmatprep.subr.bf16.mxu0 %v10166_v20  ;;  %7466 = vmatprep.subr.bf16.mxu1 %v10169_v16  ;;  %v10261_v20 = vld [vmem:[%s13777_s1 + $0x1b4c] ss:$16 sps:$4 sm:$0xff]   ;;  %v10256_v16 = vld [vmem:[%s13777_s1 + $0x1b40] ss:$16 sps:$4 sm:$0xff]  }
 0x32f   :  { %6811 = vmatpush1.bf16.msra.mxu0 %v10164_v22  ;;  %7467 = vmatpush1.bf16.msra.mxu1 %v10167_v23  ;;  %v10259_v22 = vld [vmem:[%s13777_s1 + $0x1b48] ss:$16 sps:$4 sm:$0xff]   ;;  %v10264_v23 = vld [vmem:[%s13777_s1 + $0x1b64] ss:$16 sps:$4 sm:$0xff]  }
 0x330   :  { %6812 = vmatprep.subr.bf16.mxu0 %v10172_v18  ;;  %7468 = vmatprep.subr.bf16.mxu1 %v10175_v25  ;;  %v10267_v18 = vld [vmem:[%s13777_s1 + $0x1b6c] ss:$16 sps:$4 sm:$0xff]   ;;  %v10262_v25 = vld [vmem:[%s13777_s1 + $0x1b60] ss:$16 sps:$4 sm:$0xff]  }
 0x333   :  { %6813 = vmatpush1.bf16.msra.mxu0 %v10170_v26  ;;  %7469 = vmatpush1.bf16.msra.mxu1 %v10173_v21  ;;  %v10265_v26 = vld [vmem:[%s13777_s1 + $0x1b68] ss:$16 sps:$4 sm:$0xff]   ;;  %v10270_v21 = vld [vmem:[%s13777_s1 + $0x1b84] ss:$16 sps:$4 sm:$0xff]  }
 0x334   :  { %6814 = vmatprep.subr.bf16.mxu0 %v10178_v28  ;;  %7470 = vmatprep.subr.bf16.mxu1 %v10181_v29  ;;  %v10273_v28 = vld [vmem:[%s13777_s1 + $0x1b8c] ss:$16 sps:$4 sm:$0xff]   ;;  %v10268_v29 = vld [vmem:[%s13777_s1 + $0x1b80] ss:$16 sps:$4 sm:$0xff]  }
 0x337   :  { %6815 = vmatpush1.bf16.msra.mxu0 %v10176_v24  ;;  %7471 = vmatpush1.bf16.msra.mxu1 %v10179_v31  ;;  %v10271_v24 = vld [vmem:[%s13777_s1 + $0x1b88] ss:$16 sps:$4 sm:$0xff]   ;;  %v10276_v31 = vld [vmem:[%s13777_s1 + $0x1ba4] ss:$16 sps:$4 sm:$0xff]  }
 0x338   :  { %6816 = vmatprep.subr.bf16.mxu0 %v10184_v32  ;;  %7472 = vmatprep.subr.bf16.mxu1 %v10187_v33  ;;  %v10279_v32 = vld [vmem:[%s13777_s1 + $0x1bac] ss:$16 sps:$4 sm:$0xff]   ;;  %v10274_v33 = vld [vmem:[%s13777_s1 + $0x1ba0] ss:$16 sps:$4 sm:$0xff]  }
 0x33b   :  { %6817 = vmatpush1.bf16.msra.mxu0 %v10182_v34  ;;  %7473 = vmatpush1.bf16.msra.mxu1 %v10185_v35  ;;  %v10277_v34 = vld [vmem:[%s13777_s1 + $0x1ba8] ss:$16 sps:$4 sm:$0xff]   ;;  %v10282_v35 = vld [vmem:[%s13777_s1 + $0x1bc4] ss:$16 sps:$4 sm:$0xff]  }
 0x33c   :  { %6818 = vmatprep.subr.bf16.mxu0 %v10190_v30  ;;  %7474 = vmatprep.subr.bf16.mxu1 %v10193_v37  ;;  %v10285_v30 = vld [vmem:[%s13777_s1 + $0x1bcc] ss:$16 sps:$4 sm:$0xff]   ;;  %v10280_v37 = vld [vmem:[%s13777_s1 + $0x1bc0] ss:$16 sps:$4 sm:$0xff]  }
 0x33f   :  { %6819 = vmatpush1.bf16.msra.mxu0 %v10188_v38  ;;  %7475 = vmatpush1.bf16.msra.mxu1 %v10191_v27  ;;  %v10283_v38 = vld [vmem:[%s13777_s1 + $0x1bc8] ss:$16 sps:$4 sm:$0xff]   ;;  %v10288_v27 = vld [vmem:[%s13777_s1 + $0x1be4] ss:$16 sps:$4 sm:$0xff]  }
 0x340   :  { %6829 = vmatprep.subr.bf16.mxu0 %v10198_v40  ;;  %7485 = vmatprep.subr.bf16.mxu1 %v10201_v41  ;;  %v10291_v40 = vld [vmem:[%s13777_s1 + $0x1bec] ss:$16 sps:$4 sm:$0xff]   ;;  %v10286_v41 = vld [vmem:[%s13777_s1 + $0x1be0] ss:$16 sps:$4 sm:$0xff]  }
 0x342   :  { %6821 = vmatmul.mubr.bf16.vlgmr.msra.gmra.mrb[0].mxu0 %v7768_v36  ;;  %7477 = vmatmul.mubr.bf16.vlgmr.msra.gmra.mrb[0].mxu1 %v7768_v36  ;;  %v10289_v36 = vld [vmem:[%s13777_s1 + $0x1be8] ss:$16 sps:$4 sm:$0xff]  }
 0x343   :  { %6830 = vmatpush1.bf16.msra.mxu0 %v10196_v43  ;;  %7486 = vmatpush1.bf16.msra.mxu1 %v10199_v44  ;;  %v10296_v43 = vld [vmem:[%s13777_s1 + $0x1c04] ss:$16 sps:$4 sm:$0xff]   ;;  %v10299_v44 = vld [vmem:[%s13777_s1 + $0x1c0c] ss:$16 sps:$4 sm:$0xff]  }
 0x344   :  { %6831 = vmatprep.subr.bf16.mxu0 %v10204_v39  ;;  %7487 = vmatprep.subr.bf16.mxu1 %v10207_v45  ;;  %v7770_v39 = vcombine.low %v13133_v42, %v13133_v42  ;;  %v13334_v45 = vld [vmem:[%s13778_s0 + $0x70] sm:$0xff] }
 0x345   :  { %6861 = vmatprep.mubr.bf16.mxu0 %v7771_v46  ;;  %7517 = vmatprep.mubr.bf16.mxu1 %v7771_v46  ;;  %v10294_v46 = vld [vmem:[%s13777_s1 + $0x1c00] ss:$16 sps:$4 sm:$0xff]   ;;  %v10302_v42 = vld [vmem:[%s13777_s1 + $0x1c24] ss:$16 sps:$4 sm:$0xff]  }
 0x347   :  { %6832 = vmatpush1.bf16.msra.mxu0 %v10202_v47  ;;  %7488 = vmatpush1.bf16.msra.mxu1 %v10205_v48  ;;  %v10297_v47 = vld [vmem:[%s13777_s1 + $0x1c08] ss:$16 sps:$4 sm:$0xff]   ;;  %v10305_v48 = vld [vmem:[%s13777_s1 + $0x1c2c] ss:$16 sps:$4 sm:$0xff]  }
 0x348   :  { %6833 = vmatprep.subr.bf16.mxu0 %v10210_v49  ;;  %7489 = vmatprep.subr.bf16.mxu1 %v10213_v50  ;;  %v7773_v49 = vcombine.high %v13334_v45, %v13334_v45  ;;  %v10300_v50 = vld [vmem:[%s13777_s1 + $0x1c20] ss:$16 sps:$4 sm:$0xff]  }
 0x34b   :  { %6834 = vmatpush1.bf16.msra.mxu0 %v10208_v51  ;;  %7490 = vmatpush1.bf16.msra.mxu1 %v10211_v52  ;;  %v10303_v51 = vld [vmem:[%s13777_s1 + $0x1c28] ss:$16 sps:$4 sm:$0xff]   ;;  %v10308_v52 = vld [vmem:[%s13777_s1 + $0x1c44] ss:$16 sps:$4 sm:$0xff]  }
 0x34c   :  { %6835 = vmatprep.subr.bf16.mxu0 %v10216_v53  ;;  %7491 = vmatprep.subr.bf16.mxu1 %v10219_v54  ;;  %v10311_v53 = vld [vmem:[%s13777_s1 + $0x1c4c] ss:$16 sps:$4 sm:$0xff]   ;;  %v10306_v54 = vld [vmem:[%s13777_s1 + $0x1c40] ss:$16 sps:$4 sm:$0xff]  }
 0x34f   :  { %6836 = vmatpush1.bf16.msra.mxu0 %v10214_v55  ;;  %7492 = vmatpush1.bf16.msra.mxu1 %v10217_v56  ;;  %v10309_v55 = vld [vmem:[%s13777_s1 + $0x1c48] ss:$16 sps:$4 sm:$0xff]   ;;  %v10314_v56 = vld [vmem:[%s13777_s1 + $0x1c64] ss:$16 sps:$4 sm:$0xff]  }
 0x350   :  { %6837 = vmatprep.subr.bf16.mxu0 %v10222_v57  ;;  %7493 = vmatprep.subr.bf16.mxu1 %v10225_v58  ;;  %v10317_v57 = vld [vmem:[%s13777_s1 + $0x1c6c] ss:$16 sps:$4 sm:$0xff]   ;;  %v10312_v58 = vld [vmem:[%s13777_s1 + $0x1c60] ss:$16 sps:$4 sm:$0xff]  }
 0x353   :  { %6838 = vmatpush1.bf16.msra.mxu0 %v10220_v59  ;;  %7494 = vmatpush1.bf16.msra.mxu1 %v10223_v60  ;;  %v10315_v59 = vld [vmem:[%s13777_s1 + $0x1c68] ss:$16 sps:$4 sm:$0xff]   ;;  %v10320_v60 = vld [vmem:[%s13777_s1 + $0x1c84] ss:$16 sps:$4 sm:$0xff]  }
 0x354   :  { %6839 = vmatprep.subr.bf16.mxu0 %v10228_v61  ;;  %7495 = vmatprep.subr.bf16.mxu1 %v10231_v62  ;;  %v10323_v61 = vld [vmem:[%s13777_s1 + $0x1c8c] ss:$16 sps:$4 sm:$0xff]   ;;  %v10318_v62 = vld [vmem:[%s13777_s1 + $0x1c80] ss:$16 sps:$4 sm:$0xff]  }
 0x357   :  { %6840 = vmatpush1.bf16.msra.mxu0 %v10226_v63  ;;  %7496 = vmatpush1.bf16.msra.mxu1 %v10229_v0  ;;  %v10321_v63 = vld [vmem:[%s13777_s1 + $0x1c88] ss:$16 sps:$4 sm:$0xff]   ;;  %v10326_v0 = vld [vmem:[%s13777_s1 + $0x1ca4] ss:$16 sps:$4 sm:$0xff]  }
 0x358   :  { %6841 = vmatprep.subr.bf16.mxu0 %v10234_v1  ;;  %7497 = vmatprep.subr.bf16.mxu1 %v10237_v2  ;;  %v10329_v1 = vld [vmem:[%s13777_s1 + $0x1cac] ss:$16 sps:$4 sm:$0xff]   ;;  %v10324_v2 = vld [vmem:[%s13777_s1 + $0x1ca0] ss:$16 sps:$4 sm:$0xff]  }
 0x35b   :  { %6842 = vmatpush1.bf16.msra.mxu0 %v10232_v3  ;;  %7498 = vmatpush1.bf16.msra.mxu1 %v10235_v4  ;;  %v10327_v3 = vld [vmem:[%s13777_s1 + $0x1ca8] ss:$16 sps:$4 sm:$0xff]   ;;  %v10332_v4 = vld [vmem:[%s13777_s1 + $0x1cc4] ss:$16 sps:$4 sm:$0xff]  }
 0x35c   :  { %6843 = vmatprep.subr.bf16.mxu0 %v10240_v5  ;;  %7499 = vmatprep.subr.bf16.mxu1 %v10243_v6  ;;  %v10335_v5 = vld [vmem:[%s13777_s1 + $0x1ccc] ss:$16 sps:$4 sm:$0xff]   ;;  %v10330_v6 = vld [vmem:[%s13777_s1 + $0x1cc0] ss:$16 sps:$4 sm:$0xff]  }
 0x35f   :  { %6844 = vmatpush1.bf16.msra.mxu0 %v10238_v7  ;;  %7500 = vmatpush1.bf16.msra.mxu1 %v10241_v8  ;;  %v10333_v7 = vld [vmem:[%s13777_s1 + $0x1cc8] ss:$16 sps:$4 sm:$0xff]   ;;  %v10338_v8 = vld [vmem:[%s13777_s1 + $0x1ce4] ss:$16 sps:$4 sm:$0xff]  }
 0x360   :  { %6845 = vmatprep.subr.bf16.mxu0 %v10246_v9  ;;  %7501 = vmatprep.subr.bf16.mxu1 %v10249_v10  ;;  %v10341_v9 = vld [vmem:[%s13777_s1 + $0x1cec] ss:$16 sps:$4 sm:$0xff]   ;;  %v10336_v10 = vld [vmem:[%s13777_s1 + $0x1ce0] ss:$16 sps:$4 sm:$0xff]  }
 0x363   :  { %6846 = vmatpush1.bf16.msra.mxu0 %v10244_v12  ;;  %7502 = vmatpush1.bf16.msra.mxu1 %v10247_v13  ;;  %v10339_v12 = vld [vmem:[%s13777_s1 + $0x1ce8] ss:$16 sps:$4 sm:$0xff]   ;;  %v10344_v13 = vld [vmem:[%s13777_s1 + $0x1d04] ss:$16 sps:$4 sm:$0xff]  }
 0x364   :  { %6847 = vmatprep.subr.bf16.mxu0 %v10252_v15  ;;  %7503 = vmatprep.subr.bf16.mxu1 %v10255_v11  ;;  %v10347_v15 = vld [vmem:[%s13777_s1 + $0x1d0c] ss:$16 sps:$4 sm:$0xff]   ;;  %v10342_v11 = vld [vmem:[%s13777_s1 + $0x1d00] ss:$16 sps:$4 sm:$0xff]  }
 0x367   :  { %6848 = vmatpush1.bf16.msra.mxu0 %v10250_v17  ;;  %7504 = vmatpush1.bf16.msra.mxu1 %v10253_v14  ;;  %v10345_v17 = vld [vmem:[%s13777_s1 + $0x1d08] ss:$16 sps:$4 sm:$0xff]   ;;  %v10350_v14 = vld [vmem:[%s13777_s1 + $0x1d24] ss:$16 sps:$4 sm:$0xff]  }
 0x368   :  { %6849 = vmatprep.subr.bf16.mxu0 %v10258_v19  ;;  %7505 = vmatprep.subr.bf16.mxu1 %v10261_v20  ;;  %v10353_v19 = vld [vmem:[%s13777_s1 + $0x1d2c] ss:$16 sps:$4 sm:$0xff]   ;;  %v10348_v20 = vld [vmem:[%s13777_s1 + $0x1d20] ss:$16 sps:$4 sm:$0xff]  }
 0x36b   :  { %6850 = vmatpush1.bf16.msra.mxu0 %v10256_v16  ;;  %7506 = vmatpush1.bf16.msra.mxu1 %v10259_v22  ;;  %v10351_v16 = vld [vmem:[%s13777_s1 + $0x1d28] ss:$16 sps:$4 sm:$0xff]   ;;  %v10356_v22 = vld [vmem:[%s13777_s1 + $0x1d44] ss:$16 sps:$4 sm:$0xff]  }
 0x36c   :  { %6851 = vmatprep.subr.bf16.mxu0 %v10264_v23  ;;  %7507 = vmatprep.subr.bf16.mxu1 %v10267_v18  ;;  %v10359_v23 = vld [vmem:[%s13777_s1 + $0x1d4c] ss:$16 sps:$4 sm:$0xff]   ;;  %v10354_v18 = vld [vmem:[%s13777_s1 + $0x1d40] ss:$16 sps:$4 sm:$0xff]  }
 0x36f   :  { %6852 = vmatpush1.bf16.msra.mxu0 %v10262_v25  ;;  %7508 = vmatpush1.bf16.msra.mxu1 %v10265_v26  ;;  %v10357_v25 = vld [vmem:[%s13777_s1 + $0x1d48] ss:$16 sps:$4 sm:$0xff]   ;;  %v10362_v26 = vld [vmem:[%s13777_s1 + $0x1d64] ss:$16 sps:$4 sm:$0xff]  }
 0x370   :  { %6853 = vmatprep.subr.bf16.mxu0 %v10270_v21  ;;  %7509 = vmatprep.subr.bf16.mxu1 %v10273_v28  ;;  %v10365_v21 = vld [vmem:[%s13777_s1 + $0x1d6c] ss:$16 sps:$4 sm:$0xff]   ;;  %v10360_v28 = vld [vmem:[%s13777_s1 + $0x1d60] ss:$16 sps:$4 sm:$0xff]  }
 0x373   :  { %6854 = vmatpush1.bf16.msra.mxu0 %v10268_v29  ;;  %7510 = vmatpush1.bf16.msra.mxu1 %v10271_v24  ;;  %v10363_v29 = vld [vmem:[%s13777_s1 + $0x1d68] ss:$16 sps:$4 sm:$0xff]   ;;  %v10368_v24 = vld [vmem:[%s13777_s1 + $0x1d84] ss:$16 sps:$4 sm:$0xff]  }
 0x374   :  { %6855 = vmatprep.subr.bf16.mxu0 %v10276_v31  ;;  %7511 = vmatprep.subr.bf16.mxu1 %v10279_v32  ;;  %v10371_v31 = vld [vmem:[%s13777_s1 + $0x1d8c] ss:$16 sps:$4 sm:$0xff]   ;;  %v10366_v32 = vld [vmem:[%s13777_s1 + $0x1d80] ss:$16 sps:$4 sm:$0xff]  }
 0x377   :  { %6856 = vmatpush1.bf16.msra.mxu0 %v10274_v33  ;;  %7512 = vmatpush1.bf16.msra.mxu1 %v10277_v34  ;;  %v10369_v33 = vld [vmem:[%s13777_s1 + $0x1d88] ss:$16 sps:$4 sm:$0xff]   ;;  %v10374_v34 = vld [vmem:[%s13777_s1 + $0x1da4] ss:$16 sps:$4 sm:$0xff]  }
 0x378   :  { %6857 = vmatprep.subr.bf16.mxu0 %v10282_v35  ;;  %7513 = vmatprep.subr.bf16.mxu1 %v10285_v30  ;;  %v10377_v35 = vld [vmem:[%s13777_s1 + $0x1dac] ss:$16 sps:$4 sm:$0xff]   ;;  %v10372_v30 = vld [vmem:[%s13777_s1 + $0x1da0] ss:$16 sps:$4 sm:$0xff]  }
 0x37b   :  { %6858 = vmatpush1.bf16.msra.mxu0 %v10280_v37  ;;  %7514 = vmatpush1.bf16.msra.mxu1 %v10283_v38  ;;  %v10375_v37 = vld [vmem:[%s13777_s1 + $0x1da8] ss:$16 sps:$4 sm:$0xff]   ;;  %v10380_v38 = vld [vmem:[%s13777_s1 + $0x1dc4] ss:$16 sps:$4 sm:$0xff]  }
 0x37c   :  { %6859 = vmatprep.subr.bf16.mxu0 %v10288_v27  ;;  %7515 = vmatprep.subr.bf16.mxu1 %v10291_v40  ;;  %v10383_v27 = vld [vmem:[%s13777_s1 + $0x1dcc] ss:$16 sps:$4 sm:$0xff]   ;;  %v10378_v40 = vld [vmem:[%s13777_s1 + $0x1dc0] ss:$16 sps:$4 sm:$0xff]  }
 0x37f   :  { %6860 = vmatpush1.bf16.msra.mxu0 %v10286_v41  ;;  %7516 = vmatpush1.bf16.msra.mxu1 %v10289_v36  ;;  %v10381_v41 = vld [vmem:[%s13777_s1 + $0x1dc8] ss:$16 sps:$4 sm:$0xff]   ;;  %v10386_v36 = vld [vmem:[%s13777_s1 + $0x1de4] ss:$16 sps:$4 sm:$0xff]  }
 0x380   :  { %6870 = vmatprep.subr.bf16.mxu0 %v10296_v43  ;;  %7526 = vmatprep.subr.bf16.mxu1 %v10299_v44  ;;  %v10389_v43 = vld [vmem:[%s13777_s1 + $0x1dec] ss:$16 sps:$4 sm:$0xff]   ;;  %v10384_v44 = vld [vmem:[%s13777_s1 + $0x1de0] ss:$16 sps:$4 sm:$0xff]  }
 0x382   :  { %6862 = vmatmul.mubr.bf16.vlgmr.msra.gmra.mrb[0].mxu0 %v7770_v39  ;;  %7518 = vmatmul.mubr.bf16.vlgmr.msra.gmra.mrb[0].mxu1 %v7770_v39  ;;  %v10387_v39 = vld [vmem:[%s13777_s1 + $0x1de8] ss:$16 sps:$4 sm:$0xff]  }
 0x383   :  { %6871 = vmatpush1.bf16.msra.mxu0 %v10294_v46  ;;  %7527 = vmatpush1.bf16.msra.mxu1 %v10297_v47  ;;  %v10394_v46 = vld [vmem:[%s13777_s1 + $0x1e04] ss:$16 sps:$4 sm:$0xff]   ;;  %v10397_v47 = vld [vmem:[%s13777_s1 + $0x1e0c] ss:$16 sps:$4 sm:$0xff]  }
 0x384   :  { %6872 = vmatprep.subr.bf16.mxu0 %v10302_v42  ;;  %7528 = vmatprep.subr.bf16.mxu1 %v10305_v48  ;;  %v7772_v42 = vcombine.low %v13334_v45, %v13334_v45  ;;  %v13535_v48 = vld [vmem:[%s13778_s0 + $0x78] sm:$0xff]  ;;  %v10400_v45 = vld [vmem:[%s13777_s1 + $0x1e24] ss:$16 sps:$4 sm:$0xff]  }
 0x385   :  { %6902 = vmatprep.mubr.bf16.mxu0 %v7773_v49  ;;  %7558 = vmatprep.mubr.bf16.mxu1 %v7773_v49  ;;  %v10392_v49 = vld [vmem:[%s13777_s1 + $0x1e00] ss:$16 sps:$4 sm:$0xff]  }
 0x387   :  { %6873 = vmatpush1.bf16.msra.mxu0 %v10300_v50  ;;  %7529 = vmatpush1.bf16.msra.mxu1 %v10303_v51  ;;  %v10395_v50 = vld [vmem:[%s13777_s1 + $0x1e08] ss:$16 sps:$4 sm:$0xff]   ;;  %v10403_v51 = vld [vmem:[%s13777_s1 + $0x1e2c] ss:$16 sps:$4 sm:$0xff]  }
 0x388   :  { %6874 = vmatprep.subr.bf16.mxu0 %v10308_v52  ;;  %7530 = vmatprep.subr.bf16.mxu1 %v10311_v53  ;;  %v7775_v52 = vcombine.high %v13535_v48, %v13535_v48  ;;  %v10398_v53 = vld [vmem:[%s13777_s1 + $0x1e20] ss:$16 sps:$4 sm:$0xff]  }
 0x38b   :  { %6875 = vmatpush1.bf16.msra.mxu0 %v10306_v54  ;;  %7531 = vmatpush1.bf16.msra.mxu1 %v10309_v55  ;;  %v10401_v54 = vld [vmem:[%s13777_s1 + $0x1e28] ss:$16 sps:$4 sm:$0xff]   ;;  %v10406_v55 = vld [vmem:[%s13777_s1 + $0x1e44] ss:$16 sps:$4 sm:$0xff]  }
 0x38c   :  { %6876 = vmatprep.subr.bf16.mxu0 %v10314_v56  ;;  %7532 = vmatprep.subr.bf16.mxu1 %v10317_v57  ;;  %v10409_v56 = vld [vmem:[%s13777_s1 + $0x1e4c] ss:$16 sps:$4 sm:$0xff]   ;;  %v10404_v57 = vld [vmem:[%s13777_s1 + $0x1e40] ss:$16 sps:$4 sm:$0xff]  }
 0x38f   :  { %6877 = vmatpush1.bf16.msra.mxu0 %v10312_v58  ;;  %7533 = vmatpush1.bf16.msra.mxu1 %v10315_v59  ;;  %v10407_v58 = vld [vmem:[%s13777_s1 + $0x1e48] ss:$16 sps:$4 sm:$0xff]   ;;  %v10412_v59 = vld [vmem:[%s13777_s1 + $0x1e64] ss:$16 sps:$4 sm:$0xff]  }
 0x390   :  { %6878 = vmatprep.subr.bf16.mxu0 %v10320_v60  ;;  %7534 = vmatprep.subr.bf16.mxu1 %v10323_v61  ;;  %v10415_v60 = vld [vmem:[%s13777_s1 + $0x1e6c] ss:$16 sps:$4 sm:$0xff]   ;;  %v10410_v61 = vld [vmem:[%s13777_s1 + $0x1e60] ss:$16 sps:$4 sm:$0xff]  }
 0x393   :  { %6879 = vmatpush1.bf16.msra.mxu0 %v10318_v62  ;;  %7535 = vmatpush1.bf16.msra.mxu1 %v10321_v63  ;;  %v10413_v62 = vld [vmem:[%s13777_s1 + $0x1e68] ss:$16 sps:$4 sm:$0xff]   ;;  %v10418_v63 = vld [vmem:[%s13777_s1 + $0x1e84] ss:$16 sps:$4 sm:$0xff]  }
 0x394   :  { %6880 = vmatprep.subr.bf16.mxu0 %v10326_v0  ;;  %7536 = vmatprep.subr.bf16.mxu1 %v10329_v1  ;;  %v10421_v0 = vld [vmem:[%s13777_s1 + $0x1e8c] ss:$16 sps:$4 sm:$0xff]   ;;  %v10416_v1 = vld [vmem:[%s13777_s1 + $0x1e80] ss:$16 sps:$4 sm:$0xff]  }
 0x397   :  { %6881 = vmatpush1.bf16.msra.mxu0 %v10324_v2  ;;  %7537 = vmatpush1.bf16.msra.mxu1 %v10327_v3  ;;  %v10419_v2 = vld [vmem:[%s13777_s1 + $0x1e88] ss:$16 sps:$4 sm:$0xff]   ;;  %v10424_v3 = vld [vmem:[%s13777_s1 + $0x1ea4] ss:$16 sps:$4 sm:$0xff]  }
 0x398   :  { %6882 = vmatprep.subr.bf16.mxu0 %v10332_v4  ;;  %7538 = vmatprep.subr.bf16.mxu1 %v10335_v5  ;;  %v10427_v4 = vld [vmem:[%s13777_s1 + $0x1eac] ss:$16 sps:$4 sm:$0xff]   ;;  %v10422_v5 = vld [vmem:[%s13777_s1 + $0x1ea0] ss:$16 sps:$4 sm:$0xff]  }
 0x39b   :  { %6883 = vmatpush1.bf16.msra.mxu0 %v10330_v6  ;;  %7539 = vmatpush1.bf16.msra.mxu1 %v10333_v7  ;;  %v10425_v6 = vld [vmem:[%s13777_s1 + $0x1ea8] ss:$16 sps:$4 sm:$0xff]   ;;  %v10430_v7 = vld [vmem:[%s13777_s1 + $0x1ec4] ss:$16 sps:$4 sm:$0xff]  }
 0x39c   :  { %6884 = vmatprep.subr.bf16.mxu0 %v10338_v8  ;;  %7540 = vmatprep.subr.bf16.mxu1 %v10341_v9  ;;  %v10433_v8 = vld [vmem:[%s13777_s1 + $0x1ecc] ss:$16 sps:$4 sm:$0xff]   ;;  %v10428_v9 = vld [vmem:[%s13777_s1 + $0x1ec0] ss:$16 sps:$4 sm:$0xff]  }
 0x39f   :  { %6885 = vmatpush1.bf16.msra.mxu0 %v10336_v10  ;;  %7541 = vmatpush1.bf16.msra.mxu1 %v10339_v12  ;;  %v10431_v10 = vld [vmem:[%s13777_s1 + $0x1ec8] ss:$16 sps:$4 sm:$0xff]   ;;  %v10436_v12 = vld [vmem:[%s13777_s1 + $0x1ee4] ss:$16 sps:$4 sm:$0xff]  }
 0x3a0   :  { %6886 = vmatprep.subr.bf16.mxu0 %v10344_v13  ;;  %7542 = vmatprep.subr.bf16.mxu1 %v10347_v15  ;;  %v10439_v13 = vld [vmem:[%s13777_s1 + $0x1eec] ss:$16 sps:$4 sm:$0xff]   ;;  %v10434_v15 = vld [vmem:[%s13777_s1 + $0x1ee0] ss:$16 sps:$4 sm:$0xff]  }
 0x3a3   :  { %6887 = vmatpush1.bf16.msra.mxu0 %v10342_v11  ;;  %7543 = vmatpush1.bf16.msra.mxu1 %v10345_v17  ;;  %v10437_v11 = vld [vmem:[%s13777_s1 + $0x1ee8] ss:$16 sps:$4 sm:$0xff]   ;;  %v10442_v17 = vld [vmem:[%s13777_s1 + $0x1f04] ss:$16 sps:$4 sm:$0xff]  }
 0x3a4   :  { %6888 = vmatprep.subr.bf16.mxu0 %v10350_v14  ;;  %7544 = vmatprep.subr.bf16.mxu1 %v10353_v19  ;;  %v10445_v14 = vld [vmem:[%s13777_s1 + $0x1f0c] ss:$16 sps:$4 sm:$0xff]   ;;  %v10440_v19 = vld [vmem:[%s13777_s1 + $0x1f00] ss:$16 sps:$4 sm:$0xff]  }
 0x3a7   :  { %6889 = vmatpush1.bf16.msra.mxu0 %v10348_v20  ;;  %7545 = vmatpush1.bf16.msra.mxu1 %v10351_v16  ;;  %v10443_v20 = vld [vmem:[%s13777_s1 + $0x1f08] ss:$16 sps:$4 sm:$0xff]   ;;  %v10448_v16 = vld [vmem:[%s13777_s1 + $0x1f24] ss:$16 sps:$4 sm:$0xff]  }
 0x3a8   :  { %6890 = vmatprep.subr.bf16.mxu0 %v10356_v22  ;;  %7546 = vmatprep.subr.bf16.mxu1 %v10359_v23  ;;  %v10451_v22 = vld [vmem:[%s13777_s1 + $0x1f2c] ss:$16 sps:$4 sm:$0xff]   ;;  %v10446_v23 = vld [vmem:[%s13777_s1 + $0x1f20] ss:$16 sps:$4 sm:$0xff]  }
 0x3ab   :  { %6891 = vmatpush1.bf16.msra.mxu0 %v10354_v18  ;;  %7547 = vmatpush1.bf16.msra.mxu1 %v10357_v25  ;;  %v10449_v18 = vld [vmem:[%s13777_s1 + $0x1f28] ss:$16 sps:$4 sm:$0xff]   ;;  %v10454_v25 = vld [vmem:[%s13777_s1 + $0x1f44] ss:$16 sps:$4 sm:$0xff]  }
 0x3ac   :  { %6892 = vmatprep.subr.bf16.mxu0 %v10362_v26  ;;  %7548 = vmatprep.subr.bf16.mxu1 %v10365_v21  ;;  %v10457_v26 = vld [vmem:[%s13777_s1 + $0x1f4c] ss:$16 sps:$4 sm:$0xff]   ;;  %v10452_v21 = vld [vmem:[%s13777_s1 + $0x1f40] ss:$16 sps:$4 sm:$0xff]  }
 0x3af   :  { %6893 = vmatpush1.bf16.msra.mxu0 %v10360_v28  ;;  %7549 = vmatpush1.bf16.msra.mxu1 %v10363_v29  ;;  %v10455_v28 = vld [vmem:[%s13777_s1 + $0x1f48] ss:$16 sps:$4 sm:$0xff]   ;;  %v10460_v29 = vld [vmem:[%s13777_s1 + $0x1f64] ss:$16 sps:$4 sm:$0xff]  }
 0x3b0   :  { %6894 = vmatprep.subr.bf16.mxu0 %v10368_v24  ;;  %7550 = vmatprep.subr.bf16.mxu1 %v10371_v31  ;;  %v10463_v24 = vld [vmem:[%s13777_s1 + $0x1f6c] ss:$16 sps:$4 sm:$0xff]   ;;  %v10458_v31 = vld [vmem:[%s13777_s1 + $0x1f60] ss:$16 sps:$4 sm:$0xff]  }
 0x3b3   :  { %6895 = vmatpush1.bf16.msra.mxu0 %v10366_v32  ;;  %7551 = vmatpush1.bf16.msra.mxu1 %v10369_v33  ;;  %v10461_v32 = vld [vmem:[%s13777_s1 + $0x1f68] ss:$16 sps:$4 sm:$0xff]   ;;  %v10466_v33 = vld [vmem:[%s13777_s1 + $0x1f84] ss:$16 sps:$4 sm:$0xff]  }
 0x3b4   :  { %6896 = vmatprep.subr.bf16.mxu0 %v10374_v34  ;;  %7552 = vmatprep.subr.bf16.mxu1 %v10377_v35  ;;  %v10469_v34 = vld [vmem:[%s13777_s1 + $0x1f8c] ss:$16 sps:$4 sm:$0xff]   ;;  %v10464_v35 = vld [vmem:[%s13777_s1 + $0x1f80] ss:$16 sps:$4 sm:$0xff]  }
 0x3b7   :  { %6897 = vmatpush1.bf16.msra.mxu0 %v10372_v30  ;;  %7553 = vmatpush1.bf16.msra.mxu1 %v10375_v37  ;;  %v10467_v30 = vld [vmem:[%s13777_s1 + $0x1f88] ss:$16 sps:$4 sm:$0xff]   ;;  %v10472_v37 = vld [vmem:[%s13777_s1 + $0x1fa4] ss:$16 sps:$4 sm:$0xff]  }
 0x3b8   :  { %6898 = vmatprep.subr.bf16.mxu0 %v10380_v38  ;;  %7554 = vmatprep.subr.bf16.mxu1 %v10383_v27  ;;  %v10475_v38 = vld [vmem:[%s13777_s1 + $0x1fac] ss:$16 sps:$4 sm:$0xff]   ;;  %v10470_v27 = vld [vmem:[%s13777_s1 + $0x1fa0] ss:$16 sps:$4 sm:$0xff]  }
 0x3bb   :  { %6899 = vmatpush1.bf16.msra.mxu0 %v10378_v40  ;;  %7555 = vmatpush1.bf16.msra.mxu1 %v10381_v41  ;;  %v10473_v40 = vld [vmem:[%s13777_s1 + $0x1fa8] ss:$16 sps:$4 sm:$0xff]   ;;  %v10478_v41 = vld [vmem:[%s13777_s1 + $0x1fc4] ss:$16 sps:$4 sm:$0xff]  }
 0x3bc   :  { %6900 = vmatprep.subr.bf16.mxu0 %v10386_v36  ;;  %7556 = vmatprep.subr.bf16.mxu1 %v10389_v43  ;;  %v10481_v36 = vld [vmem:[%s13777_s1 + $0x1fcc] ss:$16 sps:$4 sm:$0xff]   ;;  %v10476_v43 = vld [vmem:[%s13777_s1 + $0x1fc0] ss:$16 sps:$4 sm:$0xff]  }
 0x3bf   :  { %6901 = vmatpush1.bf16.msra.mxu0 %v10384_v44  ;;  %7557 = vmatpush1.bf16.msra.mxu1 %v10387_v39  ;;  %v10479_v44 = vld [vmem:[%s13777_s1 + $0x1fc8] ss:$16 sps:$4 sm:$0xff]   ;;  %v10484_v39 = vld [vmem:[%s13777_s1 + $0x1fe4] ss:$16 sps:$4 sm:$0xff]  }
 0x3c0   :  { %6911 = vmatprep.subr.bf16.mxu0 %v10394_v46  ;;  %7567 = vmatprep.subr.bf16.mxu1 %v10397_v47  ;;  %v10487_v46 = vld [vmem:[%s13777_s1 + $0x1fec] ss:$16 sps:$4 sm:$0xff]   ;;  %v10482_v47 = vld [vmem:[%s13777_s1 + $0x1fe0] ss:$16 sps:$4 sm:$0xff]  }
 0x3c2   :  { %6903 = vmatmul.mubr.bf16.vlgmr.msra.gmra.mrb[0].mxu0 %v7772_v42  ;;  %7559 = vmatmul.mubr.bf16.vlgmr.msra.gmra.mrb[0].mxu1 %v7772_v42  ;;  %v10485_v42 = vld [vmem:[%s13777_s1 + $0x1fe8] ss:$16 sps:$4 sm:$0xff]  }
 0x3c3   :  { %6912 = vmatpush1.bf16.msra.mxu0 %v10392_v49  ;;  %7568 = vmatpush1.bf16.msra.mxu1 %v10395_v50  ;;  %v7774_v49 = vcombine.low %v13535_v48, %v13535_v48  ;;  %v18_v50 = vlaneseq  ;;  %v10491_v48 = vmov 1966171168  }
 0x3c4   :  { %6913 = vmatprep.subr.bf16.mxu0 %v10400_v45  ;;  %7569 = vmatprep.subr.bf16.mxu1 %v10403_v51  ;;  %v10490_v51 = vmov 0.0  }
 0x3c5   :  { %6943 = vmatprep.mubr.bf16.mxu0 %v7775_v52  ;;  %7599 = vmatprep.mubr.bf16.mxu1 %v7775_v52  ;;  %vm13727_vm0 = vcmp.lt.s32.totalorder %v18_v50, 512  ;;  %v7644_v52 = vunpack.c.l.s4 %v10491_v48 }
 0x3c6   :  { %22 = vst.msk [vmem:[%s13779_s3] sm:$0xf] %vm13727_vm0, %v10490_v51  ;;  %23 = vst.msk [vmem:[%s13780_s4] sm:$0xf] %vm13727_vm0, %v10490_v51 }
 0x3c7   :  { %6914 = vmatpush1.bf16.msra.mxu0 %v10398_v53  ;;  %7570 = vmatpush1.bf16.msra.mxu1 %v10401_v54  ;;  %v7645_v53 = vunpack.c.0.s8 %v7644_v52  ;;  %v7647_v54 = vshrl.u32 %v18_v50, 7 }
 0x3c8   :  { %6915 = vmatprep.subr.bf16.mxu0 %v10406_v55  ;;  %7571 = vmatprep.subr.bf16.mxu1 %v10409_v56 }
 0x3cb   :  { %6916 = vmatpush1.bf16.msra.mxu0 %v10404_v57  ;;  %7572 = vmatpush1.bf16.msra.mxu1 %v10407_v58  ;;  %v13741_v57 = vsub.s32 %v7645_v53, %v7647_v54 }
 0x3cc   :  { %6917 = vmatprep.subr.bf16.mxu0 %v10412_v59  ;;  %7573 = vmatprep.subr.bf16.mxu1 %v10415_v60 }
 0x3cf   :  { %6918 = vmatpush1.bf16.msra.mxu0 %v10410_v61  ;;  %7574 = vmatpush1.bf16.msra.mxu1 %v10413_v62 }
 0x3d0   :  { %6919 = vmatprep.subr.bf16.mxu0 %v10418_v63  ;;  %7575 = vmatprep.subr.bf16.mxu1 %v10421_v0 }
 0x3d3   :  { %6920 = vmatpush1.bf16.msra.mxu0 %v10416_v1  ;;  %7576 = vmatpush1.bf16.msra.mxu1 %v10419_v2 }
 0x3d4   :  { %6921 = vmatprep.subr.bf16.mxu0 %v10424_v3  ;;  %7577 = vmatprep.subr.bf16.mxu1 %v10427_v4 }
 0x3d7   :  { %6922 = vmatpush1.bf16.msra.mxu0 %v10422_v5  ;;  %7578 = vmatpush1.bf16.msra.mxu1 %v10425_v6 }
 0x3d8   :  { %6923 = vmatprep.subr.bf16.mxu0 %v10430_v7  ;;  %7579 = vmatprep.subr.bf16.mxu1 %v10433_v8 }
 0x3db   :  { %6924 = vmatpush1.bf16.msra.mxu0 %v10428_v9  ;;  %7580 = vmatpush1.bf16.msra.mxu1 %v10431_v10 }
 0x3dc   :  { %6925 = vmatprep.subr.bf16.mxu0 %v10436_v12  ;;  %7581 = vmatprep.subr.bf16.mxu1 %v10439_v13 }
 0x3df   :  { %6926 = vmatpush1.bf16.msra.mxu0 %v10434_v15  ;;  %7582 = vmatpush1.bf16.msra.mxu1 %v10437_v11 }
 0x3e0   :  { %6927 = vmatprep.subr.bf16.mxu0 %v10442_v17  ;;  %7583 = vmatprep.subr.bf16.mxu1 %v10445_v14 }
 0x3e3   :  { %6928 = vmatpush1.bf16.msra.mxu0 %v10440_v19  ;;  %7584 = vmatpush1.bf16.msra.mxu1 %v10443_v20 }
 0x3e4   :  { %6929 = vmatprep.subr.bf16.mxu0 %v10448_v16  ;;  %7585 = vmatprep.subr.bf16.mxu1 %v10451_v22 }
 0x3e7   :  { %6930 = vmatpush1.bf16.msra.mxu0 %v10446_v23  ;;  %7586 = vmatpush1.bf16.msra.mxu1 %v10449_v18 }
 0x3e8   :  { %6931 = vmatprep.subr.bf16.mxu0 %v10454_v25  ;;  %7587 = vmatprep.subr.bf16.mxu1 %v10457_v26 }
 0x3eb   :  { %6932 = vmatpush1.bf16.msra.mxu0 %v10452_v21  ;;  %7588 = vmatpush1.bf16.msra.mxu1 %v10455_v28 }
 0x3ec   :  { %6933 = vmatprep.subr.bf16.mxu0 %v10460_v29  ;;  %7589 = vmatprep.subr.bf16.mxu1 %v10463_v24 }
 0x3ef   :  { %6934 = vmatpush1.bf16.msra.mxu0 %v10458_v31  ;;  %7590 = vmatpush1.bf16.msra.mxu1 %v10461_v32 }
 0x3f0   :  { %6935 = vmatprep.subr.bf16.mxu0 %v10466_v33  ;;  %7591 = vmatprep.subr.bf16.mxu1 %v10469_v34 }
 0x3f3   :  { %6936 = vmatpush1.bf16.msra.mxu0 %v10464_v35  ;;  %7592 = vmatpush1.bf16.msra.mxu1 %v10467_v30 }
 0x3f4   :  { %6937 = vmatprep.subr.bf16.mxu0 %v10472_v37  ;;  %7593 = vmatprep.subr.bf16.mxu1 %v10475_v38 }
 0x3f7   :  { %6938 = vmatpush1.bf16.msra.mxu0 %v10470_v27  ;;  %7594 = vmatpush1.bf16.msra.mxu1 %v10473_v40 }
 0x3f8   :  { %6939 = vmatprep.subr.bf16.mxu0 %v10478_v41  ;;  %7595 = vmatprep.subr.bf16.mxu1 %v10481_v36 }
 0x3fb   :  { %6940 = vmatpush1.bf16.msra.mxu0 %v10476_v43  ;;  %7596 = vmatpush1.bf16.msra.mxu1 %v10479_v44 }
 0x3fc   :  { %6941 = vmatprep.subr.bf16.mxu0 %v10484_v39  ;;  %7597 = vmatprep.subr.bf16.mxu1 %v10487_v46 }
 0x3ff   :  { %6942 = vmatpush1.bf16.msra.mxu0 %v10482_v47  ;;  %7598 = vmatpush1.bf16.msra.mxu1 %v10485_v42 }
 0x402   :  { %6944 = vmatmul.mubr.bf16.vlgmr.msra.gmra.mrb[0].mxu0 %v7774_v49  ;;  %7600 = vmatmul.mubr.bf16.vlgmr.msra.gmra.mrb[0].mxu1 %v7774_v49 }
 0x4d5   :  { %v6945_v55 = vpop.f32.mrb[0].mxu0  ;;  %v7601_v56 = vpop.f32.mrb[0].mxu1 }
 0x4d6   :  { %7608 = vst [vmem:[%s13781_s2] sm:$0xff] %v6945_v55  ;;  %v7613_v58 = vrot.slane %v6945_v55, 4  ;;  %v7673_v59 = vmul.f32 %v6945_v55, %v6945_v55  ;;  %7610 = vst [vmem:[%s13781_s2 + $0x10] sm:$0xff] %v7601_v56  ;;  %v7625_v60 = vrot.slane %v7601_v56, 4  ;;  %v7675_v61 = vmul.f32 %v7601_v56, %v7601_v56  ;;  %v6947_v62 = vpop.f32.mrb[1].mxu0  ;;  %v7603_v63 = vpop.f32.mrb[1].mxu1 }
 0x4d7   :  { %7609 = vst [vmem:[%s13781_s2 + $0x8] sm:$0xff] %v6947_v62  ;;  %v7619_v0 = vrot.slane %v6947_v62, 4  ;;  %v7674_v1 = vmul.f32 %v6947_v62, %v6947_v62  ;;  %7611 = vst [vmem:[%s13781_s2 + $0x18] sm:$0xff] %v7603_v63  ;;  %v7631_v2 = vrot.slane %v7603_v63, 4  ;;  %v7676_v3 = vmul.f32 %v7603_v63, %v7603_v63  ;;  %v6949_v4 = vpop.f32.mrb[2].mxu0  ;;  %v7605_v5 = vpop.f32.mrb[2].mxu1 }
 0x4d8   :  { %v7614_v6 = vadd.f32 %v7613_v58, %v6945_v55  ;;  %v7677_v7 = vrot.slane %v7673_v59, 4  ;;  %v7626_v8 = vadd.f32 %v7625_v60, %v7601_v56  ;;  %v7689_v9 = vrot.slane %v7675_v61, 4  ;;  %v6950_v10 = vpop.f32.mrb[3].mxu0  ;;  %v7606_v12 = vpop.f32.mrb[3].mxu1 }
 0x4d9   :  { %v7620_v13 = vadd.f32 %v7619_v0, %v6947_v62  ;;  %v7683_v15 = vrot.slane %v7674_v1, 4  ;;  %v7632_v11 = vadd.f32 %v7631_v2, %v7603_v63  ;;  %v7695_v17 = vrot.slane %v7676_v3, 4  ;;  %v7612_v63 = vld [vmem:[%s13779_s3] sm:$0xf] }
 0x4da   :  { %v7615_v14 = vrot.slane %v7614_v6, 2  ;;  %v7678_v19 = vadd.f32 %v7677_v7, %v7673_v59  ;;  %v7627_v20 = vrot.slane %v7626_v8, 2  ;;  %v7690_v16 = vadd.f32 %v7689_v9, %v7675_v61  ;;  %v7672_v2 = vld [vmem:[%s13780_s4] sm:$0xf] }
 0x4db   :  { %v7621_v22 = vrot.slane %v7620_v13, 2  ;;  %v7684_v23 = vadd.f32 %v7683_v15, %v7674_v1  ;;  %v7633_v18 = vrot.slane %v7632_v11, 2  ;;  %v7696_v25 = vadd.f32 %v7695_v17, %v7676_v3 }
 0x4dc   :  { %v7616_v26 = vadd.f32 %v7615_v14, %v7614_v6  ;;  %v7679_v21 = vrot.slane %v7678_v19, 2  ;;  %v7628_v28 = vadd.f32 %v7627_v20, %v7626_v8  ;;  %v7691_v29 = vrot.slane %v7690_v16, 2 }
 0x4dd   :  { %v7622_v24 = vadd.f32 %v7621_v22, %v7620_v13  ;;  %v7685_v31 = vrot.slane %v7684_v23, 2  ;;  %v7634_v32 = vadd.f32 %v7633_v18, %v7632_v11  ;;  %v7697_v33 = vrot.slane %v7696_v25, 2 }
 0x4de   :  { %v7617_v34 = vrot.slane %v7616_v26, 1  ;;  %v7680_v35 = vadd.f32 %v7679_v21, %v7678_v19  ;;  %v7629_v30 = vrot.slane %v7628_v28, 1  ;;  %v7692_v37 = vadd.f32 %v7691_v29, %v7690_v16 }
 0x4df   :  { %v7623_v38 = vrot.slane %v7622_v24, 1  ;;  %v7686_v27 = vadd.f32 %v7685_v31, %v7684_v23  ;;  %v7635_v40 = vrot.slane %v7634_v32, 1  ;;  %v7698_v41 = vadd.f32 %v7697_v33, %v7696_v25 }
 0x4e0   :  { %v7618_v36 = vadd.f32 %v7617_v34, %v7616_v26  ;;  %v7681_v43 = vrot.slane %v7680_v35, 1  ;;  %v7630_v44 = vadd.f32 %v7629_v30, %v7628_v28  ;;  %v7693_v39 = vrot.slane %v7692_v37, 1 }
 0x4e1   :  { %v7624_v46 = vadd.f32 %v7623_v38, %v7622_v24  ;;  %v7687_v47 = vrot.slane %v7686_v27, 1  ;;  %v7636_v42 = vadd.f32 %v7635_v40, %v7634_v32  ;;  %v7699_v49 = vrot.slane %v7698_v41, 1 }
 0x4e2   :  { %v7682_v50 = vadd.f32 %v7681_v43, %v7680_v35  ;;  %v7694_v51 = vadd.f32 %v7693_v39, %v7692_v37 }
 0x4e3   :  { %v7641_v48 = vcombine.low %v7618_v36, %v7624_v46  ;;  %v7688_v52 = vadd.f32 %v7687_v47, %v7686_v27  ;;  %v7642_v53 = vcombine.low %v7630_v44, %v7636_v42  ;;  %v7700_v54 = vadd.f32 %v7699_v49, %v7698_v41 }
 0x4e5   :  { %v7649_v55 = vrot.slane %v7641_v48, %v13741_v57  ;;  %v7705_v56 = vcombine.low %v7682_v50, %v7688_v52  ;;  %v7656_v58 = vrot.slane %v7642_v53, %v13741_v57  ;;  %v7706_v59 = vcombine.low %v7694_v51, %v7700_v54 }
 0x4e7   :  { %v7713_v60 = vrot.slane %v7705_v56, %v13741_v57  ;;  %v7657_v61 = vcombine.low %v7649_v55, %v7656_v58  ;;  %v7720_v62 = vrot.slane %v7706_v59, %v13741_v57 }
 0x4e9   :  { %v7664_v0 = vrot.slane %v7657_v61, %v13741_v57  ;;  %v7721_v1 = vcombine.low %v7713_v60, %v7720_v62 }
 0x4eb   :  { %v7666_v3 = vadd.f32 %v7664_v0, %v7612_v63  ;;  %v7728_v4 = vrot.slane %v7721_v1, %v13741_v57 }
 0x4ed   :  { %7671 = vst.msk [vmem:[%s13779_s3] sm:$0xf] %vm13727_vm0, %v7666_v3  ;;  %v7730_v5 = vadd.f32 %v7728_v4, %v7672_v2 }
 0x4ef   :  { %7731 = vst.msk [vmem:[%s13780_s4] sm:$0xf] %vm13727_vm0, %v7730_v5 }

</bundles_post_ra>
